<compile_context>
chip_gen: v7x
topology: tpu7x:2x2x1
jax: 0.10.0
libtpu: 0.0.40
codegen_flags: <defaults>
</compile_context>

<pallas_src>
import functools

import jax
import jax.numpy as jnp
from jax import lax
from jax.experimental import pallas as pl
from jax.experimental.pallas import tpu as pltpu

MIN_STD = 1e-2  # TODO(synk): `min_std` undefined in source; OmniAnomaly uses a small epsilon.
_VMEM_LIMIT = 32 * 1024 * 1024   # within the scoped-VMEM budget on v5e / v6e / v7x


def _softplus(x):
    return jnp.maximum(x, 0.0) + jnp.log(1.0 + jnp.exp(-jnp.abs(x)))


def _full_spec(a):
    nd = a.ndim
    return pl.BlockSpec(a.shape, lambda *_, _nd=nd: (0,) * _nd)


# ----------------------------------------------------------------------------
# Shared GRU recurrence (traced inline inside both fused kernels).
#   gir/giz/gin_sc : (T*rows, H) per-gate hoisted input projections (scratch)
#   whh            : (H, 3H) value, bhh : (1, 3H) value  (PyTorch gate order)
#   h_sc           : (rows, H) hidden state scratch
#   seq_sc         : (T*rows, H) per-timestep hidden outputs scratch
# ----------------------------------------------------------------------------
def _gru_recurrence(gir_sc, giz_sc, gin_sc, whh, bhh, h_sc, seq_sc, *, T, rows, H):
    h_sc[...] = jnp.zeros_like(h_sc)
    # Static Python loop: fully unrolled at trace time, all slice starts static.
    for t in range(T):
        h = h_sc[...]
        gh = jnp.dot(h, whh, preferred_element_type=jnp.float32) + bhh   # (rows, 3H)
        r0 = t * rows
        r = jax.nn.sigmoid(gir_sc[pl.ds(r0, rows), :] + gh[:, :H])
        z = jax.nn.sigmoid(giz_sc[pl.ds(r0, rows), :] + gh[:, H:2 * H])
        n = jnp.tanh(gin_sc[pl.ds(r0, rows), :] + r * gh[:, 2 * H:])     # b_hn inside r*(.)
        h_new = (1.0 - z) * n + z * h
        h_sc[...] = h_new
        seq_sc[pl.ds(r0, rows), :] = h_new


# ----------------------------------------------------------------------------
# Fused encoder kernel:
#   input projection -> GRU -> dense MLP -> e-projection -> recurrent sampler
#   -> planar flow, packed (T, S, B, 4Z+1) output slab.
# ----------------------------------------------------------------------------
def _encoder_kernel(x_ref, noise_ref,
                    wih_ref, bih_ref, whh_ref, bhh_ref,
                    w1_ref, b1_ref, w2_ref, b2_ref,
                    wms_ref, bms_ref, wz_ref, fw_ref, fu_ref, fscal_ref,
                    out_ref,
                    gir_sc, giz_sc, gin_sc, h_sc, e_sc, ems_sc, zprev_sc,
                    *, T, B, S, Z, H):
    # ---- hoisted: GRU input projection (one big matmul), per-gate split ----
    gi = (jnp.dot(x_ref[...], wih_ref[...], preferred_element_type=jnp.float32)
          + bih_ref[...])                                   # (T*B, 3H)
    gir_sc[...] = gi[:, :H]
    giz_sc[...] = gi[:, H:2 * H]
    gin_sc[...] = gi[:, 2 * H:]

    # ---- serial encoder GRU over time (state resident in VMEM) ----
    _gru_recurrence(gir_sc, giz_sc, gin_sc, whh_ref[...], bhh_ref[...],
                    h_sc, e_sc, T=T, rows=B, H=H)

    # ---- hoisted: encoder dense MLP + fused [mean|std] e-projection ----
    h1 = jnp.maximum(
        jnp.dot(e_sc[...], w1_ref[...], preferred_element_type=jnp.float32)
        + b1_ref[...], 0.0)
    h2 = jnp.maximum(
        jnp.dot(h1, w2_ref[...], preferred_element_type=jnp.float32)
        + b2_ref[...], 0.0)
    ems_sc[...] = (
        jnp.dot(h2, wms_ref[...], preferred_element_type=jnp.float32)
        + bms_ref[...])                                     # (T*B, 2Z)

    # ---- serial q(z|x) sampler + planar flow ----
    zprev_sc[...] = jnp.zeros_like(zprev_sc)
    w_row = fw_ref[...]                 # (1, Z)  planar-flow w
    u_row = fu_ref[...]                 # (1, Z)  planar-flow u_hat
    wz = wz_ref[...]                    # (Z, 2Z) z-part of the [mean|std] heads
    wz_rows = [wz[k:k + 1, :] for k in range(Z)]            # hoisted row slices
    b_val = fscal_ref[0]                # SMEM scalars (scalar slot, no vld)
    wu_val = fscal_ref[1]

    for t in range(T):
        zprev = zprev_sc[...]                               # (S, B, Z)
        e_t = ems_sc[pl.ds(t * B, B), :]                    # (B, 2Z)
        # Tiny (Z -> 2Z) contraction on the VPU; e_t broadcasts over the S axis
        # (no per-step replication / concat, no MXU push on the serial path).
        zms = e_t[None, :, :] + zprev[:, :, 0:1] * wz_rows[0]
        for k in range(1, Z):
            zms = zms + zprev[:, :, k:k + 1] * wz_rows[k]   # (S, B, 2Z)
        mu = zms[..., :Z]
        std = _softplus(zms[..., Z:])                       # q std: plain softplus (matches torch)
        zt = mu + std * noise_ref[t]                        # (S, B, Z)

        # planar normalizing flow: f(z) = z + u_hat * tanh(w.z + b)
        wzt = jnp.sum(zt * w_row, axis=-1, keepdims=True) + b_val
        tw = jnp.tanh(wzt)
        zf = zt + u_row * tw
        det = 1.0 + (1.0 - tw * tw) * wu_val
        ld = jnp.log(jnp.abs(det) + 1e-8)                   # (S, B, 1)

        zprev_sc[...] = zt
        # single packed lane-contiguous store per step: [z | mu | std | zf | ld]
        out_ref[t] = jnp.concatenate([zt, mu, std, zf, ld], axis=-1)


def encoder_sample_flow(x2d, noise, p, u_hat, flow_scal, *, T, B, S, Z, H):
    C = 4 * Z + 1
    args = (x2d, noise,
            p["enc_wih"], p["enc_bih"], p["enc_whh"], p["enc_bhh"],
            p["enc_w1"], p["enc_b1"], p["enc_w2"], p["enc_b2"],
            p["enc_ms_w"], p["enc_ms_b"], p["enc_ms_wz"],
            p["flow_w"], u_hat)
    in_specs = [_full_spec(a) for a in args] + [
        pl.BlockSpec(memory_space=pltpu.MemorySpace.SMEM)]
    kernel = functools.partial(_encoder_kernel, T=T, B=B, S=S, Z=Z, H=H)
    return pl.pallas_call(
        kernel,
        out_shape=jax.ShapeDtypeStruct((T, S, B, C), jnp.float32),
        grid=(1,),
        in_specs=in_specs,
        out_specs=pl.BlockSpec((T, S, B, C), lambda i: (0, 0, 0, 0)),
        scratch_shapes=[
            pltpu.VMEM((T * B, H), jnp.float32),       # gi_r
            pltpu.VMEM((T * B, H), jnp.float32),       # gi_z
            pltpu.VMEM((T * B, H), jnp.float32),       # gi_n
            pltpu.VMEM((B, H), jnp.float32),           # GRU hidden state
            pltpu.VMEM((T * B, H), jnp.float32),       # encoder GRU outputs e
            pltpu.VMEM((T * B, 2 * Z), jnp.float32),   # hoisted [mean|std] e-projection
            pltpu.VMEM((S, B, Z), jnp.float32),        # z_{t-1} state
        ],
        compiler_params=pltpu.CompilerParams(
            dimension_semantics=("arbitrary",), vmem_limit_bytes=_VMEM_LIMIT),
    )(*args, flow_scal)


# ----------------------------------------------------------------------------
# Fused decoder kernel:
#   input projection -> GRU -> dense MLP -> mean/std heads with iota-masked
#   softplus + MIN_STD clamp on the std lanes, single (rows, 2D) output slab.
# ----------------------------------------------------------------------------
def _decoder_kernel(z_ref, wih_ref, bih_ref, whh_ref, bhh_ref,
                    w1_ref, b1_ref, w2_ref, b2_ref, wh_ref, bh_ref,
                    out_ref,
                    gir_sc, giz_sc, gin_sc, h_sc, d_sc,
                    *, T, rows, H, D):
    gi = (jnp.dot(z_ref[...], wih_ref[...], preferred_element_type=jnp.float32)
          + bih_ref[...])                                   # (T*rows, 3H)
    gir_sc[...] = gi[:, :H]
    giz_sc[...] = gi[:, H:2 * H]
    gin_sc[...] = gi[:, 2 * H:]

    _gru_recurrence(gir_sc, giz_sc, gin_sc, whh_ref[...], bhh_ref[...],
                    h_sc, d_sc, T=T, rows=rows, H=H)

    h1 = jnp.maximum(
        jnp.dot(d_sc[...], w1_ref[...], preferred_element_type=jnp.float32)
        + b1_ref[...], 0.0)
    h2 = jnp.maximum(
        jnp.dot(h1, w2_ref[...], preferred_element_type=jnp.float32)
        + b2_ref[...], 0.0)
    o = jnp.dot(h2, wh_ref[...], preferred_element_type=jnp.float32) + bh_ref[...]
    # softplus + clamp(min=MIN_STD) applied only to the std lanes via masked
    # select: no slice+concat relayout, one lane-dense store.
    col = lax.broadcasted_iota(jnp.int32, o.shape, 1)
    out_ref[...] = jnp.where(col >= D, jnp.maximum(_softplus(o), MIN_STD), o)


def decoder_heads(z2d, p, *, T, rows, H, D):
    N = T * rows
    args = (z2d, p["dec_wih"], p["dec_bih"], p["dec_whh"], p["dec_bhh"],
            p["dec_w1"], p["dec_b1"], p["dec_w2"], p["dec_b2"],
            p["dec_head_w"], p["dec_head_b"])
    kernel = functools.partial(_decoder_kernel, T=T, rows=rows, H=H, D=D)
    return pl.pallas_call(
        kernel,
        out_shape=jax.ShapeDtypeStruct((N, 2 * D), jnp.float32),
        grid=(1,),
        in_specs=[_full_spec(a) for a in args],
        out_specs=pl.BlockSpec((N, 2 * D), lambda i: (0, 0)),
        scratch_shapes=[
            pltpu.VMEM((N, H), jnp.float32),           # gi_r
            pltpu.VMEM((N, H), jnp.float32),           # gi_z
            pltpu.VMEM((N, H), jnp.float32),           # gi_n
            pltpu.VMEM((rows, H), jnp.float32),        # GRU hidden state
            pltpu.VMEM((N, H), jnp.float32),           # decoder GRU outputs
        ],
        compiler_params=pltpu.CompilerParams(
            dimension_semantics=("arbitrary",), vmem_limit_bytes=_VMEM_LIMIT),
    )(*args)


# ----------------------------------------------------------------------------
# Parameters (deterministic synthetic init, fused-gate / fused-head layouts)
# ----------------------------------------------------------------------------
def init_params(key, input_dim, z_dim, model_dim):
    D, Z, H = input_dim, z_dim, model_dim
    keys = iter(jax.random.split(key, 32))

    def u(shape, fan_in):
        b = 1.0 / (fan_in ** 0.5)
        return jax.random.uniform(next(keys), shape, jnp.float32, -b, b)

    p = {}
    # Encoder GRU(input_dim -> H); PyTorch GRU init scale uses k = 1/hidden_size.
    p["enc_wih"], p["enc_bih"] = u((D, 3 * H), H), u((1, 3 * H), H)
    p["enc_whh"], p["enc_bhh"] = u((H, 3 * H), H), u((1, 3 * H), H)
    # Encoder dense: Linear(H,H)+ReLU, Linear(H,H)+ReLU
    p["enc_w1"], p["enc_b1"] = u((H, H), H), u((1, H), H)
    p["enc_w2"], p["enc_b2"] = u((H, H), H), u((1, H), H)
    # Encoder mean/std heads on concat[z_prev, e], fused [mean|std] columns.
    p["enc_ms_w"] = u((H, 2 * Z), H + Z)      # e-part  [Wme | Wse]
    p["enc_ms_b"] = u((1, 2 * Z), H + Z)      #         [bm  | bs ]
    p["enc_ms_wz"] = u((Z, 2 * Z), H + Z)     # z-part  [Wmz | Wsz]
    # Planar flow params (shape (z_dim,))
    p["flow_w"] = jax.random.normal(next(keys), (1, Z), jnp.float32) * 0.1
    p["flow_u"] = jax.random.normal(next(keys), (1, Z), jnp.float32) * 0.1
    p["flow_b"] = jnp.zeros((1, 1), jnp.float32)
    # Decoder GRU(z_dim -> H)
    p["dec_wih"], p["dec_bih"] = u((Z, 3 * H), H), u((1, 3 * H), H)
    p["dec_whh"], p["dec_bhh"] = u((H, 3 * H), H), u((1, 3 * H), H)
    # Decoder dense
    p["dec_w1"], p["dec_b1"] = u((H, H), H), u((1, H), H)
    p["dec_w2"], p["dec_b2"] = u((H, H), H), u((1, H), H)
    # Decoder mean/std heads, fused [mean|std] -> (H, 2D)
    p["dec_head_w"], p["dec_head_b"] = u((H, 2 * D), H), u((1, 2 * D), H)
    return p


# ----------------------------------------------------------------------------
# Full VAE_GRU.forward (two fused Pallas calls)
# ----------------------------------------------------------------------------
def vae_gru_forward(x, noise, p):
    B, T, D = x.shape                        # x is batch_first (B, T, input_dim)
    S = noise.shape[1]
    Z = noise.shape[-1]
    H = p["enc_whh"].shape[0]
    SB = S * B

    # Time-major flattened input rows (single tiny layout copy; everything else
    # — input projections, GRU, MLPs, sampler, flow, heads — is fused in-kernel).
    x2d = jnp.transpose(x, (1, 0, 2)).reshape(T * B, D)

    # Planar-flow reparameterisation (scalar math, plain XLA).
    w, u_ = p["flow_w"], p["flow_u"]
    wu = jnp.sum(w * u_)
    u_hat = u_ + ((-1.0 + jax.nn.softplus(wu)) - wu) * w / jnp.sum(w * w)
    flow_scal = jnp.stack(
        [p["flow_b"].reshape(()), jnp.sum(w * u_hat)]).astype(jnp.float32)  # SMEM scalars

    # ---------------- Encoder + recurrent sampler + planar flow ----------------
    packed = encoder_sample_flow(x2d, noise, p, u_hat, flow_scal,
                                 T=T, B=B, S=S, Z=Z, H=H)    # (T, S, B, 4Z+1)

    z_sampled = jnp.transpose(packed[..., 0 * Z:1 * Z], (1, 2, 0, 3))    # (S,B,T,Z)
    q_mean = packed[..., 1 * Z:2 * Z]                                    # (T,S,B,Z)
    q_std = packed[..., 2 * Z:3 * Z]                                     # (T,S,B,Z)
    zf_tm = packed[..., 3 * Z:4 * Z]                                     # (T,S,B,Z) time-major
    z_flowed = jnp.transpose(zf_tm, (1, 2, 0, 3))                        # (S,B,T,Z)
    flow_log_det = jnp.transpose(packed[..., 4 * Z], (1, 2, 0))          # (S,B,T)

    # ---------------- Decoder ----------------
    # zf_tm is already time-major: exactly the decoder GRU input layout.
    heads = decoder_heads(zf_tm.reshape(T * SB, Z), p, T=T, rows=SB, H=H, D=D)
    heads = heads.reshape(T, S, B, 2 * D)
    x_mean_reshape = jnp.transpose(heads[..., :D], (1, 2, 0, 3))         # (S,B,T,D)
    x_std_reshape = jnp.transpose(heads[..., D:], (1, 2, 0, 3))          # clamped in-kernel

    q_zx = (q_mean, q_std)                   # parameters of RecurrentDistribution q(z|x)
    p_xz = (x_mean_reshape, x_std_reshape)   # parameters of Normal p(x|z)
    # TODO(synk): torch.distributions objects (q_zx, p_xz) are returned as (mean, std).
    return q_zx, p_xz, z_sampled, z_flowed, x_mean_reshape, x_std_reshape, flow_log_det


if __name__ == "__main__":
    # Shapes consistent with VAE_GRU(input_dim=4, n_sample=4, window_size=8,
    #                                z_dim=3, model_dim=32)
    B, T, D = 2, 8, 4
    Z, H, S = 3, 32, 4

    key = jax.random.PRNGKey(0)
    kx, kn, kp = jax.random.split(key, 3)
    x = jax.random.normal(kx, (B, T, D), jnp.float32)
    noise = jax.random.normal(kn, (T, S, B, Z), jnp.float32)   # eps for q(z|x).sample
    params = init_params(kp, D, Z, H)

    fwd = jax.jit(vae_gru_forward)
    outs = fwd(x, noise, params)
    jax.block_until_ready(outs)

    (q_mean, q_std), (_, _), z_sampled, z_flowed, x_mean_r, x_std_r, fld = outs
    assert q_mean.shape == (T, S, B, Z) and q_std.shape == (T, S, B, Z)
    assert z_sampled.shape == (S, B, T, Z)
    assert z_flowed.shape == (S, B, T, Z)
    assert x_mean_r.shape == (S, B, T, D)
    assert x_std_r.shape == (S, B, T, D)
    assert fld.shape == (S, B, T)
    print("KERNEL_OK")
</pallas_src>

<mosaic_0001>
module attributes {stable_mosaic.version = 11 : i64} {
  func.func @_encoder_kernel(%arg0: i32, %arg1: memref<16x4xf32, #tpu.memory_space<vmem>>, %arg2: memref<8x4x2x3xf32, #tpu.memory_space<vmem>>, %arg3: memref<4x96xf32, #tpu.memory_space<vmem>>, %arg4: memref<1x96xf32, #tpu.memory_space<vmem>>, %arg5: memref<32x96xf32, #tpu.memory_space<vmem>>, %arg6: memref<1x96xf32, #tpu.memory_space<vmem>>, %arg7: memref<32x32xf32, #tpu.memory_space<vmem>>, %arg8: memref<1x32xf32, #tpu.memory_space<vmem>>, %arg9: memref<32x32xf32, #tpu.memory_space<vmem>>, %arg10: memref<1x32xf32, #tpu.memory_space<vmem>>, %arg11: memref<32x6xf32, #tpu.memory_space<vmem>>, %arg12: memref<1x6xf32, #tpu.memory_space<vmem>>, %arg13: memref<3x6xf32, #tpu.memory_space<vmem>>, %arg14: memref<1x3xf32, #tpu.memory_space<vmem>>, %arg15: memref<1x3xf32, #tpu.memory_space<vmem>>, %arg16: memref<2xf32, #tpu.memory_space<smem>>, %arg17: memref<8x4x2x13xf32, #tpu.memory_space<vmem>>, %arg18: memref<16x32xf32, #tpu.memory_space<vmem>>, %arg19: memref<16x32xf32, #tpu.memory_space<vmem>>, %arg20: memref<16x32xf32, #tpu.memory_space<vmem>>, %arg21: memref<2x32xf32, #tpu.memory_space<vmem>>, %arg22: memref<16x32xf32, #tpu.memory_space<vmem>>, %arg23: memref<16x6xf32, #tpu.memory_space<vmem>>, %arg24: memref<4x2x3xf32, #tpu.memory_space<vmem>>) attributes {dimension_semantics = [#tpu.dimension_semantics<arbitrary>], iteration_bounds = array<i64: 1>, scalar_prefetch = 0 : i64, scratch_operands = 7 : i64, tpu.core_type = #tpu.core_type<tc>, window_params = [{pipeline_mode = #tpu.pipeline_mode<synchronous>, transform_indices = @transform_0, window_bounds = array<i64: 16, 4>}, {pipeline_mode = #tpu.pipeline_mode<synchronous>, transform_indices = @transform_1, window_bounds = array<i64: 8, 4, 2, 3>}, {pipeline_mode = #tpu.pipeline_mode<synchronous>, transform_indices = @transform_2, window_bounds = array<i64: 4, 96>}, {pipeline_mode = #tpu.pipeline_mode<synchronous>, transform_indices = @transform_3, window_bounds = array<i64: 1, 96>}, {pipeline_mode = #tpu.pipeline_mode<synchronous>, transform_indices = @transform_4, window_bounds = array<i64: 32, 96>}, {pipeline_mode = #tpu.pipeline_mode<synchronous>, transform_indices = @transform_5, window_bounds = array<i64: 1, 96>}, {pipeline_mode = #tpu.pipeline_mode<synchronous>, transform_indices = @transform_6, window_bounds = array<i64: 32, 32>}, {pipeline_mode = #tpu.pipeline_mode<synchronous>, transform_indices = @transform_7, window_bounds = array<i64: 1, 32>}, {pipeline_mode = #tpu.pipeline_mode<synchronous>, transform_indices = @transform_8, window_bounds = array<i64: 32, 32>}, {pipeline_mode = #tpu.pipeline_mode<synchronous>, transform_indices = @transform_9, window_bounds = array<i64: 1, 32>}, {pipeline_mode = #tpu.pipeline_mode<synchronous>, transform_indices = @transform_10, window_bounds = array<i64: 32, 6>}, {pipeline_mode = #tpu.pipeline_mode<synchronous>, transform_indices = @transform_11, window_bounds = array<i64: 1, 6>}, {pipeline_mode = #tpu.pipeline_mode<synchronous>, transform_indices = @transform_12, window_bounds = array<i64: 3, 6>}, {pipeline_mode = #tpu.pipeline_mode<synchronous>, transform_indices = @transform_13, window_bounds = array<i64: 1, 3>}, {pipeline_mode = #tpu.pipeline_mode<synchronous>, transform_indices = @transform_14, window_bounds = array<i64: 1, 3>}, {transform_indices = @transform_15, window_bounds = array<i64: 2>}, {pipeline_mode = #tpu.pipeline_mode<synchronous>, transform_indices = @transform_16, window_bounds = array<i64: 8, 4, 2, 13>}]} {
    %c0 = arith.constant 0 : index
    %c0_0 = arith.constant 0 : index
    %0 = vector.load %arg1[%c0, %c0_0] : memref<16x4xf32, #tpu.memory_space<vmem>>, vector<16x4xf32>
    %c0_1 = arith.constant 0 : index
    %c0_2 = arith.constant 0 : index
    %1 = vector.load %arg3[%c0_1, %c0_2] : memref<4x96xf32, #tpu.memory_space<vmem>>, vector<4x96xf32>
    %cst = arith.constant dense<0.000000e+00> : vector<16x96xf32>
    %2 = tpu.matmul %0, %1, %cst {dimension_numbers = #tpu.dot_dimension_numbers<[1], [0], [0], [1], [0, 0, 1, 1], [], []>} : vector<16x4xf32>, vector<4x96xf32>, vector<16x96xf32> -> vector<16x96xf32>
    %c0_3 = arith.constant 0 : index
    %c0_4 = arith.constant 0 : index
    %3 = vector.load %arg4[%c0_3, %c0_4] : memref<1x96xf32, #tpu.memory_space<vmem>>, vector<1x96xf32>
    %4 = vector.broadcast %3 : vector<1x96xf32> to vector<16x96xf32>
    %5 = arith.addf %2, %4 : vector<16x96xf32>
    %6 = vector.extract_strided_slice %5 {offsets = [0, 0], sizes = [16, 32], strides = [1, 1]} : vector<16x96xf32> to vector<16x32xf32>
    %c0_5 = arith.constant 0 : index
    %c0_6 = arith.constant 0 : index
    %7 = vector.load %arg18[%c0_5, %c0_6] : memref<16x32xf32, #tpu.memory_space<vmem>>, vector<16x32xf32>
    tpu.vector_store %arg18[%c0_5, %c0_6], %6 {strides = array<i32>} : memref<16x32xf32, #tpu.memory_space<vmem>>, vector<16x32xf32>,
    %8 = vector.extract_strided_slice %5 {offsets = [0, 32], sizes = [16, 32], strides = [1, 1]} : vector<16x96xf32> to vector<16x32xf32>
    %c0_7 = arith.constant 0 : index
    %c0_8 = arith.constant 0 : index
    %9 = vector.load %arg19[%c0_7, %c0_8] : memref<16x32xf32, #tpu.memory_space<vmem>>, vector<16x32xf32>
    tpu.vector_store %arg19[%c0_7, %c0_8], %8 {strides = array<i32>} : memref<16x32xf32, #tpu.memory_space<vmem>>, vector<16x32xf32>,
    %10 = vector.extract_strided_slice %5 {offsets = [0, 64], sizes = [16, 32], strides = [1, 1]} : vector<16x96xf32> to vector<16x32xf32>
    %c0_9 = arith.constant 0 : index
    %c0_10 = arith.constant 0 : index
    %11 = vector.load %arg20[%c0_9, %c0_10] : memref<16x32xf32, #tpu.memory_space<vmem>>, vector<16x32xf32>
    tpu.vector_store %arg20[%c0_9, %c0_10], %10 {strides = array<i32>} : memref<16x32xf32, #tpu.memory_space<vmem>>, vector<16x32xf32>,
    %c0_11 = arith.constant 0 : index
    %c0_12 = arith.constant 0 : index
    %12 = vector.load %arg5[%c0_11, %c0_12] : memref<32x96xf32, #tpu.memory_space<vmem>>, vector<32x96xf32>
    %c0_13 = arith.constant 0 : index
    %c0_14 = arith.constant 0 : index
    %13 = vector.load %arg6[%c0_13, %c0_14] : memref<1x96xf32, #tpu.memory_space<vmem>>, vector<1x96xf32>
    %cst_15 = arith.constant 0.000000e+00 : f32
    %14 = vector.broadcast %cst_15 : f32 to vector<2x32xf32>
    %c0_16 = arith.constant 0 : index
    %c0_17 = arith.constant 0 : index
    %15 = vector.load %arg21[%c0_16, %c0_17] : memref<2x32xf32, #tpu.memory_space<vmem>>, vector<2x32xf32>
    tpu.vector_store %arg21[%c0_16, %c0_17], %14 {strides = array<i32>} : memref<2x32xf32, #tpu.memory_space<vmem>>, vector<2x32xf32>,
    %c0_18 = arith.constant 0 : index
    %c0_19 = arith.constant 0 : index
    %16 = vector.load %arg21[%c0_18, %c0_19] : memref<2x32xf32, #tpu.memory_space<vmem>>, vector<2x32xf32>
    %cst_20 = arith.constant dense<0.000000e+00> : vector<2x96xf32>
    %17 = tpu.matmul %16, %12, %cst_20 {dimension_numbers = #tpu.dot_dimension_numbers<[1], [0], [0], [1], [0, 0, 1, 1], [], []>} : vector<2x32xf32>, vector<32x96xf32>, vector<2x96xf32> -> vector<2x96xf32>
    %18 = vector.broadcast %13 : vector<1x96xf32> to vector<2x96xf32>
    %19 = arith.addf %17, %18 : vector<2x96xf32>
    %c0_21 = arith.constant 0 : index
    %c0_22 = arith.constant 0 : index
    %20 = vector.load %arg18[%c0_21, %c0_22] : memref<16x32xf32, #tpu.memory_space<vmem>>, vector<2x32xf32>
    %21 = vector.extract_strided_slice %19 {offsets = [0, 0], sizes = [2, 32], strides = [1, 1]} : vector<2x96xf32> to vector<2x32xf32>
    %22 = arith.addf %20, %21 : vector<2x32xf32>
    %23 = arith.negf %22 : vector<2x32xf32>
    %24 = math.exp %23 : vector<2x32xf32>
    %cst_23 = arith.constant 1.000000e+00 : f32
    %25 = vector.broadcast %cst_23 : f32 to vector<2x32xf32>
    %26 = arith.addf %25, %24 : vector<2x32xf32>
    %27 = arith.divf %25, %26 : vector<2x32xf32>
    %c0_24 = arith.constant 0 : index
    %c0_25 = arith.constant 0 : index
    %28 = vector.load %arg19[%c0_24, %c0_25] : memref<16x32xf32, #tpu.memory_space<vmem>>, vector<2x32xf32>
    %29 = vector.extract_strided_slice %19 {offsets = [0, 32], sizes = [2, 32], strides = [1, 1]} : vector<2x96xf32> to vector<2x32xf32>
    %30 = arith.addf %28, %29 : vector<2x32xf32>
    %31 = arith.negf %30 : vector<2x32xf32>
    %32 = math.exp %31 : vector<2x32xf32>
    %cst_26 = arith.constant 1.000000e+00 : f32
    %33 = vector.broadcast %cst_26 : f32 to vector<2x32xf32>
    %34 = arith.addf %33, %32 : vector<2x32xf32>
    %35 = arith.divf %33, %34 : vector<2x32xf32>
    %c0_27 = arith.constant 0 : index
    %c0_28 = arith.constant 0 : index
    %36 = vector.load %arg20[%c0_27, %c0_28] : memref<16x32xf32, #tpu.memory_space<vmem>>, vector<2x32xf32>
    %37 = vector.extract_strided_slice %19 {offsets = [0, 64], sizes = [2, 32], strides = [1, 1]} : vector<2x96xf32> to vector<2x32xf32>
    %38 = arith.mulf %27, %37 : vector<2x32xf32>
    %39 = arith.addf %36, %38 : vector<2x32xf32>
    %40 = math.tanh %39 : vector<2x32xf32>
    %cst_29 = arith.constant 1.000000e+00 : f32
    %41 = vector.broadcast %cst_29 : f32 to vector<2x32xf32>
    %42 = arith.subf %41, %35 : vector<2x32xf32>
    %43 = arith.mulf %42, %40 : vector<2x32xf32>
    %44 = arith.mulf %35, %16 : vector<2x32xf32>
    %45 = arith.addf %43, %44 : vector<2x32xf32>
    %c0_30 = arith.constant 0 : index
    %c0_31 = arith.constant 0 : index
    %46 = vector.load %arg21[%c0_30, %c0_31] : memref<2x32xf32, #tpu.memory_space<vmem>>, vector<2x32xf32>
    tpu.vector_store %arg21[%c0_30, %c0_31], %45 {strides = array<i32>} : memref<2x32xf32, #tpu.memory_space<vmem>>, vector<2x32xf32>,
    %c0_32 = arith.constant 0 : index
    %c0_33 = arith.constant 0 : index
    %47 = vector.load %arg22[%c0_32, %c0_33] : memref<16x32xf32, #tpu.memory_space<vmem>>, vector<2x32xf32>
    tpu.vector_store %arg22[%c0_32, %c0_33], %45 {strides = array<i32>} : memref<16x32xf32, #tpu.memory_space<vmem>>, vector<2x32xf32>,
    %c0_34 = arith.constant 0 : index
    %c0_35 = arith.constant 0 : index
    %48 = vector.load %arg21[%c0_34, %c0_35] : memref<2x32xf32, #tpu.memory_space<vmem>>, vector<2x32xf32>
    %cst_36 = arith.constant dense<0.000000e+00> : vector<2x96xf32>
    %49 = tpu.matmul %48, %12, %cst_36 {dimension_numbers = #tpu.dot_dimension_numbers<[1], [0], [0], [1], [0, 0, 1, 1], [], []>} : vector<2x32xf32>, vector<32x96xf32>, vector<2x96xf32> -> vector<2x96xf32>
    %50 = vector.broadcast %13 : vector<1x96xf32> to vector<2x96xf32>
    %51 = arith.addf %49, %50 : vector<2x96xf32>
    %c2 = arith.constant 2 : index
    %c0_37 = arith.constant 0 : index
    %52 = vector.load %arg18[%c2, %c0_37] : memref<16x32xf32, #tpu.memory_space<vmem>>, vector<2x32xf32>
    %53 = vector.extract_strided_slice %51 {offsets = [0, 0], sizes = [2, 32], strides = [1, 1]} : vector<2x96xf32> to vector<2x32xf32>
    %54 = arith.addf %52, %53 : vector<2x32xf32>
    %55 = arith.negf %54 : vector<2x32xf32>
    %56 = math.exp %55 : vector<2x32xf32>
    %cst_38 = arith.constant 1.000000e+00 : f32
    %57 = vector.broadcast %cst_38 : f32 to vector<2x32xf32>
    %58 = arith.addf %57, %56 : vector<2x32xf32>
    %59 = arith.divf %57, %58 : vector<2x32xf32>
    %c2_39 = arith.constant 2 : index
    %c0_40 = arith.constant 0 : index
    %60 = vector.load %arg19[%c2_39, %c0_40] : memref<16x32xf32, #tpu.memory_space<vmem>>, vector<2x32xf32>
    %61 = vector.extract_strided_slice %51 {offsets = [0, 32], sizes = [2, 32], strides = [1, 1]} : vector<2x96xf32> to vector<2x32xf32>
    %62 = arith.addf %60, %61 : vector<2x32xf32>
    %63 = arith.negf %62 : vector<2x32xf32>
    %64 = math.exp %63 : vector<2x32xf32>
    %cst_41 = arith.constant 1.000000e+00 : f32
    %65 = vector.broadcast %cst_41 : f32 to vector<2x32xf32>
    %66 = arith.addf %65, %64 : vector<2x32xf32>
    %67 = arith.divf %65, %66 : vector<2x32xf32>
    %c2_42 = arith.constant 2 : index
    %c0_43 = arith.constant 0 : index
    %68 = vector.load %arg20[%c2_42, %c0_43] : memref<16x32xf32, #tpu.memory_space<vmem>>, vector<2x32xf32>
    %69 = vector.extract_strided_slice %51 {offsets = [0, 64], sizes = [2, 32], strides = [1, 1]} : vector<2x96xf32> to vector<2x32xf32>
    %70 = arith.mulf %59, %69 : vector<2x32xf32>
    %71 = arith.addf %68, %70 : vector<2x32xf32>
    %72 = math.tanh %71 : vector<2x32xf32>
    %cst_44 = arith.constant 1.000000e+00 : f32
    %73 = vector.broadcast %cst_44 : f32 to vector<2x32xf32>
    %74 = arith.subf %73, %67 : vector<2x32xf32>
    %75 = arith.mulf %74, %72 : vector<2x32xf32>
    %76 = arith.mulf %67, %48 : vector<2x32xf32>
    %77 = arith.addf %75, %76 : vector<2x32xf32>
    %c0_45 = arith.constant 0 : index
    %c0_46 = arith.constant 0 : index
    %78 = vector.load %arg21[%c0_45, %c0_46] : memref<2x32xf32, #tpu.memory_space<vmem>>, vector<2x32xf32>
    tpu.vector_store %arg21[%c0_45, %c0_46], %77 {strides = array<i32>} : memref<2x32xf32, #tpu.memory_space<vmem>>, vector<2x32xf32>,
    %c2_47 = arith.constant 2 : index
    %c0_48 = arith.constant 0 : index
    %79 = vector.load %arg22[%c2_47, %c0_48] : memref<16x32xf32, #tpu.memory_space<vmem>>, vector<2x32xf32>
    tpu.vector_store %arg22[%c2_47, %c0_48], %77 {strides = array<i32>} : memref<16x32xf32, #tpu.memory_space<vmem>>, vector<2x32xf32>,
    %c0_49 = arith.constant 0 : index
    %c0_50 = arith.constant 0 : index
    %80 = vector.load %arg21[%c0_49, %c0_50] : memref<2x32xf32, #tpu.memory_space<vmem>>, vector<2x32xf32>
    %cst_51 = arith.constant dense<0.000000e+00> : vector<2x96xf32>
    %81 = tpu.matmul %80, %12, %cst_51 {dimension_numbers = #tpu.dot_dimension_numbers<[1], [0], [0], [1], [0, 0, 1, 1], [], []>} : vector<2x32xf32>, vector<32x96xf32>, vector<2x96xf32> -> vector<2x96xf32>
    %82 = vector.broadcast %13 : vector<1x96xf32> to vector<2x96xf32>
    %83 = arith.addf %81, %82 : vector<2x96xf32>
    %c4 = arith.constant 4 : index
    %c0_52 = arith.constant 0 : index
    %84 = vector.load %arg18[%c4, %c0_52] : memref<16x32xf32, #tpu.memory_space<vmem>>, vector<2x32xf32>
    %85 = vector.extract_strided_slice %83 {offsets = [0, 0], sizes = [2, 32], strides = [1, 1]} : vector<2x96xf32> to vector<2x32xf32>
    %86 = arith.addf %84, %85 : vector<2x32xf32>
    %87 = arith.negf %86 : vector<2x32xf32>
    %88 = math.exp %87 : vector<2x32xf32>
    %cst_53 = arith.constant 1.000000e+00 : f32
    %89 = vector.broadcast %cst_53 : f32 to vector<2x32xf32>
    %90 = arith.addf %89, %88 : vector<2x32xf32>
    %91 = arith.divf %89, %90 : vector<2x32xf32>
    %c4_54 = arith.constant 4 : index
    %c0_55 = arith.constant 0 : index
    %92 = vector.load %arg19[%c4_54, %c0_55] : memref<16x32xf32, #tpu.memory_space<vmem>>, vector<2x32xf32>
    %93 = vector.extract_strided_slice %83 {offsets = [0, 32], sizes = [2, 32], strides = [1, 1]} : vector<2x96xf32> to vector<2x32xf32>
    %94 = arith.addf %92, %93 : vector<2x32xf32>
    %95 = arith.negf %94 : vector<2x32xf32>
    %96 = math.exp %95 : vector<2x32xf32>
    %cst_56 = arith.constant 1.000000e+00 : f32
    %97 = vector.broadcast %cst_56 : f32 to vector<2x32xf32>
    %98 = arith.addf %97, %96 : vector<2x32xf32>
    %99 = arith.divf %97, %98 : vector<2x32xf32>
    %c4_57 = arith.constant 4 : index
    %c0_58 = arith.constant 0 : index
    %100 = vector.load %arg20[%c4_57, %c0_58] : memref<16x32xf32, #tpu.memory_space<vmem>>, vector<2x32xf32>
    %101 = vector.extract_strided_slice %83 {offsets = [0, 64], sizes = [2, 32], strides = [1, 1]} : vector<2x96xf32> to vector<2x32xf32>
    %102 = arith.mulf %91, %101 : vector<2x32xf32>
    %103 = arith.addf %100, %102 : vector<2x32xf32>
    %104 = math.tanh %103 : vector<2x32xf32>
    %cst_59 = arith.constant 1.000000e+00 : f32
    %105 = vector.broadcast %cst_59 : f32 to vector<2x32xf32>
    %106 = arith.subf %105, %99 : vector<2x32xf32>
    %107 = arith.mulf %106, %104 : vector<2x32xf32>
    %108 = arith.mulf %99, %80 : vector<2x32xf32>
    %109 = arith.addf %107, %108 : vector<2x32xf32>
    %c0_60 = arith.constant 0 : index
    %c0_61 = arith.constant 0 : index
    %110 = vector.load %arg21[%c0_60, %c0_61] : memref<2x32xf32, #tpu.memory_space<vmem>>, vector<2x32xf32>
    tpu.vector_store %arg21[%c0_60, %c0_61], %109 {strides = array<i32>} : memref<2x32xf32, #tpu.memory_space<vmem>>, vector<2x32xf32>,
    %c4_62 = arith.constant 4 : index
    %c0_63 = arith.constant 0 : index
    %111 = vector.load %arg22[%c4_62, %c0_63] : memref<16x32xf32, #tpu.memory_space<vmem>>, vector<2x32xf32>
    tpu.vector_store %arg22[%c4_62, %c0_63], %109 {strides = array<i32>} : memref<16x32xf32, #tpu.memory_space<vmem>>, vector<2x32xf32>,
    %c0_64 = arith.constant 0 : index
    %c0_65 = arith.constant 0 : index
    %112 = vector.load %arg21[%c0_64, %c0_65] : memref<2x32xf32, #tpu.memory_space<vmem>>, vector<2x32xf32>
    %cst_66 = arith.constant dense<0.000000e+00> : vector<2x96xf32>
    %113 = tpu.matmul %112, %12, %cst_66 {dimension_numbers = #tpu.dot_dimension_numbers<[1], [0], [0], [1], [0, 0, 1, 1], [], []>} : vector<2x32xf32>, vector<32x96xf32>, vector<2x96xf32> -> vector<2x96xf32>
    %114 = vector.broadcast %13 : vector<1x96xf32> to vector<2x96xf32>
    %115 = arith.addf %113, %114 : vector<2x96xf32>
    %c6 = arith.constant 6 : index
    %c0_67 = arith.constant 0 : index
    %116 = vector.load %arg18[%c6, %c0_67] : memref<16x32xf32, #tpu.memory_space<vmem>>, vector<2x32xf32>
    %117 = vector.extract_strided_slice %115 {offsets = [0, 0], sizes = [2, 32], strides = [1, 1]} : vector<2x96xf32> to vector<2x32xf32>
    %118 = arith.addf %116, %117 : vector<2x32xf32>
    %119 = arith.negf %118 : vector<2x32xf32>
    %120 = math.exp %119 : vector<2x32xf32>
    %cst_68 = arith.constant 1.000000e+00 : f32
    %121 = vector.broadcast %cst_68 : f32 to vector<2x32xf32>
    %122 = arith.addf %121, %120 : vector<2x32xf32>
    %123 = arith.divf %121, %122 : vector<2x32xf32>
    %c6_69 = arith.constant 6 : index
    %c0_70 = arith.constant 0 : index
    %124 = vector.load %arg19[%c6_69, %c0_70] : memref<16x32xf32, #tpu.memory_space<vmem>>, vector<2x32xf32>
    %125 = vector.extract_strided_slice %115 {offsets = [0, 32], sizes = [2, 32], strides = [1, 1]} : vector<2x96xf32> to vector<2x32xf32>
    %126 = arith.addf %124, %125 : vector<2x32xf32>
    %127 = arith.negf %126 : vector<2x32xf32>
    %128 = math.exp %127 : vector<2x32xf32>
    %cst_71 = arith.constant 1.000000e+00 : f32
    %129 = vector.broadcast %cst_71 : f32 to vector<2x32xf32>
    %130 = arith.addf %129, %128 : vector<2x32xf32>
    %131 = arith.divf %129, %130 : vector<2x32xf32>
    %c6_72 = arith.constant 6 : index
    %c0_73 = arith.constant 0 : index
    %132 = vector.load %arg20[%c6_72, %c0_73] : memref<16x32xf32, #tpu.memory_space<vmem>>, vector<2x32xf32>
    %133 = vector.extract_strided_slice %115 {offsets = [0, 64], sizes = [2, 32], strides = [1, 1]} : vector<2x96xf32> to vector<2x32xf32>
    %134 = arith.mulf %123, %133 : vector<2x32xf32>
    %135 = arith.addf %132, %134 : vector<2x32xf32>
    %136 = math.tanh %135 : vector<2x32xf32>
    %cst_74 = arith.constant 1.000000e+00 : f32
    %137 = vector.broadcast %cst_74 : f32 to vector<2x32xf32>
    %138 = arith.subf %137, %131 : vector<2x32xf32>
    %139 = arith.mulf %138, %136 : vector<2x32xf32>
    %140 = arith.mulf %131, %112 : vector<2x32xf32>
    %141 = arith.addf %139, %140 : vector<2x32xf32>
    %c0_75 = arith.constant 0 : index
    %c0_76 = arith.constant 0 : index
    %142 = vector.load %arg21[%c0_75, %c0_76] : memref<2x32xf32, #tpu.memory_space<vmem>>, vector<2x32xf32>
    tpu.vector_store %arg21[%c0_75, %c0_76], %141 {strides = array<i32>} : memref<2x32xf32, #tpu.memory_space<vmem>>, vector<2x32xf32>,
    %c6_77 = arith.constant 6 : index
    %c0_78 = arith.constant 0 : index
    %143 = vector.load %arg22[%c6_77, %c0_78] : memref<16x32xf32, #tpu.memory_space<vmem>>, vector<2x32xf32>
    tpu.vector_store %arg22[%c6_77, %c0_78], %141 {strides = array<i32>} : memref<16x32xf32, #tpu.memory_space<vmem>>, vector<2x32xf32>,
    %c0_79 = arith.constant 0 : index
    %c0_80 = arith.constant 0 : index
    %144 = vector.load %arg21[%c0_79, %c0_80] : memref<2x32xf32, #tpu.memory_space<vmem>>, vector<2x32xf32>
    %cst_81 = arith.constant dense<0.000000e+00> : vector<2x96xf32>
    %145 = tpu.matmul %144, %12, %cst_81 {dimension_numbers = #tpu.dot_dimension_numbers<[1], [0], [0], [1], [0, 0, 1, 1], [], []>} : vector<2x32xf32>, vector<32x96xf32>, vector<2x96xf32> -> vector<2x96xf32>
    %146 = vector.broadcast %13 : vector<1x96xf32> to vector<2x96xf32>
    %147 = arith.addf %145, %146 : vector<2x96xf32>
    %c8 = arith.constant 8 : index
    %c0_82 = arith.constant 0 : index
    %148 = vector.load %arg18[%c8, %c0_82] : memref<16x32xf32, #tpu.memory_space<vmem>>, vector<2x32xf32>
    %149 = vector.extract_strided_slice %147 {offsets = [0, 0], sizes = [2, 32], strides = [1, 1]} : vector<2x96xf32> to vector<2x32xf32>
    %150 = arith.addf %148, %149 : vector<2x32xf32>
    %151 = arith.negf %150 : vector<2x32xf32>
    %152 = math.exp %151 : vector<2x32xf32>
    %cst_83 = arith.constant 1.000000e+00 : f32
    %153 = vector.broadcast %cst_83 : f32 to vector<2x32xf32>
    %154 = arith.addf %153, %152 : vector<2x32xf32>
    %155 = arith.divf %153, %154 : vector<2x32xf32>
    %c8_84 = arith.constant 8 : index
    %c0_85 = arith.constant 0 : index
    %156 = vector.load %arg19[%c8_84, %c0_85] : memref<16x32xf32, #tpu.memory_space<vmem>>, vector<2x32xf32>
    %157 = vector.extract_strided_slice %147 {offsets = [0, 32], sizes = [2, 32], strides = [1, 1]} : vector<2x96xf32> to vector<2x32xf32>
    %158 = arith.addf %156, %157 : vector<2x32xf32>
    %159 = arith.negf %158 : vector<2x32xf32>
    %160 = math.exp %159 : vector<2x32xf32>
    %cst_86 = arith.constant 1.000000e+00 : f32
    %161 = vector.broadcast %cst_86 : f32 to vector<2x32xf32>
    %162 = arith.addf %161, %160 : vector<2x32xf32>
    %163 = arith.divf %161, %162 : vector<2x32xf32>
    %c8_87 = arith.constant 8 : index
    %c0_88 = arith.constant 0 : index
    %164 = vector.load %arg20[%c8_87, %c0_88] : memref<16x32xf32, #tpu.memory_space<vmem>>, vector<2x32xf32>
    %165 = vector.extract_strided_slice %147 {offsets = [0, 64], sizes = [2, 32], strides = [1, 1]} : vector<2x96xf32> to vector<2x32xf32>
    %166 = arith.mulf %155, %165 : vector<2x32xf32>
    %167 = arith.addf %164, %166 : vector<2x32xf32>
    %168 = math.tanh %167 : vector<2x32xf32>
    %cst_89 = arith.constant 1.000000e+00 : f32
    %169 = vector.broadcast %cst_89 : f32 to vector<2x32xf32>
    %170 = arith.subf %169, %163 : vector<2x32xf32>
    %171 = arith.mulf %170, %168 : vector<2x32xf32>
    %172 = arith.mulf %163, %144 : vector<2x32xf32>
    %173 = arith.addf %171, %172 : vector<2x32xf32>
    %c0_90 = arith.constant 0 : index
    %c0_91 = arith.constant 0 : index
    %174 = vector.load %arg21[%c0_90, %c0_91] : memref<2x32xf32, #tpu.memory_space<vmem>>, vector<2x32xf32>
    tpu.vector_store %arg21[%c0_90, %c0_91], %173 {strides = array<i32>} : memref<2x32xf32, #tpu.memory_space<vmem>>, vector<2x32xf32>,
    %c8_92 = arith.constant 8 : index
    %c0_93 = arith.constant 0 : index
    %175 = vector.load %arg22[%c8_92, %c0_93] : memref<16x32xf32, #tpu.memory_space<vmem>>, vector<2x32xf32>
    tpu.vector_store %arg22[%c8_92, %c0_93], %173 {strides = array<i32>} : memref<16x32xf32, #tpu.memory_space<vmem>>, vector<2x32xf32>,
    %c0_94 = arith.constant 0 : index
    %c0_95 = arith.constant 0 : index
    %176 = vector.load %arg21[%c0_94, %c0_95] : memref<2x32xf32, #tpu.memory_space<vmem>>, vector<2x32xf32>
    %cst_96 = arith.constant dense<0.000000e+00> : vector<2x96xf32>
    %177 = tpu.matmul %176, %12, %cst_96 {dimension_numbers = #tpu.dot_dimension_numbers<[1], [0], [0], [1], [0, 0, 1, 1], [], []>} : vector<2x32xf32>, vector<32x96xf32>, vector<2x96xf32> -> vector<2x96xf32>
    %178 = vector.broadcast %13 : vector<1x96xf32> to vector<2x96xf32>
    %179 = arith.addf %177, %178 : vector<2x96xf32>
    %c10 = arith.constant 10 : index
    %c0_97 = arith.constant 0 : index
    %180 = vector.load %arg18[%c10, %c0_97] : memref<16x32xf32, #tpu.memory_space<vmem>>, vector<2x32xf32>
    %181 = vector.extract_strided_slice %179 {offsets = [0, 0], sizes = [2, 32], strides = [1, 1]} : vector<2x96xf32> to vector<2x32xf32>
    %182 = arith.addf %180, %181 : vector<2x32xf32>
    %183 = arith.negf %182 : vector<2x32xf32>
    %184 = math.exp %183 : vector<2x32xf32>
    %cst_98 = arith.constant 1.000000e+00 : f32
    %185 = vector.broadcast %cst_98 : f32 to vector<2x32xf32>
    %186 = arith.addf %185, %184 : vector<2x32xf32>
    %187 = arith.divf %185, %186 : vector<2x32xf32>
    %c10_99 = arith.constant 10 : index
    %c0_100 = arith.constant 0 : index
    %188 = vector.load %arg19[%c10_99, %c0_100] : memref<16x32xf32, #tpu.memory_space<vmem>>, vector<2x32xf32>
    %189 = vector.extract_strided_slice %179 {offsets = [0, 32], sizes = [2, 32], strides = [1, 1]} : vector<2x96xf32> to vector<2x32xf32>
    %190 = arith.addf %188, %189 : vector<2x32xf32>
    %191 = arith.negf %190 : vector<2x32xf32>
    %192 = math.exp %191 : vector<2x32xf32>
    %cst_101 = arith.constant 1.000000e+00 : f32
    %193 = vector.broadcast %cst_101 : f32 to vector<2x32xf32>
    %194 = arith.addf %193, %192 : vector<2x32xf32>
    %195 = arith.divf %193, %194 : vector<2x32xf32>
    %c10_102 = arith.constant 10 : index
    %c0_103 = arith.constant 0 : index
    %196 = vector.load %arg20[%c10_102, %c0_103] : memref<16x32xf32, #tpu.memory_space<vmem>>, vector<2x32xf32>
    %197 = vector.extract_strided_slice %179 {offsets = [0, 64], sizes = [2, 32], strides = [1, 1]} : vector<2x96xf32> to vector<2x32xf32>
    %198 = arith.mulf %187, %197 : vector<2x32xf32>
    %199 = arith.addf %196, %198 : vector<2x32xf32>
    %200 = math.tanh %199 : vector<2x32xf32>
    %cst_104 = arith.constant 1.000000e+00 : f32
    %201 = vector.broadcast %cst_104 : f32 to vector<2x32xf32>
    %202 = arith.subf %201, %195 : vector<2x32xf32>
    %203 = arith.mulf %202, %200 : vector<2x32xf32>
    %204 = arith.mulf %195, %176 : vector<2x32xf32>
    %205 = arith.addf %203, %204 : vector<2x32xf32>
    %c0_105 = arith.constant 0 : index
    %c0_106 = arith.constant 0 : index
    %206 = vector.load %arg21[%c0_105, %c0_106] : memref<2x32xf32, #tpu.memory_space<vmem>>, vector<2x32xf32>
    tpu.vector_store %arg21[%c0_105, %c0_106], %205 {strides = array<i32>} : memref<2x32xf32, #tpu.memory_space<vmem>>, vector<2x32xf32>,
    %c10_107 = arith.constant 10 : index
    %c0_108 = arith.constant 0 : index
    %207 = vector.load %arg22[%c10_107, %c0_108] : memref<16x32xf32, #tpu.memory_space<vmem>>, vector<2x32xf32>
    tpu.vector_store %arg22[%c10_107, %c0_108], %205 {strides = array<i32>} : memref<16x32xf32, #tpu.memory_space<vmem>>, vector<2x32xf32>,
    %c0_109 = arith.constant 0 : index
    %c0_110 = arith.constant 0 : index
    %208 = vector.load %arg21[%c0_109, %c0_110] : memref<2x32xf32, #tpu.memory_space<vmem>>, vector<2x32xf32>
    %cst_111 = arith.constant dense<0.000000e+00> : vector<2x96xf32>
    %209 = tpu.matmul %208, %12, %cst_111 {dimension_numbers = #tpu.dot_dimension_numbers<[1], [0], [0], [1], [0, 0, 1, 1], [], []>} : vector<2x32xf32>, vector<32x96xf32>, vector<2x96xf32> -> vector<2x96xf32>
    %210 = vector.broadcast %13 : vector<1x96xf32> to vector<2x96xf32>
    %211 = arith.addf %209, %210 : vector<2x96xf32>
    %c12 = arith.constant 12 : index
    %c0_112 = arith.constant 0 : index
    %212 = vector.load %arg18[%c12, %c0_112] : memref<16x32xf32, #tpu.memory_space<vmem>>, vector<2x32xf32>
    %213 = vector.extract_strided_slice %211 {offsets = [0, 0], sizes = [2, 32], strides = [1, 1]} : vector<2x96xf32> to vector<2x32xf32>
    %214 = arith.addf %212, %213 : vector<2x32xf32>
    %215 = arith.negf %214 : vector<2x32xf32>
    %216 = math.exp %215 : vector<2x32xf32>
    %cst_113 = arith.constant 1.000000e+00 : f32
    %217 = vector.broadcast %cst_113 : f32 to vector<2x32xf32>
    %218 = arith.addf %217, %216 : vector<2x32xf32>
    %219 = arith.divf %217, %218 : vector<2x32xf32>
    %c12_114 = arith.constant 12 : index
    %c0_115 = arith.constant 0 : index
    %220 = vector.load %arg19[%c12_114, %c0_115] : memref<16x32xf32, #tpu.memory_space<vmem>>, vector<2x32xf32>
    %221 = vector.extract_strided_slice %211 {offsets = [0, 32], sizes = [2, 32], strides = [1, 1]} : vector<2x96xf32> to vector<2x32xf32>
    %222 = arith.addf %220, %221 : vector<2x32xf32>
    %223 = arith.negf %222 : vector<2x32xf32>
    %224 = math.exp %223 : vector<2x32xf32>
    %cst_116 = arith.constant 1.000000e+00 : f32
    %225 = vector.broadcast %cst_116 : f32 to vector<2x32xf32>
    %226 = arith.addf %225, %224 : vector<2x32xf32>
    %227 = arith.divf %225, %226 : vector<2x32xf32>
    %c12_117 = arith.constant 12 : index
    %c0_118 = arith.constant 0 : index
    %228 = vector.load %arg20[%c12_117, %c0_118] : memref<16x32xf32, #tpu.memory_space<vmem>>, vector<2x32xf32>
    %229 = vector.extract_strided_slice %211 {offsets = [0, 64], sizes = [2, 32], strides = [1, 1]} : vector<2x96xf32> to vector<2x32xf32>
    %230 = arith.mulf %219, %229 : vector<2x32xf32>
    %231 = arith.addf %228, %230 : vector<2x32xf32>
    %232 = math.tanh %231 : vector<2x32xf32>
    %cst_119 = arith.constant 1.000000e+00 : f32
    %233 = vector.broadcast %cst_119 : f32 to vector<2x32xf32>
    %234 = arith.subf %233, %227 : vector<2x32xf32>
    %235 = arith.mulf %234, %232 : vector<2x32xf32>
    %236 = arith.mulf %227, %208 : vector<2x32xf32>
    %237 = arith.addf %235, %236 : vector<2x32xf32>
    %c0_120 = arith.constant 0 : index
    %c0_121 = arith.constant 0 : index
    %238 = vector.load %arg21[%c0_120, %c0_121] : memref<2x32xf32, #tpu.memory_space<vmem>>, vector<2x32xf32>
    tpu.vector_store %arg21[%c0_120, %c0_121], %237 {strides = array<i32>} : memref<2x32xf32, #tpu.memory_space<vmem>>, vector<2x32xf32>,
    %c12_122 = arith.constant 12 : index
    %c0_123 = arith.constant 0 : index
    %239 = vector.load %arg22[%c12_122, %c0_123] : memref<16x32xf32, #tpu.memory_space<vmem>>, vector<2x32xf32>
    tpu.vector_store %arg22[%c12_122, %c0_123], %237 {strides = array<i32>} : memref<16x32xf32, #tpu.memory_space<vmem>>, vector<2x32xf32>,
    %c0_124 = arith.constant 0 : index
    %c0_125 = arith.constant 0 : index
    %240 = vector.load %arg21[%c0_124, %c0_125] : memref<2x32xf32, #tpu.memory_space<vmem>>, vector<2x32xf32>
    %cst_126 = arith.constant dense<0.000000e+00> : vector<2x96xf32>
    %241 = tpu.matmul %240, %12, %cst_126 {dimension_numbers = #tpu.dot_dimension_numbers<[1], [0], [0], [1], [0, 0, 1, 1], [], []>} : vector<2x32xf32>, vector<32x96xf32>, vector<2x96xf32> -> vector<2x96xf32>
    %242 = vector.broadcast %13 : vector<1x96xf32> to vector<2x96xf32>
    %243 = arith.addf %241, %242 : vector<2x96xf32>
    %c14 = arith.constant 14 : index
    %c0_127 = arith.constant 0 : index
    %244 = vector.load %arg18[%c14, %c0_127] : memref<16x32xf32, #tpu.memory_space<vmem>>, vector<2x32xf32>
    %245 = vector.extract_strided_slice %243 {offsets = [0, 0], sizes = [2, 32], strides = [1, 1]} : vector<2x96xf32> to vector<2x32xf32>
    %246 = arith.addf %244, %245 : vector<2x32xf32>
    %247 = arith.negf %246 : vector<2x32xf32>
    %248 = math.exp %247 : vector<2x32xf32>
    %cst_128 = arith.constant 1.000000e+00 : f32
    %249 = vector.broadcast %cst_128 : f32 to vector<2x32xf32>
    %250 = arith.addf %249, %248 : vector<2x32xf32>
    %251 = arith.divf %249, %250 : vector<2x32xf32>
    %c14_129 = arith.constant 14 : index
    %c0_130 = arith.constant 0 : index
    %252 = vector.load %arg19[%c14_129, %c0_130] : memref<16x32xf32, #tpu.memory_space<vmem>>, vector<2x32xf32>
    %253 = vector.extract_strided_slice %243 {offsets = [0, 32], sizes = [2, 32], strides = [1, 1]} : vector<2x96xf32> to vector<2x32xf32>
    %254 = arith.addf %252, %253 : vector<2x32xf32>
    %255 = arith.negf %254 : vector<2x32xf32>
    %256 = math.exp %255 : vector<2x32xf32>
    %cst_131 = arith.constant 1.000000e+00 : f32
    %257 = vector.broadcast %cst_131 : f32 to vector<2x32xf32>
    %258 = arith.addf %257, %256 : vector<2x32xf32>
    %259 = arith.divf %257, %258 : vector<2x32xf32>
    %c14_132 = arith.constant 14 : index
    %c0_133 = arith.constant 0 : index
    %260 = vector.load %arg20[%c14_132, %c0_133] : memref<16x32xf32, #tpu.memory_space<vmem>>, vector<2x32xf32>
    %261 = vector.extract_strided_slice %243 {offsets = [0, 64], sizes = [2, 32], strides = [1, 1]} : vector<2x96xf32> to vector<2x32xf32>
    %262 = arith.mulf %251, %261 : vector<2x32xf32>
    %263 = arith.addf %260, %262 : vector<2x32xf32>
    %264 = math.tanh %263 : vector<2x32xf32>
    %cst_134 = arith.constant 1.000000e+00 : f32
    %265 = vector.broadcast %cst_134 : f32 to vector<2x32xf32>
    %266 = arith.subf %265, %259 : vector<2x32xf32>
    %267 = arith.mulf %266, %264 : vector<2x32xf32>
    %268 = arith.mulf %259, %240 : vector<2x32xf32>
    %269 = arith.addf %267, %268 : vector<2x32xf32>
    %c0_135 = arith.constant 0 : index
    %c0_136 = arith.constant 0 : index
    %270 = vector.load %arg21[%c0_135, %c0_136] : memref<2x32xf32, #tpu.memory_space<vmem>>, vector<2x32xf32>
    tpu.vector_store %arg21[%c0_135, %c0_136], %269 {strides = array<i32>} : memref<2x32xf32, #tpu.memory_space<vmem>>, vector<2x32xf32>,
    %c14_137 = arith.constant 14 : index
    %c0_138 = arith.constant 0 : index
    %271 = vector.load %arg22[%c14_137, %c0_138] : memref<16x32xf32, #tpu.memory_space<vmem>>, vector<2x32xf32>
    tpu.vector_store %arg22[%c14_137, %c0_138], %269 {strides = array<i32>} : memref<16x32xf32, #tpu.memory_space<vmem>>, vector<2x32xf32>,
    %c0_139 = arith.constant 0 : index
    %c0_140 = arith.constant 0 : index
    %272 = vector.load %arg22[%c0_139, %c0_140] : memref<16x32xf32, #tpu.memory_space<vmem>>, vector<16x32xf32>
    %c0_141 = arith.constant 0 : index
    %c0_142 = arith.constant 0 : index
    %273 = vector.load %arg7[%c0_141, %c0_142] : memref<32x32xf32, #tpu.memory_space<vmem>>, vector<32x32xf32>
    %cst_143 = arith.constant dense<0.000000e+00> : vector<16x32xf32>
    %274 = tpu.matmul %272, %273, %cst_143 {dimension_numbers = #tpu.dot_dimension_numbers<[1], [0], [0], [1], [0, 0, 1, 1], [], []>} : vector<16x32xf32>, vector<32x32xf32>, vector<16x32xf32> -> vector<16x32xf32>
    %c0_144 = arith.constant 0 : index
    %c0_145 = arith.constant 0 : index
    %275 = vector.load %arg8[%c0_144, %c0_145] : memref<1x32xf32, #tpu.memory_space<vmem>>, vector<1x32xf32>
    %276 = vector.broadcast %275 : vector<1x32xf32> to vector<16x32xf32>
    %277 = arith.addf %274, %276 : vector<16x32xf32>
    %cst_146 = arith.constant 0.000000e+00 : f32
    %278 = vector.broadcast %cst_146 : f32 to vector<16x32xf32>
    %279 = arith.maximumf %277, %278 : vector<16x32xf32>
    %c0_147 = arith.constant 0 : index
    %c0_148 = arith.constant 0 : index
    %280 = vector.load %arg9[%c0_147, %c0_148] : memref<32x32xf32, #tpu.memory_space<vmem>>, vector<32x32xf32>
    %cst_149 = arith.constant dense<0.000000e+00> : vector<16x32xf32>
    %281 = tpu.matmul %279, %280, %cst_149 {dimension_numbers = #tpu.dot_dimension_numbers<[1], [0], [0], [1], [0, 0, 1, 1], [], []>} : vector<16x32xf32>, vector<32x32xf32>, vector<16x32xf32> -> vector<16x32xf32>
    %c0_150 = arith.constant 0 : index
    %c0_151 = arith.constant 0 : index
    %282 = vector.load %arg10[%c0_150, %c0_151] : memref<1x32xf32, #tpu.memory_space<vmem>>, vector<1x32xf32>
    %283 = vector.broadcast %282 : vector<1x32xf32> to vector<16x32xf32>
    %284 = arith.addf %281, %283 : vector<16x32xf32>
    %cst_152 = arith.constant 0.000000e+00 : f32
    %285 = vector.broadcast %cst_152 : f32 to vector<16x32xf32>
    %286 = arith.maximumf %284, %285 : vector<16x32xf32>
    %c0_153 = arith.constant 0 : index
    %c0_154 = arith.constant 0 : index
    %287 = vector.load %arg11[%c0_153, %c0_154] : memref<32x6xf32, #tpu.memory_space<vmem>>, vector<32x6xf32>
    %cst_155 = arith.constant dense<0.000000e+00> : vector<16x6xf32>
    %288 = tpu.matmul %286, %287, %cst_155 {dimension_numbers = #tpu.dot_dimension_numbers<[1], [0], [0], [1], [0, 0, 1, 1], [], []>} : vector<16x32xf32>, vector<32x6xf32>, vector<16x6xf32> -> vector<16x6xf32>
    %c0_156 = arith.constant 0 : index
    %c0_157 = arith.constant 0 : index
    %289 = vector.load %arg12[%c0_156, %c0_157] : memref<1x6xf32, #tpu.memory_space<vmem>>, vector<1x6xf32>
    %290 = vector.broadcast %289 : vector<1x6xf32> to vector<16x6xf32>
    %291 = arith.addf %288, %290 : vector<16x6xf32>
    %c0_158 = arith.constant 0 : index
    %c0_159 = arith.constant 0 : index
    %292 = vector.load %arg23[%c0_158, %c0_159] : memref<16x6xf32, #tpu.memory_space<vmem>>, vector<16x6xf32>
    tpu.vector_store %arg23[%c0_158, %c0_159], %291 {strides = array<i32>} : memref<16x6xf32, #tpu.memory_space<vmem>>, vector<16x6xf32>,
    %cst_160 = arith.constant 0.000000e+00 : f32
    %293 = vector.broadcast %cst_160 : f32 to vector<4x2x3xf32>
    %c0_161 = arith.constant 0 : index
    %c0_162 = arith.constant 0 : index
    %c0_163 = arith.constant 0 : index
    %294 = vector.load %arg24[%c0_161, %c0_162, %c0_163] : memref<4x2x3xf32, #tpu.memory_space<vmem>>, vector<4x2x3xf32>
    tpu.vector_store %arg24[%c0_161, %c0_162, %c0_163], %293 {strides = array<i32>} : memref<4x2x3xf32, #tpu.memory_space<vmem>>, vector<4x2x3xf32>,
    %c0_164 = arith.constant 0 : index
    %c0_165 = arith.constant 0 : index
    %295 = vector.load %arg14[%c0_164, %c0_165] : memref<1x3xf32, #tpu.memory_space<vmem>>, vector<1x3xf32>
    %c0_166 = arith.constant 0 : index
    %c0_167 = arith.constant 0 : index
    %296 = vector.load %arg15[%c0_166, %c0_167] : memref<1x3xf32, #tpu.memory_space<vmem>>, vector<1x3xf32>
    %c0_168 = arith.constant 0 : index
    %c0_169 = arith.constant 0 : index
    %297 = vector.load %arg13[%c0_168, %c0_169] : memref<3x6xf32, #tpu.memory_space<vmem>>, vector<3x6xf32>
    %298 = vector.extract_strided_slice %297 {offsets = [0, 0], sizes = [1, 6], strides = [1, 1]} : vector<3x6xf32> to vector<1x6xf32>
    %299 = vector.extract_strided_slice %297 {offsets = [1, 0], sizes = [1, 6], strides = [1, 1]} : vector<3x6xf32> to vector<1x6xf32>
    %300 = vector.extract_strided_slice %297 {offsets = [2, 0], sizes = [1, 6], strides = [1, 1]} : vector<3x6xf32> to vector<1x6xf32>
    %c0_170 = arith.constant 0 : index
    %301 = memref.load %arg16[%c0_170] : memref<2xf32, #tpu.memory_space<smem>>
    %c1 = arith.constant 1 : index
    %302 = memref.load %arg16[%c1] : memref<2xf32, #tpu.memory_space<smem>>
    %c0_171 = arith.constant 0 : index
    %c0_172 = arith.constant 0 : index
    %c0_173 = arith.constant 0 : index
    %303 = vector.load %arg24[%c0_171, %c0_172, %c0_173] : memref<4x2x3xf32, #tpu.memory_space<vmem>>, vector<4x2x3xf32>
    %c0_174 = arith.constant 0 : index
    %c0_175 = arith.constant 0 : index
    %304 = vector.load %arg23[%c0_174, %c0_175] : memref<16x6xf32, #tpu.memory_space<vmem>>, vector<2x6xf32>
    %305 = vector.shape_cast %304 : vector<2x6xf32> to vector<1x2x6xf32>
    %306 = vector.extract_strided_slice %303 {offsets = [0, 0, 0], sizes = [4, 2, 1], strides = [1, 1, 1]} : vector<4x2x3xf32> to vector<4x2x1xf32>
    %307 = vector.shape_cast %298 : vector<1x6xf32> to vector<1x1x6xf32>
    %308 = vector.broadcast %306 : vector<4x2x1xf32> to vector<4x2x6xf32>
    %309 = vector.broadcast %307 : vector<1x1x6xf32> to vector<4x2x6xf32>
    %310 = arith.mulf %308, %309 : vector<4x2x6xf32>
    %311 = vector.broadcast %305 : vector<1x2x6xf32> to vector<4x2x6xf32>
    %312 = arith.addf %311, %310 : vector<4x2x6xf32>
    %313 = vector.extract_strided_slice %303 {offsets = [0, 0, 1], sizes = [4, 2, 1], strides = [1, 1, 1]} : vector<4x2x3xf32> to vector<4x2x1xf32>
    %314 = vector.shape_cast %299 : vector<1x6xf32> to vector<1x1x6xf32>
    %315 = vector.broadcast %313 : vector<4x2x1xf32> to vector<4x2x6xf32>
    %316 = vector.broadcast %314 : vector<1x1x6xf32> to vector<4x2x6xf32>
    %317 = arith.mulf %315, %316 : vector<4x2x6xf32>
    %318 = arith.addf %312, %317 : vector<4x2x6xf32>
    %319 = vector.extract_strided_slice %303 {offsets = [0, 0, 2], sizes = [4, 2, 1], strides = [1, 1, 1]} : vector<4x2x3xf32> to vector<4x2x1xf32>
    %320 = vector.shape_cast %300 : vector<1x6xf32> to vector<1x1x6xf32>
    %321 = vector.broadcast %319 : vector<4x2x1xf32> to vector<4x2x6xf32>
    %322 = vector.broadcast %320 : vector<1x1x6xf32> to vector<4x2x6xf32>
    %323 = arith.mulf %321, %322 : vector<4x2x6xf32>
    %324 = arith.addf %318, %323 : vector<4x2x6xf32>
    %325 = vector.extract_strided_slice %324 {offsets = [0, 0, 0], sizes = [4, 2, 3], strides = [1, 1, 1]} : vector<4x2x6xf32> to vector<4x2x3xf32>
    %326 = vector.extract_strided_slice %324 {offsets = [0, 0, 3], sizes = [4, 2, 3], strides = [1, 1, 1]} : vector<4x2x6xf32> to vector<4x2x3xf32>
    %cst_176 = arith.constant 0.000000e+00 : f32
    %327 = vector.broadcast %cst_176 : f32 to vector<4x2x3xf32>
    %328 = arith.maximumf %326, %327 : vector<4x2x3xf32>
    %329 = math.absf %326 : vector<4x2x3xf32>
    %cst_177 = arith.constant 0.000000e+00 : f32
    %330 = vector.broadcast %cst_177 : f32 to vector<4x2x3xf32>
    %331 = arith.subf %330, %329 : vector<4x2x3xf32>
    %332 = math.exp %331 : vector<4x2x3xf32>
    %cst_178 = arith.constant 1.000000e+00 : f32
    %333 = vector.broadcast %cst_178 : f32 to vector<4x2x3xf32>
    %334 = arith.addf %333, %332 : vector<4x2x3xf32>
    %335 = math.log %334 : vector<4x2x3xf32>
    %336 = arith.addf %328, %335 : vector<4x2x3xf32>
    %c0_179 = arith.constant 0 : index
    %c0_180 = arith.constant 0 : index
    %c0_181 = arith.constant 0 : index
    %c0_182 = arith.constant 0 : index
    %337 = vector.load %arg2[%c0_179, %c0_180, %c0_181, %c0_182] : memref<8x4x2x3xf32, #tpu.memory_space<vmem>>, vector<1x4x2x3xf32>
    %338 = vector.shape_cast %337 : vector<1x4x2x3xf32> to vector<4x2x3xf32>
    %339 = arith.mulf %336, %338 : vector<4x2x3xf32>
    %340 = arith.addf %325, %339 : vector<4x2x3xf32>
    %341 = vector.shape_cast %295 : vector<1x3xf32> to vector<1x1x3xf32>
    %342 = vector.broadcast %341 : vector<1x1x3xf32> to vector<4x2x3xf32>
    %343 = arith.mulf %340, %342 : vector<4x2x3xf32>
    %cst_183 = arith.constant dense<0.000000e+00> : vector<4x2xf32>
    %344 = vector.multi_reduction <add>, %343, %cst_183 [2] : vector<4x2x3xf32> to vector<4x2xf32>
    %345 = vector.shape_cast %344 : vector<4x2xf32> to vector<4x2x1xf32>
    %346 = vector.broadcast %301 : f32 to vector<4x2x1xf32>
    %347 = arith.addf %345, %346 : vector<4x2x1xf32>
    %348 = math.tanh %347 : vector<4x2x1xf32>
    %349 = vector.shape_cast %296 : vector<1x3xf32> to vector<1x1x3xf32>
    %350 = vector.broadcast %349 : vector<1x1x3xf32> to vector<4x2x3xf32>
    %351 = vector.broadcast %348 : vector<4x2x1xf32> to vector<4x2x3xf32>
    %352 = arith.mulf %350, %351 : vector<4x2x3xf32>
    %353 = arith.addf %340, %352 : vector<4x2x3xf32>
    %354 = arith.mulf %348, %348 : vector<4x2x1xf32>
    %cst_184 = arith.constant 1.000000e+00 : f32
    %355 = vector.broadcast %cst_184 : f32 to vector<4x2x1xf32>
    %356 = arith.subf %355, %354 : vector<4x2x1xf32>
    %357 = vector.broadcast %302 : f32 to vector<4x2x1xf32>
    %358 = arith.mulf %356, %357 : vector<4x2x1xf32>
    %cst_185 = arith.constant 1.000000e+00 : f32
    %359 = vector.broadcast %cst_185 : f32 to vector<4x2x1xf32>
    %360 = arith.addf %359, %358 : vector<4x2x1xf32>
    %361 = math.absf %360 : vector<4x2x1xf32>
    %cst_186 = arith.constant 9.99999993E-9 : f32
    %362 = vector.broadcast %cst_186 : f32 to vector<4x2x1xf32>
    %363 = arith.addf %361, %362 : vector<4x2x1xf32>
    %364 = math.log %363 : vector<4x2x1xf32>
    %c0_187 = arith.constant 0 : index
    %c0_188 = arith.constant 0 : index
    %c0_189 = arith.constant 0 : index
    %365 = vector.load %arg24[%c0_187, %c0_188, %c0_189] : memref<4x2x3xf32, #tpu.memory_space<vmem>>, vector<4x2x3xf32>
    tpu.vector_store %arg24[%c0_187, %c0_188, %c0_189], %340 {strides = array<i32>} : memref<4x2x3xf32, #tpu.memory_space<vmem>>, vector<4x2x3xf32>,
    %366 = tpu.concatenate %340, %325, %336, %353, %364 in 2 : vector<4x2x3xf32>, vector<4x2x3xf32>, vector<4x2x3xf32>, vector<4x2x3xf32>, vector<4x2x1xf32> -> vector<4x2x13xf32>
    %c0_190 = arith.constant 0 : index
    %c0_191 = arith.constant 0 : index
    %c0_192 = arith.constant 0 : index
    %c0_193 = arith.constant 0 : index
    %367 = vector.load %arg17[%c0_190, %c0_191, %c0_192, %c0_193] : memref<8x4x2x13xf32, #tpu.memory_space<vmem>>, vector<1x4x2x13xf32>
    %368 = vector.shape_cast %367 : vector<1x4x2x13xf32> to vector<4x2x13xf32>
    %369 = vector.shape_cast %366 : vector<4x2x13xf32> to vector<1x4x2x13xf32>
    tpu.vector_store %arg17[%c0_190, %c0_191, %c0_192, %c0_193], %369 {strides = array<i32>} : memref<8x4x2x13xf32, #tpu.memory_space<vmem>>, vector<1x4x2x13xf32>,
    %c0_194 = arith.constant 0 : index
    %c0_195 = arith.constant 0 : index
    %c0_196 = arith.constant 0 : index
    %370 = vector.load %arg24[%c0_194, %c0_195, %c0_196] : memref<4x2x3xf32, #tpu.memory_space<vmem>>, vector<4x2x3xf32>
    %c2_197 = arith.constant 2 : index
    %c0_198 = arith.constant 0 : index
    %371 = vector.load %arg23[%c2_197, %c0_198] : memref<16x6xf32, #tpu.memory_space<vmem>>, vector<2x6xf32>
    %372 = vector.shape_cast %371 : vector<2x6xf32> to vector<1x2x6xf32>
    %373 = vector.extract_strided_slice %370 {offsets = [0, 0, 0], sizes = [4, 2, 1], strides = [1, 1, 1]} : vector<4x2x3xf32> to vector<4x2x1xf32>
    %374 = vector.shape_cast %298 : vector<1x6xf32> to vector<1x1x6xf32>
    %375 = vector.broadcast %373 : vector<4x2x1xf32> to vector<4x2x6xf32>
    %376 = vector.broadcast %374 : vector<1x1x6xf32> to vector<4x2x6xf32>
    %377 = arith.mulf %375, %376 : vector<4x2x6xf32>
    %378 = vector.broadcast %372 : vector<1x2x6xf32> to vector<4x2x6xf32>
    %379 = arith.addf %378, %377 : vector<4x2x6xf32>
    %380 = vector.extract_strided_slice %370 {offsets = [0, 0, 1], sizes = [4, 2, 1], strides = [1, 1, 1]} : vector<4x2x3xf32> to vector<4x2x1xf32>
    %381 = vector.shape_cast %299 : vector<1x6xf32> to vector<1x1x6xf32>
    %382 = vector.broadcast %380 : vector<4x2x1xf32> to vector<4x2x6xf32>
    %383 = vector.broadcast %381 : vector<1x1x6xf32> to vector<4x2x6xf32>
    %384 = arith.mulf %382, %383 : vector<4x2x6xf32>
    %385 = arith.addf %379, %384 : vector<4x2x6xf32>
    %386 = vector.extract_strided_slice %370 {offsets = [0, 0, 2], sizes = [4, 2, 1], strides = [1, 1, 1]} : vector<4x2x3xf32> to vector<4x2x1xf32>
    %387 = vector.shape_cast %300 : vector<1x6xf32> to vector<1x1x6xf32>
    %388 = vector.broadcast %386 : vector<4x2x1xf32> to vector<4x2x6xf32>
    %389 = vector.broadcast %387 : vector<1x1x6xf32> to vector<4x2x6xf32>
    %390 = arith.mulf %388, %389 : vector<4x2x6xf32>
    %391 = arith.addf %385, %390 : vector<4x2x6xf32>
    %392 = vector.extract_strided_slice %391 {offsets = [0, 0, 0], sizes = [4, 2, 3], strides = [1, 1, 1]} : vector<4x2x6xf32> to vector<4x2x3xf32>
    %393 = vector.extract_strided_slice %391 {offsets = [0, 0, 3], sizes = [4, 2, 3], strides = [1, 1, 1]} : vector<4x2x6xf32> to vector<4x2x3xf32>
    %cst_199 = arith.constant 0.000000e+00 : f32
    %394 = vector.broadcast %cst_199 : f32 to vector<4x2x3xf32>
    %395 = arith.maximumf %393, %394 : vector<4x2x3xf32>
    %396 = math.absf %393 : vector<4x2x3xf32>
    %cst_200 = arith.constant 0.000000e+00 : f32
    %397 = vector.broadcast %cst_200 : f32 to vector<4x2x3xf32>
    %398 = arith.subf %397, %396 : vector<4x2x3xf32>
    %399 = math.exp %398 : vector<4x2x3xf32>
    %cst_201 = arith.constant 1.000000e+00 : f32
    %400 = vector.broadcast %cst_201 : f32 to vector<4x2x3xf32>
    %401 = arith.addf %400, %399 : vector<4x2x3xf32>
    %402 = math.log %401 : vector<4x2x3xf32>
    %403 = arith.addf %395, %402 : vector<4x2x3xf32>
    %c1_202 = arith.constant 1 : index
    %c0_203 = arith.constant 0 : index
    %c0_204 = arith.constant 0 : index
    %c0_205 = arith.constant 0 : index
    %404 = vector.load %arg2[%c1_202, %c0_203, %c0_204, %c0_205] : memref<8x4x2x3xf32, #tpu.memory_space<vmem>>, vector<1x4x2x3xf32>
    %405 = vector.shape_cast %404 : vector<1x4x2x3xf32> to vector<4x2x3xf32>
    %406 = arith.mulf %403, %405 : vector<4x2x3xf32>
    %407 = arith.addf %392, %406 : vector<4x2x3xf32>
    %408 = vector.shape_cast %295 : vector<1x3xf32> to vector<1x1x3xf32>
    %409 = vector.broadcast %408 : vector<1x1x3xf32> to vector<4x2x3xf32>
    %410 = arith.mulf %407, %409 : vector<4x2x3xf32>
    %cst_206 = arith.constant dense<0.000000e+00> : vector<4x2xf32>
    %411 = vector.multi_reduction <add>, %410, %cst_206 [2] : vector<4x2x3xf32> to vector<4x2xf32>
    %412 = vector.shape_cast %411 : vector<4x2xf32> to vector<4x2x1xf32>
    %413 = vector.broadcast %301 : f32 to vector<4x2x1xf32>
    %414 = arith.addf %412, %413 : vector<4x2x1xf32>
    %415 = math.tanh %414 : vector<4x2x1xf32>
    %416 = vector.shape_cast %296 : vector<1x3xf32> to vector<1x1x3xf32>
    %417 = vector.broadcast %416 : vector<1x1x3xf32> to vector<4x2x3xf32>
    %418 = vector.broadcast %415 : vector<4x2x1xf32> to vector<4x2x3xf32>
    %419 = arith.mulf %417, %418 : vector<4x2x3xf32>
    %420 = arith.addf %407, %419 : vector<4x2x3xf32>
    %421 = arith.mulf %415, %415 : vector<4x2x1xf32>
    %cst_207 = arith.constant 1.000000e+00 : f32
    %422 = vector.broadcast %cst_207 : f32 to vector<4x2x1xf32>
    %423 = arith.subf %422, %421 : vector<4x2x1xf32>
    %424 = vector.broadcast %302 : f32 to vector<4x2x1xf32>
    %425 = arith.mulf %423, %424 : vector<4x2x1xf32>
    %cst_208 = arith.constant 1.000000e+00 : f32
    %426 = vector.broadcast %cst_208 : f32 to vector<4x2x1xf32>
    %427 = arith.addf %426, %425 : vector<4x2x1xf32>
    %428 = math.absf %427 : vector<4x2x1xf32>
    %cst_209 = arith.constant 9.99999993E-9 : f32
    %429 = vector.broadcast %cst_209 : f32 to vector<4x2x1xf32>
    %430 = arith.addf %428, %429 : vector<4x2x1xf32>
    %431 = math.log %430 : vector<4x2x1xf32>
    %c0_210 = arith.constant 0 : index
    %c0_211 = arith.constant 0 : index
    %c0_212 = arith.constant 0 : index
    %432 = vector.load %arg24[%c0_210, %c0_211, %c0_212] : memref<4x2x3xf32, #tpu.memory_space<vmem>>, vector<4x2x3xf32>
    tpu.vector_store %arg24[%c0_210, %c0_211, %c0_212], %407 {strides = array<i32>} : memref<4x2x3xf32, #tpu.memory_space<vmem>>, vector<4x2x3xf32>,
    %433 = tpu.concatenate %407, %392, %403, %420, %431 in 2 : vector<4x2x3xf32>, vector<4x2x3xf32>, vector<4x2x3xf32>, vector<4x2x3xf32>, vector<4x2x1xf32> -> vector<4x2x13xf32>
    %c1_213 = arith.constant 1 : index
    %c0_214 = arith.constant 0 : index
    %c0_215 = arith.constant 0 : index
    %c0_216 = arith.constant 0 : index
    %434 = vector.load %arg17[%c1_213, %c0_214, %c0_215, %c0_216] : memref<8x4x2x13xf32, #tpu.memory_space<vmem>>, vector<1x4x2x13xf32>
    %435 = vector.shape_cast %434 : vector<1x4x2x13xf32> to vector<4x2x13xf32>
    %436 = vector.shape_cast %433 : vector<4x2x13xf32> to vector<1x4x2x13xf32>
    tpu.vector_store %arg17[%c1_213, %c0_214, %c0_215, %c0_216], %436 {strides = array<i32>} : memref<8x4x2x13xf32, #tpu.memory_space<vmem>>, vector<1x4x2x13xf32>,
    %c0_217 = arith.constant 0 : index
    %c0_218 = arith.constant 0 : index
    %c0_219 = arith.constant 0 : index
    %437 = vector.load %arg24[%c0_217, %c0_218, %c0_219] : memref<4x2x3xf32, #tpu.memory_space<vmem>>, vector<4x2x3xf32>
    %c4_220 = arith.constant 4 : index
    %c0_221 = arith.constant 0 : index
    %438 = vector.load %arg23[%c4_220, %c0_221] : memref<16x6xf32, #tpu.memory_space<vmem>>, vector<2x6xf32>
    %439 = vector.shape_cast %438 : vector<2x6xf32> to vector<1x2x6xf32>
    %440 = vector.extract_strided_slice %437 {offsets = [0, 0, 0], sizes = [4, 2, 1], strides = [1, 1, 1]} : vector<4x2x3xf32> to vector<4x2x1xf32>
    %441 = vector.shape_cast %298 : vector<1x6xf32> to vector<1x1x6xf32>
    %442 = vector.broadcast %440 : vector<4x2x1xf32> to vector<4x2x6xf32>
    %443 = vector.broadcast %441 : vector<1x1x6xf32> to vector<4x2x6xf32>
    %444 = arith.mulf %442, %443 : vector<4x2x6xf32>
    %445 = vector.broadcast %439 : vector<1x2x6xf32> to vector<4x2x6xf32>
    %446 = arith.addf %445, %444 : vector<4x2x6xf32>
    %447 = vector.extract_strided_slice %437 {offsets = [0, 0, 1], sizes = [4, 2, 1], strides = [1, 1, 1]} : vector<4x2x3xf32> to vector<4x2x1xf32>
    %448 = vector.shape_cast %299 : vector<1x6xf32> to vector<1x1x6xf32>
    %449 = vector.broadcast %447 : vector<4x2x1xf32> to vector<4x2x6xf32>
    %450 = vector.broadcast %448 : vector<1x1x6xf32> to vector<4x2x6xf32>
    %451 = arith.mulf %449, %450 : vector<4x2x6xf32>
    %452 = arith.addf %446, %451 : vector<4x2x6xf32>
    %453 = vector.extract_strided_slice %437 {offsets = [0, 0, 2], sizes = [4, 2, 1], strides = [1, 1, 1]} : vector<4x2x3xf32> to vector<4x2x1xf32>
    %454 = vector.shape_cast %300 : vector<1x6xf32> to vector<1x1x6xf32>
    %455 = vector.broadcast %453 : vector<4x2x1xf32> to vector<4x2x6xf32>
    %456 = vector.broadcast %454 : vector<1x1x6xf32> to vector<4x2x6xf32>
    %457 = arith.mulf %455, %456 : vector<4x2x6xf32>
    %458 = arith.addf %452, %457 : vector<4x2x6xf32>
    %459 = vector.extract_strided_slice %458 {offsets = [0, 0, 0], sizes = [4, 2, 3], strides = [1, 1, 1]} : vector<4x2x6xf32> to vector<4x2x3xf32>
    %460 = vector.extract_strided_slice %458 {offsets = [0, 0, 3], sizes = [4, 2, 3], strides = [1, 1, 1]} : vector<4x2x6xf32> to vector<4x2x3xf32>
    %cst_222 = arith.constant 0.000000e+00 : f32
    %461 = vector.broadcast %cst_222 : f32 to vector<4x2x3xf32>
    %462 = arith.maximumf %460, %461 : vector<4x2x3xf32>
    %463 = math.absf %460 : vector<4x2x3xf32>
    %cst_223 = arith.constant 0.000000e+00 : f32
    %464 = vector.broadcast %cst_223 : f32 to vector<4x2x3xf32>
    %465 = arith.subf %464, %463 : vector<4x2x3xf32>
    %466 = math.exp %465 : vector<4x2x3xf32>
    %cst_224 = arith.constant 1.000000e+00 : f32
    %467 = vector.broadcast %cst_224 : f32 to vector<4x2x3xf32>
    %468 = arith.addf %467, %466 : vector<4x2x3xf32>
    %469 = math.log %468 : vector<4x2x3xf32>
    %470 = arith.addf %462, %469 : vector<4x2x3xf32>
    %c2_225 = arith.constant 2 : index
    %c0_226 = arith.constant 0 : index
    %c0_227 = arith.constant 0 : index
    %c0_228 = arith.constant 0 : index
    %471 = vector.load %arg2[%c2_225, %c0_226, %c0_227, %c0_228] : memref<8x4x2x3xf32, #tpu.memory_space<vmem>>, vector<1x4x2x3xf32>
    %472 = vector.shape_cast %471 : vector<1x4x2x3xf32> to vector<4x2x3xf32>
    %473 = arith.mulf %470, %472 : vector<4x2x3xf32>
    %474 = arith.addf %459, %473 : vector<4x2x3xf32>
    %475 = vector.shape_cast %295 : vector<1x3xf32> to vector<1x1x3xf32>
    %476 = vector.broadcast %475 : vector<1x1x3xf32> to vector<4x2x3xf32>
    %477 = arith.mulf %474, %476 : vector<4x2x3xf32>
    %cst_229 = arith.constant dense<0.000000e+00> : vector<4x2xf32>
    %478 = vector.multi_reduction <add>, %477, %cst_229 [2] : vector<4x2x3xf32> to vector<4x2xf32>
    %479 = vector.shape_cast %478 : vector<4x2xf32> to vector<4x2x1xf32>
    %480 = vector.broadcast %301 : f32 to vector<4x2x1xf32>
    %481 = arith.addf %479, %480 : vector<4x2x1xf32>
    %482 = math.tanh %481 : vector<4x2x1xf32>
    %483 = vector.shape_cast %296 : vector<1x3xf32> to vector<1x1x3xf32>
    %484 = vector.broadcast %483 : vector<1x1x3xf32> to vector<4x2x3xf32>
    %485 = vector.broadcast %482 : vector<4x2x1xf32> to vector<4x2x3xf32>
    %486 = arith.mulf %484, %485 : vector<4x2x3xf32>
    %487 = arith.addf %474, %486 : vector<4x2x3xf32>
    %488 = arith.mulf %482, %482 : vector<4x2x1xf32>
    %cst_230 = arith.constant 1.000000e+00 : f32
    %489 = vector.broadcast %cst_230 : f32 to vector<4x2x1xf32>
    %490 = arith.subf %489, %488 : vector<4x2x1xf32>
    %491 = vector.broadcast %302 : f32 to vector<4x2x1xf32>
    %492 = arith.mulf %490, %491 : vector<4x2x1xf32>
    %cst_231 = arith.constant 1.000000e+00 : f32
    %493 = vector.broadcast %cst_231 : f32 to vector<4x2x1xf32>
    %494 = arith.addf %493, %492 : vector<4x2x1xf32>
    %495 = math.absf %494 : vector<4x2x1xf32>
    %cst_232 = arith.constant 9.99999993E-9 : f32
    %496 = vector.broadcast %cst_232 : f32 to vector<4x2x1xf32>
    %497 = arith.addf %495, %496 : vector<4x2x1xf32>
    %498 = math.log %497 : vector<4x2x1xf32>
    %c0_233 = arith.constant 0 : index
    %c0_234 = arith.constant 0 : index
    %c0_235 = arith.constant 0 : index
    %499 = vector.load %arg24[%c0_233, %c0_234, %c0_235] : memref<4x2x3xf32, #tpu.memory_space<vmem>>, vector<4x2x3xf32>
    tpu.vector_store %arg24[%c0_233, %c0_234, %c0_235], %474 {strides = array<i32>} : memref<4x2x3xf32, #tpu.memory_space<vmem>>, vector<4x2x3xf32>,
    %500 = tpu.concatenate %474, %459, %470, %487, %498 in 2 : vector<4x2x3xf32>, vector<4x2x3xf32>, vector<4x2x3xf32>, vector<4x2x3xf32>, vector<4x2x1xf32> -> vector<4x2x13xf32>
    %c2_236 = arith.constant 2 : index
    %c0_237 = arith.constant 0 : index
    %c0_238 = arith.constant 0 : index
    %c0_239 = arith.constant 0 : index
    %501 = vector.load %arg17[%c2_236, %c0_237, %c0_238, %c0_239] : memref<8x4x2x13xf32, #tpu.memory_space<vmem>>, vector<1x4x2x13xf32>
    %502 = vector.shape_cast %501 : vector<1x4x2x13xf32> to vector<4x2x13xf32>
    %503 = vector.shape_cast %500 : vector<4x2x13xf32> to vector<1x4x2x13xf32>
    tpu.vector_store %arg17[%c2_236, %c0_237, %c0_238, %c0_239], %503 {strides = array<i32>} : memref<8x4x2x13xf32, #tpu.memory_space<vmem>>, vector<1x4x2x13xf32>,
    %c0_240 = arith.constant 0 : index
    %c0_241 = arith.constant 0 : index
    %c0_242 = arith.constant 0 : index
    %504 = vector.load %arg24[%c0_240, %c0_241, %c0_242] : memref<4x2x3xf32, #tpu.memory_space<vmem>>, vector<4x2x3xf32>
    %c6_243 = arith.constant 6 : index
    %c0_244 = arith.constant 0 : index
    %505 = vector.load %arg23[%c6_243, %c0_244] : memref<16x6xf32, #tpu.memory_space<vmem>>, vector<2x6xf32>
    %506 = vector.shape_cast %505 : vector<2x6xf32> to vector<1x2x6xf32>
    %507 = vector.extract_strided_slice %504 {offsets = [0, 0, 0], sizes = [4, 2, 1], strides = [1, 1, 1]} : vector<4x2x3xf32> to vector<4x2x1xf32>
    %508 = vector.shape_cast %298 : vector<1x6xf32> to vector<1x1x6xf32>
    %509 = vector.broadcast %507 : vector<4x2x1xf32> to vector<4x2x6xf32>
    %510 = vector.broadcast %508 : vector<1x1x6xf32> to vector<4x2x6xf32>
    %511 = arith.mulf %509, %510 : vector<4x2x6xf32>
    %512 = vector.broadcast %506 : vector<1x2x6xf32> to vector<4x2x6xf32>
    %513 = arith.addf %512, %511 : vector<4x2x6xf32>
    %514 = vector.extract_strided_slice %504 {offsets = [0, 0, 1], sizes = [4, 2, 1], strides = [1, 1, 1]} : vector<4x2x3xf32> to vector<4x2x1xf32>
    %515 = vector.shape_cast %299 : vector<1x6xf32> to vector<1x1x6xf32>
    %516 = vector.broadcast %514 : vector<4x2x1xf32> to vector<4x2x6xf32>
    %517 = vector.broadcast %515 : vector<1x1x6xf32> to vector<4x2x6xf32>
    %518 = arith.mulf %516, %517 : vector<4x2x6xf32>
    %519 = arith.addf %513, %518 : vector<4x2x6xf32>
    %520 = vector.extract_strided_slice %504 {offsets = [0, 0, 2], sizes = [4, 2, 1], strides = [1, 1, 1]} : vector<4x2x3xf32> to vector<4x2x1xf32>
    %521 = vector.shape_cast %300 : vector<1x6xf32> to vector<1x1x6xf32>
    %522 = vector.broadcast %520 : vector<4x2x1xf32> to vector<4x2x6xf32>
    %523 = vector.broadcast %521 : vector<1x1x6xf32> to vector<4x2x6xf32>
    %524 = arith.mulf %522, %523 : vector<4x2x6xf32>
    %525 = arith.addf %519, %524 : vector<4x2x6xf32>
    %526 = vector.extract_strided_slice %525 {offsets = [0, 0, 0], sizes = [4, 2, 3], strides = [1, 1, 1]} : vector<4x2x6xf32> to vector<4x2x3xf32>
    %527 = vector.extract_strided_slice %525 {offsets = [0, 0, 3], sizes = [4, 2, 3], strides = [1, 1, 1]} : vector<4x2x6xf32> to vector<4x2x3xf32>
    %cst_245 = arith.constant 0.000000e+00 : f32
    %528 = vector.broadcast %cst_245 : f32 to vector<4x2x3xf32>
    %529 = arith.maximumf %527, %528 : vector<4x2x3xf32>
    %530 = math.absf %527 : vector<4x2x3xf32>
    %cst_246 = arith.constant 0.000000e+00 : f32
    %531 = vector.broadcast %cst_246 : f32 to vector<4x2x3xf32>
    %532 = arith.subf %531, %530 : vector<4x2x3xf32>
    %533 = math.exp %532 : vector<4x2x3xf32>
    %cst_247 = arith.constant 1.000000e+00 : f32
    %534 = vector.broadcast %cst_247 : f32 to vector<4x2x3xf32>
    %535 = arith.addf %534, %533 : vector<4x2x3xf32>
    %536 = math.log %535 : vector<4x2x3xf32>
    %537 = arith.addf %529, %536 : vector<4x2x3xf32>
    %c3 = arith.constant 3 : index
    %c0_248 = arith.constant 0 : index
    %c0_249 = arith.constant 0 : index
    %c0_250 = arith.constant 0 : index
    %538 = vector.load %arg2[%c3, %c0_248, %c0_249, %c0_250] : memref<8x4x2x3xf32, #tpu.memory_space<vmem>>, vector<1x4x2x3xf32>
    %539 = vector.shape_cast %538 : vector<1x4x2x3xf32> to vector<4x2x3xf32>
    %540 = arith.mulf %537, %539 : vector<4x2x3xf32>
    %541 = arith.addf %526, %540 : vector<4x2x3xf32>
    %542 = vector.shape_cast %295 : vector<1x3xf32> to vector<1x1x3xf32>
    %543 = vector.broadcast %542 : vector<1x1x3xf32> to vector<4x2x3xf32>
    %544 = arith.mulf %541, %543 : vector<4x2x3xf32>
    %cst_251 = arith.constant dense<0.000000e+00> : vector<4x2xf32>
    %545 = vector.multi_reduction <add>, %544, %cst_251 [2] : vector<4x2x3xf32> to vector<4x2xf32>
    %546 = vector.shape_cast %545 : vector<4x2xf32> to vector<4x2x1xf32>
    %547 = vector.broadcast %301 : f32 to vector<4x2x1xf32>
    %548 = arith.addf %546, %547 : vector<4x2x1xf32>
    %549 = math.tanh %548 : vector<4x2x1xf32>
    %550 = vector.shape_cast %296 : vector<1x3xf32> to vector<1x1x3xf32>
    %551 = vector.broadcast %550 : vector<1x1x3xf32> to vector<4x2x3xf32>
    %552 = vector.broadcast %549 : vector<4x2x1xf32> to vector<4x2x3xf32>
    %553 = arith.mulf %551, %552 : vector<4x2x3xf32>
    %554 = arith.addf %541, %553 : vector<4x2x3xf32>
    %555 = arith.mulf %549, %549 : vector<4x2x1xf32>
    %cst_252 = arith.constant 1.000000e+00 : f32
    %556 = vector.broadcast %cst_252 : f32 to vector<4x2x1xf32>
    %557 = arith.subf %556, %555 : vector<4x2x1xf32>
    %558 = vector.broadcast %302 : f32 to vector<4x2x1xf32>
    %559 = arith.mulf %557, %558 : vector<4x2x1xf32>
    %cst_253 = arith.constant 1.000000e+00 : f32
    %560 = vector.broadcast %cst_253 : f32 to vector<4x2x1xf32>
    %561 = arith.addf %560, %559 : vector<4x2x1xf32>
    %562 = math.absf %561 : vector<4x2x1xf32>
    %cst_254 = arith.constant 9.99999993E-9 : f32
    %563 = vector.broadcast %cst_254 : f32 to vector<4x2x1xf32>
    %564 = arith.addf %562, %563 : vector<4x2x1xf32>
    %565 = math.log %564 : vector<4x2x1xf32>
    %c0_255 = arith.constant 0 : index
    %c0_256 = arith.constant 0 : index
    %c0_257 = arith.constant 0 : index
    %566 = vector.load %arg24[%c0_255, %c0_256, %c0_257] : memref<4x2x3xf32, #tpu.memory_space<vmem>>, vector<4x2x3xf32>
    tpu.vector_store %arg24[%c0_255, %c0_256, %c0_257], %541 {strides = array<i32>} : memref<4x2x3xf32, #tpu.memory_space<vmem>>, vector<4x2x3xf32>,
    %567 = tpu.concatenate %541, %526, %537, %554, %565 in 2 : vector<4x2x3xf32>, vector<4x2x3xf32>, vector<4x2x3xf32>, vector<4x2x3xf32>, vector<4x2x1xf32> -> vector<4x2x13xf32>
    %c3_258 = arith.constant 3 : index
    %c0_259 = arith.constant 0 : index
    %c0_260 = arith.constant 0 : index
    %c0_261 = arith.constant 0 : index
    %568 = vector.load %arg17[%c3_258, %c0_259, %c0_260, %c0_261] : memref<8x4x2x13xf32, #tpu.memory_space<vmem>>, vector<1x4x2x13xf32>
    %569 = vector.shape_cast %568 : vector<1x4x2x13xf32> to vector<4x2x13xf32>
    %570 = vector.shape_cast %567 : vector<4x2x13xf32> to vector<1x4x2x13xf32>
    tpu.vector_store %arg17[%c3_258, %c0_259, %c0_260, %c0_261], %570 {strides = array<i32>} : memref<8x4x2x13xf32, #tpu.memory_space<vmem>>, vector<1x4x2x13xf32>,
    %c0_262 = arith.constant 0 : index
    %c0_263 = arith.constant 0 : index
    %c0_264 = arith.constant 0 : index
    %571 = vector.load %arg24[%c0_262, %c0_263, %c0_264] : memref<4x2x3xf32, #tpu.memory_space<vmem>>, vector<4x2x3xf32>
    %c8_265 = arith.constant 8 : index
    %c0_266 = arith.constant 0 : index
    %572 = vector.load %arg23[%c8_265, %c0_266] : memref<16x6xf32, #tpu.memory_space<vmem>>, vector<2x6xf32>
    %573 = vector.shape_cast %572 : vector<2x6xf32> to vector<1x2x6xf32>
    %574 = vector.extract_strided_slice %571 {offsets = [0, 0, 0], sizes = [4, 2, 1], strides = [1, 1, 1]} : vector<4x2x3xf32> to vector<4x2x1xf32>
    %575 = vector.shape_cast %298 : vector<1x6xf32> to vector<1x1x6xf32>
    %576 = vector.broadcast %574 : vector<4x2x1xf32> to vector<4x2x6xf32>
    %577 = vector.broadcast %575 : vector<1x1x6xf32> to vector<4x2x6xf32>
    %578 = arith.mulf %576, %577 : vector<4x2x6xf32>
    %579 = vector.broadcast %573 : vector<1x2x6xf32> to vector<4x2x6xf32>
    %580 = arith.addf %579, %578 : vector<4x2x6xf32>
    %581 = vector.extract_strided_slice %571 {offsets = [0, 0, 1], sizes = [4, 2, 1], strides = [1, 1, 1]} : vector<4x2x3xf32> to vector<4x2x1xf32>
    %582 = vector.shape_cast %299 : vector<1x6xf32> to vector<1x1x6xf32>
    %583 = vector.broadcast %581 : vector<4x2x1xf32> to vector<4x2x6xf32>
    %584 = vector.broadcast %582 : vector<1x1x6xf32> to vector<4x2x6xf32>
    %585 = arith.mulf %583, %584 : vector<4x2x6xf32>
    %586 = arith.addf %580, %585 : vector<4x2x6xf32>
    %587 = vector.extract_strided_slice %571 {offsets = [0, 0, 2], sizes = [4, 2, 1], strides = [1, 1, 1]} : vector<4x2x3xf32> to vector<4x2x1xf32>
    %588 = vector.shape_cast %300 : vector<1x6xf32> to vector<1x1x6xf32>
    %589 = vector.broadcast %587 : vector<4x2x1xf32> to vector<4x2x6xf32>
    %590 = vector.broadcast %588 : vector<1x1x6xf32> to vector<4x2x6xf32>
    %591 = arith.mulf %589, %590 : vector<4x2x6xf32>
    %592 = arith.addf %586, %591 : vector<4x2x6xf32>
    %593 = vector.extract_strided_slice %592 {offsets = [0, 0, 0], sizes = [4, 2, 3], strides = [1, 1, 1]} : vector<4x2x6xf32> to vector<4x2x3xf32>
    %594 = vector.extract_strided_slice %592 {offsets = [0, 0, 3], sizes = [4, 2, 3], strides = [1, 1, 1]} : vector<4x2x6xf32> to vector<4x2x3xf32>
    %cst_267 = arith.constant 0.000000e+00 : f32
    %595 = vector.broadcast %cst_267 : f32 to vector<4x2x3xf32>
    %596 = arith.maximumf %594, %595 : vector<4x2x3xf32>
    %597 = math.absf %594 : vector<4x2x3xf32>
    %cst_268 = arith.constant 0.000000e+00 : f32
    %598 = vector.broadcast %cst_268 : f32 to vector<4x2x3xf32>
    %599 = arith.subf %598, %597 : vector<4x2x3xf32>
    %600 = math.exp %599 : vector<4x2x3xf32>
    %cst_269 = arith.constant 1.000000e+00 : f32
    %601 = vector.broadcast %cst_269 : f32 to vector<4x2x3xf32>
    %602 = arith.addf %601, %600 : vector<4x2x3xf32>
    %603 = math.log %602 : vector<4x2x3xf32>
    %604 = arith.addf %596, %603 : vector<4x2x3xf32>
    %c4_270 = arith.constant 4 : index
    %c0_271 = arith.constant 0 : index
    %c0_272 = arith.constant 0 : index
    %c0_273 = arith.constant 0 : index
    %605 = vector.load %arg2[%c4_270, %c0_271, %c0_272, %c0_273] : memref<8x4x2x3xf32, #tpu.memory_space<vmem>>, vector<1x4x2x3xf32>
    %606 = vector.shape_cast %605 : vector<1x4x2x3xf32> to vector<4x2x3xf32>
    %607 = arith.mulf %604, %606 : vector<4x2x3xf32>
    %608 = arith.addf %593, %607 : vector<4x2x3xf32>
    %609 = vector.shape_cast %295 : vector<1x3xf32> to vector<1x1x3xf32>
    %610 = vector.broadcast %609 : vector<1x1x3xf32> to vector<4x2x3xf32>
    %611 = arith.mulf %608, %610 : vector<4x2x3xf32>
    %cst_274 = arith.constant dense<0.000000e+00> : vector<4x2xf32>
    %612 = vector.multi_reduction <add>, %611, %cst_274 [2] : vector<4x2x3xf32> to vector<4x2xf32>
    %613 = vector.shape_cast %612 : vector<4x2xf32> to vector<4x2x1xf32>
    %614 = vector.broadcast %301 : f32 to vector<4x2x1xf32>
    %615 = arith.addf %613, %614 : vector<4x2x1xf32>
    %616 = math.tanh %615 : vector<4x2x1xf32>
    %617 = vector.shape_cast %296 : vector<1x3xf32> to vector<1x1x3xf32>
    %618 = vector.broadcast %617 : vector<1x1x3xf32> to vector<4x2x3xf32>
    %619 = vector.broadcast %616 : vector<4x2x1xf32> to vector<4x2x3xf32>
    %620 = arith.mulf %618, %619 : vector<4x2x3xf32>
    %621 = arith.addf %608, %620 : vector<4x2x3xf32>
    %622 = arith.mulf %616, %616 : vector<4x2x1xf32>
    %cst_275 = arith.constant 1.000000e+00 : f32
    %623 = vector.broadcast %cst_275 : f32 to vector<4x2x1xf32>
    %624 = arith.subf %623, %622 : vector<4x2x1xf32>
    %625 = vector.broadcast %302 : f32 to vector<4x2x1xf32>
    %626 = arith.mulf %624, %625 : vector<4x2x1xf32>
    %cst_276 = arith.constant 1.000000e+00 : f32
    %627 = vector.broadcast %cst_276 : f32 to vector<4x2x1xf32>
    %628 = arith.addf %627, %626 : vector<4x2x1xf32>
    %629 = math.absf %628 : vector<4x2x1xf32>
    %cst_277 = arith.constant 9.99999993E-9 : f32
    %630 = vector.broadcast %cst_277 : f32 to vector<4x2x1xf32>
    %631 = arith.addf %629, %630 : vector<4x2x1xf32>
    %632 = math.log %631 : vector<4x2x1xf32>
    %c0_278 = arith.constant 0 : index
    %c0_279 = arith.constant 0 : index
    %c0_280 = arith.constant 0 : index
    %633 = vector.load %arg24[%c0_278, %c0_279, %c0_280] : memref<4x2x3xf32, #tpu.memory_space<vmem>>, vector<4x2x3xf32>
    tpu.vector_store %arg24[%c0_278, %c0_279, %c0_280], %608 {strides = array<i32>} : memref<4x2x3xf32, #tpu.memory_space<vmem>>, vector<4x2x3xf32>,
    %634 = tpu.concatenate %608, %593, %604, %621, %632 in 2 : vector<4x2x3xf32>, vector<4x2x3xf32>, vector<4x2x3xf32>, vector<4x2x3xf32>, vector<4x2x1xf32> -> vector<4x2x13xf32>
    %c4_281 = arith.constant 4 : index
    %c0_282 = arith.constant 0 : index
    %c0_283 = arith.constant 0 : index
    %c0_284 = arith.constant 0 : index
    %635 = vector.load %arg17[%c4_281, %c0_282, %c0_283, %c0_284] : memref<8x4x2x13xf32, #tpu.memory_space<vmem>>, vector<1x4x2x13xf32>
    %636 = vector.shape_cast %635 : vector<1x4x2x13xf32> to vector<4x2x13xf32>
    %637 = vector.shape_cast %634 : vector<4x2x13xf32> to vector<1x4x2x13xf32>
    tpu.vector_store %arg17[%c4_281, %c0_282, %c0_283, %c0_284], %637 {strides = array<i32>} : memref<8x4x2x13xf32, #tpu.memory_space<vmem>>, vector<1x4x2x13xf32>,
    %c0_285 = arith.constant 0 : index
    %c0_286 = arith.constant 0 : index
    %c0_287 = arith.constant 0 : index
    %638 = vector.load %arg24[%c0_285, %c0_286, %c0_287] : memref<4x2x3xf32, #tpu.memory_space<vmem>>, vector<4x2x3xf32>
    %c10_288 = arith.constant 10 : index
    %c0_289 = arith.constant 0 : index
    %639 = vector.load %arg23[%c10_288, %c0_289] : memref<16x6xf32, #tpu.memory_space<vmem>>, vector<2x6xf32>
    %640 = vector.shape_cast %639 : vector<2x6xf32> to vector<1x2x6xf32>
    %641 = vector.extract_strided_slice %638 {offsets = [0, 0, 0], sizes = [4, 2, 1], strides = [1, 1, 1]} : vector<4x2x3xf32> to vector<4x2x1xf32>
    %642 = vector.shape_cast %298 : vector<1x6xf32> to vector<1x1x6xf32>
    %643 = vector.broadcast %641 : vector<4x2x1xf32> to vector<4x2x6xf32>
    %644 = vector.broadcast %642 : vector<1x1x6xf32> to vector<4x2x6xf32>
    %645 = arith.mulf %643, %644 : vector<4x2x6xf32>
    %646 = vector.broadcast %640 : vector<1x2x6xf32> to vector<4x2x6xf32>
    %647 = arith.addf %646, %645 : vector<4x2x6xf32>
    %648 = vector.extract_strided_slice %638 {offsets = [0, 0, 1], sizes = [4, 2, 1], strides = [1, 1, 1]} : vector<4x2x3xf32> to vector<4x2x1xf32>
    %649 = vector.shape_cast %299 : vector<1x6xf32> to vector<1x1x6xf32>
    %650 = vector.broadcast %648 : vector<4x2x1xf32> to vector<4x2x6xf32>
    %651 = vector.broadcast %649 : vector<1x1x6xf32> to vector<4x2x6xf32>
    %652 = arith.mulf %650, %651 : vector<4x2x6xf32>
    %653 = arith.addf %647, %652 : vector<4x2x6xf32>
    %654 = vector.extract_strided_slice %638 {offsets = [0, 0, 2], sizes = [4, 2, 1], strides = [1, 1, 1]} : vector<4x2x3xf32> to vector<4x2x1xf32>
    %655 = vector.shape_cast %300 : vector<1x6xf32> to vector<1x1x6xf32>
    %656 = vector.broadcast %654 : vector<4x2x1xf32> to vector<4x2x6xf32>
    %657 = vector.broadcast %655 : vector<1x1x6xf32> to vector<4x2x6xf32>
    %658 = arith.mulf %656, %657 : vector<4x2x6xf32>
    %659 = arith.addf %653, %658 : vector<4x2x6xf32>
    %660 = vector.extract_strided_slice %659 {offsets = [0, 0, 0], sizes = [4, 2, 3], strides = [1, 1, 1]} : vector<4x2x6xf32> to vector<4x2x3xf32>
    %661 = vector.extract_strided_slice %659 {offsets = [0, 0, 3], sizes = [4, 2, 3], strides = [1, 1, 1]} : vector<4x2x6xf32> to vector<4x2x3xf32>
    %cst_290 = arith.constant 0.000000e+00 : f32
    %662 = vector.broadcast %cst_290 : f32 to vector<4x2x3xf32>
    %663 = arith.maximumf %661, %662 : vector<4x2x3xf32>
    %664 = math.absf %661 : vector<4x2x3xf32>
    %cst_291 = arith.constant 0.000000e+00 : f32
    %665 = vector.broadcast %cst_291 : f32 to vector<4x2x3xf32>
    %666 = arith.subf %665, %664 : vector<4x2x3xf32>
    %667 = math.exp %666 : vector<4x2x3xf32>
    %cst_292 = arith.constant 1.000000e+00 : f32
    %668 = vector.broadcast %cst_292 : f32 to vector<4x2x3xf32>
    %669 = arith.addf %668, %667 : vector<4x2x3xf32>
    %670 = math.log %669 : vector<4x2x3xf32>
    %671 = arith.addf %663, %670 : vector<4x2x3xf32>
    %c5 = arith.constant 5 : index
    %c0_293 = arith.constant 0 : index
    %c0_294 = arith.constant 0 : index
    %c0_295 = arith.constant 0 : index
    %672 = vector.load %arg2[%c5, %c0_293, %c0_294, %c0_295] : memref<8x4x2x3xf32, #tpu.memory_space<vmem>>, vector<1x4x2x3xf32>
    %673 = vector.shape_cast %672 : vector<1x4x2x3xf32> to vector<4x2x3xf32>
    %674 = arith.mulf %671, %673 : vector<4x2x3xf32>
    %675 = arith.addf %660, %674 : vector<4x2x3xf32>
    %676 = vector.shape_cast %295 : vector<1x3xf32> to vector<1x1x3xf32>
    %677 = vector.broadcast %676 : vector<1x1x3xf32> to vector<4x2x3xf32>
    %678 = arith.mulf %675, %677 : vector<4x2x3xf32>
    %cst_296 = arith.constant dense<0.000000e+00> : vector<4x2xf32>
    %679 = vector.multi_reduction <add>, %678, %cst_296 [2] : vector<4x2x3xf32> to vector<4x2xf32>
    %680 = vector.shape_cast %679 : vector<4x2xf32> to vector<4x2x1xf32>
    %681 = vector.broadcast %301 : f32 to vector<4x2x1xf32>
    %682 = arith.addf %680, %681 : vector<4x2x1xf32>
    %683 = math.tanh %682 : vector<4x2x1xf32>
    %684 = vector.shape_cast %296 : vector<1x3xf32> to vector<1x1x3xf32>
    %685 = vector.broadcast %684 : vector<1x1x3xf32> to vector<4x2x3xf32>
    %686 = vector.broadcast %683 : vector<4x2x1xf32> to vector<4x2x3xf32>
    %687 = arith.mulf %685, %686 : vector<4x2x3xf32>
    %688 = arith.addf %675, %687 : vector<4x2x3xf32>
    %689 = arith.mulf %683, %683 : vector<4x2x1xf32>
    %cst_297 = arith.constant 1.000000e+00 : f32
    %690 = vector.broadcast %cst_297 : f32 to vector<4x2x1xf32>
    %691 = arith.subf %690, %689 : vector<4x2x1xf32>
    %692 = vector.broadcast %302 : f32 to vector<4x2x1xf32>
    %693 = arith.mulf %691, %692 : vector<4x2x1xf32>
    %cst_298 = arith.constant 1.000000e+00 : f32
    %694 = vector.broadcast %cst_298 : f32 to vector<4x2x1xf32>
    %695 = arith.addf %694, %693 : vector<4x2x1xf32>
    %696 = math.absf %695 : vector<4x2x1xf32>
    %cst_299 = arith.constant 9.99999993E-9 : f32
    %697 = vector.broadcast %cst_299 : f32 to vector<4x2x1xf32>
    %698 = arith.addf %696, %697 : vector<4x2x1xf32>
    %699 = math.log %698 : vector<4x2x1xf32>
    %c0_300 = arith.constant 0 : index
    %c0_301 = arith.constant 0 : index
    %c0_302 = arith.constant 0 : index
    %700 = vector.load %arg24[%c0_300, %c0_301, %c0_302] : memref<4x2x3xf32, #tpu.memory_space<vmem>>, vector<4x2x3xf32>
    tpu.vector_store %arg24[%c0_300, %c0_301, %c0_302], %675 {strides = array<i32>} : memref<4x2x3xf32, #tpu.memory_space<vmem>>, vector<4x2x3xf32>,
    %701 = tpu.concatenate %675, %660, %671, %688, %699 in 2 : vector<4x2x3xf32>, vector<4x2x3xf32>, vector<4x2x3xf32>, vector<4x2x3xf32>, vector<4x2x1xf32> -> vector<4x2x13xf32>
    %c5_303 = arith.constant 5 : index
    %c0_304 = arith.constant 0 : index
    %c0_305 = arith.constant 0 : index
    %c0_306 = arith.constant 0 : index
    %702 = vector.load %arg17[%c5_303, %c0_304, %c0_305, %c0_306] : memref<8x4x2x13xf32, #tpu.memory_space<vmem>>, vector<1x4x2x13xf32>
    %703 = vector.shape_cast %702 : vector<1x4x2x13xf32> to vector<4x2x13xf32>
    %704 = vector.shape_cast %701 : vector<4x2x13xf32> to vector<1x4x2x13xf32>
    tpu.vector_store %arg17[%c5_303, %c0_304, %c0_305, %c0_306], %704 {strides = array<i32>} : memref<8x4x2x13xf32, #tpu.memory_space<vmem>>, vector<1x4x2x13xf32>,
    %c0_307 = arith.constant 0 : index
    %c0_308 = arith.constant 0 : index
    %c0_309 = arith.constant 0 : index
    %705 = vector.load %arg24[%c0_307, %c0_308, %c0_309] : memref<4x2x3xf32, #tpu.memory_space<vmem>>, vector<4x2x3xf32>
    %c12_310 = arith.constant 12 : index
    %c0_311 = arith.constant 0 : index
    %706 = vector.load %arg23[%c12_310, %c0_311] : memref<16x6xf32, #tpu.memory_space<vmem>>, vector<2x6xf32>
    %707 = vector.shape_cast %706 : vector<2x6xf32> to vector<1x2x6xf32>
    %708 = vector.extract_strided_slice %705 {offsets = [0, 0, 0], sizes = [4, 2, 1], strides = [1, 1, 1]} : vector<4x2x3xf32> to vector<4x2x1xf32>
    %709 = vector.shape_cast %298 : vector<1x6xf32> to vector<1x1x6xf32>
    %710 = vector.broadcast %708 : vector<4x2x1xf32> to vector<4x2x6xf32>
    %711 = vector.broadcast %709 : vector<1x1x6xf32> to vector<4x2x6xf32>
    %712 = arith.mulf %710, %711 : vector<4x2x6xf32>
    %713 = vector.broadcast %707 : vector<1x2x6xf32> to vector<4x2x6xf32>
    %714 = arith.addf %713, %712 : vector<4x2x6xf32>
    %715 = vector.extract_strided_slice %705 {offsets = [0, 0, 1], sizes = [4, 2, 1], strides = [1, 1, 1]} : vector<4x2x3xf32> to vector<4x2x1xf32>
    %716 = vector.shape_cast %299 : vector<1x6xf32> to vector<1x1x6xf32>
    %717 = vector.broadcast %715 : vector<4x2x1xf32> to vector<4x2x6xf32>
    %718 = vector.broadcast %716 : vector<1x1x6xf32> to vector<4x2x6xf32>
    %719 = arith.mulf %717, %718 : vector<4x2x6xf32>
    %720 = arith.addf %714, %719 : vector<4x2x6xf32>
    %721 = vector.extract_strided_slice %705 {offsets = [0, 0, 2], sizes = [4, 2, 1], strides = [1, 1, 1]} : vector<4x2x3xf32> to vector<4x2x1xf32>
    %722 = vector.shape_cast %300 : vector<1x6xf32> to vector<1x1x6xf32>
    %723 = vector.broadcast %721 : vector<4x2x1xf32> to vector<4x2x6xf32>
    %724 = vector.broadcast %722 : vector<1x1x6xf32> to vector<4x2x6xf32>
    %725 = arith.mulf %723, %724 : vector<4x2x6xf32>
    %726 = arith.addf %720, %725 : vector<4x2x6xf32>
    %727 = vector.extract_strided_slice %726 {offsets = [0, 0, 0], sizes = [4, 2, 3], strides = [1, 1, 1]} : vector<4x2x6xf32> to vector<4x2x3xf32>
    %728 = vector.extract_strided_slice %726 {offsets = [0, 0, 3], sizes = [4, 2, 3], strides = [1, 1, 1]} : vector<4x2x6xf32> to vector<4x2x3xf32>
    %cst_312 = arith.constant 0.000000e+00 : f32
    %729 = vector.broadcast %cst_312 : f32 to vector<4x2x3xf32>
    %730 = arith.maximumf %728, %729 : vector<4x2x3xf32>
    %731 = math.absf %728 : vector<4x2x3xf32>
    %cst_313 = arith.constant 0.000000e+00 : f32
    %732 = vector.broadcast %cst_313 : f32 to vector<4x2x3xf32>
    %733 = arith.subf %732, %731 : vector<4x2x3xf32>
    %734 = math.exp %733 : vector<4x2x3xf32>
    %cst_314 = arith.constant 1.000000e+00 : f32
    %735 = vector.broadcast %cst_314 : f32 to vector<4x2x3xf32>
    %736 = arith.addf %735, %734 : vector<4x2x3xf32>
    %737 = math.log %736 : vector<4x2x3xf32>
    %738 = arith.addf %730, %737 : vector<4x2x3xf32>
    %c6_315 = arith.constant 6 : index
    %c0_316 = arith.constant 0 : index
    %c0_317 = arith.constant 0 : index
    %c0_318 = arith.constant 0 : index
    %739 = vector.load %arg2[%c6_315, %c0_316, %c0_317, %c0_318] : memref<8x4x2x3xf32, #tpu.memory_space<vmem>>, vector<1x4x2x3xf32>
    %740 = vector.shape_cast %739 : vector<1x4x2x3xf32> to vector<4x2x3xf32>
    %741 = arith.mulf %738, %740 : vector<4x2x3xf32>
    %742 = arith.addf %727, %741 : vector<4x2x3xf32>
    %743 = vector.shape_cast %295 : vector<1x3xf32> to vector<1x1x3xf32>
    %744 = vector.broadcast %743 : vector<1x1x3xf32> to vector<4x2x3xf32>
    %745 = arith.mulf %742, %744 : vector<4x2x3xf32>
    %cst_319 = arith.constant dense<0.000000e+00> : vector<4x2xf32>
    %746 = vector.multi_reduction <add>, %745, %cst_319 [2] : vector<4x2x3xf32> to vector<4x2xf32>
    %747 = vector.shape_cast %746 : vector<4x2xf32> to vector<4x2x1xf32>
    %748 = vector.broadcast %301 : f32 to vector<4x2x1xf32>
    %749 = arith.addf %747, %748 : vector<4x2x1xf32>
    %750 = math.tanh %749 : vector<4x2x1xf32>
    %751 = vector.shape_cast %296 : vector<1x3xf32> to vector<1x1x3xf32>
    %752 = vector.broadcast %751 : vector<1x1x3xf32> to vector<4x2x3xf32>
    %753 = vector.broadcast %750 : vector<4x2x1xf32> to vector<4x2x3xf32>
    %754 = arith.mulf %752, %753 : vector<4x2x3xf32>
    %755 = arith.addf %742, %754 : vector<4x2x3xf32>
    %756 = arith.mulf %750, %750 : vector<4x2x1xf32>
    %cst_320 = arith.constant 1.000000e+00 : f32
    %757 = vector.broadcast %cst_320 : f32 to vector<4x2x1xf32>
    %758 = arith.subf %757, %756 : vector<4x2x1xf32>
    %759 = vector.broadcast %302 : f32 to vector<4x2x1xf32>
    %760 = arith.mulf %758, %759 : vector<4x2x1xf32>
    %cst_321 = arith.constant 1.000000e+00 : f32
    %761 = vector.broadcast %cst_321 : f32 to vector<4x2x1xf32>
    %762 = arith.addf %761, %760 : vector<4x2x1xf32>
    %763 = math.absf %762 : vector<4x2x1xf32>
    %cst_322 = arith.constant 9.99999993E-9 : f32
    %764 = vector.broadcast %cst_322 : f32 to vector<4x2x1xf32>
    %765 = arith.addf %763, %764 : vector<4x2x1xf32>
    %766 = math.log %765 : vector<4x2x1xf32>
    %c0_323 = arith.constant 0 : index
    %c0_324 = arith.constant 0 : index
    %c0_325 = arith.constant 0 : index
    %767 = vector.load %arg24[%c0_323, %c0_324, %c0_325] : memref<4x2x3xf32, #tpu.memory_space<vmem>>, vector<4x2x3xf32>
    tpu.vector_store %arg24[%c0_323, %c0_324, %c0_325], %742 {strides = array<i32>} : memref<4x2x3xf32, #tpu.memory_space<vmem>>, vector<4x2x3xf32>,
    %768 = tpu.concatenate %742, %727, %738, %755, %766 in 2 : vector<4x2x3xf32>, vector<4x2x3xf32>, vector<4x2x3xf32>, vector<4x2x3xf32>, vector<4x2x1xf32> -> vector<4x2x13xf32>
    %c6_326 = arith.constant 6 : index
    %c0_327 = arith.constant 0 : index
    %c0_328 = arith.constant 0 : index
    %c0_329 = arith.constant 0 : index
    %769 = vector.load %arg17[%c6_326, %c0_327, %c0_328, %c0_329] : memref<8x4x2x13xf32, #tpu.memory_space<vmem>>, vector<1x4x2x13xf32>
    %770 = vector.shape_cast %769 : vector<1x4x2x13xf32> to vector<4x2x13xf32>
    %771 = vector.shape_cast %768 : vector<4x2x13xf32> to vector<1x4x2x13xf32>
    tpu.vector_store %arg17[%c6_326, %c0_327, %c0_328, %c0_329], %771 {strides = array<i32>} : memref<8x4x2x13xf32, #tpu.memory_space<vmem>>, vector<1x4x2x13xf32>,
    %c0_330 = arith.constant 0 : index
    %c0_331 = arith.constant 0 : index
    %c0_332 = arith.constant 0 : index
    %772 = vector.load %arg24[%c0_330, %c0_331, %c0_332] : memref<4x2x3xf32, #tpu.memory_space<vmem>>, vector<4x2x3xf32>
    %c14_333 = arith.constant 14 : index
    %c0_334 = arith.constant 0 : index
    %773 = vector.load %arg23[%c14_333, %c0_334] : memref<16x6xf32, #tpu.memory_space<vmem>>, vector<2x6xf32>
    %774 = vector.shape_cast %773 : vector<2x6xf32> to vector<1x2x6xf32>
    %775 = vector.extract_strided_slice %772 {offsets = [0, 0, 0], sizes = [4, 2, 1], strides = [1, 1, 1]} : vector<4x2x3xf32> to vector<4x2x1xf32>
    %776 = vector.shape_cast %298 : vector<1x6xf32> to vector<1x1x6xf32>
    %777 = vector.broadcast %775 : vector<4x2x1xf32> to vector<4x2x6xf32>
    %778 = vector.broadcast %776 : vector<1x1x6xf32> to vector<4x2x6xf32>
    %779 = arith.mulf %777, %778 : vector<4x2x6xf32>
    %780 = vector.broadcast %774 : vector<1x2x6xf32> to vector<4x2x6xf32>
    %781 = arith.addf %780, %779 : vector<4x2x6xf32>
    %782 = vector.extract_strided_slice %772 {offsets = [0, 0, 1], sizes = [4, 2, 1], strides = [1, 1, 1]} : vector<4x2x3xf32> to vector<4x2x1xf32>
    %783 = vector.shape_cast %299 : vector<1x6xf32> to vector<1x1x6xf32>
    %784 = vector.broadcast %782 : vector<4x2x1xf32> to vector<4x2x6xf32>
    %785 = vector.broadcast %783 : vector<1x1x6xf32> to vector<4x2x6xf32>
    %786 = arith.mulf %784, %785 : vector<4x2x6xf32>
    %787 = arith.addf %781, %786 : vector<4x2x6xf32>
    %788 = vector.extract_strided_slice %772 {offsets = [0, 0, 2], sizes = [4, 2, 1], strides = [1, 1, 1]} : vector<4x2x3xf32> to vector<4x2x1xf32>
    %789 = vector.shape_cast %300 : vector<1x6xf32> to vector<1x1x6xf32>
    %790 = vector.broadcast %788 : vector<4x2x1xf32> to vector<4x2x6xf32>
    %791 = vector.broadcast %789 : vector<1x1x6xf32> to vector<4x2x6xf32>
    %792 = arith.mulf %790, %791 : vector<4x2x6xf32>
    %793 = arith.addf %787, %792 : vector<4x2x6xf32>
    %794 = vector.extract_strided_slice %793 {offsets = [0, 0, 0], sizes = [4, 2, 3], strides = [1, 1, 1]} : vector<4x2x6xf32> to vector<4x2x3xf32>
    %795 = vector.extract_strided_slice %793 {offsets = [0, 0, 3], sizes = [4, 2, 3], strides = [1, 1, 1]} : vector<4x2x6xf32> to vector<4x2x3xf32>
    %cst_335 = arith.constant 0.000000e+00 : f32
    %796 = vector.broadcast %cst_335 : f32 to vector<4x2x3xf32>
    %797 = arith.maximumf %795, %796 : vector<4x2x3xf32>
    %798 = math.absf %795 : vector<4x2x3xf32>
    %cst_336 = arith.constant 0.000000e+00 : f32
    %799 = vector.broadcast %cst_336 : f32 to vector<4x2x3xf32>
    %800 = arith.subf %799, %798 : vector<4x2x3xf32>
    %801 = math.exp %800 : vector<4x2x3xf32>
    %cst_337 = arith.constant 1.000000e+00 : f32
    %802 = vector.broadcast %cst_337 : f32 to vector<4x2x3xf32>
    %803 = arith.addf %802, %801 : vector<4x2x3xf32>
    %804 = math.log %803 : vector<4x2x3xf32>
    %805 = arith.addf %797, %804 : vector<4x2x3xf32>
    %c7 = arith.constant 7 : index
    %c0_338 = arith.constant 0 : index
    %c0_339 = arith.constant 0 : index
    %c0_340 = arith.constant 0 : index
    %806 = vector.load %arg2[%c7, %c0_338, %c0_339, %c0_340] : memref<8x4x2x3xf32, #tpu.memory_space<vmem>>, vector<1x4x2x3xf32>
    %807 = vector.shape_cast %806 : vector<1x4x2x3xf32> to vector<4x2x3xf32>
    %808 = arith.mulf %805, %807 : vector<4x2x3xf32>
    %809 = arith.addf %794, %808 : vector<4x2x3xf32>
    %810 = vector.shape_cast %295 : vector<1x3xf32> to vector<1x1x3xf32>
    %811 = vector.broadcast %810 : vector<1x1x3xf32> to vector<4x2x3xf32>
    %812 = arith.mulf %809, %811 : vector<4x2x3xf32>
    %cst_341 = arith.constant dense<0.000000e+00> : vector<4x2xf32>
    %813 = vector.multi_reduction <add>, %812, %cst_341 [2] : vector<4x2x3xf32> to vector<4x2xf32>
    %814 = vector.shape_cast %813 : vector<4x2xf32> to vector<4x2x1xf32>
    %815 = vector.broadcast %301 : f32 to vector<4x2x1xf32>
    %816 = arith.addf %814, %815 : vector<4x2x1xf32>
    %817 = math.tanh %816 : vector<4x2x1xf32>
    %818 = vector.shape_cast %296 : vector<1x3xf32> to vector<1x1x3xf32>
    %819 = vector.broadcast %818 : vector<1x1x3xf32> to vector<4x2x3xf32>
    %820 = vector.broadcast %817 : vector<4x2x1xf32> to vector<4x2x3xf32>
    %821 = arith.mulf %819, %820 : vector<4x2x3xf32>
    %822 = arith.addf %809, %821 : vector<4x2x3xf32>
    %823 = arith.mulf %817, %817 : vector<4x2x1xf32>
    %cst_342 = arith.constant 1.000000e+00 : f32
    %824 = vector.broadcast %cst_342 : f32 to vector<4x2x1xf32>
    %825 = arith.subf %824, %823 : vector<4x2x1xf32>
    %826 = vector.broadcast %302 : f32 to vector<4x2x1xf32>
    %827 = arith.mulf %825, %826 : vector<4x2x1xf32>
    %cst_343 = arith.constant 1.000000e+00 : f32
    %828 = vector.broadcast %cst_343 : f32 to vector<4x2x1xf32>
    %829 = arith.addf %828, %827 : vector<4x2x1xf32>
    %830 = math.absf %829 : vector<4x2x1xf32>
    %cst_344 = arith.constant 9.99999993E-9 : f32
    %831 = vector.broadcast %cst_344 : f32 to vector<4x2x1xf32>
    %832 = arith.addf %830, %831 : vector<4x2x1xf32>
    %833 = math.log %832 : vector<4x2x1xf32>
    %c0_345 = arith.constant 0 : index
    %c0_346 = arith.constant 0 : index
    %c0_347 = arith.constant 0 : index
    %834 = vector.load %arg24[%c0_345, %c0_346, %c0_347] : memref<4x2x3xf32, #tpu.memory_space<vmem>>, vector<4x2x3xf32>
    tpu.vector_store %arg24[%c0_345, %c0_346, %c0_347], %809 {strides = array<i32>} : memref<4x2x3xf32, #tpu.memory_space<vmem>>, vector<4x2x3xf32>,
    %835 = tpu.concatenate %809, %794, %805, %822, %833 in 2 : vector<4x2x3xf32>, vector<4x2x3xf32>, vector<4x2x3xf32>, vector<4x2x3xf32>, vector<4x2x1xf32> -> vector<4x2x13xf32>
    %c7_348 = arith.constant 7 : index
    %c0_349 = arith.constant 0 : index
    %c0_350 = arith.constant 0 : index
    %c0_351 = arith.constant 0 : index
    %836 = vector.load %arg17[%c7_348, %c0_349, %c0_350, %c0_351] : memref<8x4x2x13xf32, #tpu.memory_space<vmem>>, vector<1x4x2x13xf32>
    %837 = vector.shape_cast %836 : vector<1x4x2x13xf32> to vector<4x2x13xf32>
    %838 = vector.shape_cast %835 : vector<4x2x13xf32> to vector<1x4x2x13xf32>
    tpu.vector_store %arg17[%c7_348, %c0_349, %c0_350, %c0_351], %838 {strides = array<i32>} : memref<8x4x2x13xf32, #tpu.memory_space<vmem>>, vector<1x4x2x13xf32>,
    return
  }
  func.func @transform_0(%arg0: i32) -> (i32, i32) {
    %c0_i32 = arith.constant 0 : i32
    %c0_i32_0 = arith.constant 0 : i32
    %c0_i32_1 = arith.constant 0 : i32
    return %c0_i32, %c0_i32_0 : i32, i32
  }
  func.func @transform_1(%arg0: i32) -> (i32, i32, i32, i32) {
    %c0_i32 = arith.constant 0 : i32
    %c0_i32_0 = arith.constant 0 : i32
    %c0_i32_1 = arith.constant 0 : i32
    %c0_i32_2 = arith.constant 0 : i32
    %c0_i32_3 = arith.constant 0 : i32
    return %c0_i32, %c0_i32_0, %c0_i32_1, %c0_i32_2 : i32, i32, i32, i32
  }
  func.func @transform_2(%arg0: i32) -> (i32, i32) {
    %c0_i32 = arith.constant 0 : i32
    %c0_i32_0 = arith.constant 0 : i32
    %c0_i32_1 = arith.constant 0 : i32
    return %c0_i32, %c0_i32_0 : i32, i32
  }
  func.func @transform_3(%arg0: i32) -> (i32, i32) {
    %c0_i32 = arith.constant 0 : i32
    %c0_i32_0 = arith.constant 0 : i32
    %c0_i32_1 = arith.constant 0 : i32
    return %c0_i32, %c0_i32_0 : i32, i32
  }
  func.func @transform_4(%arg0: i32) -> (i32, i32) {
    %c0_i32 = arith.constant 0 : i32
    %c0_i32_0 = arith.constant 0 : i32
    %c0_i32_1 = arith.constant 0 : i32
    return %c0_i32, %c0_i32_0 : i32, i32
  }
  func.func @transform_5(%arg0: i32) -> (i32, i32) {
    %c0_i32 = arith.constant 0 : i32
    %c0_i32_0 = arith.constant 0 : i32
    %c0_i32_1 = arith.constant 0 : i32
    return %c0_i32, %c0_i32_0 : i32, i32
  }
  func.func @transform_6(%arg0: i32) -> (i32, i32) {
    %c0_i32 = arith.constant 0 : i32
    %c0_i32_0 = arith.constant 0 : i32
    %c0_i32_1 = arith.constant 0 : i32
    return %c0_i32, %c0_i32_0 : i32, i32
  }
  func.func @transform_7(%arg0: i32) -> (i32, i32) {
    %c0_i32 = arith.constant 0 : i32
    %c0_i32_0 = arith.constant 0 : i32
    %c0_i32_1 = arith.constant 0 : i32
    return %c0_i32, %c0_i32_0 : i32, i32
  }
  func.func @transform_8(%arg0: i32) -> (i32, i32) {
    %c0_i32 = arith.constant 0 : i32
    %c0_i32_0 = arith.constant 0 : i32
    %c0_i32_1 = arith.constant 0 : i32
    return %c0_i32, %c0_i32_0 : i32, i32
  }
  func.func @transform_9(%arg0: i32) -> (i32, i32) {
    %c0_i32 = arith.constant 0 : i32
    %c0_i32_0 = arith.constant 0 : i32
    %c0_i32_1 = arith.constant 0 : i32
    return %c0_i32, %c0_i32_0 : i32, i32
  }
  func.func @transform_10(%arg0: i32) -> (i32, i32) {
    %c0_i32 = arith.constant 0 : i32
    %c0_i32_0 = arith.constant 0 : i32
    %c0_i32_1 = arith.constant 0 : i32
    return %c0_i32, %c0_i32_0 : i32, i32
  }
  func.func @transform_11(%arg0: i32) -> (i32, i32) {
    %c0_i32 = arith.constant 0 : i32
    %c0_i32_0 = arith.constant 0 : i32
    %c0_i32_1 = arith.constant 0 : i32
    return %c0_i32, %c0_i32_0 : i32, i32
  }
  func.func @transform_12(%arg0: i32) -> (i32, i32) {
    %c0_i32 = arith.constant 0 : i32
    %c0_i32_0 = arith.constant 0 : i32
    %c0_i32_1 = arith.constant 0 : i32
    return %c0_i32, %c0_i32_0 : i32, i32
  }
  func.func @transform_13(%arg0: i32) -> (i32, i32) {
    %c0_i32 = arith.constant 0 : i32
    %c0_i32_0 = arith.constant 0 : i32
    %c0_i32_1 = arith.constant 0 : i32
    return %c0_i32, %c0_i32_0 : i32, i32
  }
  func.func @transform_14(%arg0: i32) -> (i32, i32) {
    %c0_i32 = arith.constant 0 : i32
    %c0_i32_0 = arith.constant 0 : i32
    %c0_i32_1 = arith.constant 0 : i32
    return %c0_i32, %c0_i32_0 : i32, i32
  }
  func.func @transform_15(%arg0: i32) -> i32 {
    %c0_i32 = arith.constant 0 : i32
    %c0_i32_0 = arith.constant 0 : i32
    return %c0_i32 : i32
  }
  func.func @transform_16(%arg0: i32) -> (i32, i32, i32, i32) {
    %c0_i32 = arith.constant 0 : i32
    %c0_i32_0 = arith.constant 0 : i32
    %c0_i32_1 = arith.constant 0 : i32
    %c0_i32_2 = arith.constant 0 : i32
    %c0_i32_3 = arith.constant 0 : i32
    return %c0_i32, %c0_i32_0, %c0_i32_1, %c0_i32_2 : i32, i32, i32, i32
  }
}

module attributes {stable_mosaic.version = 11 : i64} {
  func.func @_decoder_kernel(%arg0: i32, %arg1: memref<64x3xf32, #tpu.memory_space<vmem>>, %arg2: memref<3x96xf32, #tpu.memory_space<vmem>>, %arg3: memref<1x96xf32, #tpu.memory_space<vmem>>, %arg4: memref<32x96xf32, #tpu.memory_space<vmem>>, %arg5: memref<1x96xf32, #tpu.memory_space<vmem>>, %arg6: memref<32x32xf32, #tpu.memory_space<vmem>>, %arg7: memref<1x32xf32, #tpu.memory_space<vmem>>, %arg8: memref<32x32xf32, #tpu.memory_space<vmem>>, %arg9: memref<1x32xf32, #tpu.memory_space<vmem>>, %arg10: memref<32x8xf32, #tpu.memory_space<vmem>>, %arg11: memref<1x8xf32, #tpu.memory_space<vmem>>, %arg12: memref<64x8xf32, #tpu.memory_space<vmem>>, %arg13: memref<64x32xf32, #tpu.memory_space<vmem>>, %arg14: memref<64x32xf32, #tpu.memory_space<vmem>>, %arg15: memref<64x32xf32, #tpu.memory_space<vmem>>, %arg16: memref<8x32xf32, #tpu.memory_space<vmem>>, %arg17: memref<64x32xf32, #tpu.memory_space<vmem>>) attributes {dimension_semantics = [#tpu.dimension_semantics<arbitrary>], iteration_bounds = array<i64: 1>, scalar_prefetch = 0 : i64, scratch_operands = 5 : i64, tpu.core_type = #tpu.core_type<tc>, window_params = [{pipeline_mode = #tpu.pipeline_mode<synchronous>, transform_indices = @transform_0, window_bounds = array<i64: 64, 3>}, {pipeline_mode = #tpu.pipeline_mode<synchronous>, transform_indices = @transform_1, window_bounds = array<i64: 3, 96>}, {pipeline_mode = #tpu.pipeline_mode<synchronous>, transform_indices = @transform_2, window_bounds = array<i64: 1, 96>}, {pipeline_mode = #tpu.pipeline_mode<synchronous>, transform_indices = @transform_3, window_bounds = array<i64: 32, 96>}, {pipeline_mode = #tpu.pipeline_mode<synchronous>, transform_indices = @transform_4, window_bounds = array<i64: 1, 96>}, {pipeline_mode = #tpu.pipeline_mode<synchronous>, transform_indices = @transform_5, window_bounds = array<i64: 32, 32>}, {pipeline_mode = #tpu.pipeline_mode<synchronous>, transform_indices = @transform_6, window_bounds = array<i64: 1, 32>}, {pipeline_mode = #tpu.pipeline_mode<synchronous>, transform_indices = @transform_7, window_bounds = array<i64: 32, 32>}, {pipeline_mode = #tpu.pipeline_mode<synchronous>, transform_indices = @transform_8, window_bounds = array<i64: 1, 32>}, {pipeline_mode = #tpu.pipeline_mode<synchronous>, transform_indices = @transform_9, window_bounds = array<i64: 32, 8>}, {pipeline_mode = #tpu.pipeline_mode<synchronous>, transform_indices = @transform_10, window_bounds = array<i64: 1, 8>}, {pipeline_mode = #tpu.pipeline_mode<synchronous>, transform_indices = @transform_11, window_bounds = array<i64: 64, 8>}]} {
    %c0 = arith.constant 0 : index
    %c0_0 = arith.constant 0 : index
    %0 = vector.load %arg1[%c0, %c0_0] : memref<64x3xf32, #tpu.memory_space<vmem>>, vector<64x3xf32>
    %c0_1 = arith.constant 0 : index
    %c0_2 = arith.constant 0 : index
    %1 = vector.load %arg2[%c0_1, %c0_2] : memref<3x96xf32, #tpu.memory_space<vmem>>, vector<3x96xf32>
    %cst = arith.constant dense<0.000000e+00> : vector<64x96xf32>
    %2 = tpu.matmul %0, %1, %cst {dimension_numbers = #tpu.dot_dimension_numbers<[1], [0], [0], [1], [0, 0, 1, 1], [], []>} : vector<64x3xf32>, vector<3x96xf32>, vector<64x96xf32> -> vector<64x96xf32>
    %c0_3 = arith.constant 0 : index
    %c0_4 = arith.constant 0 : index
    %3 = vector.load %arg3[%c0_3, %c0_4] : memref<1x96xf32, #tpu.memory_space<vmem>>, vector<1x96xf32>
    %4 = vector.broadcast %3 : vector<1x96xf32> to vector<64x96xf32>
    %5 = arith.addf %2, %4 : vector<64x96xf32>
    %6 = vector.extract_strided_slice %5 {offsets = [0, 0], sizes = [64, 32], strides = [1, 1]} : vector<64x96xf32> to vector<64x32xf32>
    %c0_5 = arith.constant 0 : index
    %c0_6 = arith.constant 0 : index
    %7 = vector.load %arg13[%c0_5, %c0_6] : memref<64x32xf32, #tpu.memory_space<vmem>>, vector<64x32xf32>
    tpu.vector_store %arg13[%c0_5, %c0_6], %6 {strides = array<i32>} : memref<64x32xf32, #tpu.memory_space<vmem>>, vector<64x32xf32>,
    %8 = vector.extract_strided_slice %5 {offsets = [0, 32], sizes = [64, 32], strides = [1, 1]} : vector<64x96xf32> to vector<64x32xf32>
    %c0_7 = arith.constant 0 : index
    %c0_8 = arith.constant 0 : index
    %9 = vector.load %arg14[%c0_7, %c0_8] : memref<64x32xf32, #tpu.memory_space<vmem>>, vector<64x32xf32>
    tpu.vector_store %arg14[%c0_7, %c0_8], %8 {strides = array<i32>} : memref<64x32xf32, #tpu.memory_space<vmem>>, vector<64x32xf32>,
    %10 = vector.extract_strided_slice %5 {offsets = [0, 64], sizes = [64, 32], strides = [1, 1]} : vector<64x96xf32> to vector<64x32xf32>
    %c0_9 = arith.constant 0 : index
    %c0_10 = arith.constant 0 : index
    %11 = vector.load %arg15[%c0_9, %c0_10] : memref<64x32xf32, #tpu.memory_space<vmem>>, vector<64x32xf32>
    tpu.vector_store %arg15[%c0_9, %c0_10], %10 {strides = array<i32>} : memref<64x32xf32, #tpu.memory_space<vmem>>, vector<64x32xf32>,
    %c0_11 = arith.constant 0 : index
    %c0_12 = arith.constant 0 : index
    %12 = vector.load %arg4[%c0_11, %c0_12] : memref<32x96xf32, #tpu.memory_space<vmem>>, vector<32x96xf32>
    %c0_13 = arith.constant 0 : index
    %c0_14 = arith.constant 0 : index
    %13 = vector.load %arg5[%c0_13, %c0_14] : memref<1x96xf32, #tpu.memory_space<vmem>>, vector<1x96xf32>
    %cst_15 = arith.constant 0.000000e+00 : f32
    %14 = vector.broadcast %cst_15 : f32 to vector<8x32xf32>
    %c0_16 = arith.constant 0 : index
    %c0_17 = arith.constant 0 : index
    %15 = vector.load %arg16[%c0_16, %c0_17] : memref<8x32xf32, #tpu.memory_space<vmem>>, vector<8x32xf32>
    tpu.vector_store %arg16[%c0_16, %c0_17], %14 {strides = array<i32>} : memref<8x32xf32, #tpu.memory_space<vmem>>, vector<8x32xf32>,
    %c0_18 = arith.constant 0 : index
    %c0_19 = arith.constant 0 : index
    %16 = vector.load %arg16[%c0_18, %c0_19] : memref<8x32xf32, #tpu.memory_space<vmem>>, vector<8x32xf32>
    %cst_20 = arith.constant dense<0.000000e+00> : vector<8x96xf32>
    %17 = tpu.matmul %16, %12, %cst_20 {dimension_numbers = #tpu.dot_dimension_numbers<[1], [0], [0], [1], [0, 0, 1, 1], [], []>} : vector<8x32xf32>, vector<32x96xf32>, vector<8x96xf32> -> vector<8x96xf32>
    %18 = vector.broadcast %13 : vector<1x96xf32> to vector<8x96xf32>
    %19 = arith.addf %17, %18 : vector<8x96xf32>
    %c0_21 = arith.constant 0 : index
    %c0_22 = arith.constant 0 : index
    %20 = vector.load %arg13[%c0_21, %c0_22] : memref<64x32xf32, #tpu.memory_space<vmem>>, vector<8x32xf32>
    %21 = vector.extract_strided_slice %19 {offsets = [0, 0], sizes = [8, 32], strides = [1, 1]} : vector<8x96xf32> to vector<8x32xf32>
    %22 = arith.addf %20, %21 : vector<8x32xf32>
    %23 = arith.negf %22 : vector<8x32xf32>
    %24 = math.exp %23 : vector<8x32xf32>
    %cst_23 = arith.constant 1.000000e+00 : f32
    %25 = vector.broadcast %cst_23 : f32 to vector<8x32xf32>
    %26 = arith.addf %25, %24 : vector<8x32xf32>
    %27 = arith.divf %25, %26 : vector<8x32xf32>
    %c0_24 = arith.constant 0 : index
    %c0_25 = arith.constant 0 : index
    %28 = vector.load %arg14[%c0_24, %c0_25] : memref<64x32xf32, #tpu.memory_space<vmem>>, vector<8x32xf32>
    %29 = vector.extract_strided_slice %19 {offsets = [0, 32], sizes = [8, 32], strides = [1, 1]} : vector<8x96xf32> to vector<8x32xf32>
    %30 = arith.addf %28, %29 : vector<8x32xf32>
    %31 = arith.negf %30 : vector<8x32xf32>
    %32 = math.exp %31 : vector<8x32xf32>
    %cst_26 = arith.constant 1.000000e+00 : f32
    %33 = vector.broadcast %cst_26 : f32 to vector<8x32xf32>
    %34 = arith.addf %33, %32 : vector<8x32xf32>
    %35 = arith.divf %33, %34 : vector<8x32xf32>
    %c0_27 = arith.constant 0 : index
    %c0_28 = arith.constant 0 : index
    %36 = vector.load %arg15[%c0_27, %c0_28] : memref<64x32xf32, #tpu.memory_space<vmem>>, vector<8x32xf32>
    %37 = vector.extract_strided_slice %19 {offsets = [0, 64], sizes = [8, 32], strides = [1, 1]} : vector<8x96xf32> to vector<8x32xf32>
    %38 = arith.mulf %27, %37 : vector<8x32xf32>
    %39 = arith.addf %36, %38 : vector<8x32xf32>
    %40 = math.tanh %39 : vector<8x32xf32>
    %cst_29 = arith.constant 1.000000e+00 : f32
    %41 = vector.broadcast %cst_29 : f32 to vector<8x32xf32>
    %42 = arith.subf %41, %35 : vector<8x32xf32>
    %43 = arith.mulf %42, %40 : vector<8x32xf32>
    %44 = arith.mulf %35, %16 : vector<8x32xf32>
    %45 = arith.addf %43, %44 : vector<8x32xf32>
    %c0_30 = arith.constant 0 : index
    %c0_31 = arith.constant 0 : index
    %46 = vector.load %arg16[%c0_30, %c0_31] : memref<8x32xf32, #tpu.memory_space<vmem>>, vector<8x32xf32>
    tpu.vector_store %arg16[%c0_30, %c0_31], %45 {strides = array<i32>} : memref<8x32xf32, #tpu.memory_space<vmem>>, vector<8x32xf32>,
    %c0_32 = arith.constant 0 : index
    %c0_33 = arith.constant 0 : index
    %47 = vector.load %arg17[%c0_32, %c0_33] : memref<64x32xf32, #tpu.memory_space<vmem>>, vector<8x32xf32>
    tpu.vector_store %arg17[%c0_32, %c0_33], %45 {strides = array<i32>} : memref<64x32xf32, #tpu.memory_space<vmem>>, vector<8x32xf32>,
    %c0_34 = arith.constant 0 : index
    %c0_35 = arith.constant 0 : index
    %48 = vector.load %arg16[%c0_34, %c0_35] : memref<8x32xf32, #tpu.memory_space<vmem>>, vector<8x32xf32>
    %cst_36 = arith.constant dense<0.000000e+00> : vector<8x96xf32>
    %49 = tpu.matmul %48, %12, %cst_36 {dimension_numbers = #tpu.dot_dimension_numbers<[1], [0], [0], [1], [0, 0, 1, 1], [], []>} : vector<8x32xf32>, vector<32x96xf32>, vector<8x96xf32> -> vector<8x96xf32>
    %50 = vector.broadcast %13 : vector<1x96xf32> to vector<8x96xf32>
    %51 = arith.addf %49, %50 : vector<8x96xf32>
    %c8 = arith.constant 8 : index
    %c0_37 = arith.constant 0 : index
    %52 = vector.load %arg13[%c8, %c0_37] : memref<64x32xf32, #tpu.memory_space<vmem>>, vector<8x32xf32>
    %53 = vector.extract_strided_slice %51 {offsets = [0, 0], sizes = [8, 32], strides = [1, 1]} : vector<8x96xf32> to vector<8x32xf32>
    %54 = arith.addf %52, %53 : vector<8x32xf32>
    %55 = arith.negf %54 : vector<8x32xf32>
    %56 = math.exp %55 : vector<8x32xf32>
    %cst_38 = arith.constant 1.000000e+00 : f32
    %57 = vector.broadcast %cst_38 : f32 to vector<8x32xf32>
    %58 = arith.addf %57, %56 : vector<8x32xf32>
    %59 = arith.divf %57, %58 : vector<8x32xf32>
    %c8_39 = arith.constant 8 : index
    %c0_40 = arith.constant 0 : index
    %60 = vector.load %arg14[%c8_39, %c0_40] : memref<64x32xf32, #tpu.memory_space<vmem>>, vector<8x32xf32>
    %61 = vector.extract_strided_slice %51 {offsets = [0, 32], sizes = [8, 32], strides = [1, 1]} : vector<8x96xf32> to vector<8x32xf32>
    %62 = arith.addf %60, %61 : vector<8x32xf32>
    %63 = arith.negf %62 : vector<8x32xf32>
    %64 = math.exp %63 : vector<8x32xf32>
    %cst_41 = arith.constant 1.000000e+00 : f32
    %65 = vector.broadcast %cst_41 : f32 to vector<8x32xf32>
    %66 = arith.addf %65, %64 : vector<8x32xf32>
    %67 = arith.divf %65, %66 : vector<8x32xf32>
    %c8_42 = arith.constant 8 : index
    %c0_43 = arith.constant 0 : index
    %68 = vector.load %arg15[%c8_42, %c0_43] : memref<64x32xf32, #tpu.memory_space<vmem>>, vector<8x32xf32>
    %69 = vector.extract_strided_slice %51 {offsets = [0, 64], sizes = [8, 32], strides = [1, 1]} : vector<8x96xf32> to vector<8x32xf32>
    %70 = arith.mulf %59, %69 : vector<8x32xf32>
    %71 = arith.addf %68, %70 : vector<8x32xf32>
    %72 = math.tanh %71 : vector<8x32xf32>
    %cst_44 = arith.constant 1.000000e+00 : f32
    %73 = vector.broadcast %cst_44 : f32 to vector<8x32xf32>
    %74 = arith.subf %73, %67 : vector<8x32xf32>
    %75 = arith.mulf %74, %72 : vector<8x32xf32>
    %76 = arith.mulf %67, %48 : vector<8x32xf32>
    %77 = arith.addf %75, %76 : vector<8x32xf32>
    %c0_45 = arith.constant 0 : index
    %c0_46 = arith.constant 0 : index
    %78 = vector.load %arg16[%c0_45, %c0_46] : memref<8x32xf32, #tpu.memory_space<vmem>>, vector<8x32xf32>
    tpu.vector_store %arg16[%c0_45, %c0_46], %77 {strides = array<i32>} : memref<8x32xf32, #tpu.memory_space<vmem>>, vector<8x32xf32>,
    %c8_47 = arith.constant 8 : index
    %c0_48 = arith.constant 0 : index
    %79 = vector.load %arg17[%c8_47, %c0_48] : memref<64x32xf32, #tpu.memory_space<vmem>>, vector<8x32xf32>
    tpu.vector_store %arg17[%c8_47, %c0_48], %77 {strides = array<i32>} : memref<64x32xf32, #tpu.memory_space<vmem>>, vector<8x32xf32>,
    %c0_49 = arith.constant 0 : index
    %c0_50 = arith.constant 0 : index
    %80 = vector.load %arg16[%c0_49, %c0_50] : memref<8x32xf32, #tpu.memory_space<vmem>>, vector<8x32xf32>
    %cst_51 = arith.constant dense<0.000000e+00> : vector<8x96xf32>
    %81 = tpu.matmul %80, %12, %cst_51 {dimension_numbers = #tpu.dot_dimension_numbers<[1], [0], [0], [1], [0, 0, 1, 1], [], []>} : vector<8x32xf32>, vector<32x96xf32>, vector<8x96xf32> -> vector<8x96xf32>
    %82 = vector.broadcast %13 : vector<1x96xf32> to vector<8x96xf32>
    %83 = arith.addf %81, %82 : vector<8x96xf32>
    %c16 = arith.constant 16 : index
    %c0_52 = arith.constant 0 : index
    %84 = vector.load %arg13[%c16, %c0_52] : memref<64x32xf32, #tpu.memory_space<vmem>>, vector<8x32xf32>
    %85 = vector.extract_strided_slice %83 {offsets = [0, 0], sizes = [8, 32], strides = [1, 1]} : vector<8x96xf32> to vector<8x32xf32>
    %86 = arith.addf %84, %85 : vector<8x32xf32>
    %87 = arith.negf %86 : vector<8x32xf32>
    %88 = math.exp %87 : vector<8x32xf32>
    %cst_53 = arith.constant 1.000000e+00 : f32
    %89 = vector.broadcast %cst_53 : f32 to vector<8x32xf32>
    %90 = arith.addf %89, %88 : vector<8x32xf32>
    %91 = arith.divf %89, %90 : vector<8x32xf32>
    %c16_54 = arith.constant 16 : index
    %c0_55 = arith.constant 0 : index
    %92 = vector.load %arg14[%c16_54, %c0_55] : memref<64x32xf32, #tpu.memory_space<vmem>>, vector<8x32xf32>
    %93 = vector.extract_strided_slice %83 {offsets = [0, 32], sizes = [8, 32], strides = [1, 1]} : vector<8x96xf32> to vector<8x32xf32>
    %94 = arith.addf %92, %93 : vector<8x32xf32>
    %95 = arith.negf %94 : vector<8x32xf32>
    %96 = math.exp %95 : vector<8x32xf32>
    %cst_56 = arith.constant 1.000000e+00 : f32
    %97 = vector.broadcast %cst_56 : f32 to vector<8x32xf32>
    %98 = arith.addf %97, %96 : vector<8x32xf32>
    %99 = arith.divf %97, %98 : vector<8x32xf32>
    %c16_57 = arith.constant 16 : index
    %c0_58 = arith.constant 0 : index
    %100 = vector.load %arg15[%c16_57, %c0_58] : memref<64x32xf32, #tpu.memory_space<vmem>>, vector<8x32xf32>
    %101 = vector.extract_strided_slice %83 {offsets = [0, 64], sizes = [8, 32], strides = [1, 1]} : vector<8x96xf32> to vector<8x32xf32>
    %102 = arith.mulf %91, %101 : vector<8x32xf32>
    %103 = arith.addf %100, %102 : vector<8x32xf32>
    %104 = math.tanh %103 : vector<8x32xf32>
    %cst_59 = arith.constant 1.000000e+00 : f32
    %105 = vector.broadcast %cst_59 : f32 to vector<8x32xf32>
    %106 = arith.subf %105, %99 : vector<8x32xf32>
    %107 = arith.mulf %106, %104 : vector<8x32xf32>
    %108 = arith.mulf %99, %80 : vector<8x32xf32>
    %109 = arith.addf %107, %108 : vector<8x32xf32>
    %c0_60 = arith.constant 0 : index
    %c0_61 = arith.constant 0 : index
    %110 = vector.load %arg16[%c0_60, %c0_61] : memref<8x32xf32, #tpu.memory_space<vmem>>, vector<8x32xf32>
    tpu.vector_store %arg16[%c0_60, %c0_61], %109 {strides = array<i32>} : memref<8x32xf32, #tpu.memory_space<vmem>>, vector<8x32xf32>,
    %c16_62 = arith.constant 16 : index
    %c0_63 = arith.constant 0 : index
    %111 = vector.load %arg17[%c16_62, %c0_63] : memref<64x32xf32, #tpu.memory_space<vmem>>, vector<8x32xf32>
    tpu.vector_store %arg17[%c16_62, %c0_63], %109 {strides = array<i32>} : memref<64x32xf32, #tpu.memory_space<vmem>>, vector<8x32xf32>,
    %c0_64 = arith.constant 0 : index
    %c0_65 = arith.constant 0 : index
    %112 = vector.load %arg16[%c0_64, %c0_65] : memref<8x32xf32, #tpu.memory_space<vmem>>, vector<8x32xf32>
    %cst_66 = arith.constant dense<0.000000e+00> : vector<8x96xf32>
    %113 = tpu.matmul %112, %12, %cst_66 {dimension_numbers = #tpu.dot_dimension_numbers<[1], [0], [0], [1], [0, 0, 1, 1], [], []>} : vector<8x32xf32>, vector<32x96xf32>, vector<8x96xf32> -> vector<8x96xf32>
    %114 = vector.broadcast %13 : vector<1x96xf32> to vector<8x96xf32>
    %115 = arith.addf %113, %114 : vector<8x96xf32>
    %c24 = arith.constant 24 : index
    %c0_67 = arith.constant 0 : index
    %116 = vector.load %arg13[%c24, %c0_67] : memref<64x32xf32, #tpu.memory_space<vmem>>, vector<8x32xf32>
    %117 = vector.extract_strided_slice %115 {offsets = [0, 0], sizes = [8, 32], strides = [1, 1]} : vector<8x96xf32> to vector<8x32xf32>
    %118 = arith.addf %116, %117 : vector<8x32xf32>
    %119 = arith.negf %118 : vector<8x32xf32>
    %120 = math.exp %119 : vector<8x32xf32>
    %cst_68 = arith.constant 1.000000e+00 : f32
    %121 = vector.broadcast %cst_68 : f32 to vector<8x32xf32>
    %122 = arith.addf %121, %120 : vector<8x32xf32>
    %123 = arith.divf %121, %122 : vector<8x32xf32>
    %c24_69 = arith.constant 24 : index
    %c0_70 = arith.constant 0 : index
    %124 = vector.load %arg14[%c24_69, %c0_70] : memref<64x32xf32, #tpu.memory_space<vmem>>, vector<8x32xf32>
    %125 = vector.extract_strided_slice %115 {offsets = [0, 32], sizes = [8, 32], strides = [1, 1]} : vector<8x96xf32> to vector<8x32xf32>
    %126 = arith.addf %124, %125 : vector<8x32xf32>
    %127 = arith.negf %126 : vector<8x32xf32>
    %128 = math.exp %127 : vector<8x32xf32>
    %cst_71 = arith.constant 1.000000e+00 : f32
    %129 = vector.broadcast %cst_71 : f32 to vector<8x32xf32>
    %130 = arith.addf %129, %128 : vector<8x32xf32>
    %131 = arith.divf %129, %130 : vector<8x32xf32>
    %c24_72 = arith.constant 24 : index
    %c0_73 = arith.constant 0 : index
    %132 = vector.load %arg15[%c24_72, %c0_73] : memref<64x32xf32, #tpu.memory_space<vmem>>, vector<8x32xf32>
    %133 = vector.extract_strided_slice %115 {offsets = [0, 64], sizes = [8, 32], strides = [1, 1]} : vector<8x96xf32> to vector<8x32xf32>
    %134 = arith.mulf %123, %133 : vector<8x32xf32>
    %135 = arith.addf %132, %134 : vector<8x32xf32>
    %136 = math.tanh %135 : vector<8x32xf32>
    %cst_74 = arith.constant 1.000000e+00 : f32
    %137 = vector.broadcast %cst_74 : f32 to vector<8x32xf32>
    %138 = arith.subf %137, %131 : vector<8x32xf32>
    %139 = arith.mulf %138, %136 : vector<8x32xf32>
    %140 = arith.mulf %131, %112 : vector<8x32xf32>
    %141 = arith.addf %139, %140 : vector<8x32xf32>
    %c0_75 = arith.constant 0 : index
    %c0_76 = arith.constant 0 : index
    %142 = vector.load %arg16[%c0_75, %c0_76] : memref<8x32xf32, #tpu.memory_space<vmem>>, vector<8x32xf32>
    tpu.vector_store %arg16[%c0_75, %c0_76], %141 {strides = array<i32>} : memref<8x32xf32, #tpu.memory_space<vmem>>, vector<8x32xf32>,
    %c24_77 = arith.constant 24 : index
    %c0_78 = arith.constant 0 : index
    %143 = vector.load %arg17[%c24_77, %c0_78] : memref<64x32xf32, #tpu.memory_space<vmem>>, vector<8x32xf32>
    tpu.vector_store %arg17[%c24_77, %c0_78], %141 {strides = array<i32>} : memref<64x32xf32, #tpu.memory_space<vmem>>, vector<8x32xf32>,
    %c0_79 = arith.constant 0 : index
    %c0_80 = arith.constant 0 : index
    %144 = vector.load %arg16[%c0_79, %c0_80] : memref<8x32xf32, #tpu.memory_space<vmem>>, vector<8x32xf32>
    %cst_81 = arith.constant dense<0.000000e+00> : vector<8x96xf32>
    %145 = tpu.matmul %144, %12, %cst_81 {dimension_numbers = #tpu.dot_dimension_numbers<[1], [0], [0], [1], [0, 0, 1, 1], [], []>} : vector<8x32xf32>, vector<32x96xf32>, vector<8x96xf32> -> vector<8x96xf32>
    %146 = vector.broadcast %13 : vector<1x96xf32> to vector<8x96xf32>
    %147 = arith.addf %145, %146 : vector<8x96xf32>
    %c32 = arith.constant 32 : index
    %c0_82 = arith.constant 0 : index
    %148 = vector.load %arg13[%c32, %c0_82] : memref<64x32xf32, #tpu.memory_space<vmem>>, vector<8x32xf32>
    %149 = vector.extract_strided_slice %147 {offsets = [0, 0], sizes = [8, 32], strides = [1, 1]} : vector<8x96xf32> to vector<8x32xf32>
    %150 = arith.addf %148, %149 : vector<8x32xf32>
    %151 = arith.negf %150 : vector<8x32xf32>
    %152 = math.exp %151 : vector<8x32xf32>
    %cst_83 = arith.constant 1.000000e+00 : f32
    %153 = vector.broadcast %cst_83 : f32 to vector<8x32xf32>
    %154 = arith.addf %153, %152 : vector<8x32xf32>
    %155 = arith.divf %153, %154 : vector<8x32xf32>
    %c32_84 = arith.constant 32 : index
    %c0_85 = arith.constant 0 : index
    %156 = vector.load %arg14[%c32_84, %c0_85] : memref<64x32xf32, #tpu.memory_space<vmem>>, vector<8x32xf32>
    %157 = vector.extract_strided_slice %147 {offsets = [0, 32], sizes = [8, 32], strides = [1, 1]} : vector<8x96xf32> to vector<8x32xf32>
    %158 = arith.addf %156, %157 : vector<8x32xf32>
    %159 = arith.negf %158 : vector<8x32xf32>
    %160 = math.exp %159 : vector<8x32xf32>
    %cst_86 = arith.constant 1.000000e+00 : f32
    %161 = vector.broadcast %cst_86 : f32 to vector<8x32xf32>
    %162 = arith.addf %161, %160 : vector<8x32xf32>
    %163 = arith.divf %161, %162 : vector<8x32xf32>
    %c32_87 = arith.constant 32 : index
    %c0_88 = arith.constant 0 : index
    %164 = vector.load %arg15[%c32_87, %c0_88] : memref<64x32xf32, #tpu.memory_space<vmem>>, vector<8x32xf32>
    %165 = vector.extract_strided_slice %147 {offsets = [0, 64], sizes = [8, 32], strides = [1, 1]} : vector<8x96xf32> to vector<8x32xf32>
    %166 = arith.mulf %155, %165 : vector<8x32xf32>
    %167 = arith.addf %164, %166 : vector<8x32xf32>
    %168 = math.tanh %167 : vector<8x32xf32>
    %cst_89 = arith.constant 1.000000e+00 : f32
    %169 = vector.broadcast %cst_89 : f32 to vector<8x32xf32>
    %170 = arith.subf %169, %163 : vector<8x32xf32>
    %171 = arith.mulf %170, %168 : vector<8x32xf32>
    %172 = arith.mulf %163, %144 : vector<8x32xf32>
    %173 = arith.addf %171, %172 : vector<8x32xf32>
    %c0_90 = arith.constant 0 : index
    %c0_91 = arith.constant 0 : index
    %174 = vector.load %arg16[%c0_90, %c0_91] : memref<8x32xf32, #tpu.memory_space<vmem>>, vector<8x32xf32>
    tpu.vector_store %arg16[%c0_90, %c0_91], %173 {strides = array<i32>} : memref<8x32xf32, #tpu.memory_space<vmem>>, vector<8x32xf32>,
    %c32_92 = arith.constant 32 : index
    %c0_93 = arith.constant 0 : index
    %175 = vector.load %arg17[%c32_92, %c0_93] : memref<64x32xf32, #tpu.memory_space<vmem>>, vector<8x32xf32>
    tpu.vector_store %arg17[%c32_92, %c0_93], %173 {strides = array<i32>} : memref<64x32xf32, #tpu.memory_space<vmem>>, vector<8x32xf32>,
    %c0_94 = arith.constant 0 : index
    %c0_95 = arith.constant 0 : index
    %176 = vector.load %arg16[%c0_94, %c0_95] : memref<8x32xf32, #tpu.memory_space<vmem>>, vector<8x32xf32>
    %cst_96 = arith.constant dense<0.000000e+00> : vector<8x96xf32>
    %177 = tpu.matmul %176, %12, %cst_96 {dimension_numbers = #tpu.dot_dimension_numbers<[1], [0], [0], [1], [0, 0, 1, 1], [], []>} : vector<8x32xf32>, vector<32x96xf32>, vector<8x96xf32> -> vector<8x96xf32>
    %178 = vector.broadcast %13 : vector<1x96xf32> to vector<8x96xf32>
    %179 = arith.addf %177, %178 : vector<8x96xf32>
    %c40 = arith.constant 40 : index
    %c0_97 = arith.constant 0 : index
    %180 = vector.load %arg13[%c40, %c0_97] : memref<64x32xf32, #tpu.memory_space<vmem>>, vector<8x32xf32>
    %181 = vector.extract_strided_slice %179 {offsets = [0, 0], sizes = [8, 32], strides = [1, 1]} : vector<8x96xf32> to vector<8x32xf32>
    %182 = arith.addf %180, %181 : vector<8x32xf32>
    %183 = arith.negf %182 : vector<8x32xf32>
    %184 = math.exp %183 : vector<8x32xf32>
    %cst_98 = arith.constant 1.000000e+00 : f32
    %185 = vector.broadcast %cst_98 : f32 to vector<8x32xf32>
    %186 = arith.addf %185, %184 : vector<8x32xf32>
    %187 = arith.divf %185, %186 : vector<8x32xf32>
    %c40_99 = arith.constant 40 : index
    %c0_100 = arith.constant 0 : index
    %188 = vector.load %arg14[%c40_99, %c0_100] : memref<64x32xf32, #tpu.memory_space<vmem>>, vector<8x32xf32>
    %189 = vector.extract_strided_slice %179 {offsets = [0, 32], sizes = [8, 32], strides = [1, 1]} : vector<8x96xf32> to vector<8x32xf32>
    %190 = arith.addf %188, %189 : vector<8x32xf32>
    %191 = arith.negf %190 : vector<8x32xf32>
    %192 = math.exp %191 : vector<8x32xf32>
    %cst_101 = arith.constant 1.000000e+00 : f32
    %193 = vector.broadcast %cst_101 : f32 to vector<8x32xf32>
    %194 = arith.addf %193, %192 : vector<8x32xf32>
    %195 = arith.divf %193, %194 : vector<8x32xf32>
    %c40_102 = arith.constant 40 : index
    %c0_103 = arith.constant 0 : index
    %196 = vector.load %arg15[%c40_102, %c0_103] : memref<64x32xf32, #tpu.memory_space<vmem>>, vector<8x32xf32>
    %197 = vector.extract_strided_slice %179 {offsets = [0, 64], sizes = [8, 32], strides = [1, 1]} : vector<8x96xf32> to vector<8x32xf32>
    %198 = arith.mulf %187, %197 : vector<8x32xf32>
    %199 = arith.addf %196, %198 : vector<8x32xf32>
    %200 = math.tanh %199 : vector<8x32xf32>
    %cst_104 = arith.constant 1.000000e+00 : f32
    %201 = vector.broadcast %cst_104 : f32 to vector<8x32xf32>
    %202 = arith.subf %201, %195 : vector<8x32xf32>
    %203 = arith.mulf %202, %200 : vector<8x32xf32>
    %204 = arith.mulf %195, %176 : vector<8x32xf32>
    %205 = arith.addf %203, %204 : vector<8x32xf32>
    %c0_105 = arith.constant 0 : index
    %c0_106 = arith.constant 0 : index
    %206 = vector.load %arg16[%c0_105, %c0_106] : memref<8x32xf32, #tpu.memory_space<vmem>>, vector<8x32xf32>
    tpu.vector_store %arg16[%c0_105, %c0_106], %205 {strides = array<i32>} : memref<8x32xf32, #tpu.memory_space<vmem>>, vector<8x32xf32>,
    %c40_107 = arith.constant 40 : index
    %c0_108 = arith.constant 0 : index
    %207 = vector.load %arg17[%c40_107, %c0_108] : memref<64x32xf32, #tpu.memory_space<vmem>>, vector<8x32xf32>
    tpu.vector_store %arg17[%c40_107, %c0_108], %205 {strides = array<i32>} : memref<64x32xf32, #tpu.memory_space<vmem>>, vector<8x32xf32>,
    %c0_109 = arith.constant 0 : index
    %c0_110 = arith.constant 0 : index
    %208 = vector.load %arg16[%c0_109, %c0_110] : memref<8x32xf32, #tpu.memory_space<vmem>>, vector<8x32xf32>
    %cst_111 = arith.constant dense<0.000000e+00> : vector<8x96xf32>
    %209 = tpu.matmul %208, %12, %cst_111 {dimension_numbers = #tpu.dot_dimension_numbers<[1], [0], [0], [1], [0, 0, 1, 1], [], []>} : vector<8x32xf32>, vector<32x96xf32>, vector<8x96xf32> -> vector<8x96xf32>
    %210 = vector.broadcast %13 : vector<1x96xf32> to vector<8x96xf32>
    %211 = arith.addf %209, %210 : vector<8x96xf32>
    %c48 = arith.constant 48 : index
    %c0_112 = arith.constant 0 : index
    %212 = vector.load %arg13[%c48, %c0_112] : memref<64x32xf32, #tpu.memory_space<vmem>>, vector<8x32xf32>
    %213 = vector.extract_strided_slice %211 {offsets = [0, 0], sizes = [8, 32], strides = [1, 1]} : vector<8x96xf32> to vector<8x32xf32>
    %214 = arith.addf %212, %213 : vector<8x32xf32>
    %215 = arith.negf %214 : vector<8x32xf32>
    %216 = math.exp %215 : vector<8x32xf32>
    %cst_113 = arith.constant 1.000000e+00 : f32
    %217 = vector.broadcast %cst_113 : f32 to vector<8x32xf32>
    %218 = arith.addf %217, %216 : vector<8x32xf32>
    %219 = arith.divf %217, %218 : vector<8x32xf32>
    %c48_114 = arith.constant 48 : index
    %c0_115 = arith.constant 0 : index
    %220 = vector.load %arg14[%c48_114, %c0_115] : memref<64x32xf32, #tpu.memory_space<vmem>>, vector<8x32xf32>
    %221 = vector.extract_strided_slice %211 {offsets = [0, 32], sizes = [8, 32], strides = [1, 1]} : vector<8x96xf32> to vector<8x32xf32>
    %222 = arith.addf %220, %221 : vector<8x32xf32>
    %223 = arith.negf %222 : vector<8x32xf32>
    %224 = math.exp %223 : vector<8x32xf32>
    %cst_116 = arith.constant 1.000000e+00 : f32
    %225 = vector.broadcast %cst_116 : f32 to vector<8x32xf32>
    %226 = arith.addf %225, %224 : vector<8x32xf32>
    %227 = arith.divf %225, %226 : vector<8x32xf32>
    %c48_117 = arith.constant 48 : index
    %c0_118 = arith.constant 0 : index
    %228 = vector.load %arg15[%c48_117, %c0_118] : memref<64x32xf32, #tpu.memory_space<vmem>>, vector<8x32xf32>
    %229 = vector.extract_strided_slice %211 {offsets = [0, 64], sizes = [8, 32], strides = [1, 1]} : vector<8x96xf32> to vector<8x32xf32>
    %230 = arith.mulf %219, %229 : vector<8x32xf32>
    %231 = arith.addf %228, %230 : vector<8x32xf32>
    %232 = math.tanh %231 : vector<8x32xf32>
    %cst_119 = arith.constant 1.000000e+00 : f32
    %233 = vector.broadcast %cst_119 : f32 to vector<8x32xf32>
    %234 = arith.subf %233, %227 : vector<8x32xf32>
    %235 = arith.mulf %234, %232 : vector<8x32xf32>
    %236 = arith.mulf %227, %208 : vector<8x32xf32>
    %237 = arith.addf %235, %236 : vector<8x32xf32>
    %c0_120 = arith.constant 0 : index
    %c0_121 = arith.constant 0 : index
    %238 = vector.load %arg16[%c0_120, %c0_121] : memref<8x32xf32, #tpu.memory_space<vmem>>, vector<8x32xf32>
    tpu.vector_store %arg16[%c0_120, %c0_121], %237 {strides = array<i32>} : memref<8x32xf32, #tpu.memory_space<vmem>>, vector<8x32xf32>,
    %c48_122 = arith.constant 48 : index
    %c0_123 = arith.constant 0 : index
    %239 = vector.load %arg17[%c48_122, %c0_123] : memref<64x32xf32, #tpu.memory_space<vmem>>, vector<8x32xf32>
    tpu.vector_store %arg17[%c48_122, %c0_123], %237 {strides = array<i32>} : memref<64x32xf32, #tpu.memory_space<vmem>>, vector<8x32xf32>,
    %c0_124 = arith.constant 0 : index
    %c0_125 = arith.constant 0 : index
    %240 = vector.load %arg16[%c0_124, %c0_125] : memref<8x32xf32, #tpu.memory_space<vmem>>, vector<8x32xf32>
    %cst_126 = arith.constant dense<0.000000e+00> : vector<8x96xf32>
    %241 = tpu.matmul %240, %12, %cst_126 {dimension_numbers = #tpu.dot_dimension_numbers<[1], [0], [0], [1], [0, 0, 1, 1], [], []>} : vector<8x32xf32>, vector<32x96xf32>, vector<8x96xf32> -> vector<8x96xf32>
    %242 = vector.broadcast %13 : vector<1x96xf32> to vector<8x96xf32>
    %243 = arith.addf %241, %242 : vector<8x96xf32>
    %c56 = arith.constant 56 : index
    %c0_127 = arith.constant 0 : index
    %244 = vector.load %arg13[%c56, %c0_127] : memref<64x32xf32, #tpu.memory_space<vmem>>, vector<8x32xf32>
    %245 = vector.extract_strided_slice %243 {offsets = [0, 0], sizes = [8, 32], strides = [1, 1]} : vector<8x96xf32> to vector<8x32xf32>
    %246 = arith.addf %244, %245 : vector<8x32xf32>
    %247 = arith.negf %246 : vector<8x32xf32>
    %248 = math.exp %247 : vector<8x32xf32>
    %cst_128 = arith.constant 1.000000e+00 : f32
    %249 = vector.broadcast %cst_128 : f32 to vector<8x32xf32>
    %250 = arith.addf %249, %248 : vector<8x32xf32>
    %251 = arith.divf %249, %250 : vector<8x32xf32>
    %c56_129 = arith.constant 56 : index
    %c0_130 = arith.constant 0 : index
    %252 = vector.load %arg14[%c56_129, %c0_130] : memref<64x32xf32, #tpu.memory_space<vmem>>, vector<8x32xf32>
    %253 = vector.extract_strided_slice %243 {offsets = [0, 32], sizes = [8, 32], strides = [1, 1]} : vector<8x96xf32> to vector<8x32xf32>
    %254 = arith.addf %252, %253 : vector<8x32xf32>
    %255 = arith.negf %254 : vector<8x32xf32>
    %256 = math.exp %255 : vector<8x32xf32>
    %cst_131 = arith.constant 1.000000e+00 : f32
    %257 = vector.broadcast %cst_131 : f32 to vector<8x32xf32>
    %258 = arith.addf %257, %256 : vector<8x32xf32>
    %259 = arith.divf %257, %258 : vector<8x32xf32>
    %c56_132 = arith.constant 56 : index
    %c0_133 = arith.constant 0 : index
    %260 = vector.load %arg15[%c56_132, %c0_133] : memref<64x32xf32, #tpu.memory_space<vmem>>, vector<8x32xf32>
    %261 = vector.extract_strided_slice %243 {offsets = [0, 64], sizes = [8, 32], strides = [1, 1]} : vector<8x96xf32> to vector<8x32xf32>
    %262 = arith.mulf %251, %261 : vector<8x32xf32>
    %263 = arith.addf %260, %262 : vector<8x32xf32>
    %264 = math.tanh %263 : vector<8x32xf32>
    %cst_134 = arith.constant 1.000000e+00 : f32
    %265 = vector.broadcast %cst_134 : f32 to vector<8x32xf32>
    %266 = arith.subf %265, %259 : vector<8x32xf32>
    %267 = arith.mulf %266, %264 : vector<8x32xf32>
    %268 = arith.mulf %259, %240 : vector<8x32xf32>
    %269 = arith.addf %267, %268 : vector<8x32xf32>
    %c0_135 = arith.constant 0 : index
    %c0_136 = arith.constant 0 : index
    %270 = vector.load %arg16[%c0_135, %c0_136] : memref<8x32xf32, #tpu.memory_space<vmem>>, vector<8x32xf32>
    tpu.vector_store %arg16[%c0_135, %c0_136], %269 {strides = array<i32>} : memref<8x32xf32, #tpu.memory_space<vmem>>, vector<8x32xf32>,
    %c56_137 = arith.constant 56 : index
    %c0_138 = arith.constant 0 : index
    %271 = vector.load %arg17[%c56_137, %c0_138] : memref<64x32xf32, #tpu.memory_space<vmem>>, vector<8x32xf32>
    tpu.vector_store %arg17[%c56_137, %c0_138], %269 {strides = array<i32>} : memref<64x32xf32, #tpu.memory_space<vmem>>, vector<8x32xf32>,
    %c0_139 = arith.constant 0 : index
    %c0_140 = arith.constant 0 : index
    %272 = vector.load %arg17[%c0_139, %c0_140] : memref<64x32xf32, #tpu.memory_space<vmem>>, vector<64x32xf32>
    %c0_141 = arith.constant 0 : index
    %c0_142 = arith.constant 0 : index
    %273 = vector.load %arg6[%c0_141, %c0_142] : memref<32x32xf32, #tpu.memory_space<vmem>>, vector<32x32xf32>
    %cst_143 = arith.constant dense<0.000000e+00> : vector<64x32xf32>
    %274 = tpu.matmul %272, %273, %cst_143 {dimension_numbers = #tpu.dot_dimension_numbers<[1], [0], [0], [1], [0, 0, 1, 1], [], []>} : vector<64x32xf32>, vector<32x32xf32>, vector<64x32xf32> -> vector<64x32xf32>
    %c0_144 = arith.constant 0 : index
    %c0_145 = arith.constant 0 : index
    %275 = vector.load %arg7[%c0_144, %c0_145] : memref<1x32xf32, #tpu.memory_space<vmem>>, vector<1x32xf32>
    %276 = vector.broadcast %275 : vector<1x32xf32> to vector<64x32xf32>
    %277 = arith.addf %274, %276 : vector<64x32xf32>
    %cst_146 = arith.constant 0.000000e+00 : f32
    %278 = vector.broadcast %cst_146 : f32 to vector<64x32xf32>
    %279 = arith.maximumf %277, %278 : vector<64x32xf32>
    %c0_147 = arith.constant 0 : index
    %c0_148 = arith.constant 0 : index
    %280 = vector.load %arg8[%c0_147, %c0_148] : memref<32x32xf32, #tpu.memory_space<vmem>>, vector<32x32xf32>
    %cst_149 = arith.constant dense<0.000000e+00> : vector<64x32xf32>
    %281 = tpu.matmul %279, %280, %cst_149 {dimension_numbers = #tpu.dot_dimension_numbers<[1], [0], [0], [1], [0, 0, 1, 1], [], []>} : vector<64x32xf32>, vector<32x32xf32>, vector<64x32xf32> -> vector<64x32xf32>
    %c0_150 = arith.constant 0 : index
    %c0_151 = arith.constant 0 : index
    %282 = vector.load %arg9[%c0_150, %c0_151] : memref<1x32xf32, #tpu.memory_space<vmem>>, vector<1x32xf32>
    %283 = vector.broadcast %282 : vector<1x32xf32> to vector<64x32xf32>
    %284 = arith.addf %281, %283 : vector<64x32xf32>
    %cst_152 = arith.constant 0.000000e+00 : f32
    %285 = vector.broadcast %cst_152 : f32 to vector<64x32xf32>
    %286 = arith.maximumf %284, %285 : vector<64x32xf32>
    %c0_153 = arith.constant 0 : index
    %c0_154 = arith.constant 0 : index
    %287 = vector.load %arg10[%c0_153, %c0_154] : memref<32x8xf32, #tpu.memory_space<vmem>>, vector<32x8xf32>
    %cst_155 = arith.constant dense<0.000000e+00> : vector<64x8xf32>
    %288 = tpu.matmul %286, %287, %cst_155 {dimension_numbers = #tpu.dot_dimension_numbers<[1], [0], [0], [1], [0, 0, 1, 1], [], []>} : vector<64x32xf32>, vector<32x8xf32>, vector<64x8xf32> -> vector<64x8xf32>
    %c0_156 = arith.constant 0 : index
    %c0_157 = arith.constant 0 : index
    %289 = vector.load %arg11[%c0_156, %c0_157] : memref<1x8xf32, #tpu.memory_space<vmem>>, vector<1x8xf32>
    %290 = vector.broadcast %289 : vector<1x8xf32> to vector<64x8xf32>
    %291 = arith.addf %288, %290 : vector<64x8xf32>
    %292 = tpu.iota {dimensions = array<i32: 1>} : vector<64x8xi32>
    %c4_i32 = arith.constant 4 : i32
    %293 = vector.broadcast %c4_i32 : i32 to vector<64x8xi32>
    %294 = arith.cmpi sge, %292, %293 : vector<64x8xi32>
    %cst_158 = arith.constant 0.000000e+00 : f32
    %295 = vector.broadcast %cst_158 : f32 to vector<64x8xf32>
    %296 = arith.maximumf %291, %295 : vector<64x8xf32>
    %297 = math.absf %291 : vector<64x8xf32>
    %cst_159 = arith.constant 0.000000e+00 : f32
    %298 = vector.broadcast %cst_159 : f32 to vector<64x8xf32>
    %299 = arith.subf %298, %297 : vector<64x8xf32>
    %300 = math.exp %299 : vector<64x8xf32>
    %cst_160 = arith.constant 1.000000e+00 : f32
    %301 = vector.broadcast %cst_160 : f32 to vector<64x8xf32>
    %302 = arith.addf %301, %300 : vector<64x8xf32>
    %303 = math.log %302 : vector<64x8xf32>
    %304 = arith.addf %296, %303 : vector<64x8xf32>
    %cst_161 = arith.constant 0.00999999977 : f32
    %305 = vector.broadcast %cst_161 : f32 to vector<64x8xf32>
    %306 = arith.maximumf %304, %305 : vector<64x8xf32>
    %307 = arith.select %294, %306, %291 : vector<64x8xi1>, vector<64x8xf32>
    %c0_162 = arith.constant 0 : index
    %c0_163 = arith.constant 0 : index
    %308 = vector.load %arg12[%c0_162, %c0_163] : memref<64x8xf32, #tpu.memory_space<vmem>>, vector<64x8xf32>
    tpu.vector_store %arg12[%c0_162, %c0_163], %307 {strides = array<i32>} : memref<64x8xf32, #tpu.memory_space<vmem>>, vector<64x8xf32>,
    return
  }
  func.func @transform_0(%arg0: i32) -> (i32, i32) {
    %c0_i32 = arith.constant 0 : i32
    %c0_i32_0 = arith.constant 0 : i32
    %c0_i32_1 = arith.constant 0 : i32
    return %c0_i32, %c0_i32_0 : i32, i32
  }
  func.func @transform_1(%arg0: i32) -> (i32, i32) {
    %c0_i32 = arith.constant 0 : i32
    %c0_i32_0 = arith.constant 0 : i32
    %c0_i32_1 = arith.constant 0 : i32
    return %c0_i32, %c0_i32_0 : i32, i32
  }
  func.func @transform_2(%arg0: i32) -> (i32, i32) {
    %c0_i32 = arith.constant 0 : i32
    %c0_i32_0 = arith.constant 0 : i32
    %c0_i32_1 = arith.constant 0 : i32
    return %c0_i32, %c0_i32_0 : i32, i32
  }
  func.func @transform_3(%arg0: i32) -> (i32, i32) {
    %c0_i32 = arith.constant 0 : i32
    %c0_i32_0 = arith.constant 0 : i32
    %c0_i32_1 = arith.constant 0 : i32
    return %c0_i32, %c0_i32_0 : i32, i32
  }
  func.func @transform_4(%arg0: i32) -> (i32, i32) {
    %c0_i32 = arith.constant 0 : i32
    %c0_i32_0 = arith.constant 0 : i32
    %c0_i32_1 = arith.constant 0 : i32
    return %c0_i32, %c0_i32_0 : i32, i32
  }
  func.func @transform_5(%arg0: i32) -> (i32, i32) {
    %c0_i32 = arith.constant 0 : i32
    %c0_i32_0 = arith.constant 0 : i32
    %c0_i32_1 = arith.constant 0 : i32
    return %c0_i32, %c0_i32_0 : i32, i32
  }
  func.func @transform_6(%arg0: i32) -> (i32, i32) {
    %c0_i32 = arith.constant 0 : i32
    %c0_i32_0 = arith.constant 0 : i32
    %c0_i32_1 = arith.constant 0 : i32
    return %c0_i32, %c0_i32_0 : i32, i32
  }
  func.func @transform_7(%arg0: i32) -> (i32, i32) {
    %c0_i32 = arith.constant 0 : i32
    %c0_i32_0 = arith.constant 0 : i32
    %c0_i32_1 = arith.constant 0 : i32
    return %c0_i32, %c0_i32_0 : i32, i32
  }
  func.func @transform_8(%arg0: i32) -> (i32, i32) {
    %c0_i32 = arith.constant 0 : i32
    %c0_i32_0 = arith.constant 0 : i32
    %c0_i32_1 = arith.constant 0 : i32
    return %c0_i32, %c0_i32_0 : i32, i32
  }
  func.func @transform_9(%arg0: i32) -> (i32, i32) {
    %c0_i32 = arith.constant 0 : i32
    %c0_i32_0 = arith.constant 0 : i32
    %c0_i32_1 = arith.constant 0 : i32
    return %c0_i32, %c0_i32_0 : i32, i32
  }
  func.func @transform_10(%arg0: i32) -> (i32, i32) {
    %c0_i32 = arith.constant 0 : i32
    %c0_i32_0 = arith.constant 0 : i32
    %c0_i32_1 = arith.constant 0 : i32
    return %c0_i32, %c0_i32_0 : i32, i32
  }
  func.func @transform_11(%arg0: i32) -> (i32, i32) {
    %c0_i32 = arith.constant 0 : i32
    %c0_i32_0 = arith.constant 0 : i32
    %c0_i32_1 = arith.constant 0 : i32
    return %c0_i32, %c0_i32_0 : i32, i32
  }
}

</mosaic_0001>

<bundles_post_ra>
// kernel: vae_gru_forward.3
= control target key start
LH: loop header
LB: loop body
LE: loop exit
PB: predicated region body
PF: predicated region fallthrough
CT: control target
= control target key end

     0   :  { %vm79_vm0 = vcmask 1042432   ;;  %vm188_vm1 = vcmask 261120   ;;  %vm54_vm2 = vcmask 23552   ;;  %v2185_v6 = vmov 0.0   ;;  %s2188_s23 = smov 64   ;;  %s2639_s1 = inlined_call_operand.vmem [shape: f32[3,96], index: 1, kind: input, shape index: {}]   ;;  %s2640_s0 = inlined_call_operand.vmem [shape: f32[64,3], index: 0, kind: input, shape index: {}]   ;;  %s2641_s3 = inlined_call_operand.vmem [shape: f32[32,96], index: 3, kind: input, shape index: {}]   ;;  %s2642_s2 = inlined_call_operand.vmem [shape: f32[1,96], index: 2, kind: input, shape index: {}]   ;;  %s2643_s4 = inlined_call_operand.vmem [shape: f32[1,96], index: 4, kind: input, shape index: {}]   ;;  %s2644_s5 = inlined_call_operand.vmem [shape: f32[32,32], index: 5, kind: input, shape index: {}]   ;;  %s2645_s7 = inlined_call_operand.vmem [shape: f32[32,32], index: 7, kind: input, shape index: {}]   ;;  %s2646_s6 = inlined_call_operand.vmem [shape: f32[1,32], index: 6, kind: input, shape index: {}]   ;;  %s2647_s9 = inlined_call_operand.vmem [shape: f32[32,8], index: 9, kind: input, shape index: {}]   ;;  %s2648_s8 = inlined_call_operand.vmem [shape: f32[1,32], index: 8, kind: input, shape index: {}]   ;;  %s2649_s10 = inlined_call_operand.vmem [shape: f32[1,8], index: 10, kind: input, shape index: {}]   ;;  %s2650_s11 = inlined_call_operand.vmem [shape: f32[64,8], index: 11, kind: output, shape index: {}]  }
   0x1   :  { %v46_v0 = vld [vmem:[%s2639_s1] sm:$0x7]  ;;  %v39_v3 = vld [vmem:[%s2640_s0 + $0x8] sm:$0xff]  ;;  %274 = vst.msk [vmem:[#allocation5] sm:$0xff] %vm188_vm1, %v2185_v6  ;;  %v44_v8 = vld [vmem:[%s2640_s0 + $0x30] sm:$0xff]  ;;  %v2186_v13 = vmov 0.0|0.0  }
   0x2   :  { %v38_v1 = vld [vmem:[%s2640_s0] sm:$0xff]  ;;  %1832 = vmatprep.subr.msk.mxu0 %vm79_vm0, %v46_v0  ;;  %2066 = vmatprep.subr.msk.mxu1 %vm79_vm0, %v46_v0  ;;  %v43_v4 = vld [vmem:[%s2640_s0 + $0x28] sm:$0xff]  ;;  %v271_v10 = vld [vmem:[%s2641_s3 + $0x10] sm:$0xff]  ;;  %vm2187_vm3 = vmmov 0   ;;  %vm1672_vm5 = vcmask 64512  }
   0x3   :  { %v42_v2 = vld [vmem:[%s2640_s0 + $0x20] sm:$0xff]  ;;  %1833 = vmatpush3.msk.msra.mxu0 %vm79_vm0, %v46_v0  ;;  %2067 = vmatpush3.msk.msra.mxu1 %vm79_vm0, %v46_v0  ;;  %v270_v7 = vld [vmem:[%s2641_s3 + $0x8] sm:$0xff]  ;;  %v272_v11 = vld [vmem:[%s2641_s3 + $0x18] sm:$0xff] }
   0x4   :  { %v269_v5 = vld [vmem:[%s2641_s3] sm:$0xff]  ;;  %1834 = vmatprep.mubr.msk.f32.mxu0 %vm54_vm2, %v38_v1  ;;  %1840 = vmatprep.mubr.msk.f32.mxu1 %vm54_vm2, %v42_v2  ;;  %v40_v12 = vld [vmem:[%s2640_s0 + $0x10] sm:$0xff]  ;;  %v45_v14 = vld [vmem:[%s2640_s0 + $0x38] sm:$0xff]  ;;  %v2304_v16 = vpack.c.bf16 %v272_v11, %v271_v10 }
   0x5   :  { %v2282_v9 = vpack.c.bf16 %v270_v7, %v269_v5  ;;  %1835 = vmatmul.mubr.msk.f32.vlgmr.msra.gmra.mrb[0].mxu0 %vm54_vm2, %v39_v3  ;;  %1841 = vmatmul.mubr.msk.f32.vlgmr.msra.gmra.mrb[0].mxu1 %vm54_vm2, %v43_v4  ;;  %v41_v15 = vld [vmem:[%s2640_s0 + $0x18] sm:$0xff]  ;;  %v1685_v18 = vld [vmem:[%s2642_s2] ss:$0 sm:$0xff]  ;;  %s2189_s2 = smov 96  }
   0x6   :  { %1994 = vmatprep.subr.bf16.mxu1 %v2186_v13  ;;  %1843 = vmatprep.mubr.msk.f32.mxu1 %vm54_vm2, %v44_v8  ;;  %v2344_v35 = vld [vmem:[%s2643_s4] ss:$0 sm:$0xff] }
   0x7   :  { %1996 = vmatpush3.bf16.msra.mxu1 %v2282_v9  ;;  %1837 = vmatprep.mubr.msk.f32.mxu0 %vm54_vm2, %v40_v12 }
   0x8   :  { %1997 = vmatprep.subr.bf16.mxu1 %v2186_v13  ;;  %2006 = vmatprep.subr.bf16.mxu0 %v2186_v13  ;;  %v2315_v17 = vld [vmem:[#allocation5] sm:$0xff] }
   0x9   :  { %1844 = vmatmul.mubr.msk.f32.gmra.mrb[2].mxu1 %vm54_vm2, %v45_v14  ;;  %1838 = vmatmul.mubr.msk.f32.gmra.mrb[2].mxu0 %vm54_vm2, %v41_v15 }
   0xa   :  { %1854 = vmatprep.mubr.msk.f32.mxu1 %vm2187_vm3, %v2185_v6  ;;  %2008 = vmatpush3.bf16.msra.mxu0 %v2282_v9 }
   0xb   :  { %1999 = vmatpush3.bf16.msra.mxu1 %v2304_v16  ;;  %2009 = vmatprep.subr.bf16.mxu0 %v2186_v13 }
   0xc   :  { %2000 = vmatprep.subr.bf16.mxu1 %v2186_v13  ;;  %1876 = vmatprep.mubr.msk.f32.mxu0 %vm2187_vm3, %v2185_v6 }
   0xe   :  { %1855 = vmatmul.mubr.msk.f32.vlgmr.msra.gmra.mrb[4].mxu1 %vm188_vm1, %v2315_v17  ;;  %2011 = vmatpush3.bf16.msra.mxu0 %v2304_v16 }
   0xf   :  { %2002 = vmatpush3.bf16.msra.mxu1 %v2282_v9  ;;  %1865 = vmatprep.mubr.msk.f32.mxu1 %vm2187_vm3, %v2185_v6 }
  0x10   :  { %2003 = vmatprep.subr.bf16.mxu1 %v2186_v13  ;;  %2018 = vmatprep.subr.bf16.mxu0 %v2186_v13 }
  0x13   :  { %2005 = vmatpush3.bf16.msra.mxu1 %v2304_v16 }
  0x14   :  { %2012 = vmatprep.subr.bf16.mxu1 %v2186_v13 }
  0xd8   :  { %v1836_v19 = vpop.f32.mrb[0].mxu0  ;;  %v1842_v20 = vpop.f32.mrb[0].mxu1 }
  0xd9   :  { %v155_v21 = vadd.f32 %v1836_v19, %v1685_v18  ;;  %v175_v22 = vadd.f32 %v1842_v20, %v1685_v18  ;;  %v149_v23 = vpop.f32.mrb[1].mxu0  ;;  %v169_v24 = vpop.f32.mrb[1].mxu1 }
  0xda   :  { %v150_v25 = vadd.f32 %v1685_v18, %v149_v23  ;;  %v170_v26 = vadd.f32 %v1685_v18, %v169_v24 }
  0xdb   :  { %190 = vst.msk [vmem:[#allocation2 + $0x8] sm:$0xff] %vm188_vm1, %v155_v21  ;;  %194 = vst.msk [vmem:[#allocation2 + $0x28] sm:$0xff] %vm188_vm1, %v175_v22 }
  0xdc   :  { %189 = vst.msk [vmem:[#allocation2] sm:$0xff] %vm188_vm1, %v150_v25  ;;  %193 = vst.msk [vmem:[#allocation2 + $0x20] sm:$0xff] %vm188_vm1, %v170_v26  ;;  %v1845_v27 = vpop.f32.mrb[2].mxu1  ;;  %237 = vrot.lane.b32.xlu1 %v150_v25, %s2188_s23  ;;  %205 = vrot.lane.b32.xlu0 %v150_v25, %s2189_s2  ;;  %v1839_v28 = vpop.f32.mrb[2].mxu0 }
  0xdd   :  { %v185_v29 = vadd.f32 %v1845_v27, %v1685_v18  ;;  %v179_v30 = vpop.f32.mrb[3].mxu1  ;;  %v165_v31 = vadd.f32 %v1839_v28, %v1685_v18  ;;  %v159_v32 = vpop.f32.mrb[3].mxu0 }
  0xde   :  { %v180_v33 = vadd.f32 %v1685_v18, %v179_v30  ;;  %v160_v34 = vadd.f32 %v1685_v18, %v159_v32 }
  0xdf   :  { %196 = vst.msk [vmem:[#allocation2 + $0x38] sm:$0xff] %vm188_vm1, %v185_v29  ;;  %192 = vst.msk [vmem:[#allocation2 + $0x18] sm:$0xff] %vm188_vm1, %v165_v31 }
  0xe0   :  { %195 = vst.msk [vmem:[#allocation2 + $0x30] sm:$0xff] %vm188_vm1, %v180_v33  ;;  %191 = vst.msk [vmem:[#allocation2 + $0x10] sm:$0xff] %vm188_vm1, %v160_v34 }
  0xe1   :  { %v351_v36 = vpop.f32.mrb[4].mxu1 }
  0xe2   :  { %v352_v37 = vadd.f32 %v2344_v35, %v351_v36  ;;  %v1856_v38 = vpop.f32.mrb[5].mxu1 }
  0xe3   :  { %v355_v39 = vld [vmem:[#allocation2] sm:$0xff] }
  0xe4   :  { %376 = vrot.lane.b32.xlu1 %v352_v37, %s2188_s23  ;;  %365 = vrot.lane.b32.xlu0 %v352_v37, %s2189_s2  ;;  %v356_v40 = vadd.f32 %v355_v39, %v352_v37 }
  0xe6   :  { %v1697_v41 = vmul.f32 -1.442695, %v356_v40 }
  0xe8   :  { %207 = vrot.lane.b32.xlu0 %v155_v21, %s2189_s2  ;;  %2073 = vpow2.f32 %v1697_v41 }
  0xec   :  { %239 = vrot.lane.b32.xlu0 %v155_v21, %s2188_s23  ;;  %v462_v21 = vld [vmem:[#allocation2 + $0x8] sm:$0xff] }
  0xf0   :  { %209 = vrot.lane.b32.xlu0 %v160_v34, %s2189_s2 }
  0xf2   :  { %v2074_v44 = vpop.eup %2073 }
  0xf3   :  { %v360_v45 = vadd.f32 1.0, %v2074_v44 }
  0xf4   :  { %241 = vrot.lane.b32.xlu0 %v160_v34, %s2188_s23 }
  0xf5   :  { %2075 = vrcp.f32 %v360_v45 }
  0xf8   :  { %211 = vrot.lane.b32.xlu0 %v165_v31, %s2189_s2 }
  0xfc   :  { %243 = vrot.lane.b32.xlu0 %v165_v31, %s2188_s23 }
  0xff   :  { %v2076_v53 = vpop.eup %2075 }
 0x100   :  { %213 = vrot.lane.b32.xlu0 %v170_v26, %s2189_s2 }
 0x104   :  { %245 = vrot.lane.b32.xlu0 %v170_v26, %s2188_s23 }
 0x108   :  { %215 = vrot.lane.b32.xlu0 %v175_v22, %s2189_s2 }
 0x10c   :  { %247 = vrot.lane.b32.xlu0 %v175_v22, %s2188_s23 }
 0x110   :  { %217 = vrot.lane.b32.xlu0 %v180_v33, %s2189_s2 }
 0x114   :  { %249 = vrot.lane.b32.xlu0 %v180_v33, %s2188_s23 }
 0x118   :  { %219 = vrot.lane.b32.xlu0 %v185_v29, %s2189_s2 }
 0x11c   :  { %251 = vrot.lane.b32.xlu0 %v185_v29, %s2188_s23 }
 0x14e   :  { %v238_v42 = vpop.permute.xlu1 %237  ;;  %v206_v43 = vpop.permute.xlu0 %205 }
 0x14f   :  { %261 = vst.msk [vmem:[#allocation4] sm:$0xff] %vm188_vm1, %v238_v42  ;;  %229 = vst.msk [vmem:[#allocation3] sm:$0xff] %vm188_vm1, %v206_v43 }
 0x156   :  { %v363_v46 = vld [vmem:[#allocation3] sm:$0xff]  ;;  %v366_v47 = vpop.permute.xlu0 %365  ;;  %v377_v52 = vpop.permute.xlu1 %376 }
 0x157   :  { %v368_v48 = vadd.f32 %v366_v47, %v363_v46  ;;  %v379_v55 = vmul.f32 %v2076_v53, %v377_v52  ;;  %v375_v56 = vld [vmem:[#allocation4] sm:$0xff] }
 0x159   :  { %v1698_v49 = vmul.f32 -1.442695, %v368_v48  ;;  %v380_v59 = vadd.f32 %v379_v55, %v375_v56  ;;  %v569_v48 = vld [vmem:[#allocation2 + $0x10] sm:$0xff] }
 0x15a   :  { %v208_v50 = vpop.permute.xlu0 %207 }
 0x15b   :  { %230 = vst.msk [vmem:[#allocation3 + $0x8] sm:$0xff] %vm188_vm1, %v208_v50  ;;  %2077 = vpow2.f32 %v1698_v49 }
 0x15e   :  { %v240_v51 = vpop.permute.xlu0 %239 }
 0x15f   :  { %262 = vst.msk [vmem:[#allocation4 + $0x8] sm:$0xff] %vm188_vm1, %v240_v51 }
 0x162   :  { %v210_v54 = vpop.permute.xlu0 %209  ;;  %v470_v26 = vld [vmem:[#allocation3 + $0x8] sm:$0xff] }
 0x163   :  { %231 = vst.msk [vmem:[#allocation3 + $0x10] sm:$0xff] %vm188_vm1, %v210_v54 }
 0x165   :  { %v2078_v57 = vpop.eup %2077 }
 0x166   :  { %v242_v58 = vpop.permute.xlu0 %241  ;;  %v372_v60 = vadd.f32 1.0, %v2078_v57  ;;  %v482_v34 = vld [vmem:[#allocation4 + $0x8] sm:$0xff] }
 0x167   :  { %263 = vst.msk [vmem:[#allocation4 + $0x10] sm:$0xff] %vm188_vm1, %v242_v58 }
 0x168   :  { %2079 = vrcp.f32 %v372_v60 }
 0x169   :  { %2081 = vtanh.f32 %v380_v59 }
 0x16a   :  { %v212_v61 = vpop.permute.xlu0 %211  ;;  %v577_v53 = vld [vmem:[#allocation3 + $0x10] sm:$0xff] }
 0x16b   :  { %232 = vst.msk [vmem:[#allocation3 + $0x18] sm:$0xff] %vm188_vm1, %v212_v61 }
 0x16e   :  { %v244_v62 = vpop.permute.xlu0 %243  ;;  %v589_v61 = vld [vmem:[#allocation4 + $0x10] sm:$0xff] }
 0x16f   :  { %264 = vst.msk [vmem:[#allocation4 + $0x18] sm:$0xff] %vm188_vm1, %v244_v62 }
 0x172   :  { %v214_v63 = vpop.permute.xlu0 %213  ;;  %v2080_v0 = vpop.eup %2079 }
 0x173   :  { %233 = vst.msk [vmem:[#allocation3 + $0x20] sm:$0xff] %vm188_vm1, %v214_v63  ;;  %v382_v1 = vsub.f32 1.0, %v2080_v0  ;;  %v2082_v2 = vpop.eup %2081  ;;  %v384_v4 = vmul.f32 %v2080_v0, %v2315_v17 }
 0x175   :  { %v383_v3 = vmul.f32 %v2082_v2, %v382_v1 }
 0x176   :  { %v246_v5 = vpop.permute.xlu0 %245 }
 0x177   :  { %265 = vst.msk [vmem:[#allocation4 + $0x20] sm:$0xff] %vm188_vm1, %v246_v5  ;;  %v385_v7 = vadd.f32 %v384_v4, %v383_v3 }
 0x179   :  { %386 = vst.msk [vmem:[#allocation5] sm:$0xff] %vm188_vm1, %v385_v7  ;;  %387 = vst.msk [vmem:[#allocation6] sm:$0xff] %vm188_vm1, %v385_v7 }
 0x17a   :  { %v216_v8 = vpop.permute.xlu0 %215 }
 0x17b   :  { %234 = vst.msk [vmem:[#allocation3 + $0x28] sm:$0xff] %vm188_vm1, %v216_v8 }
 0x17e   :  { %v248_v10 = vpop.permute.xlu0 %247 }
 0x17f   :  { %266 = vst.msk [vmem:[#allocation4 + $0x28] sm:$0xff] %vm188_vm1, %v248_v10 }
 0x180   :  { %v388_v11 = vld [vmem:[#allocation5] sm:$0xff] }
 0x181   :  { %1866 = vmatmul.mubr.msk.f32.vlgmr.msra.gmra.mrb[6].mxu1 %vm188_vm1, %v388_v11 }
 0x182   :  { %v218_v12 = vpop.permute.xlu0 %217  ;;  %2014 = vmatpush3.bf16.msra.mxu1 %v2282_v9  ;;  %1887 = vmatprep.mubr.msk.f32.mxu1 %vm2187_vm3, %v2185_v6 }
 0x183   :  { %235 = vst.msk [vmem:[#allocation3 + $0x30] sm:$0xff] %vm188_vm1, %v218_v12  ;;  %2015 = vmatprep.subr.bf16.mxu1 %v2186_v13  ;;  %v676_v12 = vld [vmem:[#allocation2 + $0x18] sm:$0xff] }
 0x186   :  { %v250_v14 = vpop.permute.xlu0 %249  ;;  %2017 = vmatpush3.bf16.msra.mxu1 %v2304_v16 }
 0x187   :  { %267 = vst.msk [vmem:[#allocation4 + $0x30] sm:$0xff] %vm188_vm1, %v250_v14  ;;  %2024 = vmatprep.subr.bf16.mxu1 %v2186_v13 }
 0x18a   :  { %v220_v15 = vpop.permute.xlu0 %219 }
 0x18b   :  { %236 = vst.msk [vmem:[#allocation3 + $0x38] sm:$0xff] %vm188_vm1, %v220_v15 }
 0x18e   :  { %v252_v17 = vpop.permute.xlu0 %251 }
 0x18f   :  { %268 = vst.msk [vmem:[#allocation4 + $0x38] sm:$0xff] %vm188_vm1, %v252_v17 }
 0x254   :  { %v458_v18 = vpop.f32.mrb[6].mxu1 }
 0x255   :  { %v459_v19 = vadd.f32 %v2344_v35, %v458_v18  ;;  %v1867_v20 = vpop.f32.mrb[7].mxu1 }
 0x257   :  { %472 = vrot.lane.b32.xlu1 %v459_v19, %s2189_s2  ;;  %v463_v22 = vadd.f32 %v462_v21, %v459_v19 }
 0x259   :  { %v1700_v23 = vmul.f32 -1.442695, %v463_v22 }
 0x25b   :  { %483 = vrot.lane.b32.xlu1 %v459_v19, %s2188_s23  ;;  %2083 = vpow2.f32 %v1700_v23  ;;  %v684_v19 = vld [vmem:[#allocation3 + $0x18] sm:$0xff] }
 0x265   :  { %v2084_v24 = vpop.eup %2083 }
 0x266   :  { %v467_v25 = vadd.f32 1.0, %v2084_v24 }
 0x268   :  { %2085 = vrcp.f32 %v467_v25 }
 0x272   :  { %v2086_v31 = vpop.eup %2085 }
 0x2c9   :  { %v473_v27 = vpop.permute.xlu1 %472 }
 0x2ca   :  { %v475_v28 = vadd.f32 %v473_v27, %v470_v26  ;;  %v696_v27 = vld [vmem:[#allocation4 + $0x18] sm:$0xff] }
 0x2cc   :  { %v1701_v29 = vmul.f32 -1.442695, %v475_v28 }
 0x2cd   :  { %v484_v30 = vpop.permute.xlu1 %483 }
 0x2ce   :  { %2087 = vpow2.f32 %v1701_v29  ;;  %v486_v32 = vmul.f32 %v2086_v31, %v484_v30 }
 0x2d0   :  { %v487_v37 = vadd.f32 %v486_v32, %v482_v34 }
 0x2d8   :  { %v2088_v33 = vpop.eup %2087 }
 0x2d9   :  { %v479_v36 = vadd.f32 1.0, %v2088_v33 }
 0x2db   :  { %2089 = vrcp.f32 %v479_v36 }
 0x2dc   :  { %2091 = vtanh.f32 %v487_v37 }
 0x2e5   :  { %v2090_v38 = vpop.eup %2089 }
 0x2e6   :  { %v489_v39 = vsub.f32 1.0, %v2090_v38  ;;  %v2092_v40 = vpop.eup %2091  ;;  %v491_v41 = vmul.f32 %v2090_v38, %v388_v11 }
 0x2e8   :  { %v490_v42 = vmul.f32 %v2092_v40, %v489_v39 }
 0x2ea   :  { %v492_v43 = vadd.f32 %v491_v41, %v490_v42  ;;  %v783_v41 = vld [vmem:[#allocation2 + $0x20] sm:$0xff] }
 0x2ec   :  { %493 = vst.msk [vmem:[#allocation5] sm:$0xff] %vm188_vm1, %v492_v43  ;;  %494 = vst.msk [vmem:[#allocation6 + $0x8] sm:$0xff] %vm188_vm1, %v492_v43 }
 0x2f3   :  { %v495_v44 = vld [vmem:[#allocation5] sm:$0xff] }
 0x2f4   :  { %1877 = vmatmul.mubr.msk.f32.vlgmr.msra.gmra.mrb[4].mxu0 %vm188_vm1, %v495_v44 }
 0x2f5   :  { %2020 = vmatpush3.bf16.msra.mxu0 %v2282_v9  ;;  %1898 = vmatprep.mubr.msk.f32.mxu0 %vm2187_vm3, %v2185_v6 }
 0x2f6   :  { %2021 = vmatprep.subr.bf16.mxu0 %v2186_v13 }
 0x2f9   :  { %2023 = vmatpush3.bf16.msra.mxu0 %v2304_v16 }
 0x2fa   :  { %2030 = vmatprep.subr.bf16.mxu0 %v2186_v13 }
 0x3c7   :  { %v565_v45 = vpop.f32.mrb[4].mxu0 }
 0x3c8   :  { %v566_v46 = vadd.f32 %v2344_v35, %v565_v45  ;;  %v1878_v47 = vpop.f32.mrb[5].mxu0 }
 0x3ca   :  { %579 = vrot.lane.b32.xlu1 %v566_v46, %s2189_s2  ;;  %v570_v49 = vadd.f32 %v569_v48, %v566_v46 }
 0x3cc   :  { %v1703_v50 = vmul.f32 -1.442695, %v570_v49 }
 0x3ce   :  { %590 = vrot.lane.b32.xlu1 %v566_v46, %s2188_s23  ;;  %2093 = vpow2.f32 %v1703_v50  ;;  %v791_v46 = vld [vmem:[#allocation3 + $0x20] sm:$0xff] }
 0x3d8   :  { %v2094_v51 = vpop.eup %2093 }
 0x3d9   :  { %v574_v52 = vadd.f32 1.0, %v2094_v51 }
 0x3db   :  { %2095 = vrcp.f32 %v574_v52 }
 0x3e5   :  { %v2096_v58 = vpop.eup %2095 }
 0x43c   :  { %v580_v54 = vpop.permute.xlu1 %579 }
 0x43d   :  { %v582_v55 = vadd.f32 %v580_v54, %v577_v53  ;;  %v803_v54 = vld [vmem:[#allocation4 + $0x20] sm:$0xff] }
 0x43f   :  { %v1704_v56 = vmul.f32 -1.442695, %v582_v55 }
 0x440   :  { %v591_v57 = vpop.permute.xlu1 %590 }
 0x441   :  { %2097 = vpow2.f32 %v1704_v56  ;;  %v593_v59 = vmul.f32 %v2096_v58, %v591_v57 }
 0x443   :  { %v594_v63 = vadd.f32 %v593_v59, %v589_v61 }
 0x44b   :  { %v2098_v60 = vpop.eup %2097 }
 0x44c   :  { %v586_v62 = vadd.f32 1.0, %v2098_v60 }
 0x44e   :  { %2099 = vrcp.f32 %v586_v62 }
 0x44f   :  { %2101 = vtanh.f32 %v594_v63 }
 0x458   :  { %v2100_v0 = vpop.eup %2099 }
 0x459   :  { %v596_v1 = vsub.f32 1.0, %v2100_v0  ;;  %v2102_v2 = vpop.eup %2101  ;;  %v598_v3 = vmul.f32 %v2100_v0, %v495_v44 }
 0x45b   :  { %v597_v4 = vmul.f32 %v2102_v2, %v596_v1 }
 0x45d   :  { %v599_v5 = vadd.f32 %v598_v3, %v597_v4  ;;  %v1145_v3 = vld [vmem:[%s2644_s5] sm:$0xff] }
 0x45f   :  { %600 = vst.msk [vmem:[#allocation5] sm:$0xff] %vm188_vm1, %v599_v5  ;;  %601 = vst.msk [vmem:[#allocation6 + $0x10] sm:$0xff] %vm188_vm1, %v599_v5 }
 0x466   :  { %v602_v7 = vld [vmem:[#allocation5] sm:$0xff] }
 0x467   :  { %1888 = vmatmul.mubr.msk.f32.vlgmr.msra.gmra.mrb[8].mxu1 %vm188_vm1, %v602_v7 }
 0x468   :  { %2026 = vmatpush3.bf16.msra.mxu1 %v2282_v9  ;;  %1909 = vmatprep.mubr.msk.f32.mxu1 %vm2187_vm3, %v2185_v6 }
 0x469   :  { %2027 = vmatprep.subr.bf16.mxu1 %v2186_v13 }
 0x46c   :  { %2029 = vmatpush3.bf16.msra.mxu1 %v2304_v16 }
 0x46d   :  { %2036 = vmatprep.subr.bf16.mxu1 %v2186_v13 }
 0x53a   :  { %v672_v8 = vpop.f32.mrb[8].mxu1 }
 0x53b   :  { %v673_v10 = vadd.f32 %v2344_v35, %v672_v8  ;;  %v1889_v11 = vpop.f32.mrb[9].mxu1  ;;  %v898_v8 = vld [vmem:[#allocation3 + $0x28] sm:$0xff] }
 0x53d   :  { %686 = vrot.lane.b32.xlu1 %v673_v10, %s2189_s2  ;;  %v677_v14 = vadd.f32 %v676_v12, %v673_v10 }
 0x53f   :  { %v1706_v15 = vmul.f32 -1.442695, %v677_v14 }
 0x541   :  { %697 = vrot.lane.b32.xlu1 %v673_v10, %s2188_s23  ;;  %2103 = vpow2.f32 %v1706_v15 }
 0x54b   :  { %v2104_v17 = vpop.eup %2103 }
 0x54c   :  { %v681_v18 = vadd.f32 1.0, %v2104_v17 }
 0x54e   :  { %2105 = vrcp.f32 %v681_v18 }
 0x558   :  { %v2106_v24 = vpop.eup %2105 }
 0x5af   :  { %v687_v20 = vpop.permute.xlu1 %686 }
 0x5b0   :  { %v689_v21 = vadd.f32 %v687_v20, %v684_v19  ;;  %v910_v19 = vld [vmem:[#allocation4 + $0x28] sm:$0xff] }
 0x5b2   :  { %v1707_v22 = vmul.f32 -1.442695, %v689_v21 }
 0x5b3   :  { %v698_v23 = vpop.permute.xlu1 %697 }
 0x5b4   :  { %2107 = vpow2.f32 %v1707_v22  ;;  %v700_v25 = vmul.f32 %v2106_v24, %v698_v23 }
 0x5b6   :  { %v701_v29 = vadd.f32 %v700_v25, %v696_v27 }
 0x5be   :  { %v2108_v26 = vpop.eup %2107 }
 0x5bf   :  { %v693_v28 = vadd.f32 1.0, %v2108_v26 }
 0x5c1   :  { %2109 = vrcp.f32 %v693_v28  ;;  %v1147_v28 = vld [vmem:[%s2644_s5 + $0x10] sm:$0xff] }
 0x5c2   :  { %2111 = vtanh.f32 %v701_v29  ;;  %v1148_v29 = vld [vmem:[%s2644_s5 + $0x18] sm:$0xff] }
 0x5cb   :  { %v2110_v30 = vpop.eup %2109 }
 0x5cc   :  { %v703_v31 = vsub.f32 1.0, %v2110_v30  ;;  %v2112_v32 = vpop.eup %2111  ;;  %v705_v33 = vmul.f32 %v2110_v30, %v602_v7  ;;  %v2046_v30 = vpack.c.bf16 %v1148_v29, %v1147_v28 }
 0x5ce   :  { %v704_v34 = vmul.f32 %v2112_v32, %v703_v31  ;;  %v1137_v32 = vld [vmem:[#allocation6] sm:$0xff] }
 0x5d0   :  { %v706_v36 = vadd.f32 %v705_v33, %v704_v34  ;;  %v1138_v33 = vld [vmem:[#allocation6 + $0x8] sm:$0xff]  ;;  %v1139_v34 = vld [vmem:[#allocation6 + $0x10] sm:$0xff] }
 0x5d2   :  { %707 = vst.msk [vmem:[#allocation5] sm:$0xff] %vm188_vm1, %v706_v36  ;;  %708 = vst.msk [vmem:[#allocation6 + $0x18] sm:$0xff] %vm188_vm1, %v706_v36 }
 0x5d9   :  { %v709_v37 = vld [vmem:[#allocation5] sm:$0xff] }
 0x5da   :  { %1899 = vmatmul.mubr.msk.f32.vlgmr.msra.gmra.mrb[6].mxu0 %vm188_vm1, %v709_v37  ;;  %v1140_v36 = vld [vmem:[#allocation6 + $0x18] sm:$0xff] }
 0x5db   :  { %2032 = vmatpush3.bf16.msra.mxu0 %v2282_v9  ;;  %1920 = vmatprep.mubr.msk.f32.mxu0 %vm2187_vm3, %v2185_v6 }
 0x5dc   :  { %2033 = vmatprep.subr.bf16.mxu0 %v2186_v13 }
 0x5df   :  { %2035 = vmatpush3.bf16.msra.mxu0 %v2304_v16 }
 0x6ad   :  { %v779_v38 = vpop.f32.mrb[6].mxu0 }
 0x6ae   :  { %v780_v39 = vadd.f32 %v2344_v35, %v779_v38  ;;  %v1900_v40 = vpop.f32.mrb[7].mxu0 }
 0x6b0   :  { %793 = vrot.lane.b32.xlu1 %v780_v39, %s2189_s2  ;;  %v784_v42 = vadd.f32 %v783_v41, %v780_v39 }
 0x6b2   :  { %v1709_v43 = vmul.f32 -1.442695, %v784_v42 }
 0x6b4   :  { %804 = vrot.lane.b32.xlu1 %v780_v39, %s2188_s23  ;;  %2113 = vpow2.f32 %v1709_v43 }
 0x6be   :  { %v2114_v44 = vpop.eup %2113 }
 0x6bf   :  { %v788_v45 = vadd.f32 1.0, %v2114_v44 }
 0x6c1   :  { %2115 = vrcp.f32 %v788_v45 }
 0x6cb   :  { %v2116_v51 = vpop.eup %2115 }
 0x722   :  { %v794_v47 = vpop.permute.xlu1 %793 }
 0x723   :  { %v796_v48 = vadd.f32 %v794_v47, %v791_v46 }
 0x725   :  { %v1710_v49 = vmul.f32 -1.442695, %v796_v48  ;;  %v1293_v48 = vld [vmem:[%s2645_s7] sm:$0xff] }
 0x726   :  { %v805_v50 = vpop.permute.xlu1 %804 }
 0x727   :  { %2117 = vpow2.f32 %v1710_v49  ;;  %v807_v52 = vmul.f32 %v2116_v51, %v805_v50  ;;  %v1294_v49 = vld [vmem:[%s2645_s7 + $0x8] sm:$0xff]  ;;  %v997_v51 = vld [vmem:[#allocation2 + $0x30] sm:$0xff] }
 0x728   :  { %v2050_v50 = vpack.c.bf16 %v1294_v49, %v1293_v48 }
 0x729   :  { %v808_v56 = vadd.f32 %v807_v52, %v803_v54 }
 0x731   :  { %v2118_v53 = vpop.eup %2117 }
 0x732   :  { %v800_v55 = vadd.f32 1.0, %v2118_v53 }
 0x734   :  { %2119 = vrcp.f32 %v800_v55 }
 0x735   :  { %2121 = vtanh.f32 %v808_v56  ;;  %v1005_v56 = vld [vmem:[#allocation3 + $0x30] sm:$0xff] }
 0x73e   :  { %v2120_v57 = vpop.eup %2119 }
 0x73f   :  { %v810_v58 = vsub.f32 1.0, %v2120_v57  ;;  %v2122_v59 = vpop.eup %2121  ;;  %v812_v60 = vmul.f32 %v2120_v57, %v709_v37 }
 0x741   :  { %v811_v61 = vmul.f32 %v2122_v59, %v810_v58 }
 0x743   :  { %v813_v62 = vadd.f32 %v812_v60, %v811_v61 }
 0x745   :  { %814 = vst.msk [vmem:[#allocation5] sm:$0xff] %vm188_vm1, %v813_v62  ;;  %815 = vst.msk [vmem:[#allocation6 + $0x20] sm:$0xff] %vm188_vm1, %v813_v62 }
 0x74c   :  { %v816_v63 = vld [vmem:[#allocation5] sm:$0xff]  ;;  %v1141_v37 = vld [vmem:[#allocation6 + $0x20] sm:$0xff] }
 0x74d   :  { %1910 = vmatmul.mubr.msk.f32.vlgmr.msra.gmra.mrb[10].mxu1 %vm188_vm1, %v816_v63 }
 0x74e   :  { %2038 = vmatpush3.bf16.msra.mxu1 %v2282_v9  ;;  %1931 = vmatprep.mubr.msk.f32.mxu1 %vm2187_vm3, %v2185_v6  ;;  %v1146_v6 = vld [vmem:[%s2644_s5 + $0x8] sm:$0xff] }
 0x74f   :  { %2039 = vmatprep.subr.bf16.mxu1 %v2186_v13  ;;  %v2042_v9 = vpack.c.bf16 %v1146_v6, %v1145_v3  ;;  %v890_v13 = vld [vmem:[#allocation2 + $0x28] sm:$0xff] }
 0x751   :  { %2043 = vmatprep.subr.bf16.mxu0 %v2042_v9 }
 0x752   :  { %2041 = vmatpush3.bf16.msra.mxu1 %v2304_v16 }
 0x753   :  { %2051 = vmatprep.subr.bf16.mxu1 %v2050_v50 }
 0x820   :  { %v886_v0 = vpop.f32.mrb[10].mxu1 }
 0x821   :  { %v887_v1 = vadd.f32 %v2344_v35, %v886_v0  ;;  %v1911_v2 = vpop.f32.mrb[11].mxu1  ;;  %v1017_v0 = vld [vmem:[#allocation4 + $0x30] sm:$0xff] }
 0x823   :  { %900 = vrot.lane.b32.xlu1 %v887_v1, %s2189_s2  ;;  %v891_v16 = vadd.f32 %v890_v13, %v887_v1 }
 0x825   :  { %v1712_v4 = vmul.f32 -1.442695, %v891_v16 }
 0x827   :  { %911 = vrot.lane.b32.xlu1 %v887_v1, %s2188_s23  ;;  %2123 = vpow2.f32 %v1712_v4 }
 0x831   :  { %v2124_v5 = vpop.eup %2123 }
 0x832   :  { %v895_v7 = vadd.f32 1.0, %v2124_v5  ;;  %v2474_v5 = vld [vmem:[%s2646_s6] ss:$0 sm:$0xff] }
 0x834   :  { %2125 = vrcp.f32 %v895_v7 }
 0x83e   :  { %v2126_v15 = vpop.eup %2125 }
 0x895   :  { %v901_v10 = vpop.permute.xlu1 %900 }
 0x896   :  { %v903_v11 = vadd.f32 %v901_v10, %v898_v8  ;;  %v1295_v8 = vld [vmem:[%s2645_s7 + $0x10] sm:$0xff]  ;;  %v1296_v10 = vld [vmem:[%s2645_s7 + $0x18] sm:$0xff] }
 0x898   :  { %v1713_v12 = vmul.f32 -1.442695, %v903_v11  ;;  %v2054_v11 = vpack.c.bf16 %v1296_v10, %v1295_v8 }
 0x899   :  { %v912_v14 = vpop.permute.xlu1 %911 }
 0x89a   :  { %2127 = vpow2.f32 %v1713_v12  ;;  %v914_v17 = vmul.f32 %v2126_v15, %v912_v14 }
 0x89c   :  { %v915_v21 = vadd.f32 %v914_v17, %v910_v19 }
 0x8a4   :  { %v2128_v18 = vpop.eup %2127 }
 0x8a5   :  { %v907_v20 = vadd.f32 1.0, %v2128_v18 }
 0x8a7   :  { %2129 = vrcp.f32 %v907_v20 }
 0x8a8   :  { %2131 = vtanh.f32 %v915_v21 }
 0x8b1   :  { %v2130_v22 = vpop.eup %2129 }
 0x8b2   :  { %v917_v23 = vsub.f32 1.0, %v2130_v22  ;;  %v2132_v24 = vpop.eup %2131  ;;  %v919_v25 = vmul.f32 %v2130_v22, %v816_v63 }
 0x8b4   :  { %v918_v26 = vmul.f32 %v2132_v24, %v917_v23 }
 0x8b6   :  { %v920_v27 = vadd.f32 %v919_v25, %v918_v26 }
 0x8b8   :  { %921 = vst.msk [vmem:[#allocation5] sm:$0xff] %vm188_vm1, %v920_v27  ;;  %922 = vst.msk [vmem:[#allocation6 + $0x28] sm:$0xff] %vm188_vm1, %v920_v27 }
 0x8bf   :  { %v923_v31 = vld [vmem:[#allocation5] sm:$0xff]  ;;  %v1142_v38 = vld [vmem:[#allocation6 + $0x28] sm:$0xff] }
 0x8c0   :  { %1921 = vmatmul.mubr.msk.f32.vlgmr.msra.gmra.mrb[8].mxu0 %vm188_vm1, %v923_v31 }
 0x8c1   :  { %2045 = vmatpush3.bf16.msra.mxu0 %v2042_v9  ;;  %1942 = vmatprep.mubr.msk.f32.mxu0 %vm188_vm1, %v1137_v32 }
 0x8c2   :  { %2047 = vmatprep.subr.bf16.mxu0 %v2046_v30 }
 0x8c5   :  { %2049 = vmatpush3.bf16.msra.mxu0 %v2046_v30 }
 0x8c8   :  { %1943 = vmatmul.mubr.msk.f32.vlgmr.msra.gmra.mrb[10].mxu0 %vm188_vm1, %v1138_v33 }
 0x8c9   :  { %1945 = vmatprep.mubr.msk.f32.mxu0 %vm188_vm1, %v1139_v34 }
 0x8cc   :  { %1946 = vmatmul.mubr.msk.f32.gmra.mrb[12].mxu0 %vm188_vm1, %v1140_v36 }
 0x8cd   :  { %1948 = vmatprep.mubr.msk.f32.mxu0 %vm188_vm1, %v1141_v37  ;;  %v1441_v37 = vld [vmem:[%s2647_s9] sm:$0xff] }
 0x8d0   :  { %1949 = vmatmul.mubr.msk.f32.gmra.mrb[14].mxu0 %vm188_vm1, %v1142_v38  ;;  %v1442_v38 = vld [vmem:[%s2647_s9 + $0x8] sm:$0xff] }
 0x993   :  { %v993_v39 = vpop.f32.mrb[8].mxu0 }
 0x994   :  { %v994_v40 = vadd.f32 %v2344_v35, %v993_v39  ;;  %v1922_v41 = vpop.f32.mrb[9].mxu0  ;;  %v1443_v39 = vld [vmem:[%s2647_s9 + $0x10] sm:$0xff] }
 0x996   :  { %1007 = vrot.lane.b32.xlu1 %v994_v40, %s2189_s2  ;;  %v998_v52 = vadd.f32 %v997_v51, %v994_v40 }
 0x998   :  { %v1715_v53 = vmul.f32 -1.442695, %v998_v52 }
 0x99a   :  { %1018 = vrot.lane.b32.xlu1 %v994_v40, %s2188_s23  ;;  %2133 = vpow2.f32 %v1715_v53  ;;  %v1444_v40 = vld [vmem:[%s2647_s9 + $0x18] sm:$0xff] }
 0x99b   :  { %v1944_v42 = vpop.f32.mrb[10].mxu0  ;;  %v2062_v41 = vpack.c.bf16 %v1444_v40, %v1443_v39 }
 0x99c   :  { %v1246_v43 = vpop.f32.mrb[11].mxu0  ;;  %v1252_v17 = vadd.f32 %v1944_v42, %v2474_v5  ;;  %v1104_v42 = vld [vmem:[#allocation2 + $0x38] sm:$0xff] }
 0x99d   :  { %v1247_v7 = vadd.f32 %v2474_v5, %v1246_v43 }
 0x99e   :  { %v1286_v19 = vmax.f32 %v1252_v17, 0.0 }
 0x99f   :  { %v1947_v44 = vpop.f32.mrb[12].mxu0  ;;  %v1285_v12 = vmax.f32 %v1247_v7, 0.0 }
 0x9a0   :  { %v1256_v45 = vpop.f32.mrb[13].mxu0  ;;  %v1262_v20 = vadd.f32 %v1947_v44, %v2474_v5 }
 0x9a1   :  { %v1257_v18 = vadd.f32 %v2474_v5, %v1256_v45 }
 0x9a2   :  { %v1288_v23 = vmax.f32 %v1262_v20, 0.0 }
 0x9a3   :  { %v1950_v46 = vpop.f32.mrb[14].mxu0  ;;  %v1287_v21 = vmax.f32 %v1257_v18, 0.0 }
 0x9a4   :  { %v1266_v47 = vpop.f32.mrb[15].mxu0  ;;  %v2134_v54 = vpop.eup %2133  ;;  %v1272_v24 = vadd.f32 %v1950_v46, %v2474_v5 }
 0x9a5   :  { %v1002_v55 = vadd.f32 1.0, %v2134_v54  ;;  %v1267_v22 = vadd.f32 %v2474_v5, %v1266_v47  ;;  %v1112_v47 = vld [vmem:[#allocation3 + $0x38] sm:$0xff] }
 0x9a6   :  { %v1290_v26 = vmax.f32 %v1272_v24, 0.0 }
 0x9a7   :  { %2135 = vrcp.f32 %v1002_v55  ;;  %v1289_v25 = vmax.f32 %v1267_v22, 0.0  ;;  %v1124_v55 = vld [vmem:[#allocation4 + $0x38] sm:$0xff] }
 0x9b1   :  { %v2136_v61 = vpop.eup %2135 }
 0xa08   :  { %v1008_v57 = vpop.permute.xlu1 %1007 }
 0xa09   :  { %v1010_v58 = vadd.f32 %v1008_v57, %v1005_v56 }
 0xa0b   :  { %v1716_v59 = vmul.f32 -1.442695, %v1010_v58 }
 0xa0c   :  { %v1019_v60 = vpop.permute.xlu1 %1018 }
 0xa0d   :  { %2137 = vpow2.f32 %v1716_v59  ;;  %v1021_v62 = vmul.f32 %v2136_v61, %v1019_v60 }
 0xa0f   :  { %v1022_v2 = vadd.f32 %v1021_v62, %v1017_v0  ;;  %v2520_v0 = vld [vmem:[%s2648_s8] ss:$0 sm:$0xff] }
 0xa17   :  { %v2138_v63 = vpop.eup %2137 }
 0xa18   :  { %v1014_v1 = vadd.f32 1.0, %v2138_v63 }
 0xa1a   :  { %2139 = vrcp.f32 %v1014_v1 }
 0xa1b   :  { %2141 = vtanh.f32 %v1022_v2 }
 0xa24   :  { %v2140_v3 = vpop.eup %2139 }
 0xa25   :  { %v1024_v6 = vsub.f32 1.0, %v2140_v3  ;;  %v2142_v9 = vpop.eup %2141  ;;  %v1026_v13 = vmul.f32 %v2140_v3, %v923_v31 }
 0xa27   :  { %v1025_v16 = vmul.f32 %v2142_v9, %v1024_v6 }
 0xa29   :  { %v1027_v4 = vadd.f32 %v1026_v13, %v1025_v16 }
 0xa2b   :  { %1028 = vst.msk [vmem:[#allocation5] sm:$0xff] %vm188_vm1, %v1027_v4  ;;  %1029 = vst.msk [vmem:[#allocation6 + $0x30] sm:$0xff] %vm188_vm1, %v1027_v4 }
 0xa32   :  { %v2485_v14 = vld [vmem:[#allocation5] sm:$0xff]  ;;  %v1143_v15 = vld [vmem:[#allocation6 + $0x30] sm:$0xff] }
 0xa33   :  { %1932 = vmatmul.mubr.msk.f32.vlgmr.msra.gmra.mrb[12].mxu1 %vm188_vm1, %v2485_v14  ;;  %1951 = vmatprep.mubr.msk.f32.mxu0 %vm188_vm1, %v1143_v15 }
 0xa34   :  { %2053 = vmatpush3.bf16.msra.mxu1 %v2050_v50  ;;  %1962 = vmatprep.mubr.msk.f32.mxu1 %vm188_vm1, %v1285_v12 }
 0xa35   :  { %2055 = vmatprep.subr.bf16.mxu1 %v2054_v11 }
 0xa38   :  { %2057 = vmatpush3.bf16.msra.mxu1 %v2054_v11 }
 0xa3b   :  { %1963 = vmatmul.mubr.msk.f32.vlgmr.msra.gmra.mrb[14].mxu1 %vm188_vm1, %v1286_v19  ;;  %v2542_v19 = vld [vmem:[%s2649_s10] ss:$0 sm:$0xff] }
 0xa3c   :  { %1965 = vmatprep.mubr.msk.f32.mxu1 %vm188_vm1, %v1287_v21 }
 0xa3f   :  { %1966 = vmatmul.mubr.msk.f32.gmra.mrb[16].mxu1 %vm188_vm1, %v1288_v23 }
 0xa40   :  { %1968 = vmatprep.mubr.msk.f32.mxu1 %vm188_vm1, %v1289_v25 }
 0xa43   :  { %1969 = vmatmul.mubr.msk.f32.gmra.mrb[18].mxu1 %vm188_vm1, %v1290_v26 }
 0xb06   :  { %v1100_v27 = vpop.f32.mrb[12].mxu1 }
 0xb07   :  { %v1101_v28 = vadd.f32 %v2344_v35, %v1100_v27  ;;  %v1933_v29 = vpop.f32.mrb[13].mxu1  ;;  %v2058_v35 = vpack.c.bf16 %v1442_v38, %v1441_v37 }
 0xb09   :  { %1114 = vrot.lane.b32.xlu1 %v1101_v28, %s2189_s2  ;;  %2059 = vmatprep.subr.bf16.mxu0 %v2058_v35  ;;  %v1105_v43 = vadd.f32 %v1104_v42, %v1101_v28 }
 0xb0a   :  { %2061 = vmatpush3.bf16.msra.mxu0 %v2058_v35 }
 0xb0b   :  { %2063 = vmatprep.subr.bf16.mxu0 %v2062_v41  ;;  %v1718_v44 = vmul.f32 -1.442695, %v1105_v43 }
 0xb0d   :  { %1125 = vrot.lane.b32.xlu1 %v1101_v28, %s2188_s23  ;;  %2143 = vpow2.f32 %v1718_v44 }
 0xb0e   :  { %v1964_v30 = vpop.f32.mrb[14].mxu1  ;;  %2065 = vmatpush3.bf16.msra.mxu0 %v2062_v41 }
 0xb0f   :  { %v1394_v31 = vpop.f32.mrb[15].mxu1  ;;  %v1400_v2 = vadd.f32 %v1964_v30, %v2520_v0 }
 0xb10   :  { %v1395_v1 = vadd.f32 %v2520_v0, %v1394_v31 }
 0xb11   :  { %v1434_v13 = vmax.f32 %v1400_v2, 0.0 }
 0xb12   :  { %v1967_v32 = vpop.f32.mrb[16].mxu1  ;;  %v1433_v3 = vmax.f32 %v1395_v1, 0.0 }
 0xb13   :  { %v1404_v33 = vpop.f32.mrb[17].mxu1  ;;  %v1410_v16 = vadd.f32 %v1967_v32, %v2520_v0 }
 0xb14   :  { %v1405_v6 = vadd.f32 %v2520_v0, %v1404_v33 }
 0xb15   :  { %v1436_v8 = vmax.f32 %v1410_v16, 0.0 }
 0xb16   :  { %v1970_v34 = vpop.f32.mrb[18].mxu1  ;;  %v1435_v4 = vmax.f32 %v1405_v6, 0.0 }
 0xb17   :  { %v1414_v36 = vpop.f32.mrb[19].mxu1  ;;  %v2144_v45 = vpop.eup %2143  ;;  %v1420_v10 = vadd.f32 %v1970_v34, %v2520_v0 }
 0xb18   :  { %v1109_v46 = vadd.f32 1.0, %v2144_v45  ;;  %v1415_v7 = vadd.f32 %v2520_v0, %v1414_v36 }
 0xb19   :  { %v1438_v12 = vmax.f32 %v1420_v10, 0.0 }
 0xb1a   :  { %2145 = vrcp.f32 %v1109_v46  ;;  %v1437_v11 = vmax.f32 %v1415_v7, 0.0 }
 0xb24   :  { %v2146_v52 = vpop.eup %2145 }
 0xb7b   :  { %v1115_v48 = vpop.permute.xlu1 %1114 }
 0xb7c   :  { %v1117_v49 = vadd.f32 %v1115_v48, %v1112_v47 }
 0xb7e   :  { %v1719_v50 = vmul.f32 -1.442695, %v1117_v49 }
 0xb7f   :  { %v1126_v51 = vpop.permute.xlu1 %1125 }
 0xb80   :  { %2147 = vpow2.f32 %v1719_v50  ;;  %v1128_v53 = vmul.f32 %v2146_v52, %v1126_v51 }
 0xb82   :  { %v1129_v57 = vadd.f32 %v1128_v53, %v1124_v55 }
 0xb8a   :  { %v2148_v54 = vpop.eup %2147 }
 0xb8b   :  { %v1121_v56 = vadd.f32 1.0, %v2148_v54 }
 0xb8d   :  { %2149 = vrcp.f32 %v1121_v56 }
 0xb8e   :  { %2151 = vtanh.f32 %v1129_v57 }
 0xb97   :  { %v2150_v58 = vpop.eup %2149 }
 0xb98   :  { %v1131_v59 = vsub.f32 1.0, %v2150_v58  ;;  %v2152_v60 = vpop.eup %2151  ;;  %v1133_v61 = vmul.f32 %v2150_v58, %v2485_v14 }
 0xb9a   :  { %v1132_v62 = vmul.f32 %v2152_v60, %v1131_v59 }
 0xb9c   :  { %v1134_v63 = vadd.f32 %v1133_v61, %v1132_v62  ;;  %v1581_v61 = vlaneseq }
 0xb9e   :  { %1135 = vst.msk [vmem:[#allocation5] sm:$0xff] %vm188_vm1, %v1134_v63  ;;  %1136 = vst.msk [vmem:[#allocation6 + $0x38] sm:$0xff] %vm188_vm1, %v1134_v63  ;;  %v2570_v2 = vand.u32 127, %v1581_v61 }
 0xba0   :  { %vm1583_vm4 = vcmp.ge.s32.totalorder %v2570_v2, 4 }
 0xba5   :  { %v1144_v9 = vld [vmem:[#allocation6 + $0x38] sm:$0xff] }
 0xba6   :  { %1952 = vmatmul.mubr.msk.f32.gmra.mrb[16].mxu0 %vm188_vm1, %v1144_v9 }
 0xba7   :  { %1982 = vmatprep.mubr.msk.f32.mxu0 %vm188_vm1, %v1433_v3 }
 0xbaa   :  { %1983 = vmatmul.mubr.msk.f32.vlgmr.msra.gmra.mrb[18].mxu0 %vm188_vm1, %v1434_v13 }
 0xbab   :  { %1985 = vmatprep.mubr.msk.f32.mxu0 %vm188_vm1, %v1435_v4 }
 0xbae   :  { %1986 = vmatmul.mubr.msk.f32.gmra.mrb[20].mxu0 %vm188_vm1, %v1436_v8 }
 0xbaf   :  { %1988 = vmatprep.mubr.msk.f32.mxu0 %vm188_vm1, %v1437_v11 }
 0xbb2   :  { %1989 = vmatmul.mubr.msk.f32.gmra.mrb[22].mxu0 %vm188_vm1, %v1438_v12 }
 0xc79   :  { %v1953_v14 = vpop.f32.mrb[16].mxu0 }
 0xc7a   :  { %v1282_v15 = vadd.f32 %v1953_v14, %v2474_v5  ;;  %v1276_v17 = vpop.f32.mrb[17].mxu0 }
 0xc7b   :  { %v1277_v18 = vadd.f32 %v2474_v5, %v1276_v17 }
 0xc7c   :  { %v1292_v22 = vmax.f32 %v1282_v15, 0.0 }
 0xc7d   :  { %v1291_v20 = vmax.f32 %v1277_v18, 0.0  ;;  %v1984_v21 = vpop.f32.mrb[18].mxu0 }
 0xc7e   :  { %v2545_v23 = vadd.f32 %v1984_v21, %v2542_v19  ;;  %v1542_v24 = vpop.f32.mrb[19].mxu0 }
 0xc7f   :  { %v2548_v25 = vadd.f32 %v2542_v19, %v1542_v24  ;;  %1971 = vmatprep.mubr.msk.f32.mxu1 %vm188_vm1, %v1291_v20 }
 0xc80   :  { %v1593_v26 = vand.u32 2147483647, %v2545_v23  ;;  %1972 = vmatmul.mubr.msk.f32.gmra.mrb[20].mxu1 %vm188_vm1, %v1292_v22  ;;  %v1585_v6 = vmax.f32 %v2545_v23, 0.0 }
 0xc81   :  { %v1592_v5 = vand.u32 2147483647, %v2548_v25  ;;  %v1987_v27 = vpop.f32.mrb[20].mxu0  ;;  %v1584_v13 = vmax.f32 %v2548_v25, 0.0 }
 0xc82   :  { %v1601_v28 = vsub.f32 0.0, %v1593_v26  ;;  %v2555_v29 = vadd.f32 %v1987_v27, %v2542_v19  ;;  %v1552_v30 = vpop.f32.mrb[21].mxu0 }
 0xc83   :  { %v1600_v31 = vsub.f32 0.0, %v1592_v5  ;;  %v2558_v32 = vadd.f32 %v2542_v19, %v1552_v30 }
 0xc84   :  { %v1610_v33 = vmul.f32 1.442695, %v1601_v28  ;;  %v1595_v34 = vand.u32 2147483647, %v2555_v29  ;;  %v1587_v12 = vmax.f32 %v2555_v29, 0.0 }
 0xc85   :  { %v1608_v36 = vmul.f32 1.442695, %v1600_v31  ;;  %v1594_v37 = vand.u32 2147483647, %v2558_v32  ;;  %v1990_v38 = vpop.f32.mrb[22].mxu0  ;;  %v1586_v17 = vmax.f32 %v2558_v32, 0.0 }
 0xc86   :  { %2153 = vpow2.f32 %v1610_v33  ;;  %v1603_v35 = vsub.f32 0.0, %v1595_v34  ;;  %v2563_v39 = vadd.f32 %v1990_v38, %v2542_v19  ;;  %v1562_v40 = vpop.f32.mrb[23].mxu0 }
 0xc87   :  { %2155 = vpow2.f32 %v1608_v36  ;;  %v1602_v41 = vsub.f32 0.0, %v1594_v37  ;;  %v2566_v42 = vadd.f32 %v2542_v19, %v1562_v40 }
 0xc88   :  { %v1614_v43 = vmul.f32 1.442695, %v1603_v35  ;;  %v1597_v44 = vand.u32 2147483647, %v2563_v39 }
 0xc89   :  { %v1612_v45 = vmul.f32 1.442695, %v1602_v41  ;;  %v1596_v46 = vand.u32 2147483647, %v2566_v42  ;;  %v1588_v31 = vmax.f32 %v2566_v42, 0.0 }
 0xc8a   :  { %2157 = vpow2.f32 %v1614_v43  ;;  %v1605_v47 = vsub.f32 0.0, %v1597_v44 }
 0xc8b   :  { %2159 = vpow2.f32 %v1612_v45  ;;  %v1604_v48 = vsub.f32 0.0, %v1596_v46 }
 0xc8c   :  { %v1618_v49 = vmul.f32 1.442695, %v1605_v47 }
 0xc8d   :  { %v1616_v50 = vmul.f32 1.442695, %v1604_v48 }
 0xc8e   :  { %2161 = vpow2.f32 %v1618_v49 }
 0xc8f   :  { %2163 = vpow2.f32 %v1616_v50 }
 0xc90   :  { %v2154_v51 = vpop.eup %2153 }
 0xc91   :  { %v2156_v52 = vpop.eup %2155  ;;  %v1625_v53 = vadd.f32 1.0, %v2154_v51 }
 0xc92   :  { %v1624_v54 = vadd.f32 1.0, %v2156_v52 }
 0xc93   :  { %2165 = vlog2.f32 %v1625_v53 }
 0xc94   :  { %v2158_v55 = vpop.eup %2157  ;;  %2167 = vlog2.f32 %v1624_v54 }
 0xc95   :  { %v2160_v56 = vpop.eup %2159  ;;  %v1627_v57 = vadd.f32 1.0, %v2158_v55 }
 0xc96   :  { %v1626_v58 = vadd.f32 1.0, %v2160_v56 }
 0xc97   :  { %2169 = vlog2.f32 %v1627_v57 }
 0xc98   :  { %v2162_v59 = vpop.eup %2161  ;;  %2171 = vlog2.f32 %v1626_v58 }
 0xc99   :  { %v2164_v60 = vpop.eup %2163  ;;  %v1629_v62 = vadd.f32 1.0, %v2162_v59 }
 0xc9a   :  { %v1628_v63 = vadd.f32 1.0, %v2164_v60 }
 0xc9b   :  { %2173 = vlog2.f32 %v1629_v62 }
 0xc9c   :  { %2175 = vlog2.f32 %v1628_v63 }
 0xc9d   :  { %v2166_v1 = vpop.eup %2165 }
 0xc9e   :  { %v2168_v3 = vpop.eup %2167  ;;  %v1635_v9 = vmul.f32 0.6931472, %v2166_v1 }
 0xc9f   :  { %v1633_v16 = vmul.f32 0.6931472, %v2168_v3 }
 0xca0   :  { %v1649_v4 = vadd.f32 %v1635_v9, %v1585_v6 }
 0xca1   :  { %v2170_v7 = vpop.eup %2169  ;;  %v1648_v8 = vadd.f32 %v1633_v16, %v1584_v13 }
 0xca2   :  { %v2172_v10 = vpop.eup %2171  ;;  %v1657_v11 = vmax.f32 %v1649_v4, 0.01  ;;  %v1639_v14 = vmul.f32 0.6931472, %v2170_v7 }
 0xca3   :  { %v1656_v15 = vmax.f32 %v1648_v8, 0.01  ;;  %v1637_v18 = vmul.f32 0.6931472, %v2172_v10 }
 0xca4   :  { %v1665_v20 = vsel %vm1583_vm4, %v1657_v11, %v2545_v23  ;;  %v1651_v21 = vadd.f32 %v1639_v14, %v1587_v12  ;;  %v1589_v23 = vmax.f32 %v2563_v39, 0.0 }
 0xca5   :  { %v2174_v22 = vpop.eup %2173  ;;  %1674 = vst.msk [vmem:[%s2650_s11 + $0x8] sm:$0xff] %vm1672_vm5, %v1665_v20  ;;  %v1664_v24 = vsel %vm1583_vm4, %v1656_v15, %v2548_v25  ;;  %v1650_v26 = vadd.f32 %v1637_v18, %v1586_v17 }
 0xca6   :  { %v2176_v5 = vpop.eup %2175  ;;  %1673 = vst.msk [vmem:[%s2650_s11] sm:$0xff] %vm1672_vm5, %v1664_v24  ;;  %v1659_v27 = vmax.f32 %v1651_v21, 0.01  ;;  %v1643_v28 = vmul.f32 0.6931472, %v2174_v22 }
 0xca7   :  { %v1658_v30 = vmax.f32 %v1650_v26, 0.01  ;;  %v1641_v33 = vmul.f32 0.6931472, %v2176_v5 }
 0xca8   :  { %v1667_v34 = vsel %vm1583_vm4, %v1659_v27, %v2555_v29  ;;  %v1653_v25 = vadd.f32 %v1643_v28, %v1589_v23 }
 0xca9   :  { %1676 = vst.msk [vmem:[%s2650_s11 + $0x18] sm:$0xff] %vm1672_vm5, %v1667_v34  ;;  %v1666_v36 = vsel %vm1583_vm4, %v1658_v30, %v2558_v32  ;;  %v1652_v37 = vadd.f32 %v1641_v33, %v1588_v31 }
 0xcaa   :  { %1675 = vst.msk [vmem:[%s2650_s11 + $0x10] sm:$0xff] %vm1672_vm5, %v1666_v36  ;;  %v1661_v38 = vmax.f32 %v1653_v25, 0.01 }
 0xcab   :  { %v1660_v35 = vmax.f32 %v1652_v37, 0.01 }
 0xcac   :  { %v1669_v29 = vsel %vm1583_vm4, %v1661_v38, %v2563_v39 }
 0xcad   :  { %1678 = vst.msk [vmem:[%s2650_s11 + $0x28] sm:$0xff] %vm1672_vm5, %v1669_v29  ;;  %v1668_v32 = vsel %vm1583_vm4, %v1660_v35, %v2566_v42 }
 0xcae   :  { %1677 = vst.msk [vmem:[%s2650_s11 + $0x20] sm:$0xff] %vm1672_vm5, %v1668_v32 }
 0xd53   :  { %v1973_v40 = vpop.f32.mrb[20].mxu1 }
 0xd54   :  { %v1430_v41 = vadd.f32 %v1973_v40, %v2520_v0  ;;  %v1424_v43 = vpop.f32.mrb[21].mxu1 }
 0xd55   :  { %v1425_v39 = vadd.f32 %v2520_v0, %v1424_v43 }
 0xd56   :  { %v1440_v45 = vmax.f32 %v1430_v41, 0.0 }
 0xd57   :  { %v1439_v44 = vmax.f32 %v1425_v39, 0.0 }
 0xd59   :  { %1991 = vmatprep.mubr.msk.f32.mxu0 %vm188_vm1, %v1439_v44 }
 0xd5a   :  { %1992 = vmatmul.mubr.msk.f32.gmra.mrb[24].mxu0 %vm188_vm1, %v1440_v45 }
 0xe2d   :  { %v1993_v46 = vpop.f32.mrb[24].mxu0 }
 0xe2e   :  { %v1578_v42 = vadd.f32 %v1993_v46, %v2542_v19  ;;  %v1572_v47 = vpop.f32.mrb[25].mxu0 }
 0xe2f   :  { %v1573_v48 = vadd.f32 %v2542_v19, %v1572_v47 }
 0xe30   :  { %v1599_v49 = vand.u32 2147483647, %v1578_v42  ;;  %v1591_v60 = vmax.f32 %v1578_v42, 0.0 }
 0xe31   :  { %v1598_v50 = vand.u32 2147483647, %v1573_v48  ;;  %v1590_v62 = vmax.f32 %v1573_v48, 0.0 }
 0xe32   :  { %v1607_v51 = vsub.f32 0.0, %v1599_v49 }
 0xe33   :  { %v1606_v52 = vsub.f32 0.0, %v1598_v50 }
 0xe34   :  { %v1622_v53 = vmul.f32 1.442695, %v1607_v51 }
 0xe35   :  { %v1620_v54 = vmul.f32 1.442695, %v1606_v52 }
 0xe36   :  { %2177 = vpow2.f32 %v1622_v53 }
 0xe37   :  { %2179 = vpow2.f32 %v1620_v54 }
 0xe40   :  { %v2178_v0 = vpop.eup %2177 }
 0xe41   :  { %v2180_v55 = vpop.eup %2179  ;;  %v1631_v56 = vadd.f32 1.0, %v2178_v0 }
 0xe42   :  { %v1630_v57 = vadd.f32 1.0, %v2180_v55 }
 0xe43   :  { %2181 = vlog2.f32 %v1631_v56 }
 0xe44   :  { %2183 = vlog2.f32 %v1630_v57 }
 0xe4d   :  { %v2182_v58 = vpop.eup %2181 }
 0xe4e   :  { %v2184_v59 = vpop.eup %2183  ;;  %v1647_v61 = vmul.f32 0.6931472, %v2182_v58 }
 0xe4f   :  { %v1645_v19 = vmul.f32 0.6931472, %v2184_v59 }
 0xe50   :  { %v1655_v63 = vadd.f32 %v1647_v61, %v1591_v60 }
 0xe51   :  { %v1654_v1 = vadd.f32 %v1645_v19, %v1590_v62 }
 0xe52   :  { %v1663_v3 = vmax.f32 %v1655_v63, 0.01 }
 0xe53   :  { %v1662_v6 = vmax.f32 %v1654_v1, 0.01 }
 0xe54   :  { %v1671_v9 = vsel %vm1583_vm4, %v1663_v3, %v1578_v42 }
 0xe55   :  { %1680 = vst.msk [vmem:[%s2650_s11 + $0x38] sm:$0xff] %vm1672_vm5, %v1671_v9  ;;  %v1670_v13 = vsel %vm1583_vm4, %v1662_v6, %v1573_v48 }
 0xe56   :  { %1679 = vst.msk [vmem:[%s2650_s11 + $0x30] sm:$0xff] %vm1672_vm5, %v1670_v13 }

// kernel: vae_gru_forward.2
= control target key start
LH: loop header
LB: loop body
LE: loop exit
PB: predicated region body
PF: predicated region fallthrough
CT: control target
= control target key end

     0   :  { %s6563_s0 = inlined_call_operand.vmem [shape: f32[16,4], index: 0, kind: input, shape index: {}]   ;;  %s6564_s1 = inlined_call_operand.vmem [shape: f32[8,4,2,3], index: 1, kind: input, shape index: {}]   ;;  %s6565_s2 = inlined_call_operand.vmem [shape: f32[4,96], index: 2, kind: input, shape index: {}]   ;;  %s6566_s3 = inlined_call_operand.vmem [shape: f32[1,96], index: 3, kind: input, shape index: {}]   ;;  %s6567_s4 = inlined_call_operand.vmem [shape: f32[32,96], index: 4, kind: input, shape index: {}]   ;;  %s6568_s5 = inlined_call_operand.vmem [shape: f32[1,96], index: 5, kind: input, shape index: {}]   ;;  %s6569_s6 = inlined_call_operand.vmem [shape: f32[32,32], index: 6, kind: input, shape index: {}]   ;;  %s6570_s7 = inlined_call_operand.vmem [shape: f32[1,32], index: 7, kind: input, shape index: {}]   ;;  %s6571_s8 = inlined_call_operand.vmem [shape: f32[32,32], index: 8, kind: input, shape index: {}]   ;;  %s6572_s9 = inlined_call_operand.vmem [shape: f32[1,32], index: 9, kind: input, shape index: {}]   ;;  %s6573_s10 = inlined_call_operand.vmem [shape: f32[32,6], index: 10, kind: input, shape index: {}]   ;;  %s6574_s11 = inlined_call_operand.vmem [shape: f32[1,6], index: 11, kind: input, shape index: {}]   ;;  %s6575_s12 = inlined_call_operand.vmem [shape: f32[3,6], index: 12, kind: input, shape index: {}]   ;;  %s6576_s13 = inlined_call_operand.vmem [shape: f32[1,3], index: 13, kind: input, shape index: {}]   ;;  %s6577_s14 = inlined_call_operand.vmem [shape: f32[1,3], index: 14, kind: input, shape index: {}]   ;;  %s6578_s15 = inlined_call_operand.vmem [shape: f32[2], index: 15, kind: input, shape index: {}]   ;;  %s6579_s16 = inlined_call_operand.vmem [shape: f32[8,4,2,13], index: 16, kind: output, shape index: {}]  }
   0x1   :  { %6601 = sst [smem:[#allocation31_spill]] %s6563_s0 }
   0x2   :  { %21 = vsyncpa [#allocation10], 0  ;;  %s58_s23 = sshll.u32 %s6578_s15, 4  ;;  %s59_s23 = int_to_ptr.vmem [resolvable:$true] %s58_s23 }
   0x3   :  { %s4528_s24 = scalar_lea.vmem %s59_s23, 16  ;;  %p4533_p1 = scmp.lt.s32.totalorder %s59_s23, %s59_s23 }
   0x4   :  { %p4529_p0 = scmp.ne.s32.totalorder %s59_s23, %s4528_s24  ;;  %p4534_p2 = scmp.lt.s32.totalorder %s4528_s24, %s4528_s24 }
   0x6   :  { %p4535_p3 = por %p4534_p2, %p4533_p1 }
   0x8   :  { %p4536_p4 = pnand %p4535_p3, %p4529_p0 }
   0xa   :  { %4539 = shalt.err (!%p4536_p4)
}
   0xb   :  { %s4542_s25 = smov [#allocation9]  }
   0xc   :  { %61 = dma.vmem_to_smem %s59_s23, 16, %s4542_s25, [#allocation10]  }
   0xd   :  { %4540 = dma.done.wait [#allocation10], 16  }
   0xe   :  { %4541 = vsyncadd [#allocation10], 4294967280 }
   0xf   :  { %65 = sfence }
  0x10   :  { %v68_v0 = vld [vmem:[%s6565_s2] sm:$0xf]  ;;  %vm83_vm0 = vcmask 1043456   ;;  %s6602_s29 = sld [smem:[#allocation31_spill]]  ;;  %vm76_vm1 = vcmask 31744   ;;  %v184_v4 = vld [vmem:[%s6567_s4 + $0x8] sm:$0xff] }
  0x11   :  { %3930 = vmatprep.subr.msk.mxu0 %vm83_vm0, %v68_v0  ;;  %v183_v3 = vld [vmem:[%s6567_s4] sm:$0xff]  ;;  %v4543_v5 = vmov 0.0|0.0   ;;  %v185_v7 = vld [vmem:[%s6567_s4 + $0x10] sm:$0xff]  ;;  %v186_v8 = vld [vmem:[%s6567_s4 + $0x18] sm:$0xff]  ;;  %vm188_vm2 = vcmask 254976   ;;  %vm4544_vm3 = vmmov 0  }
  0x12   :  { %3931 = vmatpush3.msk.msra.mxu0 %vm83_vm0, %v68_v0  ;;  %4056 = vmatprep.subr.bf16.mxu1 %v4543_v5  ;;  %v4658_v6 = vpack.c.bf16 %v184_v4, %v183_v3  ;;  %v4545_v9 = vmov 0.0   ;;  %v4671_v10 = vpack.c.bf16 %v186_v8, %v185_v7  ;;  %vm162_vm4 = vcmask 261120   ;;  %v3772_v12 = vld [vmem:[%s6566_s3] ss:$0 sm:$0xff]  ;;  %s4546_s25 = smov 64   ;;  %s4547_s26 = smov 96  }
  0x13   :  { %3943 = vmatprep.mubr.msk.f32.mxu1 %vm4544_vm3, %v4545_v9  ;;  %189 = vst.msk [vmem:[#allocation5] sm:$0x3] %vm188_vm2, %v4545_v9  ;;  %4062 = vmatprep.subr.bf16.mxu0 %v4543_v5  ;;  %v4703_v17 = vld [vmem:[%s6568_s5] ss:$0 sm:$0xff]  ;;  %vm1337_vm5 = vcmask 17408   ;;  %s4551_s30 = smov 3  }
  0x14   :  { %4058 = vmatpush3.bf16.msra.mxu1 %v4658_v6  ;;  %1339 = vst.msk [vmem:[#allocation8 + $0x2] sm:$0x3] %vm1337_vm5, %v4545_v9  ;;  %1338 = vst.msk [vmem:[#allocation8] sm:$0x3] %vm1337_vm5, %v4545_v9  ;;  %vm1334_vm6 = vcmask 48128   ;;  %s1345_s20 = sld [smem:[#allocation9]] }
  0x15   :  { %4059 = vmatprep.subr.bf16.mxu1 %v4543_v5  ;;  %1340 = vst.msk [vmem:[#allocation8 + $0x4] sm:$0x3] %vm1337_vm5, %v4545_v9  ;;  %1341 = vst.msk [vmem:[#allocation8 + $0x6] sm:$0x3] %vm1337_vm5, %v4545_v9  ;;  %s4553_s4 = smov 9   ;;  %s3810_s27 = sld [smem:[#allocation9 + $0x1]] }
  0x16   :  { %v66_v1 = vld [vmem:[%s6602_s29] sm:$0xff]  ;;  %v67_v2 = vld [vmem:[%s6602_s29 + $0x8] sm:$0xff]  ;;  %vm1650_vm7 = vcmask 23552   ;;  %vm1659_vm8 = vcmask 72704   ;;  %vm1664_vm9 = vcmask 97280   ;;  %vm1669_vm10 = vcmask 99328  }
  0x17   :  { %3932 = vmatprep.mubr.msk.f32.mxu0 %vm76_vm1, %v66_v1 }
  0x18   :  { %3933 = vmatmul.mubr.msk.f32.vlgmr.msra.gmra.mrb[0].mxu0 %vm76_vm1, %v67_v2  ;;  %4061 = vmatpush3.bf16.msra.mxu1 %v4671_v10 }
  0x19   :  { %4064 = vmatpush3.bf16.msra.mxu0 %v4658_v6  ;;  %3954 = vmatprep.mubr.msk.f32.mxu0 %vm4544_vm3, %v4545_v9 }
  0x1a   :  { %4065 = vmatprep.subr.bf16.mxu0 %v4543_v5  ;;  %4068 = vmatprep.subr.bf16.mxu1 %v4543_v5  ;;  %v190_v11 = vld [vmem:[#allocation5] sm:$0x3] }
  0x1b   :  { %3944 = vmatmul.mubr.msk.f32.vlgmr.msra.gmra.mrb[0].mxu1 %vm162_vm4, %v190_v11 }
  0x1c   :  { %4070 = vmatpush3.bf16.msra.mxu1 %v4658_v6  ;;  %3965 = vmatprep.mubr.msk.f32.mxu1 %vm4544_vm3, %v4545_v9 }
  0x1d   :  { %4067 = vmatpush3.bf16.msra.mxu0 %v4671_v10  ;;  %4071 = vmatprep.subr.bf16.mxu1 %v4543_v5 }
  0x1e   :  { %4074 = vmatprep.subr.bf16.mxu0 %v4543_v5 }
  0x20   :  { %4073 = vmatpush3.bf16.msra.mxu1 %v4671_v10 }
  0x21   :  { %4080 = vmatprep.subr.bf16.mxu1 %v4543_v5 }
  0xeb   :  { %v3934_v13 = vpop.f32.mrb[0].mxu0 }
  0xec   :  { %v4693_v14 = vadd.f32 %v3934_v13, %v3772_v12  ;;  %v153_v15 = vpop.f32.mrb[1].mxu0 }
  0xed   :  { %v154_v16 = vadd.f32 %v3772_v12, %v153_v15 }
  0xee   :  { %164 = vst.msk [vmem:[#allocation2 + $0x8] sm:$0xff] %vm162_vm4, %v4693_v14  ;;  %v266_v18 = vpop.f32.mrb[0].mxu1 }
  0xef   :  { %163 = vst.msk [vmem:[#allocation2] sm:$0xff] %vm162_vm4, %v154_v16  ;;  %175 = vrot.lane.b32.xlu1 %v154_v16, %s4546_s25  ;;  %167 = vrot.lane.b32.xlu0 %v154_v16, %s4547_s26  ;;  %v267_v19 = vadd.f32 %v4703_v17, %v266_v18  ;;  %v3945_v20 = vpop.f32.mrb[1].mxu1 }
  0xf3   :  { %291 = vrot.lane.b32.xlu1 %v267_v19, %s4546_s25  ;;  %280 = vrot.lane.b32.xlu0 %v267_v19, %s4547_s26 }
  0xf6   :  { %v270_v21 = vld [vmem:[#allocation2] sm:$0x3]  ;;  %v377_v49 = vld [vmem:[#allocation2 + $0x2] sm:$0x3]  ;;  %v484_v16 = vld [vmem:[#allocation2 + $0x4] sm:$0x3] }
  0xf7   :  { %v271_v22 = vadd.f32 %v270_v21, %v267_v19 }
  0xf9   :  { %v3778_v23 = vmul.f32 -1.442695, %v271_v22 }
  0xfb   :  { %4188 = vpow2.f32 %v3778_v23 }
 0x105   :  { %v4189_v26 = vpop.eup %4188 }
 0x106   :  { %v275_v27 = vadd.f32 1.0, %v4189_v26 }
 0x108   :  { %4190 = vrcp.f32 %v275_v27 }
 0x112   :  { %v4191_v33 = vpop.eup %4190 }
 0x161   :  { %v176_v24 = vpop.permute.xlu1 %175  ;;  %v168_v25 = vpop.permute.xlu0 %167 }
 0x162   :  { %181 = vst.msk [vmem:[#allocation4] sm:$0xff] %vm162_vm4, %v176_v24  ;;  %173 = vst.msk [vmem:[#allocation3] sm:$0xff] %vm162_vm4, %v168_v25 }
 0x165   :  { %v281_v28 = vpop.permute.xlu0 %280  ;;  %v292_v32 = vpop.permute.xlu1 %291 }
 0x166   :  { %v294_v34 = vmul.f32 %v4191_v33, %v292_v32 }
 0x169   :  { %v278_v29 = vld [vmem:[#allocation3] sm:$0x3]  ;;  %v290_v35 = vld [vmem:[#allocation4] sm:$0x3]  ;;  %v385_v54 = vld [vmem:[#allocation3 + $0x2] sm:$0x3] }
 0x16a   :  { %v283_v30 = vadd.f32 %v281_v28, %v278_v29  ;;  %v295_v37 = vadd.f32 %v294_v34, %v290_v35  ;;  %v397_v62 = vld [vmem:[#allocation4 + $0x2] sm:$0x3]  ;;  %v492_v22 = vld [vmem:[#allocation3 + $0x4] sm:$0x3] }
 0x16c   :  { %v3779_v31 = vmul.f32 -1.442695, %v283_v30  ;;  %v504_v30 = vld [vmem:[#allocation4 + $0x4] sm:$0x3] }
 0x16e   :  { %4192 = vpow2.f32 %v3779_v31 }
 0x178   :  { %v4193_v36 = vpop.eup %4192 }
 0x179   :  { %v287_v38 = vadd.f32 1.0, %v4193_v36 }
 0x17b   :  { %4194 = vrcp.f32 %v287_v38 }
 0x17c   :  { %4196 = vtanh.f32 %v295_v37 }
 0x185   :  { %v4195_v39 = vpop.eup %4194 }
 0x186   :  { %v297_v40 = vsub.f32 1.0, %v4195_v39  ;;  %v4197_v41 = vpop.eup %4196  ;;  %v299_v43 = vmul.f32 %v4195_v39, %v190_v11 }
 0x188   :  { %v298_v42 = vmul.f32 %v4197_v41, %v297_v40 }
 0x18a   :  { %v300_v44 = vadd.f32 %v299_v43, %v298_v42  ;;  %v591_v43 = vld [vmem:[#allocation2 + $0x6] sm:$0x3] }
 0x18c   :  { %301 = vst.msk [vmem:[#allocation5] sm:$0x3] %vm188_vm2, %v300_v44  ;;  %302 = vst.msk [vmem:[#allocation6] sm:$0x3] %vm188_vm2, %v300_v44 }
 0x193   :  { %v303_v45 = vld [vmem:[#allocation5] sm:$0x3] }
 0x194   :  { %3955 = vmatmul.mubr.msk.f32.vlgmr.msra.gmra.mrb[2].mxu0 %vm162_vm4, %v303_v45 }
 0x195   :  { %4076 = vmatpush3.bf16.msra.mxu0 %v4658_v6  ;;  %3976 = vmatprep.mubr.msk.f32.mxu0 %vm4544_vm3, %v4545_v9 }
 0x196   :  { %4077 = vmatprep.subr.bf16.mxu0 %v4543_v5 }
 0x199   :  { %4079 = vmatpush3.bf16.msra.mxu0 %v4671_v10 }
 0x19a   :  { %4086 = vmatprep.subr.bf16.mxu0 %v4543_v5 }
 0x267   :  { %v373_v46 = vpop.f32.mrb[2].mxu0 }
 0x268   :  { %v374_v47 = vadd.f32 %v4703_v17, %v373_v46  ;;  %v3956_v48 = vpop.f32.mrb[3].mxu0 }
 0x269   :  { %v599_v48 = vld [vmem:[#allocation3 + $0x6] sm:$0x3] }
 0x26a   :  { %398 = vrot.lane.b32.xlu1 %v374_v47, %s4546_s25  ;;  %387 = vrot.lane.b32.xlu0 %v374_v47, %s4547_s26  ;;  %v378_v50 = vadd.f32 %v377_v49, %v374_v47 }
 0x26c   :  { %v3781_v51 = vmul.f32 -1.442695, %v378_v50 }
 0x26e   :  { %4198 = vpow2.f32 %v3781_v51 }
 0x278   :  { %v4199_v52 = vpop.eup %4198 }
 0x279   :  { %v382_v53 = vadd.f32 1.0, %v4199_v52 }
 0x27b   :  { %4200 = vrcp.f32 %v382_v53 }
 0x285   :  { %v4201_v59 = vpop.eup %4200 }
 0x2dc   :  { %v388_v55 = vpop.permute.xlu0 %387  ;;  %v399_v58 = vpop.permute.xlu1 %398 }
 0x2dd   :  { %v390_v56 = vadd.f32 %v388_v55, %v385_v54  ;;  %v401_v60 = vmul.f32 %v4201_v59, %v399_v58 }
 0x2df   :  { %v3782_v57 = vmul.f32 -1.442695, %v390_v56  ;;  %v402_v63 = vadd.f32 %v401_v60, %v397_v62 }
 0x2e1   :  { %4202 = vpow2.f32 %v3782_v57  ;;  %v611_v57 = vld [vmem:[#allocation4 + $0x6] sm:$0x3] }
 0x2eb   :  { %v4203_v61 = vpop.eup %4202 }
 0x2ec   :  { %v394_v0 = vadd.f32 1.0, %v4203_v61 }
 0x2ee   :  { %4204 = vrcp.f32 %v394_v0 }
 0x2ef   :  { %4206 = vtanh.f32 %v402_v63 }
 0x2f8   :  { %v4205_v1 = vpop.eup %4204 }
 0x2f9   :  { %v404_v2 = vsub.f32 1.0, %v4205_v1  ;;  %v4207_v3 = vpop.eup %4206  ;;  %v406_v7 = vmul.f32 %v4205_v1, %v303_v45 }
 0x2fb   :  { %v405_v4 = vmul.f32 %v4207_v3, %v404_v2 }
 0x2fd   :  { %v407_v8 = vadd.f32 %v406_v7, %v405_v4 }
 0x2ff   :  { %408 = vst.msk [vmem:[#allocation5] sm:$0x3] %vm188_vm2, %v407_v8  ;;  %409 = vst.msk [vmem:[#allocation6 + $0x2] sm:$0x3] %vm188_vm2, %v407_v8  ;;  %v698_v8 = vld [vmem:[#allocation2 + $0x8] sm:$0x3] }
 0x306   :  { %v410_v11 = vld [vmem:[#allocation5] sm:$0x3] }
 0x307   :  { %3966 = vmatmul.mubr.msk.f32.vlgmr.msra.gmra.mrb[2].mxu1 %vm162_vm4, %v410_v11 }
 0x308   :  { %4082 = vmatpush3.bf16.msra.mxu1 %v4658_v6  ;;  %3987 = vmatprep.mubr.msk.f32.mxu1 %vm4544_vm3, %v4545_v9 }
 0x309   :  { %4083 = vmatprep.subr.bf16.mxu1 %v4543_v5 }
 0x30c   :  { %4085 = vmatpush3.bf16.msra.mxu1 %v4671_v10 }
 0x30d   :  { %4092 = vmatprep.subr.bf16.mxu1 %v4543_v5 }
 0x3da   :  { %v480_v12 = vpop.f32.mrb[2].mxu1 }
 0x3db   :  { %v481_v13 = vadd.f32 %v4703_v17, %v480_v12  ;;  %v3967_v15 = vpop.f32.mrb[3].mxu1 }
 0x3dd   :  { %505 = vrot.lane.b32.xlu1 %v481_v13, %s4546_s25  ;;  %494 = vrot.lane.b32.xlu0 %v481_v13, %s4547_s26  ;;  %v485_v18 = vadd.f32 %v484_v16, %v481_v13 }
 0x3df   :  { %v3784_v19 = vmul.f32 -1.442695, %v485_v18 }
 0x3e1   :  { %4208 = vpow2.f32 %v3784_v19 }
 0x3eb   :  { %v4209_v20 = vpop.eup %4208 }
 0x3ec   :  { %v489_v21 = vadd.f32 1.0, %v4209_v20 }
 0x3ee   :  { %4210 = vrcp.f32 %v489_v21 }
 0x3f8   :  { %v4211_v27 = vpop.eup %4210 }
 0x44f   :  { %v495_v23 = vpop.permute.xlu0 %494  ;;  %v506_v26 = vpop.permute.xlu1 %505 }
 0x450   :  { %v497_v24 = vadd.f32 %v495_v23, %v492_v22  ;;  %v508_v28 = vmul.f32 %v4211_v27, %v506_v26 }
 0x452   :  { %v3785_v25 = vmul.f32 -1.442695, %v497_v24  ;;  %v509_v31 = vadd.f32 %v508_v28, %v504_v30 }
 0x454   :  { %4212 = vpow2.f32 %v3785_v25 }
 0x45e   :  { %v4213_v29 = vpop.eup %4212 }
 0x45f   :  { %v501_v32 = vadd.f32 1.0, %v4213_v29 }
 0x461   :  { %4214 = vrcp.f32 %v501_v32 }
 0x462   :  { %4216 = vtanh.f32 %v509_v31 }
 0x46b   :  { %v4215_v33 = vpop.eup %4214 }
 0x46c   :  { %v511_v34 = vsub.f32 1.0, %v4215_v33  ;;  %v4217_v35 = vpop.eup %4216  ;;  %v513_v37 = vmul.f32 %v4215_v33, %v410_v11 }
 0x46e   :  { %v512_v36 = vmul.f32 %v4217_v35, %v511_v34 }
 0x470   :  { %v514_v38 = vadd.f32 %v513_v37, %v512_v36 }
 0x472   :  { %515 = vst.msk [vmem:[#allocation5] sm:$0x3] %vm188_vm2, %v514_v38  ;;  %516 = vst.msk [vmem:[#allocation6 + $0x4] sm:$0x3] %vm188_vm2, %v514_v38  ;;  %v805_v38 = vld [vmem:[#allocation2 + $0xa] sm:$0x3] }
 0x479   :  { %v517_v39 = vld [vmem:[#allocation5] sm:$0x3] }
 0x47a   :  { %3977 = vmatmul.mubr.msk.f32.vlgmr.msra.gmra.mrb[4].mxu0 %vm162_vm4, %v517_v39 }
 0x47b   :  { %4088 = vmatpush3.bf16.msra.mxu0 %v4658_v6  ;;  %3998 = vmatprep.mubr.msk.f32.mxu0 %vm4544_vm3, %v4545_v9 }
 0x47c   :  { %4089 = vmatprep.subr.bf16.mxu0 %v4543_v5 }
 0x47f   :  { %4091 = vmatpush3.bf16.msra.mxu0 %v4671_v10 }
 0x480   :  { %4098 = vmatprep.subr.bf16.mxu0 %v4543_v5 }
 0x54d   :  { %v587_v40 = vpop.f32.mrb[4].mxu0 }
 0x54e   :  { %v588_v41 = vadd.f32 %v4703_v17, %v587_v40  ;;  %v3978_v42 = vpop.f32.mrb[5].mxu0 }
 0x550   :  { %612 = vrot.lane.b32.xlu1 %v588_v41, %s4546_s25  ;;  %601 = vrot.lane.b32.xlu0 %v588_v41, %s4547_s26  ;;  %v592_v44 = vadd.f32 %v591_v43, %v588_v41 }
 0x552   :  { %v3787_v45 = vmul.f32 -1.442695, %v592_v44 }
 0x554   :  { %169 = vrot.lane.b32.xlu0 %v4693_v14, %s4547_s26  ;;  %4218 = vpow2.f32 %v3787_v45 }
 0x558   :  { %177 = vrot.lane.b32.xlu0 %v4693_v14, %s4546_s25 }
 0x55e   :  { %v4219_v46 = vpop.eup %4218 }
 0x55f   :  { %v596_v47 = vadd.f32 1.0, %v4219_v46 }
 0x561   :  { %4220 = vrcp.f32 %v596_v47 }
 0x56b   :  { %v4221_v14 = vpop.eup %4220 }
 0x5c2   :  { %v602_v49 = vpop.permute.xlu0 %601  ;;  %v613_v54 = vpop.permute.xlu1 %612 }
 0x5c3   :  { %v604_v50 = vadd.f32 %v602_v49, %v599_v48  ;;  %v615_v55 = vmul.f32 %v4221_v14, %v613_v54 }
 0x5c5   :  { %v3788_v51 = vmul.f32 -1.442695, %v604_v50  ;;  %v616_v58 = vadd.f32 %v615_v55, %v611_v57 }
 0x5c6   :  { %v170_v52 = vpop.permute.xlu0 %169 }
 0x5c7   :  { %174 = vst.msk [vmem:[#allocation3 + $0x8] sm:$0xff] %vm162_vm4, %v170_v52  ;;  %4222 = vpow2.f32 %v3788_v51 }
 0x5ca   :  { %v178_v53 = vpop.permute.xlu0 %177 }
 0x5cb   :  { %182 = vst.msk [vmem:[#allocation4 + $0x8] sm:$0xff] %vm162_vm4, %v178_v53 }
 0x5ce   :  { %v706_v16 = vld [vmem:[#allocation3 + $0x8] sm:$0x3]  ;;  %v813_v42 = vld [vmem:[#allocation3 + $0xa] sm:$0x3] }
 0x5d1   :  { %v4223_v56 = vpop.eup %4222 }
 0x5d2   :  { %v608_v59 = vadd.f32 1.0, %v4223_v56  ;;  %v718_v25 = vld [vmem:[#allocation4 + $0x8] sm:$0x3]  ;;  %v825_v48 = vld [vmem:[#allocation4 + $0xa] sm:$0x3] }
 0x5d4   :  { %4224 = vrcp.f32 %v608_v59 }
 0x5d5   :  { %4226 = vtanh.f32 %v616_v58 }
 0x5de   :  { %v4225_v60 = vpop.eup %4224 }
 0x5df   :  { %v618_v61 = vsub.f32 1.0, %v4225_v60  ;;  %v4227_v62 = vpop.eup %4226  ;;  %v620_v0 = vmul.f32 %v4225_v60, %v517_v39 }
 0x5e1   :  { %v619_v63 = vmul.f32 %v4227_v62, %v618_v61  ;;  %v912_v61 = vld [vmem:[#allocation2 + $0xc] sm:$0x3] }
 0x5e3   :  { %v621_v1 = vadd.f32 %v620_v0, %v619_v63 }
 0x5e5   :  { %623 = vst.msk [vmem:[#allocation6 + $0x6] sm:$0x3] %vm188_vm2, %v621_v1  ;;  %622 = vst.msk [vmem:[#allocation5] sm:$0x3] %vm188_vm2, %v621_v1 }
 0x5ec   :  { %v624_v2 = vld [vmem:[#allocation5] sm:$0x3]  ;;  %v1052_v57 = vld [vmem:[#allocation6] sm:$0xff] }
 0x5ed   :  { %3988 = vmatmul.mubr.msk.f32.vlgmr.msra.gmra.mrb[4].mxu1 %vm162_vm4, %v624_v2 }
 0x5ee   :  { %4094 = vmatpush3.bf16.msra.mxu1 %v4658_v6  ;;  %4009 = vmatprep.mubr.msk.f32.mxu1 %vm4544_vm3, %v4545_v9 }
 0x5ef   :  { %4095 = vmatprep.subr.bf16.mxu1 %v4543_v5 }
 0x5f2   :  { %4097 = vmatpush3.bf16.msra.mxu1 %v4671_v10 }
 0x6c0   :  { %v694_v3 = vpop.f32.mrb[4].mxu1 }
 0x6c1   :  { %v695_v4 = vadd.f32 %v4703_v17, %v694_v3  ;;  %v3989_v7 = vpop.f32.mrb[5].mxu1 }
 0x6c3   :  { %708 = vrot.lane.b32.xlu1 %v695_v4, %s4547_s26  ;;  %v699_v11 = vadd.f32 %v698_v8, %v695_v4 }
 0x6c5   :  { %v3790_v12 = vmul.f32 -1.442695, %v699_v11 }
 0x6c7   :  { %719 = vrot.lane.b32.xlu1 %v695_v4, %s4546_s25  ;;  %4228 = vpow2.f32 %v3790_v12 }
 0x6d1   :  { %v4229_v13 = vpop.eup %4228 }
 0x6d2   :  { %v703_v15 = vadd.f32 1.0, %v4229_v13 }
 0x6d4   :  { %4230 = vrcp.f32 %v703_v15  ;;  %v932_v15 = vld [vmem:[#allocation4 + $0xc] sm:$0x3] }
 0x6de   :  { %v4231_v22 = vpop.eup %4230 }
 0x735   :  { %v709_v18 = vpop.permute.xlu1 %708 }
 0x736   :  { %v711_v19 = vadd.f32 %v709_v18, %v706_v16 }
 0x738   :  { %v3791_v20 = vmul.f32 -1.442695, %v711_v19 }
 0x739   :  { %v720_v21 = vpop.permute.xlu1 %719 }
 0x73a   :  { %4232 = vpow2.f32 %v3791_v20  ;;  %v722_v23 = vmul.f32 %v4231_v22, %v720_v21 }
 0x73c   :  { %v723_v27 = vadd.f32 %v722_v23, %v718_v25 }
 0x744   :  { %v4233_v24 = vpop.eup %4232 }
 0x745   :  { %v715_v26 = vadd.f32 1.0, %v4233_v24 }
 0x747   :  { %4234 = vrcp.f32 %v715_v26 }
 0x748   :  { %4236 = vtanh.f32 %v723_v27 }
 0x751   :  { %v4235_v28 = vpop.eup %4234 }
 0x752   :  { %v725_v29 = vsub.f32 1.0, %v4235_v28  ;;  %v4237_v30 = vpop.eup %4236  ;;  %v727_v31 = vmul.f32 %v4235_v28, %v624_v2  ;;  %v920_v2 = vld [vmem:[#allocation3 + $0xc] sm:$0x3] }
 0x754   :  { %v726_v32 = vmul.f32 %v4237_v30, %v725_v29  ;;  %v1054_v29 = vld [vmem:[%s6569_s6] sm:$0xff]  ;;  %v1055_v30 = vld [vmem:[%s6569_s6 + $0x8] sm:$0xff] }
 0x756   :  { %v728_v33 = vadd.f32 %v727_v31, %v726_v32  ;;  %v4104_v31 = vpack.c.bf16 %v1055_v30, %v1054_v29  ;;  %v1056_v32 = vld [vmem:[%s6569_s6 + $0x10] sm:$0xff] }
 0x758   :  { %730 = vst.msk [vmem:[#allocation6 + $0x8] sm:$0x3] %vm188_vm2, %v728_v33  ;;  %729 = vst.msk [vmem:[#allocation5] sm:$0x3] %vm188_vm2, %v728_v33  ;;  %4105 = vmatprep.subr.bf16.mxu1 %v4104_v31 }
 0x75f   :  { %v731_v34 = vld [vmem:[#allocation5] sm:$0x3] }
 0x760   :  { %3999 = vmatmul.mubr.msk.f32.vlgmr.msra.gmra.mrb[6].mxu0 %vm162_vm4, %v731_v34 }
 0x761   :  { %4100 = vmatpush3.bf16.msra.mxu0 %v4658_v6  ;;  %4020 = vmatprep.mubr.msk.f32.mxu0 %vm4544_vm3, %v4545_v9  ;;  %v1477_v9 = vld [vmem:[%s6564_s1 + $0x2] sm:$0x3] }
 0x762   :  { %4101 = vmatprep.subr.bf16.mxu0 %v4543_v5 }
 0x765   :  { %4103 = vmatpush3.bf16.msra.mxu0 %v4671_v10 }
 0x833   :  { %v801_v35 = vpop.f32.mrb[6].mxu0 }
 0x834   :  { %v802_v36 = vadd.f32 %v4703_v17, %v801_v35  ;;  %v4000_v37 = vpop.f32.mrb[7].mxu0  ;;  %v1149_v35 = vld [vmem:[%s6571_s8 + $0x8] sm:$0xff] }
 0x835   :  { %v1019_v37 = vld [vmem:[#allocation2 + $0xe] sm:$0x3] }
 0x836   :  { %826 = vrot.lane.b32.xlu1 %v802_v36, %s4546_s25  ;;  %815 = vrot.lane.b32.xlu0 %v802_v36, %s4547_s26  ;;  %v806_v39 = vadd.f32 %v805_v38, %v802_v36 }
 0x838   :  { %v3793_v40 = vmul.f32 -1.442695, %v806_v39 }
 0x83a   :  { %4238 = vpow2.f32 %v3793_v40 }
 0x844   :  { %v4239_v6 = vpop.eup %4238 }
 0x845   :  { %v810_v41 = vadd.f32 1.0, %v4239_v6 }
 0x847   :  { %4240 = vrcp.f32 %v810_v41  ;;  %v1027_v41 = vld [vmem:[#allocation3 + $0xe] sm:$0x3] }
 0x851   :  { %v4241_v45 = vpop.eup %4240 }
 0x8a8   :  { %v816_v43 = vpop.permute.xlu0 %815  ;;  %v827_v10 = vpop.permute.xlu1 %826 }
 0x8a9   :  { %v818_v44 = vadd.f32 %v816_v43, %v813_v42  ;;  %v829_v46 = vmul.f32 %v4241_v45, %v827_v10 }
 0x8ab   :  { %v3794_v5 = vmul.f32 -1.442695, %v818_v44  ;;  %v830_v49 = vadd.f32 %v829_v46, %v825_v48 }
 0x8ad   :  { %4242 = vpow2.f32 %v3794_v5 }
 0x8b7   :  { %v4243_v47 = vpop.eup %4242 }
 0x8b8   :  { %v822_v50 = vadd.f32 1.0, %v4243_v47  ;;  %v1039_v47 = vld [vmem:[#allocation4 + $0xe] sm:$0x3] }
 0x8ba   :  { %4244 = vrcp.f32 %v822_v50 }
 0x8bb   :  { %4246 = vtanh.f32 %v830_v49 }
 0x8c4   :  { %v4245_v51 = vpop.eup %4244 }
 0x8c5   :  { %v832_v52 = vsub.f32 1.0, %v4245_v51  ;;  %v4247_v53 = vpop.eup %4246  ;;  %v834_v14 = vmul.f32 %v4245_v51, %v731_v34  ;;  %v1148_v34 = vld [vmem:[%s6571_s8] sm:$0xff] }
 0x8c6   :  { %v4112_v36 = vpack.c.bf16 %v1149_v35, %v1148_v34 }
 0x8c7   :  { %v833_v54 = vmul.f32 %v4247_v53, %v832_v52 }
 0x8c8   :  { %4113 = vmatprep.subr.bf16.mxu0 %v4112_v36 }
 0x8c9   :  { %v835_v55 = vadd.f32 %v834_v14, %v833_v54 }
 0x8cb   :  { %837 = vst.msk [vmem:[#allocation6 + $0xa] sm:$0x3] %vm188_vm2, %v835_v55  ;;  %836 = vst.msk [vmem:[#allocation5] sm:$0x3] %vm188_vm2, %v835_v55 }
 0x8d2   :  { %v838_v56 = vld [vmem:[#allocation5] sm:$0x3] }
 0x8d3   :  { %4010 = vmatmul.mubr.msk.f32.vlgmr.msra.gmra.mrb[6].mxu1 %vm162_vm4, %v838_v56 }
 0x8d4   :  { %4031 = vmatprep.mubr.msk.f32.mxu1 %vm162_vm4, %v1052_v57  ;;  %4107 = vmatpush3.bf16.msra.mxu1 %v4104_v31  ;;  %v1151_v57 = vld [vmem:[%s6571_s8 + $0x18] sm:$0xff] }
 0x9a6   :  { %v908_v58 = vpop.f32.mrb[6].mxu1 }
 0x9a7   :  { %v909_v59 = vadd.f32 %v4703_v17, %v908_v58  ;;  %v4011_v60 = vpop.f32.mrb[7].mxu1 }
 0x9a8   :  { %v1243_v60 = vld [vmem:[%s6573_s10 + $0x8] sm:$0xff] }
 0x9a9   :  { %933 = vrot.lane.b32.xlu1 %v909_v59, %s4546_s25  ;;  %922 = vrot.lane.b32.xlu0 %v909_v59, %s4547_s26  ;;  %v913_v62 = vadd.f32 %v912_v61, %v909_v59  ;;  %v1242_v59 = vld [vmem:[%s6573_s10] sm:$0xff] }
 0x9aa   :  { %v4120_v61 = vpack.c.bf16 %v1243_v60, %v1242_v59 }
 0x9ab   :  { %v3796_v63 = vmul.f32 -1.442695, %v913_v62  ;;  %v3801_v62 = vld [vmem:[%s6570_s7] ss:$0 sm:$0xff] }
 0x9ad   :  { %4248 = vpow2.f32 %v3796_v63 }
 0x9b7   :  { %v4249_v0 = vpop.eup %4248 }
 0x9b8   :  { %v917_v1 = vadd.f32 1.0, %v4249_v0 }
 0x9ba   :  { %4250 = vrcp.f32 %v917_v1 }
 0x9c4   :  { %v4251_v11 = vpop.eup %4250 }
 0xa1b   :  { %v923_v3 = vpop.permute.xlu0 %922  ;;  %v934_v8 = vpop.permute.xlu1 %933 }
 0xa1c   :  { %v925_v4 = vadd.f32 %v923_v3, %v920_v2  ;;  %v936_v12 = vmul.f32 %v4251_v11, %v934_v8  ;;  %v1245_v8 = vld [vmem:[%s6573_s10 + $0x18] sm:$0xff] }
 0xa1e   :  { %v3797_v7 = vmul.f32 -1.442695, %v925_v4  ;;  %v937_v16 = vadd.f32 %v936_v12, %v932_v15  ;;  %v6581_v12 = vmov 0   ;;  %v1347_v15 = vld [vmem:[#allocation8] sm:$0x3] }
 0xa1f   :  { %4141 = vset.pattern.permute.xlu1 %v6581_v12  ;;  %4140 = vset.pattern.permute.xlu0 %v6581_v12 }
 0xa20   :  { %4252 = vpow2.f32 %v3797_v7  ;;  %v1244_v7 = vld [vmem:[%s6573_s10 + $0x10] sm:$0xff] }
 0xa21   :  { %v4124_v11 = vpack.c.bf16 %v1245_v8, %v1244_v7 }
 0xa2a   :  { %v4253_v13 = vpop.eup %4252 }
 0xa2b   :  { %v929_v18 = vadd.f32 1.0, %v4253_v13  ;;  %v1348_v13 = vld [vmem:[#allocation8 + $0x2] sm:$0x3] }
 0xa2d   :  { %4254 = vrcp.f32 %v929_v18  ;;  %v1350_v18 = vld [vmem:[#allocation8 + $0x6] sm:$0x3] }
 0xa2e   :  { %4256 = vtanh.f32 %v937_v16  ;;  %v1349_v16 = vld [vmem:[#allocation8 + $0x4] sm:$0x3] }
 0xa37   :  { %v4255_v19 = vpop.eup %4254 }
 0xa38   :  { %v939_v20 = vsub.f32 1.0, %v4255_v19  ;;  %v4257_v21 = vpop.eup %4256  ;;  %v941_v23 = vmul.f32 %v4255_v19, %v838_v56  ;;  %v1150_v56 = vld [vmem:[%s6571_s8 + $0x10] sm:$0xff]  ;;  %v6583_v19 = vmov 1  }
 0xa39   :  { %v4116_v58 = vpack.c.bf16 %v1151_v57, %v1150_v56 }
 0xa3a   :  { %v940_v22 = vmul.f32 %v4257_v21, %v939_v20  ;;  %v6585_v20 = vmov 2   ;;  %v1479_v21 = vld [vmem:[%s6564_s1 + $0x6] sm:$0x3] }
 0xa3c   :  { %v942_v24 = vadd.f32 %v941_v23, %v940_v22  ;;  %v1476_v22 = vld [vmem:[%s6564_s1] sm:$0x3]  ;;  %v1478_v23 = vld [vmem:[%s6564_s1 + $0x4] sm:$0x3] }
 0xa3e   :  { %944 = vst.msk [vmem:[#allocation6 + $0xc] sm:$0x3] %vm188_vm2, %v942_v24  ;;  %943 = vst.msk [vmem:[#allocation5] sm:$0x3] %vm188_vm2, %v942_v24  ;;  %v3804_v24 = vld [vmem:[%s6572_s9] ss:$0 sm:$0xff] }
 0xa45   :  { %v945_v25 = vld [vmem:[#allocation5] sm:$0x3] }
 0xa46   :  { %4021 = vmatmul.mubr.msk.f32.vlgmr.msra.gmra.mrb[8].mxu0 %vm162_vm4, %v945_v25 }
 0xa47   :  { %4115 = vmatpush3.bf16.msra.mxu0 %v4112_v36  ;;  %v1372_v36 = vlaneseq }
 0xa48   :  { %4117 = vmatprep.subr.bf16.mxu0 %v4116_v58 }
 0xa4b   :  { %4119 = vmatpush3.bf16.msra.mxu0 %v4116_v58 }
 0xb19   :  { %v1015_v26 = vpop.f32.mrb[8].mxu0 }
 0xb1a   :  { %v1016_v27 = vadd.f32 %v4703_v17, %v1015_v26  ;;  %v4022_v28 = vpop.f32.mrb[9].mxu0  ;;  %v1057_v17 = vld [vmem:[%s6569_s6 + $0x18] sm:$0xff] }
 0xb1b   :  { %v4108_v33 = vpack.c.bf16 %v1057_v17, %v1056_v32 }
 0xb1c   :  { %1040 = vrot.lane.b32.xlu1 %v1016_v27, %s4546_s25  ;;  %1029 = vrot.lane.b32.xlu0 %v1016_v27, %s4547_s26  ;;  %v1020_v38 = vadd.f32 %v1019_v37, %v1016_v27 }
 0xb1d   :  { %4109 = vmatprep.subr.bf16.mxu1 %v4108_v33 }
 0xb1e   :  { %4111 = vmatpush3.bf16.msra.mxu1 %v4108_v33  ;;  %v3799_v39 = vmul.f32 -1.442695, %v1020_v38  ;;  %v1373_v38 = vshrl.u32 %v1372_v36, 7 }
 0xb1f   :  { %4121 = vmatprep.subr.bf16.mxu1 %v4120_v61 }
 0xb20   :  { %4258 = vpow2.f32 %v3799_v39  ;;  %1359 = vperm.xlu1 %4141, %v1348_v13   ;;  %1354 = vperm.xlu0 %4140, %v1347_v15  }
 0xb24   :  { %1364 = vperm.xlu1 %4141, %v1349_v16   ;;  %1369 = vperm.xlu0 %4140, %v1350_v18  }
 0xb28   :  { %4142 = vset.pattern.permute.xlu1 %v6583_v19  ;;  %4143 = vset.pattern.permute.xlu0 %v6583_v19 }
 0xb29   :  { %1385 = vperm.xlu1 %4142, %v1347_v15   ;;  %1389 = vperm.xlu0 %4143, %v1348_v13  }
 0xb2a   :  { %v4259_v40 = vpop.eup %4258 }
 0xb2b   :  { %v1024_v6 = vadd.f32 1.0, %v4259_v40  ;;  %v3807_v40 = vld [vmem:[%s6574_s11] ss:$0 sm:$0xff]  ;;  %s4552_s11 = smov 125  }
 0xb2d   :  { %4260 = vrcp.f32 %v1024_v6  ;;  %1393 = vperm.xlu1 %4142, %v1349_v16   ;;  %4144 = vset.pattern.permute.xlu0 %v6585_v20 }
 0xb2e   :  { %1413 = vperm.xlu0 %4144, %v1347_v15  }
 0xb31   :  { %1397 = vperm.xlu1 %4142, %v1350_v18  }
 0xb32   :  { %1425 = vperm.xlu0 %4144, %v1350_v18  }
 0xb35   :  { %4145 = vset.pattern.permute.xlu1 %v6585_v20 }
 0xb36   :  { %1417 = vperm.xlu1 %4145, %v1348_v13   ;;  %1486 = vrot.lane.b32.xlu0 %v1477_v9, %s4551_s30 }
 0xb37   :  { %v4261_v10 = vpop.eup %4260  ;;  %4147 = vset.pattern.permute.xlu0 %v6581_v12 }
 0xb3a   :  { %1421 = vperm.xlu1 %4145, %v1349_v16   ;;  %1490 = vrot.lane.b32.xlu0 %v1479_v21, %s4551_s30 }
 0xb3e   :  { %1484 = vrot.lane.b32.xlu1 %v1476_v22, %s4551_s30 }
 0xb3f   :  { %4146 = vset.pattern.permute.xlu1 %v6581_v12 }
 0xb42   :  { %1488 = vrot.lane.b32.xlu1 %v1478_v23, %s4551_s30 }
 0xb8e   :  { %v1030_v42 = vpop.permute.xlu0 %1029  ;;  %v1041_v5 = vpop.permute.xlu1 %1040 }
 0xb8f   :  { %v1032_v43 = vadd.f32 %v1030_v42, %v1027_v41  ;;  %v1043_v45 = vmul.f32 %v4261_v10, %v1041_v5  ;;  %v1374_v41 = vsub.s32 0, %v1373_v38  ;;  %v1402_v5 = vsub.s32 1, %v1373_v38 }
 0xb91   :  { %v3800_v44 = vmul.f32 -1.442695, %v1032_v43  ;;  %v1044_v48 = vadd.f32 %v1043_v45, %v1039_v47  ;;  %v1430_v47 = vsub.s32 2, %v1373_v38 }
 0xb93   :  { %4262 = vpow2.f32 %v3800_v44  ;;  %v1344_v44 = vld [vmem:[%s6575_s12] sm:$0x7] }
 0xb9d   :  { %v4263_v46 = vpop.eup %4262 }
 0xb9e   :  { %v1036_v49 = vadd.f32 1.0, %v4263_v46 }
 0xb9f   :  { %v1360_v31 = vpop.permute.xlu1 %1359  ;;  %v1355_v33 = vpop.permute.xlu0 %1354 }
 0xba0   :  { %4264 = vrcp.f32 %v1036_v49  ;;  %v4878_v49 = vrot.slane %v1344_v44, %v1402_v5 }
 0xba1   :  { %4266 = vtanh.f32 %v1044_v48  ;;  %v4876_v48 = vrot.slane %v1344_v44, %v1374_v41 }
 0xba3   :  { %v1365_v32 = vpop.permute.xlu1 %1364  ;;  %v1370_v35 = vpop.permute.xlu0 %1369 }
 0xba8   :  { %v1386_v17 = vpop.permute.xlu1 %1385  ;;  %v1390_v37 = vpop.permute.xlu0 %1389 }
 0xba9   :  { %v1404_v56 = vmul.f32 %v4878_v49, %v1386_v17  ;;  %v1405_v59 = vmul.f32 %v4878_v49, %v1390_v37 }
 0xbaa   :  { %v4265_v50 = vpop.eup %4264 }
 0xbab   :  { %v1046_v51 = vsub.f32 1.0, %v4265_v50  ;;  %v4267_v52 = vpop.eup %4266  ;;  %v1048_v54 = vmul.f32 %v4265_v50, %v945_v25  ;;  %v4880_v50 = vrot.slane %v1344_v44, %v1430_v47 }
 0xbac   :  { %v1394_v34 = vpop.permute.xlu1 %1393 }
 0xbad   :  { %v1047_v53 = vmul.f32 %v4267_v52, %v1046_v51  ;;  %v1414_v46 = vpop.permute.xlu0 %1413  ;;  %v1406_v57 = vmul.f32 %v4878_v49, %v1394_v34 }
 0xbaf   :  { %v1049_v14 = vadd.f32 %v1048_v54, %v1047_v53  ;;  %v1377_v53 = vmul.f32 %v4876_v48, %v1360_v31  ;;  %v1378_v54 = vmul.f32 %v4876_v48, %v1365_v32 }
 0xbb0   :  { %v1398_v39 = vpop.permute.xlu1 %1397 }
 0xbb1   :  { %1050 = vst.msk [vmem:[#allocation5] sm:$0x3] %vm188_vm2, %v1049_v14  ;;  %1051 = vst.msk [vmem:[#allocation6 + $0xe] sm:$0x3] %vm188_vm2, %v1049_v14  ;;  %v1426_v52 = vpop.permute.xlu0 %1425  ;;  %v1376_v14 = vmul.f32 %v4876_v48, %v1355_v33  ;;  %v1407_v58 = vmul.f32 %v4878_v49, %v1398_v39 }
 0xbb5   :  { %v1418_v45 = vpop.permute.xlu1 %1417  ;;  %v1487_v44 = vpop.permute.xlu0 %1486 }
 0xbb8   :  { %v1053_v55 = vld [vmem:[#allocation6 + $0x8] sm:$0xff] }
 0xbb9   :  { %4032 = vmatmul.mubr.msk.f32.vlgmr.msra.gmra.mrb[8].mxu1 %vm162_vm4, %v1053_v55  ;;  %v1422_v51 = vpop.permute.xlu1 %1421  ;;  %v1379_v55 = vmul.f32 %v4876_v48, %v1370_v35 }
 0xbba   :  { %4123 = vmatpush3.bf16.msra.mxu1 %v4120_v61  ;;  %v1433_v61 = vmul.f32 %v4880_v50, %v1418_v45 }
 0xbbb   :  { %4125 = vmatprep.subr.bf16.mxu1 %v4124_v11 }
 0xbbe   :  { %4127 = vmatpush3.bf16.msra.mxu1 %v4124_v11 }
 0xc8c   :  { %v4033_v63 = vpop.f32.mrb[8].mxu1 }
 0xc8d   :  { %v1143_v0 = vadd.f32 %v4033_v63, %v3801_v62  ;;  %v1137_v1 = vpop.f32.mrb[9].mxu1  ;;  %v1434_v63 = vmul.f32 %v4880_v50, %v1422_v51 }
 0xc8e   :  { %v1138_v2 = vadd.f32 %v3801_v62, %v1137_v1  ;;  %v1432_v62 = vmul.f32 %v4880_v50, %v1414_v46 }
 0xc8f   :  { %v1147_v4 = vmax.f32 %v1143_v0, 0.0  ;;  %v1435_v0 = vmul.f32 %v4880_v50, %v1426_v52 }
 0xc90   :  { %v1146_v3 = vmax.f32 %v1138_v2, 0.0 }
 0xc92   :  { %4042 = vmatprep.mubr.msk.f32.mxu0 %vm162_vm4, %v1146_v3 }
 0xc93   :  { %4043 = vmatmul.mubr.msk.f32.vlgmr.msra.gmra.mrb[10].mxu0 %vm162_vm4, %v1147_v4 }
 0xd66   :  { %v4044_v25 = vpop.f32.mrb[10].mxu0 }
 0xd67   :  { %v1237_v26 = vadd.f32 %v4044_v25, %v3804_v24  ;;  %v1231_v27 = vpop.f32.mrb[11].mxu0 }
 0xd68   :  { %v1232_v28 = vadd.f32 %v3804_v24, %v1231_v27 }
 0xd69   :  { %v1241_v30 = vmax.f32 %v1237_v26, 0.0 }
 0xd6a   :  { %v1240_v29 = vmax.f32 %v1232_v28, 0.0 }
 0xd6c   :  { %4053 = vmatprep.mubr.msk.f32.mxu1 %vm162_vm4, %v1240_v29 }
 0xd6d   :  { %4054 = vmatmul.mubr.msk.f32.vlgmr.msra.gmra.mrb[10].mxu1 %vm162_vm4, %v1241_v30 }
 0xe40   :  { %v4055_v6 = vpop.f32.mrb[10].mxu1 }
 0xe41   :  { %v1331_v42 = vadd.f32 %v4055_v6, %v3807_v40  ;;  %v1325_v43 = vpop.f32.mrb[11].mxu1  ;;  %v1485_v6 = vpop.permute.xlu1 %1484 }
 0xe42   :  { %v1326_v10 = vadd.f32 %v3807_v40, %v1325_v43 }
 0xe43   :  { %1336 = vst.msk [vmem:[#allocation7 + $0x8] sm:$0xff] %vm1334_vm6, %v1331_v42 }
 0xe44   :  { %1335 = vst.msk [vmem:[#allocation7] sm:$0xff] %vm1334_vm6, %v1326_v10 }
 0xe4b   :  { %v1351_v60 = vld [vmem:[#allocation7] sm:$0x3] }
 0xe4c   :  { %v1381_v1 = vadd.f32 %v1377_v53, %v1351_v60  ;;  %v1380_v2 = vadd.f32 %v1376_v14, %v1351_v60  ;;  %v1382_v3 = vadd.f32 %v1378_v54, %v1351_v60  ;;  %v1383_v4 = vadd.f32 %v1379_v55, %v1351_v60  ;;  %v1491_v60 = vpop.permute.xlu0 %1490 }
 0xe4e   :  { %v1409_v7 = vadd.f32 %v1405_v59, %v1381_v1  ;;  %v1408_v8 = vadd.f32 %v1404_v56, %v1380_v2  ;;  %v1410_v11 = vadd.f32 %v1406_v57, %v1382_v3  ;;  %v1411_v13 = vadd.f32 %v1407_v58, %v1383_v4  ;;  %v1489_v58 = vpop.permute.xlu1 %1488 }
 0xe50   :  { %v4894_v15 = vadd.f32 %v1433_v61, %v1409_v7  ;;  %v4896_v16 = vadd.f32 %v1432_v62, %v1408_v8  ;;  %v4898_v18 = vadd.f32 %v1434_v63, %v1410_v11  ;;  %v4900_v9 = vadd.f32 %v1435_v0, %v1411_v13 }
 0xe52   :  { %v1445_v21 = vand.u32 2147483647, %v4894_v15  ;;  %v1444_v22 = vand.u32 2147483647, %v4896_v16  ;;  %v1446_v23 = vand.u32 2147483647, %v4898_v18 }
 0xe53   :  { %v1447_v24 = vand.u32 2147483647, %v4900_v9  ;;  %v1440_v42 = vmax.f32 %v4896_v16, 0.0  ;;  %v1441_v10 = vmax.f32 %v4894_v15, 0.0  ;;  %v1442_v51 = vmax.f32 %v4898_v18, 0.0 }
 0xe54   :  { %v1449_v25 = vsub.f32 0.0, %v1445_v21  ;;  %v1448_v26 = vsub.f32 0.0, %v1444_v22  ;;  %v1450_v27 = vsub.f32 0.0, %v1446_v23  ;;  %v1443_v54 = vmax.f32 %v4900_v9, 0.0  ;;  %v3813_v23 = vld [vmem:[%s6564_s1 + $0x8] sm:$0x3] }
 0xe55   :  { %v1451_v28 = vsub.f32 0.0, %v1447_v24  ;;  %v3815_v24 = vld [vmem:[%s6564_s1 + $0xc] sm:$0x3] }
 0xe56   :  { %v1452_v29 = vmul.f32 1.442695, %v1448_v26  ;;  %v1454_v30 = vmul.f32 1.442695, %v1449_v25  ;;  %v1456_v31 = vmul.f32 1.442695, %v1450_v27 }
 0xe57   :  { %v1458_v32 = vmul.f32 1.442695, %v1451_v28  ;;  %v3814_v25 = vld [vmem:[%s6564_s1 + $0xa] sm:$0x3]  ;;  %v3816_v26 = vld [vmem:[%s6564_s1 + $0xe] sm:$0x3] }
 0xe58   :  { %4268 = vpow2.f32 %v1452_v29 }
 0xe59   :  { %4270 = vpow2.f32 %v1454_v30 }
 0xe5a   :  { %4272 = vpow2.f32 %v1456_v31 }
 0xe5b   :  { %4274 = vpow2.f32 %v1458_v32 }
 0xe62   :  { %v4269_v17 = vpop.eup %4268 }
 0xe63   :  { %v4271_v33 = vpop.eup %4270  ;;  %v1460_v34 = vadd.f32 1.0, %v4269_v17 }
 0xe64   :  { %v4273_v35 = vpop.eup %4272  ;;  %v1461_v36 = vadd.f32 1.0, %v4271_v33  ;;  %v1678_v33 = vld [vmem:[#allocation7 + $0x2] sm:$0x3] }
 0xe65   :  { %v4275_v37 = vpop.eup %4274  ;;  %4276 = vlog2.f32 %v1460_v34  ;;  %v1462_v38 = vadd.f32 1.0, %v4273_v35 }
 0xe66   :  { %4278 = vlog2.f32 %v1461_v36  ;;  %v1463_v39 = vadd.f32 1.0, %v4275_v37 }
 0xe67   :  { %4280 = vlog2.f32 %v1462_v38 }
 0xe68   :  { %4282 = vlog2.f32 %v1463_v39 }
 0xe6f   :  { %v4277_v40 = vpop.eup %4276 }
 0xe70   :  { %v4279_v41 = vpop.eup %4278  ;;  %v1465_v43 = vmul.f32 0.6931472, %v4277_v40 }
 0xe71   :  { %v4281_v5 = vpop.eup %4280  ;;  %v1467_v45 = vmul.f32 0.6931472, %v4279_v41 }
 0xe72   :  { %v4283_v46 = vpop.eup %4282  ;;  %v4908_v47 = vadd.f32 %v1465_v43, %v1440_v42  ;;  %v1469_v52 = vmul.f32 0.6931472, %v4281_v5 }
 0xe73   :  { %v4911_v53 = vadd.f32 %v1467_v45, %v1441_v10  ;;  %v1471_v14 = vmul.f32 0.6931472, %v4283_v46 }
 0xe74   :  { %v1496_v55 = vmul.f32 %v1485_v6, %v4908_v47  ;;  %v4915_v56 = vadd.f32 %v1469_v52, %v1442_v51 }
 0xe75   :  { %v1497_v57 = vmul.f32 %v1487_v44, %v4911_v53  ;;  %v4918_v59 = vadd.f32 %v1471_v14, %v1443_v54 }
 0xe76   :  { %1504 = vrot.lane.b32.xlu1 %v1496_v55, %s4552_s11  ;;  %v1498_v61 = vmul.f32 %v1489_v58, %v4915_v56 }
 0xe77   :  { %1506 = vrot.lane.b32.xlu0 %v1497_v57, %s4552_s11  ;;  %v1499_v62 = vmul.f32 %v1491_v60, %v4918_v59 }
 0xe7a   :  { %1508 = vrot.lane.b32.xlu1 %v1498_v61, %s4552_s11 }
 0xe7b   :  { %1510 = vrot.lane.b32.xlu0 %v1499_v62, %s4552_s11 }
 0xee8   :  { %v1505_v63 = vpop.permute.xlu1 %1504 }
 0xee9   :  { %v1507_v0 = vpop.permute.xlu0 %1506  ;;  %v4927_v1 = vadd.f32 %v1505_v63, %v4896_v16 }
 0xeea   :  { %v4930_v2 = vadd.f32 %v1507_v0, %v4894_v15 }
 0xeeb   :  { %1598 = vst.msk [vmem:[#allocation8] sm:$0x3] %vm1337_vm5, %v4927_v1 }
 0xeec   :  { %1599 = vst.msk [vmem:[#allocation8 + $0x2] sm:$0x3] %vm1337_vm5, %v4930_v2  ;;  %v1509_v3 = vpop.permute.xlu1 %1508 }
 0xeed   :  { %v1511_v4 = vpop.permute.xlu0 %1510  ;;  %v4937_v7 = vadd.f32 %v1509_v3, %v4898_v18 }
 0xeee   :  { %v4940_v8 = vadd.f32 %v1511_v4, %v4900_v9 }
 0xeef   :  { %1600 = vst.msk [vmem:[#allocation8 + $0x4] sm:$0x3] %vm1337_vm5, %v4937_v7 }
 0xef0   :  { %1601 = vst.msk [vmem:[#allocation8 + $0x6] sm:$0x3] %vm1337_vm5, %v4940_v8 }
 0xef2   :  { %v1674_v11 = vld [vmem:[#allocation8] sm:$0x3] }
 0xef3   :  { %v1675_v13 = vld [vmem:[#allocation8 + $0x2] sm:$0x3]  ;;  %1681 = vperm.xlu1 %4146, %v1674_v11  }
 0xef4   :  { %1686 = vperm.xlu0 %4147, %v1675_v13  }
 0xef6   :  { %v1676_v21 = vld [vmem:[#allocation8 + $0x4] sm:$0x3] }
 0xef7   :  { %1691 = vperm.xlu1 %4146, %v1676_v21   ;;  %v1677_v22 = vld [vmem:[#allocation8 + $0x6] sm:$0x3] }
 0xef8   :  { %4148 = vset.pattern.permute.xlu0 %v6583_v19 }
 0xef9   :  { %1708 = vperm.xlu0 %4148, %v1674_v11  }
 0xefb   :  { %1696 = vperm.xlu1 %4146, %v1677_v22  }
 0xefd   :  { %1720 = vperm.xlu0 %4148, %v1677_v22  }
 0xeff   :  { %4149 = vset.pattern.permute.xlu1 %v6583_v19 }
 0xf00   :  { %1712 = vperm.xlu1 %4149, %v1675_v13  }
 0xf01   :  { %4151 = vset.pattern.permute.xlu0 %v6585_v20 }
 0xf02   :  { %1736 = vperm.xlu0 %4151, %v1675_v13  }
 0xf04   :  { %1716 = vperm.xlu1 %4149, %v1676_v21  }
 0xf06   :  { %1800 = vrot.lane.b32.xlu0 %v3813_v23, %s4551_s30 }
 0xf07   :  { %4152 = vset.pattern.permute.xlu0 %v6581_v12 }
 0xf08   :  { %4150 = vset.pattern.permute.xlu1 %v6585_v20 }
 0xf09   :  { %1732 = vperm.xlu1 %4150, %v1674_v11  }
 0xf0a   :  { %1804 = vrot.lane.b32.xlu0 %v3815_v24, %s4551_s30 }
 0xf0d   :  { %1740 = vperm.xlu1 %4150, %v1676_v21  }
 0xf11   :  { %1744 = vperm.xlu1 %4150, %v1677_v22  }
 0xf15   :  { %1802 = vrot.lane.b32.xlu1 %v3814_v25, %s4551_s30 }
 0xf16   :  { %4153 = vset.pattern.permute.xlu1 %v6581_v12 }
 0xf19   :  { %1806 = vrot.lane.b32.xlu1 %v3816_v26, %s4551_s30 }
 0xf72   :  { %v1682_v27 = vpop.permute.xlu1 %1681 }
 0xf73   :  { %v1687_v28 = vpop.permute.xlu0 %1686  ;;  %v1699_v40 = vmul.f32 %v1682_v27, %v4876_v48 }
 0xf74   :  { %v1700_v32 = vmul.f32 %v1687_v28, %v4876_v48 }
 0xf75   :  { %v1703_v44 = vadd.f32 %v1699_v40, %v1678_v33 }
 0xf76   :  { %v1692_v29 = vpop.permute.xlu1 %1691  ;;  %v1704_v35 = vadd.f32 %v1700_v32, %v1678_v33 }
 0xf77   :  { %v1701_v5 = vmul.f32 %v1692_v29, %v4876_v48 }
 0xf78   :  { %v1709_v30 = vpop.permute.xlu0 %1708 }
 0xf79   :  { %v1723_v42 = vmul.f32 %v1709_v30, %v4878_v49  ;;  %v1705_v55 = vadd.f32 %v1701_v5, %v1678_v33 }
 0xf7a   :  { %v1697_v31 = vpop.permute.xlu1 %1696 }
 0xf7b   :  { %v1702_v10 = vmul.f32 %v1697_v31, %v4876_v48  ;;  %v1727_v51 = vadd.f32 %v1723_v42, %v1703_v44 }
 0xf7c   :  { %v1721_v17 = vpop.permute.xlu0 %1720 }
 0xf7d   :  { %v1706_v58 = vadd.f32 %v1702_v10, %v1678_v33  ;;  %v1726_v61 = vmul.f32 %v1721_v17, %v4878_v49 }
 0xf7f   :  { %v1713_v34 = vpop.permute.xlu1 %1712  ;;  %v1730_v13 = vadd.f32 %v1726_v61, %v1706_v58 }
 0xf80   :  { %v1724_v36 = vmul.f32 %v1713_v34, %v4878_v49 }
 0xf81   :  { %v1737_v37 = vpop.permute.xlu0 %1736 }
 0xf82   :  { %v1728_v38 = vadd.f32 %v1724_v36, %v1704_v35  ;;  %v1748_v39 = vmul.f32 %v1737_v37, %v4880_v50 }
 0xf83   :  { %v1717_v6 = vpop.permute.xlu1 %1716 }
 0xf84   :  { %v4972_v41 = vadd.f32 %v1748_v39, %v1728_v38  ;;  %v1725_v52 = vmul.f32 %v1717_v6, %v4878_v49 }
 0xf85   :  { %v1801_v44 = vpop.permute.xlu0 %1800 }
 0xf86   :  { %v1760_v43 = vand.u32 2147483647, %v4972_v41  ;;  %v1729_v62 = vadd.f32 %v1725_v52, %v1705_v55  ;;  %v1756_v36 = vmax.f32 %v4972_v41, 0.0 }
 0xf88   :  { %v1764_v45 = vsub.f32 0.0, %v1760_v43  ;;  %v1733_v46 = vpop.permute.xlu1 %1732 }
 0xf89   :  { %v1747_v54 = vmul.f32 %v1733_v46, %v4880_v50 }
 0xf8a   :  { %v1769_v14 = vmul.f32 1.442695, %v1764_v45 }
 0xf8b   :  { %v4980_v57 = vadd.f32 %v1747_v54, %v1727_v51 }
 0xf8c   :  { %v1741_v60 = vpop.permute.xlu1 %1740  ;;  %4284 = vpow2.f32 %v1769_v14  ;;  %v1805_v14 = vpop.permute.xlu0 %1804 }
 0xf8d   :  { %v1759_v63 = vand.u32 2147483647, %v4980_v57  ;;  %v1749_v0 = vmul.f32 %v1741_v60, %v4880_v50  ;;  %v1755_v5 = vmax.f32 %v4980_v57, 0.0 }
 0xf8f   :  { %v1763_v3 = vsub.f32 0.0, %v1759_v63  ;;  %v4985_v4 = vadd.f32 %v1749_v0, %v1729_v62 }
 0xf90   :  { %v1745_v11 = vpop.permute.xlu1 %1744 }
 0xf91   :  { %v1761_v21 = vand.u32 2147483647, %v4985_v4  ;;  %v1750_v22 = vmul.f32 %v1745_v11, %v4880_v50  ;;  %v1767_v23 = vmul.f32 1.442695, %v1763_v3  ;;  %v1757_v52 = vmax.f32 %v4985_v4, 0.0 }
 0xf93   :  { %v1765_v24 = vsub.f32 0.0, %v1761_v21  ;;  %v4989_v25 = vadd.f32 %v1750_v22, %v1730_v13  ;;  %4286 = vpow2.f32 %v1767_v23 }
 0xf94   :  { %v1803_v39 = vpop.permute.xlu1 %1802 }
 0xf95   :  { %v1762_v26 = vand.u32 2147483647, %v4989_v25  ;;  %v1771_v27 = vmul.f32 1.442695, %v1765_v24  ;;  %v1758_v61 = vmax.f32 %v4989_v25, 0.0 }
 0xf96   :  { %v4285_v28 = vpop.eup %4284 }
 0xf97   :  { %v1766_v29 = vsub.f32 0.0, %v1762_v26  ;;  %v1776_v30 = vadd.f32 1.0, %v4285_v28  ;;  %4288 = vpow2.f32 %v1771_v27 }
 0xf98   :  { %v1807_v63 = vpop.permute.xlu1 %1806 }
 0xf99   :  { %4290 = vlog2.f32 %v1776_v30  ;;  %v1773_v31 = vmul.f32 1.442695, %v1766_v29 }
 0xf9b   :  { %4292 = vpow2.f32 %v1773_v31 }
 0xf9d   :  { %v4287_v32 = vpop.eup %4286 }
 0xf9e   :  { %v1775_v17 = vadd.f32 1.0, %v4287_v32  ;;  %v3822_v32 = vld [vmem:[%s6564_s1 + $0x12] sm:$0x3] }
 0xfa0   :  { %4294 = vlog2.f32 %v1775_v17  ;;  %v3824_v17 = vld [vmem:[%s6564_s1 + $0x16] sm:$0x3] }
 0xfa1   :  { %v4289_v33 = vpop.eup %4288 }
 0xfa2   :  { %v1777_v34 = vadd.f32 1.0, %v4289_v33  ;;  %v3829_v33 = vld [vmem:[%s6564_s1 + $0x18] sm:$0x3] }
 0xfa3   :  { %v4291_v35 = vpop.eup %4290 }
 0xfa4   :  { %v1782_v37 = vmul.f32 0.6931472, %v4291_v35  ;;  %4296 = vlog2.f32 %v1777_v34  ;;  %v3821_v34 = vld [vmem:[%s6564_s1 + $0x10] sm:$0x3]  ;;  %v3831_v35 = vld [vmem:[%s6564_s1 + $0x1c] sm:$0x3] }
 0xfa5   :  { %v4293_v38 = vpop.eup %4292 }
 0xfa6   :  { %v4993_v40 = vadd.f32 %v1782_v37, %v1756_v36  ;;  %v1778_v6 = vadd.f32 1.0, %v4293_v38  ;;  %v3823_v36 = vld [vmem:[%s6564_s1 + $0x14] sm:$0x3]  ;;  %v3838_v37 = vld [vmem:[%s6564_s1 + $0x22] sm:$0x3] }
 0xfa7   :  { %v3830_v38 = vld [vmem:[%s6564_s1 + $0x1a] sm:$0x3] }
 0xfa8   :  { %v1813_v42 = vmul.f32 %v1803_v39, %v4993_v40  ;;  %4298 = vlog2.f32 %v1778_v6  ;;  %v3840_v39 = vld [vmem:[%s6564_s1 + $0x26] sm:$0x3]  ;;  %v3832_v6 = vld [vmem:[%s6564_s1 + $0x1e] sm:$0x3] }
 0xfaa   :  { %v4295_v43 = vpop.eup %4294  ;;  %1822 = vrot.lane.b32.xlu1 %v1813_v42, %s4552_s11  ;;  %v3845_v42 = vld [vmem:[%s6564_s1 + $0x28] sm:$0x3] }
 0xfab   :  { %v1780_v10 = vmul.f32 0.6931472, %v4295_v43  ;;  %v3837_v43 = vld [vmem:[%s6564_s1 + $0x20] sm:$0x3] }
 0xfad   :  { %v4998_v45 = vadd.f32 %v1780_v10, %v1755_v5  ;;  %v3839_v5 = vld [vmem:[%s6564_s1 + $0x24] sm:$0x3]  ;;  %v3846_v10 = vld [vmem:[%s6564_s1 + $0x2a] sm:$0x3] }
 0xfae   :  { %v4297_v46 = vpop.eup %4296 }
 0xfaf   :  { %v1812_v51 = vmul.f32 %v1801_v44, %v4998_v45  ;;  %v1784_v54 = vmul.f32 0.6931472, %v4297_v46  ;;  %v3847_v44 = vld [vmem:[%s6564_s1 + $0x2c] sm:$0x3]  ;;  %v3848_v46 = vld [vmem:[%s6564_s1 + $0x2e] sm:$0x3] }
 0xfb1   :  { %1820 = vrot.lane.b32.xlu0 %v1812_v51, %s4552_s11  ;;  %v5003_v55 = vadd.f32 %v1784_v54, %v1757_v52  ;;  %v5105_v51 = vld [vmem:[%s6576_s13] ss:$0 sm:$0xff] }
 0xfb2   :  { %v4299_v58 = vpop.eup %4298  ;;  %v1526_v52 = vmul.f32 %v5105_v51, %v4927_v1 }
 0xfb3   :  { %v1814_v60 = vmul.f32 %v1805_v14, %v5003_v55  ;;  %v1786_v62 = vmul.f32 0.6931472, %v4299_v58 }
 0xfb4   :  { %v1530_v54 = vsel %vm1337_vm5, %v1526_v52, 0.0 }
 0xfb5   :  { %1824 = vrot.lane.b32.xlu0 %v1814_v60, %s4552_s11  ;;  %v5008_v0 = vadd.f32 %v1786_v62, %v1758_v61 }
 0xfb7   :  { %v1815_v3 = vmul.f32 %v1807_v63, %v5008_v0 }
 0xfb9   :  { %1826 = vrot.lane.b32.xlu1 %v1815_v3, %s4552_s11 }
0x101c   :  { %v1823_v11 = vpop.permute.xlu1 %1822 }
0x101d   :  { %v5013_v13 = vadd.f32 %v1823_v11, %v4972_v41 }
0x101f   :  { %1901 = vst.msk [vmem:[#allocation8 + $0x2] sm:$0x3] %vm1337_vm5, %v5013_v13 }
0x1023   :  { %v1821_v21 = vpop.permute.xlu0 %1820 }
0x1024   :  { %v5018_v22 = vadd.f32 %v1821_v21, %v4980_v57 }
0x1026   :  { %1900 = vst.msk [vmem:[#allocation8] sm:$0x3] %vm1337_vm5, %v5018_v22  ;;  %v1974_v23 = vld [vmem:[#allocation8 + $0x2] sm:$0x3] }
0x1027   :  { %v1825_v24 = vpop.permute.xlu0 %1824  ;;  %1985 = vperm.xlu1 %4153, %v1974_v23  }
0x1028   :  { %v5023_v26 = vadd.f32 %v1825_v24, %v4985_v4 }
0x102a   :  { %1902 = vst.msk [vmem:[#allocation8 + $0x4] sm:$0x3] %vm1337_vm5, %v5023_v26 }
0x102b   :  { %v1827_v27 = vpop.permute.xlu1 %1826 }
0x102c   :  { %v5028_v28 = vadd.f32 %v1827_v27, %v4989_v25 }
0x102d   :  { %v1973_v29 = vld [vmem:[#allocation8] sm:$0x3] }
0x102e   :  { %1903 = vst.msk [vmem:[#allocation8 + $0x6] sm:$0x3] %vm1337_vm5, %v5028_v28  ;;  %1980 = vperm.xlu0 %4152, %v1973_v29  }
0x1031   :  { %v1975_v30 = vld [vmem:[#allocation8 + $0x4] sm:$0x3] }
0x1032   :  { %1990 = vperm.xlu1 %4153, %v1975_v30  }
0x1035   :  { %v1976_v31 = vld [vmem:[#allocation8 + $0x6] sm:$0x3] }
0x1036   :  { %4154 = vset.pattern.permute.xlu1 %v6583_v19  ;;  %1995 = vperm.xlu0 %4152, %v1976_v31  }
0x1037   :  { %2007 = vperm.xlu1 %4154, %v1973_v29  }
0x103a   :  { %4155 = vset.pattern.permute.xlu0 %v6583_v19 }
0x103b   :  { %2015 = vperm.xlu1 %4154, %v1975_v30   ;;  %2011 = vperm.xlu0 %4155, %v1974_v23  }
0x103f   :  { %2019 = vperm.xlu1 %4154, %v1976_v31   ;;  %4156 = vset.pattern.permute.xlu0 %v6585_v20 }
0x1040   :  { %2031 = vperm.xlu0 %4156, %v1973_v29  }
0x1043   :  { %4157 = vset.pattern.permute.xlu1 %v6585_v20 }
0x1044   :  { %2035 = vperm.xlu1 %4157, %v1974_v23   ;;  %2101 = vrot.lane.b32.xlu0 %v3822_v32, %s4551_s30  ;;  %v5114_v23 = vld [vmem:[#allocation7 + $0x4] sm:$0x3] }
0x1048   :  { %2039 = vperm.xlu1 %4157, %v1975_v30   ;;  %2105 = vrot.lane.b32.xlu0 %v3824_v17, %s4551_s30 }
0x104c   :  { %2398 = vrot.lane.b32.xlu0 %v3829_v33, %s4551_s30  ;;  %2099 = vrot.lane.b32.xlu1 %v3821_v34, %s4551_s30 }
0x104d   :  { %4158 = vset.pattern.permute.xlu1 %v6581_v12 }
0x1050   :  { %2402 = vrot.lane.b32.xlu0 %v3831_v35, %s4551_s30  ;;  %2103 = vrot.lane.b32.xlu1 %v3823_v36, %s4551_s30 }
0x1054   :  { %2699 = vrot.lane.b32.xlu0 %v3838_v37, %s4551_s30  ;;  %2400 = vrot.lane.b32.xlu1 %v3830_v38, %s4551_s30 }
0x1058   :  { %2703 = vrot.lane.b32.xlu0 %v3840_v39, %s4551_s30  ;;  %2404 = vrot.lane.b32.xlu1 %v3832_v6, %s4551_s30 }
0x105c   :  { %2996 = vrot.lane.b32.xlu0 %v3845_v42, %s4551_s30  ;;  %2697 = vrot.lane.b32.xlu1 %v3837_v43, %s4551_s30 }
0x1060   :  { %3000 = vrot.lane.b32.xlu0 %v3847_v44, %s4551_s30  ;;  %2701 = vrot.lane.b32.xlu1 %v3839_v5, %s4551_s30 }
0x1064   :  { %2043 = vperm.xlu0 %4156, %v1976_v31   ;;  %2998 = vrot.lane.b32.xlu1 %v3846_v10, %s4551_s30 }
0x1068   :  { %3002 = vrot.lane.b32.xlu1 %v3848_v46, %s4551_s30  ;;  %4159 = vset.pattern.permute.xlu0 %v6581_v12  ;;  %v5229_v12 = vstv %s1345_s20 }
0x1083   :  { %1531 = vadd.xlane.f32.xlu0 %v1530_v54 }
0x10a6   :  { %v1986_v14 = vpop.permute.xlu1 %1985 }
0x10a7   :  { %v1999_v24 = vmul.f32 %v1986_v14, %v4876_v48 }
0x10a9   :  { %v2003_v33 = vadd.f32 %v1999_v24, %v5114_v23 }
0x10ad   :  { %v1981_v58 = vpop.permute.xlu0 %1980 }
0x10ae   :  { %v1998_v63 = vmul.f32 %v1981_v58, %v4876_v48 }
0x10b0   :  { %v2002_v27 = vadd.f32 %v1998_v63, %v5114_v23 }
0x10b1   :  { %v1991_v60 = vpop.permute.xlu1 %1990 }
0x10b2   :  { %v2000_v34 = vmul.f32 %v1991_v60, %v4876_v48 }
0x10b4   :  { %v2004_v43 = vadd.f32 %v2000_v34, %v5114_v23 }
0x10b5   :  { %v5110_v61 = vpop.permute.xlu0 %1995 }
0x10b6   :  { %v2008_v62 = vpop.permute.xlu1 %2007 }
0x10b7   :  { %v2022_v21 = vmul.f32 %v2008_v62, %v4878_v49 }
0x10b9   :  { %v2026_v31 = vadd.f32 %v2022_v21, %v2002_v27 }
0x10ba   :  { %v2012_v3 = vpop.permute.xlu0 %2011  ;;  %v2016_v11 = vpop.permute.xlu1 %2015 }
0x10bb   :  { %v2023_v32 = vmul.f32 %v2012_v3, %v4878_v49  ;;  %v2024_v39 = vmul.f32 %v2016_v11, %v4878_v49 }
0x10bd   :  { %v2027_v38 = vadd.f32 %v2023_v32, %v2003_v33  ;;  %v2028_v52 = vadd.f32 %v2024_v39, %v2004_v43 }
0x10be   :  { %v5118_v29 = vpop.permute.xlu1 %2019 }
0x10bf   :  { %v2032_v30 = vpop.permute.xlu0 %2031 }
0x10c0   :  { %v2046_v17 = vmul.f32 %v2032_v30, %v4880_v50 }
0x10c2   :  { %v5124_v35 = vadd.f32 %v2046_v17, %v2026_v31 }
0x10c3   :  { %v2102_v36 = vpop.permute.xlu0 %2101  ;;  %v2036_v37 = vpop.permute.xlu1 %2035 }
0x10c4   :  { %v2058_v6 = vand.u32 2147483647, %v5124_v35  ;;  %v2047_v42 = vmul.f32 %v2036_v37, %v4880_v50 }
0x10c6   :  { %v2062_v44 = vsub.f32 0.0, %v2058_v6  ;;  %v5130_v5 = vadd.f32 %v2047_v42, %v2027_v38  ;;  %v2054_v42 = vmax.f32 %v5124_v35, 0.0 }
0x10c7   :  { %v5132_v10 = vpop.permute.xlu0 %2105  ;;  %v2040_v46 = vpop.permute.xlu1 %2039 }
0x10c8   :  { %6603 = vst [vmem:[#allocation12_spill] sm:$0xff] %v5130_v5  ;;  %v2059_v54 = vand.u32 2147483647, %v5130_v5  ;;  %v2048_v14 = vmul.f32 %v2040_v46, %v4880_v50  ;;  %v2066_v58 = vmul.f32 1.442695, %v2062_v44 }
0x10ca   :  { %v2063_v60 = vsub.f32 0.0, %v2059_v54  ;;  %v5136_v62 = vadd.f32 %v2048_v14, %v2028_v52  ;;  %4300 = vpow2.f32 %v2066_v58  ;;  %v2055_v58 = vmax.f32 %v5130_v5, 0.0 }
0x10cb   :  { %v5138_v63 = vpop.permute.xlu0 %2398  ;;  %v2100_v44 = vpop.permute.xlu1 %2099 }
0x10cc   :  { %6604 = vst [vmem:[#allocation13_spill] sm:$0xff] %v5136_v62  ;;  %v2068_v3 = vmul.f32 1.442695, %v2063_v60  ;;  %v2060_v11 = vand.u32 2147483647, %v5136_v62 }
0x10ce   :  { %4302 = vpow2.f32 %v2068_v3  ;;  %v2064_v21 = vsub.f32 0.0, %v2060_v11 }
0x10cf   :  { %v5141_v24 = vpop.permute.xlu0 %2402 }
0x10d0   :  { %v2070_v27 = vmul.f32 1.442695, %v2064_v21  ;;  %v2001_v21 = vmul.f32 %v5110_v61, %v4876_v48 }
0x10d2   :  { %4304 = vpow2.f32 %v2070_v27 }
0x10d3   :  { %v5143_v30 = vpop.permute.xlu0 %2699 }
0x10d4   :  { %v4301_v31 = vpop.eup %4300 }
0x10d5   :  { %v2074_v32 = vadd.f32 1.0, %v4301_v31 }
0x10d7   :  { %4306 = vlog2.f32 %v2074_v32  ;;  %v5145_v33 = vpop.permute.xlu0 %2703  ;;  %v2056_v32 = vmax.f32 %v5136_v62, 0.0 }
0x10d8   :  { %v4303_v17 = vpop.eup %4302  ;;  %6605 = vst [vmem:[#allocation14_spill] sm:$0xff] %v5145_v33 }
0x10d9   :  { %v2075_v34 = vadd.f32 1.0, %v4303_v17 }
0x10db   :  { %4308 = vlog2.f32 %v2075_v34  ;;  %v5147_v39 = vpop.permute.xlu0 %2996  ;;  %v2025_v34 = vmul.f32 %v5118_v29, %v4878_v49 }
0x10dc   :  { %v4305_v37 = vpop.eup %4304  ;;  %6606 = vst [vmem:[#allocation15_spill] sm:$0xff] %v5147_v39 }
0x10dd   :  { %v2076_v38 = vadd.f32 1.0, %v4305_v37  ;;  %v2104_v37 = vpop.permute.xlu1 %2103 }
0x10df   :  { %4310 = vlog2.f32 %v2076_v38  ;;  %v5150_v46 = vpop.permute.xlu0 %3000 }
0x10e0   :  { %6607 = vst [vmem:[#allocation16_spill] sm:$0xff] %v5150_v46 }
0x10e1   :  { %v4307_v6 = vpop.eup %4306 }
0x10e2   :  { %v2079_v43 = vmul.f32 0.6931472, %v4307_v6  ;;  %v2005_v6 = vadd.f32 %v2001_v21, %v5114_v23  ;;  %v1529_v23 = vmul.f32 %v5105_v51, %v4940_v8 }
0x10e3   :  { %v2044_v27 = vpop.permute.xlu0 %2043 }
0x10e4   :  { %v5152_v52 = vadd.f32 %v2079_v43, %v2054_v42  ;;  %v2049_v42 = vmul.f32 %v2044_v27, %v4880_v50  ;;  %v2029_v43 = vadd.f32 %v2025_v34, %v2005_v6  ;;  %v1527_v27 = vmul.f32 %v5105_v51, %v4930_v2 }
0x10e5   :  { %v4309_v54 = vpop.eup %4308 }
0x10e6   :  { %6608 = vst [vmem:[#allocation17_spill] sm:$0xff] %v5152_v52  ;;  %v2111_v14 = vmul.f32 %v2100_v44, %v5152_v52  ;;  %v2081_v60 = vmul.f32 0.6931472, %v4309_v54 }
0x10e8   :  { %2119 = vrot.lane.b32.xlu1 %v2111_v14, %s4552_s11  ;;  %v5157_v3 = vadd.f32 %v2081_v60, %v2055_v58  ;;  %v1528_v14 = vmul.f32 %v5105_v51, %v4937_v7 }
0x10e9   :  { %v4311_v11 = vpop.eup %4310 }
0x10ea   :  { %6609 = vst [vmem:[#allocation18_spill] sm:$0xff] %v5157_v3  ;;  %v2112_v31 = vmul.f32 %v2102_v36, %v5157_v3  ;;  %v2083_v17 = vmul.f32 0.6931472, %v4311_v11  ;;  %v5172_v36 = vadd.f32 %v2049_v42, %v2029_v43  ;;  %v1536_v58 = vsel %vm1337_vm5, %v1528_v14, 0.0  ;;  %v5192_v42 = vpop.permute.xlu1 %2400 }
0x10eb   :  { %v1539_v11 = vsel %vm1337_vm5, %v1529_v23, 0.0 }
0x10ec   :  { %2121 = vrot.lane.b32.xlu0 %v2112_v31, %s4552_s11  ;;  %v5166_v38 = vadd.f32 %v2083_v17, %v2056_v32  ;;  %6611 = vst [vmem:[#allocation20_spill] sm:$0xff] %v5172_v36  ;;  %v2061_v44 = vand.u32 2147483647, %v5172_v36  ;;  %v1533_v31 = vsel %vm1337_vm5, %v1527_v27, 0.0  ;;  %v2057_v34 = vmax.f32 %v5172_v36, 0.0 }
0x10ee   :  { %6610 = vst [vmem:[#allocation19_spill] sm:$0xff] %v5166_v38  ;;  %v2113_v61 = vmul.f32 %v2104_v37, %v5166_v38  ;;  %v2065_v54 = vsub.f32 0.0, %v2061_v44 }
0x10f0   :  { %2123 = vrot.lane.b32.xlu1 %v2113_v61, %s4552_s11  ;;  %v2072_v29 = vmul.f32 1.442695, %v2065_v54  ;;  %v5194_v61 = vpop.permute.xlu1 %2404 }
0x10f2   :  { %4312 = vpow2.f32 %v2072_v29 }
0x10f4   :  { %v5196_v43 = vpop.permute.xlu1 %2697 }
0x10f5   :  { %6613 = vst [vmem:[#allocation22_spill] sm:$0xff] %v5196_v43 }
0x10f8   :  { %v5198_v44 = vpop.permute.xlu1 %2701 }
0x10f9   :  { %6614 = vst [vmem:[#allocation23_spill] sm:$0xff] %v5198_v44 }
0x10fc   :  { %v4313_v60 = vpop.eup %4312  ;;  %v5200_v54 = vpop.permute.xlu1 %2998 }
0x10fd   :  { %v2077_v21 = vadd.f32 1.0, %v4313_v60  ;;  %6615 = vst [vmem:[#allocation24_spill] sm:$0xff] %v5200_v54 }
0x10ff   :  { %4314 = vlog2.f32 %v2077_v21 }
0x1100   :  { %v5202_v29 = vpop.permute.xlu1 %3002 }
0x1101   :  { %6616 = vst [vmem:[#allocation25_spill] sm:$0xff] %v5202_v29  ;;  %v6618_v29 = vmov 0  }
0x1109   :  { %v4315_v32 = vpop.eup %4314 }
0x110a   :  { %v2085_v17 = vmul.f32 0.6931472, %v4315_v32 }
0x110b   :  { %1537 = vadd.xlane.f32.xlu0 %v1536_v58 }
0x110c   :  { %v5185_v37 = vadd.f32 %v2085_v17, %v2057_v34 }
0x110e   :  { %6612 = vst [vmem:[#allocation21_spill] sm:$0xff] %v5185_v37  ;;  %v2114_v6 = vmul.f32 %v5132_v10, %v5185_v37 }
0x110f   :  { %1540 = vadd.xlane.f32.xlu0 %v1539_v11 }
0x1110   :  { %v1532_v14 = vpop.xlane.xlu0 %1531 }
0x1114   :  { %1534 = vadd.xlane.f32.xlu1 %v1533_v31 }
0x1125   :  { %1606 = vrot.lane.b32.xlu0 %v4896_v16, %s4551_s30 }
0x1129   :  { %2125 = vrot.lane.b32.xlu0 %v2114_v6, %s4552_s11 }
0x115a   :  { %v2120_v58 = vpop.permute.xlu1 %2119 }
0x115b   :  { %v5205_v16 = vadd.f32 %v2120_v58, %v5124_v35 }
0x115d   :  { %2199 = vst.msk [vmem:[#allocation8] sm:$0x3] %vm1337_vm5, %v5205_v16 }
0x115e   :  { %v2122_v10 = vpop.permute.xlu0 %2121 }
0x115f   :  { %v5210_v23 = vadd.f32 %v2122_v10, %v5130_v5 }
0x1161   :  { %2200 = vst.msk [vmem:[#allocation8 + $0x2] sm:$0x3] %vm1337_vm5, %v5210_v23 }
0x1162   :  { %v2124_v60 = vpop.permute.xlu1 %2123 }
0x1163   :  { %v5215_v11 = vadd.f32 %v2124_v60, %v5136_v62 }
0x1164   :  { %v2272_v21 = vld [vmem:[#allocation8] sm:$0x3] }
0x1165   :  { %2201 = vst.msk [vmem:[#allocation8 + $0x4] sm:$0x3] %vm1337_vm5, %v5215_v11  ;;  %2279 = vperm.xlu1 %4158, %v2272_v21  }
0x1168   :  { %v2273_v27 = vld [vmem:[#allocation8 + $0x2] sm:$0x3] }
0x1169   :  { %2284 = vperm.xlu0 %4159, %v2273_v27  }
0x116c   :  { %v2274_v31 = vld [vmem:[#allocation8 + $0x4] sm:$0x3] }
0x116d   :  { %4160 = vset.pattern.permute.xlu0 %v6583_v19  ;;  %2289 = vperm.xlu1 %4158, %v2274_v31  }
0x116e   :  { %2306 = vperm.xlu0 %4160, %v2272_v21  }
0x1198   :  { %v1538_v32 = vpop.xlane.xlu0 %1537 }
0x119c   :  { %v1541_v17 = vpop.xlane.xlu0 %1540 }
0x11a0   :  { %v5220_v34 = vpop.permute.xlu0 %1606 }
0x11a1   :  { %v1535_v60 = vpop.xlane.xlu1 %1534 }
0x11a4   :  { %v2126_v6 = vpop.permute.xlu0 %2125 }
0x11a5   :  { %v5223_v58 = vadd.f32 %v2126_v6, %v5172_v36  ;;  %v1544_v6 = vadd.f32 %v5229_v12, %v1535_v60 }
0x11a7   :  { %6617 = vst [vmem:[#allocation26_spill] sm:$0xff] %v5223_v58  ;;  %2202 = vst.msk [vmem:[#allocation8 + $0x6] sm:$0x3] %vm1337_vm5, %v5223_v58  ;;  %4316 = vtanh.f32 %v1544_v6 }
0x11ae   :  { %v2275_v10 = vld [vmem:[#allocation8 + $0x6] sm:$0x3] }
0x11af   :  { %2318 = vperm.xlu0 %4160, %v2275_v10   ;;  %2294 = vperm.xlu1 %4158, %v2275_v10  }
0x11b3   :  { %4163 = vset.pattern.permute.xlu0 %v6585_v20  ;;  %4161 = vset.pattern.permute.xlu1 %v6583_v19  ;;  %v1546_v19 = vadd.f32 %v5229_v12, %v1541_v17 }
0x11b4   :  { %2334 = vperm.xlu0 %4163, %v2273_v27   ;;  %2310 = vperm.xlu1 %4161, %v2273_v27   ;;  %v1543_v27 = vadd.f32 %v5229_v12, %v1532_v14 }
0x11b5   :  { %4318 = vtanh.f32 %v1546_v19  ;;  %v3855_v19 = vld [vmem:[%s6564_s1 + $0x34] sm:$0x3] }
0x11b6   :  { %4320 = vtanh.f32 %v1543_v27  ;;  %v3856_v27 = vld [vmem:[%s6564_s1 + $0x36] sm:$0x3] }
0x11b8   :  { %1610 = vrot.lane.b32.xlu0 %v4898_v18, %s4551_s30  ;;  %2314 = vperm.xlu1 %4161, %v2274_v31   ;;  %v3853_v18 = vld [vmem:[%s6564_s1 + $0x30] sm:$0x3] }
0x11b9   :  { %4164 = vset.pattern.permute.xlu0 %v6618_v29 }
0x11bc   :  { %1612 = vrot.lane.b32.xlu0 %v4900_v9, %s4551_s30  ;;  %4162 = vset.pattern.permute.xlu1 %v6585_v20  ;;  %v4317_v9 = vpop.eup %4316 }
0x11bd   :  { %2330 = vperm.xlu1 %4162, %v2272_v21  }
0x11bf   :  { %v4319_v21 = vpop.eup %4318 }
0x11c0   :  { %1622 = vrot.lane.b32.xlu0 %v4908_v47, %s4551_s30  ;;  %v5256_v47 = vld [vmem:[%s6577_s14] ss:$0 sm:$0xff] }
0x11c1   :  { %2338 = vperm.xlu1 %4162, %v2274_v31   ;;  %v1558_v14 = vmul.f32 %v4317_v9, %v5256_v47  ;;  %v4321_v31 = vpop.eup %4320  ;;  %v1560_v17 = vmul.f32 %v4319_v21, %v5256_v47 }
0x11c4   :  { %1626 = vrot.lane.b32.xlu0 %v4915_v56, %s4551_s30  ;;  %v1545_v56 = vadd.f32 %v5229_v12, %v1538_v32  ;;  %v1564_v32 = vadd.f32 %v1560_v17, %v4940_v8  ;;  %v1836_v17 = vmul.f32 %v5105_v51, %v5018_v22 }
0x11c5   :  { %2342 = vperm.xlu1 %4162, %v2275_v10   ;;  %v1557_v10 = vmul.f32 %v4321_v31, %v5256_v47 }
0x11c6   :  { %4322 = vtanh.f32 %v1545_v56 }
0x11c7   :  { %v1561_v60 = vadd.f32 %v1557_v10, %v4927_v1  ;;  %v1840_v10 = vsel %vm1337_vm5, %v1836_v17, 0.0 }
0x11c8   :  { %3295 = vrot.lane.b32.xlu0 %v3853_v18, %s4551_s30 }
0x11c9   :  { %1608 = vrot.lane.b32.xlu1 %v4894_v15, %s4551_s30  ;;  %v1562_v15 = vadd.f32 %v1558_v14, %v4930_v2  ;;  %v1838_v14 = vmul.f32 %v5105_v51, %v5023_v26 }
0x11ca   :  { %4165 = vset.pattern.permute.xlu1 %v6618_v29 }
0x11cc   :  { %3299 = vrot.lane.b32.xlu0 %v3855_v19, %s4551_s30  ;;  %v1837_v19 = vmul.f32 %v5105_v51, %v5013_v13 }
0x11cd   :  { %1624 = vrot.lane.b32.xlu1 %v4911_v53, %s4551_s30  ;;  %v3854_v53 = vld [vmem:[%s6564_s1 + $0x32] sm:$0x3] }
0x11ce   :  { %v1843_v56 = vsel %vm1337_vm5, %v1837_v19, 0.0  ;;  %v1568_v19 = vmul.f32 %v4319_v21, %v4319_v21 }
0x11d0   :  { %1640 = vrot.lane.b32.xlu0 %v1562_v15, %s4553_s4  ;;  %v4323_v6 = vpop.eup %4322  ;;  %v1846_v15 = vsel %vm1337_vm5, %v1838_v14, 0.0  ;;  %v1572_v39 = vsub.f32 1.0, %v1568_v19 }
0x11d1   :  { %1628 = vrot.lane.b32.xlu1 %v4918_v59, %s4551_s30  ;;  %v1559_v59 = vmul.f32 %v4323_v6, %v5256_v47 }
0x11d3   :  { %v1563_v18 = vadd.f32 %v1559_v59, %v4937_v7 }
0x11d4   :  { %1644 = vrot.lane.b32.xlu0 %v1564_v32, %s4553_s4 }
0x11d5   :  { %1638 = vrot.lane.b32.xlu1 %v1561_v60, %s4553_s4 }
0x11d9   :  { %3297 = vrot.lane.b32.xlu1 %v3854_v53, %s4551_s30  ;;  %v1566_v53 = vmul.f32 %v4317_v9, %v4317_v9 }
0x11db   :  { %v1570_v20 = vsub.f32 1.0, %v1566_v53 }
0x11dd   :  { %3301 = vrot.lane.b32.xlu1 %v3856_v27, %s4551_s30 }
0x11e1   :  { %1642 = vrot.lane.b32.xlu1 %v1563_v18, %s4553_s4  ;;  %v1565_v18 = vmul.f32 %v4321_v31, %v4321_v31 }
0x11e3   :  { %v1569_v54 = vsub.f32 1.0, %v1565_v18 }
0x11e4   :  { %v2280_v60 = vpop.permute.xlu1 %2279 }
0x11e8   :  { %v2285_v32 = vpop.permute.xlu0 %2284 }
0x11e9   :  { %v2298_v14 = vmul.f32 %v2285_v32, %v4876_v48  ;;  %v2297_v32 = vmul.f32 %v2280_v60, %v4876_v48 }
0x11ec   :  { %v2290_v27 = vpop.permute.xlu1 %2289 }
0x11ed   :  { %v2307_v59 = vpop.permute.xlu0 %2306 }
0x11f3   :  { %1844 = vadd.xlane.f32.xlu0 %v1843_v56 }
0x11f7   :  { %1847 = vadd.xlane.f32.xlu0 %v1846_v15  ;;  %v5295_v15 = vstv %s3810_s27 }
0x11f8   :  { %v1575_v17 = vmul.f32 %v5295_v15, %v1570_v20  ;;  %v1574_v31 = vmul.f32 %v5295_v15, %v1569_v54  ;;  %v1577_v18 = vmul.f32 %v5295_v15, %v1572_v39  ;;  %v1567_v20 = vmul.f32 %v4323_v6, %v4323_v6 }
0x11fa   :  { %v1579_v5 = vadd.f32 1.0, %v1575_v17  ;;  %v1578_v44 = vadd.f32 1.0, %v1574_v31  ;;  %v1581_v43 = vadd.f32 1.0, %v1577_v18  ;;  %v1571_v39 = vsub.f32 1.0, %v1567_v20 }
0x11fc   :  { %v1583_v54 = vand.u32 2147483647, %v1579_v5  ;;  %v1582_v37 = vand.u32 2147483647, %v1578_v44  ;;  %v1585_v5 = vand.u32 2147483647, %v1581_v43 }
0x1205   :  { %1841 = vadd.xlane.f32.xlu1 %v1840_v10  ;;  %v2276_v10 = vld [vmem:[#allocation7 + $0x6] sm:$0x3] }
0x1206   :  { %v2302_v62 = vadd.f32 %v2298_v14, %v2276_v10  ;;  %v2321_v14 = vmul.f32 %v2307_v59, %v4878_v49 }
0x122e   :  { %v2319_v46 = vpop.permute.xlu0 %2318  ;;  %v2295_v56 = vpop.permute.xlu1 %2294 }
0x122f   :  { %v2300_v6 = vmul.f32 %v2295_v56, %v4876_v48  ;;  %v2324_v43 = vmul.f32 %v2319_v46, %v4878_v49 }
0x1231   :  { %v2304_v36 = vadd.f32 %v2300_v6, %v2276_v10 }
0x1233   :  { %v2335_v38 = vpop.permute.xlu0 %2334  ;;  %v2311_v52 = vpop.permute.xlu1 %2310 }
0x1234   :  { %v2322_v9 = vmul.f32 %v2311_v52, %v4878_v49  ;;  %v2346_v21 = vmul.f32 %v2335_v38, %v4880_v50  ;;  %v2301_v38 = vadd.f32 %v2297_v32, %v2276_v10 }
0x1236   :  { %v2326_v53 = vadd.f32 %v2322_v9, %v2302_v62  ;;  %v2299_v62 = vmul.f32 %v2290_v27, %v4876_v48  ;;  %v2325_v3 = vadd.f32 %v2321_v14, %v2301_v38  ;;  %v1576_v38 = vmul.f32 %v5295_v15, %v1571_v39 }
0x1237   :  { %v5303_v58 = vpop.permute.xlu0 %1610  ;;  %v2315_v19 = vpop.permute.xlu1 %2314 }
0x1238   :  { %v5305_v33 = vadd.f32 %v2346_v21, %v2326_v53  ;;  %v2323_v31 = vmul.f32 %v2315_v19, %v4878_v49  ;;  %v1587_v53 = vadd.f32 1e-08, %v1583_v54  ;;  %v2303_v18 = vadd.f32 %v2299_v62, %v2276_v10 }
0x1239   :  { %v1589_v19 = vadd.f32 1e-08, %v1585_v5 }
0x123a   :  { %v2358_v52 = vand.u32 2147483647, %v5305_v33  ;;  %v2327_v44 = vadd.f32 %v2323_v31, %v2303_v18  ;;  %v1580_v31 = vadd.f32 1.0, %v1576_v38 }
0x123b   :  { %v5310_v17 = vpop.permute.xlu0 %1612 }
0x123c   :  { %v2362_v60 = vsub.f32 0.0, %v2358_v52  ;;  %v2331_v9 = vpop.permute.xlu1 %2330  ;;  %v1586_v52 = vadd.f32 1e-08, %v1582_v37 }
0x123d   :  { %v2345_v59 = vmul.f32 %v2331_v9, %v4880_v50  ;;  %v2328_v9 = vadd.f32 %v2324_v43, %v2304_v36 }
0x123e   :  { %v2367_v21 = vmul.f32 1.442695, %v2362_v60 }
0x123f   :  { %v5315_v32 = vadd.f32 %v2345_v59, %v2325_v3  ;;  %v5317_v27 = vpop.permute.xlu0 %1622 }
0x1240   :  { %4324 = vpow2.f32 %v2367_v21  ;;  %v2339_v20 = vpop.permute.xlu1 %2338 }
0x1241   :  { %v2357_v14 = vand.u32 2147483647, %v5315_v32  ;;  %v2347_v56 = vmul.f32 %v2339_v20, %v4880_v50  ;;  %4326 = vlog2.f32 %v1587_v53  ;;  %v1584_v20 = vand.u32 2147483647, %v1580_v31 }
0x1242   :  { %4328 = vlog2.f32 %v1586_v52 }
0x1243   :  { %v2361_v54 = vsub.f32 0.0, %v2357_v14  ;;  %v5323_v3 = vadd.f32 %v2347_v56, %v2327_v44  ;;  %v5325_v62 = vpop.permute.xlu0 %1626  ;;  %4330 = vlog2.f32 %v1589_v19 }
0x1244   :  { %v2343_v60 = vpop.permute.xlu1 %2342 }
0x1245   :  { %v2365_v37 = vmul.f32 1.442695, %v2361_v54  ;;  %v2359_v10 = vand.u32 2147483647, %v5323_v3  ;;  %v2348_v6 = vmul.f32 %v2343_v60, %v4880_v50  ;;  %v1588_v54 = vadd.f32 1e-08, %v1584_v20 }
0x1247   :  { %4332 = vpow2.f32 %v2365_v37  ;;  %v2363_v59 = vsub.f32 0.0, %v2359_v10  ;;  %v5329_v39 = vadd.f32 %v2348_v6, %v2328_v9  ;;  %v5331_v46 = vpop.permute.xlu0 %3295 }
0x1248   :  { %6619 = vst [vmem:[#allocation27_spill] sm:$0xff] %v5331_v46  ;;  %v1609_v21 = vpop.permute.xlu1 %1608 }
0x1249   :  { %v2369_v53 = vmul.f32 1.442695, %v2363_v59  ;;  %v2360_v5 = vand.u32 2147483647, %v5329_v39  ;;  %v1652_v43 = vsel %vm1650_vm7, %v4930_v2, %v1609_v21  ;;  %v1651_v21 = vsel %vm1650_vm7, %v4927_v1, %v5220_v34 }
0x124a   :  { %v4325_v18 = vpop.eup %4324 }
0x124b   :  { %4334 = vpow2.f32 %v2369_v53  ;;  %v2364_v52 = vsub.f32 0.0, %v2360_v5  ;;  %v5334_v44 = vpop.permute.xlu0 %3299  ;;  %v2374_v36 = vadd.f32 1.0, %v4325_v18  ;;  %v4327_v14 = vpop.eup %4326  ;;  %v1654_v5 = vsel %vm1650_vm7, %v4940_v8, %v5310_v17 }
0x124c   :  { %6620 = vst [vmem:[#allocation28_spill] sm:$0xff] %v5334_v44  ;;  %v1625_v56 = vpop.permute.xlu1 %1624  ;;  %v4329_v38 = vpop.eup %4328  ;;  %v1593_v37 = vmul.f32 0.6931472, %v4327_v14 }
0x124d   :  { %v2371_v19 = vmul.f32 1.442695, %v2364_v52  ;;  %4336 = vlog2.f32 %v2374_v36  ;;  %v1656_v60 = vsel %vm1334_vm6, %v1652_v43, %v1625_v56  ;;  %v4331_v9 = vpop.eup %4330  ;;  %v1655_v36 = vsel %vm1334_vm6, %v1651_v21, %v5317_v27 }
0x124e   :  { %v1597_v20 = vmul.f32 0.6931472, %v4331_v9  ;;  %v1591_v17 = vmul.f32 0.6931472, %v4329_v38  ;;  %v2354_v38 = vmax.f32 %v5305_v33, 0.0 }
0x124f   :  { %4338 = vpow2.f32 %v2371_v19  ;;  %v1641_v10 = vpop.permute.xlu0 %1640 }
0x1250   :  { %v1661_v6 = vsel %vm1659_vm8, %v1656_v60, %v1641_v10  ;;  %v1629_v31 = vpop.permute.xlu1 %1628  ;;  %4340 = vlog2.f32 %v1588_v54 }
0x1251   :  { %v4333_v59 = vpop.eup %4332  ;;  %v1666_v53 = vsel %vm1664_vm9, %v1661_v6, %v1593_v37  ;;  %v1658_v18 = vsel %vm1334_vm6, %v1654_v5, %v1629_v31  ;;  %v1653_v5 = vsel %vm1650_vm7, %v4937_v7, %v5303_v58  ;;  %v2355_v58 = vmax.f32 %v5323_v3, 0.0 }
0x1252   :  { %1671 = vst.msk [vmem:[%s6579_s16 + $0x2] sm:$0x3] %vm1669_vm10, %v1666_v53  ;;  %v2373_v2 = vadd.f32 1.0, %v4333_v59 }
0x1253   :  { %v1645_v52 = vpop.permute.xlu0 %1644 }
0x1254   :  { %v1663_v8 = vsel %vm1659_vm8, %v1658_v18, %v1645_v52  ;;  %v1639_v14 = vpop.permute.xlu1 %1638  ;;  %4342 = vlog2.f32 %v2373_v2  ;;  %v2353_v2 = vmax.f32 %v5315_v32, 0.0  ;;  %v1657_v18 = vsel %vm1334_vm6, %v1653_v5, %v5325_v62 }
0x1255   :  { %v4335_v56 = vpop.eup %4334  ;;  %v1668_v19 = vsel %vm1664_vm9, %v1663_v8, %v1597_v20  ;;  %v1660_v43 = vsel %vm1659_vm8, %v1655_v36, %v1639_v14 }
0x1256   :  { %1673 = vst.msk [vmem:[%s6579_s16 + $0x6] sm:$0x3] %vm1669_vm10, %v1668_v19  ;;  %v1665_v1 = vsel %vm1664_vm9, %v1660_v43, %v1591_v17  ;;  %v2375_v34 = vadd.f32 1.0, %v4335_v56  ;;  %v2356_v43 = vmax.f32 %v5329_v39, 0.0 }
0x1257   :  { %v4337_v54 = vpop.eup %4336  ;;  %1670 = vst.msk [vmem:[%s6579_s16] sm:$0x3] %vm1669_vm10, %v1665_v1 }
0x1258   :  { %v5366_v27 = vpop.permute.xlu1 %3297  ;;  %v2380_v60 = vmul.f32 0.6931472, %v4337_v54  ;;  %4344 = vlog2.f32 %v2375_v34 }
0x1259   :  { %6621 = vst [vmem:[#allocation29_spill] sm:$0xff] %v5366_v27  ;;  %v4339_v37 = vpop.eup %4338 }
0x125a   :  { %v5369_v10 = vadd.f32 %v2380_v60, %v2354_v38  ;;  %v2376_v9 = vadd.f32 1.0, %v4339_v37  ;;  %v4341_v59 = vpop.eup %4340 }
0x125b   :  { %v1595_v20 = vmul.f32 0.6931472, %v4341_v59 }
0x125c   :  { %v5371_v6 = vpop.permute.xlu1 %3301  ;;  %v2411_v31 = vmul.f32 %v5192_v42, %v5369_v10  ;;  %4346 = vlog2.f32 %v2376_v9 }
0x125d   :  { %6622 = vst [vmem:[#allocation30_spill] sm:$0xff] %v5371_v6 }
0x125e   :  { %v4343_v53 = vpop.eup %4342  ;;  %2420 = vrot.lane.b32.xlu1 %v2411_v31, %s4552_s11 }
0x125f   :  { %v2378_v21 = vmul.f32 0.6931472, %v4343_v53 }
0x1260   :  { %v1643_v52 = vpop.permute.xlu1 %1642 }
0x1261   :  { %v1662_v36 = vsel %vm1659_vm8, %v1657_v18, %v1643_v52  ;;  %v5383_v42 = vadd.f32 %v2378_v21, %v2353_v2  ;;  %v6623_v21 = vmov 1  }
0x1262   :  { %v4345_v8 = vpop.eup %4344  ;;  %v1667_v17 = vsel %vm1664_vm9, %v1662_v36, %v1595_v20  ;;  %v6624_v36 = vmov 2  }
0x1263   :  { %1672 = vst.msk [vmem:[%s6579_s16 + $0x4] sm:$0x3] %vm1669_vm10, %v1667_v17  ;;  %v2410_v7 = vmul.f32 %v5138_v63, %v5383_v42  ;;  %v2382_v62 = vmul.f32 0.6931472, %v4345_v8 }
0x1265   :  { %2418 = vrot.lane.b32.xlu0 %v2410_v7, %s4552_s11  ;;  %v5394_v14 = vadd.f32 %v2382_v62, %v2355_v58 }
0x1266   :  { %v4347_v56 = vpop.eup %4346 }
0x1267   :  { %v2412_v19 = vmul.f32 %v5141_v24, %v5394_v14  ;;  %v2384_v1 = vmul.f32 0.6931472, %v4347_v56  ;;  %v1839_v24 = vmul.f32 %v5105_v51, %v5028_v28 }
0x1269   :  { %2422 = vrot.lane.b32.xlu0 %v2412_v19, %s4552_s11  ;;  %v5400_v34 = vadd.f32 %v2384_v1, %v2356_v43  ;;  %v1849_v54 = vsel %vm1337_vm5, %v1839_v24, 0.0  ;;  %v2135_v1 = vmul.f32 %v5105_v51, %v5205_v16 }
0x126b   :  { %v2413_v63 = vmul.f32 %v5194_v61, %v5400_v34 }
0x126d   :  { %1908 = vrot.lane.b32.xlu0 %v4980_v57, %s4551_s30  ;;  %2424 = vrot.lane.b32.xlu1 %v2413_v63, %s4552_s11  ;;  %v2139_v63 = vsel %vm1337_vm5, %v2135_v1, 0.0 }
0x1271   :  { %1914 = vrot.lane.b32.xlu0 %v4989_v25, %s4551_s30 }
0x1275   :  { %1926 = vrot.lane.b32.xlu0 %v4993_v40, %s4551_s30 }
0x1279   :  { %1930 = vrot.lane.b32.xlu0 %v5008_v0, %s4551_s30 }
0x1280   :  { %v1845_v25 = vpop.xlane.xlu0 %1844 }
0x1284   :  { %v1848_v61 = vpop.xlane.xlu0 %1847 }
0x1285   :  { %v1854_v18 = vadd.f32 %v1848_v61, %v5229_v12 }
0x1291   :  { %1850 = vadd.xlane.f32.xlu1 %v1849_v54 }
0x1292   :  { %v1842_v57 = vpop.xlane.xlu1 %1841 }
0x1293   :  { %v1852_v53 = vadd.f32 %v1842_v57, %v5229_v12 }
0x12a2   :  { %1910 = vrot.lane.b32.xlu1 %v4972_v41, %s4551_s30 }
0x12a6   :  { %1912 = vrot.lane.b32.xlu1 %v4985_v4, %s4551_s30 }
0x12aa   :  { %1924 = vrot.lane.b32.xlu1 %v4998_v45, %s4551_s30 }
0x12ae   :  { %1928 = vrot.lane.b32.xlu1 %v5003_v55, %s4551_s30  ;;  %v1853_v55 = vadd.f32 %v1845_v25, %v5229_v12  ;;  %v2136_v25 = vmul.f32 %v5105_v51, %v5210_v23 }
0x12b0   :  { %4348 = vtanh.f32 %v1853_v55 }
0x12b1   :  { %4350 = vtanh.f32 %v1852_v53 }
0x12b2   :  { %4352 = vtanh.f32 %v1854_v18 }
0x12ba   :  { %v4349_v2 = vpop.eup %4348 }
0x12bb   :  { %v1861_v20 = vmul.f32 %v4349_v2, %v5256_v47  ;;  %v4351_v8 = vpop.eup %4350  ;;  %v1869_v61 = vmul.f32 %v4349_v2, %v4349_v2 }
0x12bc   :  { %v1860_v17 = vmul.f32 %v4351_v8, %v5256_v47  ;;  %v4353_v7 = vpop.eup %4352 }
0x12bd   :  { %v1865_v52 = vadd.f32 %v1861_v20, %v5013_v13  ;;  %v1862_v62 = vmul.f32 %v4353_v7, %v5256_v47  ;;  %v1868_v20 = vmul.f32 %v4351_v8, %v4351_v8 }
0x12be   :  { %v1864_v58 = vadd.f32 %v1860_v17, %v5018_v22  ;;  %v1870_v17 = vmul.f32 %v4353_v7, %v4353_v7 }
0x12bf   :  { %v1866_v56 = vadd.f32 %v1862_v62, %v5023_v26  ;;  %v1872_v62 = vsub.f32 1.0, %v1868_v20 }
0x12c0   :  { %v1874_v2 = vsub.f32 1.0, %v1870_v17 }
0x12c1   :  { %v1876_v1 = vmul.f32 %v1872_v62, %v5295_v15 }
0x12c2   :  { %v1878_v8 = vmul.f32 %v1874_v2, %v5295_v15 }
0x12c3   :  { %v1880_v7 = vadd.f32 1.0, %v1876_v1 }
0x12d0   :  { %v2421_v40 = vpop.permute.xlu1 %2420 }
0x12d1   :  { %v5425_v0 = vadd.f32 %v2421_v40, %v5305_v33 }
0x12d3   :  { %2499 = vst.msk [vmem:[#allocation8 + $0x2] sm:$0x3] %vm1337_vm5, %v5425_v0 }
0x12d7   :  { %v2419_v41 = vpop.permute.xlu0 %2418 }
0x12d8   :  { %v5430_v38 = vadd.f32 %v2419_v41, %v5315_v32  ;;  %v2142_v41 = vsel %vm1337_vm5, %v2136_v25, 0.0  ;;  %v1882_v25 = vadd.f32 1.0, %v1878_v8 }
0x12da   :  { %2498 = vst.msk [vmem:[#allocation8] sm:$0x3] %vm1337_vm5, %v5430_v38  ;;  %v2572_v4 = vld [vmem:[#allocation8 + $0x2] sm:$0x3] }
0x12db   :  { %v2423_v45 = vpop.permute.xlu0 %2422  ;;  %2583 = vperm.xlu1 %4165, %v2572_v4  }
0x12dc   :  { %v5436_v60 = vadd.f32 %v2423_v45, %v5323_v3  ;;  %v1873_v45 = vsub.f32 1.0, %v1869_v61 }
0x12de   :  { %2500 = vst.msk [vmem:[#allocation8 + $0x4] sm:$0x3] %vm1337_vm5, %v5436_v60 }
0x12df   :  { %v2425_v37 = vpop.permute.xlu1 %2424 }
0x12e0   :  { %v5441_v9 = vadd.f32 %v2425_v37, %v5329_v39 }
0x12e1   :  { %v5443_v31 = vld [vmem:[#allocation8] sm:$0x3] }
0x12e2   :  { %2501 = vst.msk [vmem:[#allocation8 + $0x6] sm:$0x3] %vm1337_vm5, %v5441_v9  ;;  %2578 = vperm.xlu0 %4164, %v5443_v31  }
0x12e5   :  { %v2573_v59 = vld [vmem:[#allocation8 + $0x4] sm:$0x3] }
0x12e6   :  { %2588 = vperm.xlu1 %4165, %v2573_v59  }
0x12e9   :  { %v5449_v5 = vld [vmem:[#allocation8 + $0x6] sm:$0x3] }
0x12ea   :  { %4166 = vset.pattern.permute.xlu1 %v6623_v21  ;;  %2593 = vperm.xlu0 %4164, %v5449_v5  }
0x12eb   :  { %2605 = vperm.xlu1 %4166, %v5443_v31  }
0x12ee   :  { %4167 = vset.pattern.permute.xlu0 %v6623_v21 }
0x12ef   :  { %2613 = vperm.xlu1 %4166, %v2573_v59   ;;  %2609 = vperm.xlu0 %4167, %v2572_v4  }
0x12f3   :  { %2617 = vperm.xlu1 %4166, %v5449_v5   ;;  %1942 = vrot.lane.b32.xlu0 %v1865_v52, %s4553_s4 }
0x12f4   :  { %4169 = vset.pattern.permute.xlu0 %v6624_v36 }
0x12f7   :  { %4168 = vset.pattern.permute.xlu1 %v6624_v36 }
0x12f8   :  { %2633 = vperm.xlu1 %4168, %v2572_v4   ;;  %v1909_v4 = vpop.permute.xlu0 %1908 }
0x12fc   :  { %2637 = vperm.xlu1 %4168, %v2573_v59   ;;  %v5484_v37 = vpop.permute.xlu0 %1914  ;;  %v1877_v59 = vmul.f32 %v1873_v45, %v5295_v15  ;;  %v1886_v45 = vand.u32 2147483647, %v1882_v25 }
0x12fe   :  { %v1881_v18 = vadd.f32 1.0, %v1877_v59 }
0x1300   :  { %1940 = vrot.lane.b32.xlu1 %v1864_v58, %s4553_s4  ;;  %v1927_v52 = vpop.permute.xlu0 %1926  ;;  %v1885_v51 = vand.u32 2147483647, %v1881_v18 }
0x1301   :  { %4170 = vset.pattern.permute.xlu1 %v6618_v29 }
0x1304   :  { %1944 = vrot.lane.b32.xlu1 %v1866_v56, %s4553_s4  ;;  %v5487_v56 = vpop.permute.xlu0 %1930 }
0x131e   :  { %v1851_v19 = vpop.xlane.xlu1 %1850 }
0x131f   :  { %v1855_v43 = vadd.f32 %v1851_v19, %v5229_v12 }
0x1321   :  { %4354 = vtanh.f32 %v1855_v43  ;;  %v1889_v43 = vadd.f32 1e-08, %v1885_v51  ;;  %v1890_v51 = vadd.f32 1e-08, %v1886_v45 }
0x1322   :  { %v1911_v40 = vpop.permute.xlu1 %1910 }
0x1323   :  { %4356 = vlog2.f32 %v1889_v43  ;;  %v1953_v17 = vsel %vm1650_vm7, %v5013_v13, %v1911_v40 }
0x1324   :  { %v1957_v43 = vsel %vm1334_vm6, %v1953_v17, %v1927_v52 }
0x1326   :  { %v5482_v55 = vpop.permute.xlu1 %1912 }
0x1328   :  { %2140 = vadd.xlane.f32.xlu1 %v2139_v63 }
0x132a   :  { %v1925_v53 = vpop.permute.xlu1 %1924 }
0x132b   :  { %v5473_v24 = vpop.eup %4354 }
0x132c   :  { %v1863_v54 = vmul.f32 %v5473_v24, %v5256_v47  ;;  %v1871_v17 = vmul.f32 %v5473_v24, %v5473_v24 }
0x132d   :  { %v4357_v20 = vpop.eup %4356 }
0x132e   :  { %v1867_v57 = vadd.f32 %v1863_v54, %v5028_v28  ;;  %v1929_v58 = vpop.permute.xlu1 %1928  ;;  %v1895_v2 = vmul.f32 0.6931472, %v4357_v20 }
0x1330   :  { %1946 = vrot.lane.b32.xlu0 %v1867_v57, %s4553_s4 }
0x134f   :  { %2143 = vadd.xlane.f32.xlu0 %v2142_v41  ;;  %v1884_v41 = vand.u32 2147483647, %v1880_v7 }
0x135a   :  { %v2584_v19 = vpop.permute.xlu1 %2583 }
0x135b   :  { %v2597_v62 = vmul.f32 %v2584_v19, %v4876_v48 }
0x1361   :  { %v5490_v63 = vpop.permute.xlu0 %2578 }
0x1365   :  { %2629 = vperm.xlu0 %4169, %v5443_v31   ;;  %v5493_v54 = vpop.permute.xlu1 %2588  ;;  %v1888_v31 = vadd.f32 1e-08, %v1884_v41  ;;  %v5513_v41 = vld [vmem:[#allocation7 + $0x8] sm:$0x3] }
0x1366   :  { %v2601_v13 = vadd.f32 %v2597_v62, %v5513_v41 }
0x1367   :  { %4358 = vlog2.f32 %v1888_v31 }
0x1368   :  { %4360 = vlog2.f32 %v1890_v51 }
0x1369   :  { %v5496_v57 = vpop.permute.xlu0 %2593  ;;  %2641 = vperm.xlu0 %4169, %v5449_v5  }
0x136a   :  { %v5499_v61 = vpop.permute.xlu1 %2605 }
0x136d   :  { %4171 = vset.pattern.permute.xlu0 %v6618_v29 }
0x136e   :  { %v2610_v59 = vpop.permute.xlu0 %2609  ;;  %v5502_v18 = vpop.permute.xlu1 %2613 }
0x136f   :  { %v2621_v7 = vmul.f32 %v2610_v59, %v4878_v49 }
0x1371   :  { %v2625_v52 = vadd.f32 %v2621_v7, %v2601_v13  ;;  %v4359_v59 = vpop.eup %4358  ;;  %v1875_v13 = vsub.f32 1.0, %v1871_v17 }
0x1372   :  { %v1943_v5 = vpop.permute.xlu0 %1942  ;;  %v5508_v1 = vpop.permute.xlu1 %2617  ;;  %v1893_v51 = vmul.f32 0.6931472, %v4359_v59 }
0x1373   :  { %v1961_v8 = vsel %vm1659_vm8, %v1957_v43, %v1943_v5  ;;  %v1879_v59 = vmul.f32 %v1875_v13, %v5295_v15 }
0x1374   :  { %v1965_v25 = vsel %vm1664_vm9, %v1961_v8, %v1895_v2  ;;  %v1952_v2 = vsel %vm1650_vm7, %v5018_v22, %v1909_v4  ;;  %v4361_v8 = vpop.eup %4360 }
0x1375   :  { %3818 = vst.msk [vmem:[%s6579_s16 + $0xa] sm:$0x3] %vm1669_vm10, %v1965_v25  ;;  %v1956_v62 = vsel %vm1334_vm6, %v1952_v2, %v1925_v53  ;;  %v1897_v24 = vmul.f32 0.6931472, %v4361_v8  ;;  %v5542_v53 = vld [vmem:[%s6576_s13] ss:$0 sm:$0xff] }
0x1377   :  { %v2634_v40 = vpop.permute.xlu1 %2633 }
0x1378   :  { %v2645_v19 = vmul.f32 %v2634_v40, %v4880_v50 }
0x137a   :  { %v5521_v45 = vadd.f32 %v2645_v19, %v2625_v52  ;;  %v1954_v52 = vsel %vm1650_vm7, %v5023_v26, %v5482_v55  ;;  %v2137_v19 = vmul.f32 %v5542_v53, %v5215_v11 }
0x137b   :  { %v2638_v31 = vpop.permute.xlu1 %2637  ;;  %v1958_v22 = vsel %vm1334_vm6, %v1954_v52, %v1929_v58 }
0x137c   :  { %v2657_v20 = vand.u32 2147483647, %v5521_v45  ;;  %v2145_v58 = vsel %vm1337_vm5, %v2137_v19, 0.0 }
0x137e   :  { %v2661_v5 = vsub.f32 0.0, %v2657_v20  ;;  %v1883_v20 = vadd.f32 1.0, %v1879_v59 }
0x137f   :  { %v1941_v43 = vpop.permute.xlu1 %1940 }
0x1380   :  { %v2666_v7 = vmul.f32 1.442695, %v2661_v5  ;;  %v1960_v25 = vsel %vm1659_vm8, %v1956_v62, %v1941_v43  ;;  %v1887_v5 = vand.u32 2147483647, %v1883_v20  ;;  %v2653_v43 = vmax.f32 %v5521_v45, 0.0 }
0x1381   :  { %v1964_v40 = vsel %vm1664_vm9, %v1960_v25, %v1893_v51 }
0x1382   :  { %4362 = vpow2.f32 %v2666_v7  ;;  %3817 = vst.msk [vmem:[%s6579_s16 + $0x8] sm:$0x3] %vm1669_vm10, %v1964_v40  ;;  %v1891_v62 = vadd.f32 1e-08, %v1887_v5  ;;  %v1955_v40 = vsel %vm1650_vm7, %v5028_v28, %v5484_v37  ;;  %v6626_v28 = vld [vmem:[#allocation18_spill] sm:$0xff]  ;;  %v6627_v37 = vld [vmem:[#allocation21_spill] sm:$0xff]  ;;  %v2596_v5 = vmul.f32 %v5490_v63, %v4876_v48 }
0x1383   :  { %v1945_v4 = vpop.permute.xlu1 %1944  ;;  %v1959_v52 = vsel %vm1334_vm6, %v1955_v40, %v5487_v56  ;;  %v2598_v56 = vmul.f32 %v5493_v54, %v4876_v48  ;;  %v2620_v54 = vmul.f32 %v5499_v61, %v4878_v49  ;;  %v2599_v61 = vmul.f32 %v5496_v57, %v4876_v48 }
0x1384   :  { %v1962_v26 = vsel %vm1659_vm8, %v1958_v22, %v1945_v4 }
0x1385   :  { %v1966_v55 = vsel %vm1664_vm9, %v1962_v26, %v1897_v24  ;;  %v2602_v26 = vadd.f32 %v2598_v56, %v5513_v41 }
0x1386   :  { %3819 = vst.msk [vmem:[%s6579_s16 + $0xc] sm:$0x3] %vm1669_vm10, %v1966_v55  ;;  %v2646_v55 = vmul.f32 %v2638_v31, %v4880_v50 }
0x1388   :  { %2146 = vadd.xlane.f32.xlu0 %v2145_v58 }
0x138c   :  { %v4363_v17 = vpop.eup %4362 }
0x138d   :  { %v2673_v2 = vadd.f32 1.0, %v4363_v17 }
0x138f   :  { %4364 = vlog2.f32 %v2673_v2 }
0x1390   :  { %4366 = vlog2.f32 %v1891_v62  ;;  %v2600_v62 = vadd.f32 %v2596_v5, %v5513_v41 }
0x1392   :  { %v2624_v31 = vadd.f32 %v2620_v54, %v2600_v62 }
0x1399   :  { %v4365_v51 = vpop.eup %4364 }
0x139a   :  { %v2679_v8 = vmul.f32 0.6931472, %v4365_v51  ;;  %v4367_v13 = vpop.eup %4366 }
0x139b   :  { %v1899_v22 = vmul.f32 0.6931472, %v4367_v13 }
0x139c   :  { %v5555_v7 = vadd.f32 %v2679_v8, %v2653_v43 }
0x139e   :  { %v2710_v25 = vmul.f32 %v5143_v30, %v5555_v7  ;;  %v6625_v30 = vld [vmem:[#allocation20_spill] sm:$0xff] }
0x13a0   :  { %2719 = vrot.lane.b32.xlu0 %v2710_v25, %s4552_s11 }
0x13a2   :  { %v1947_v24 = vpop.permute.xlu0 %1946 }
0x13a3   :  { %v1963_v4 = vsel %vm1659_vm8, %v1959_v52, %v1947_v24 }
0x13a4   :  { %v1967_v19 = vsel %vm1664_vm9, %v1963_v4, %v1899_v22  ;;  %2207 = vrot.lane.b32.xlu0 %v5124_v35, %s4551_s30  ;;  %v2622_v35 = vmul.f32 %v5502_v18, %v4878_v49  ;;  %v2623_v4 = vmul.f32 %v5508_v1, %v4878_v49  ;;  %v3863_v1 = vld [vmem:[%s6564_s1 + $0x3c] sm:$0x3] }
0x13a5   :  { %3820 = vst.msk [vmem:[%s6579_s16 + $0xe] sm:$0x3] %vm1669_vm10, %v1967_v19 }
0x13a6   :  { %v2626_v59 = vadd.f32 %v2622_v35, %v2602_v26 }
0x13a8   :  { %2213 = vrot.lane.b32.xlu0 %v6625_v30, %s4551_s30  ;;  %v5585_v58 = vadd.f32 %v2646_v55, %v2626_v59  ;;  %v2603_v30 = vadd.f32 %v2599_v61, %v5513_v41  ;;  %v6629_v61 = vld [vmem:[#allocation23_spill] sm:$0xff] }
0x13aa   :  { %v2658_v17 = vand.u32 2147483647, %v5585_v58  ;;  %v2627_v57 = vadd.f32 %v2623_v4, %v2603_v30 }
0x13ac   :  { %2225 = vrot.lane.b32.xlu0 %v6626_v28, %s4551_s30  ;;  %v2662_v18 = vsub.f32 0.0, %v2658_v17 }
0x13ae   :  { %v2668_v43 = vmul.f32 1.442695, %v2662_v18 }
0x13b0   :  { %2229 = vrot.lane.b32.xlu0 %v6627_v37, %s4551_s30  ;;  %v3861_v37 = vld [vmem:[%s6564_s1 + $0x38] sm:$0x3] }
0x13dc   :  { %v2144_v20 = vpop.xlane.xlu0 %2143 }
0x13dd   :  { %v2152_v2 = vadd.f32 %v2144_v20, %v5229_v12 }
0x13df   :  { %4368 = vtanh.f32 %v2152_v2 }
0x13e0   :  { %4370 = vpow2.f32 %v2668_v43  ;;  %v6628_v43 = vld [vmem:[#allocation22_spill] sm:$0xff] }
0x13e4   :  { %v2630_v51 = vpop.permute.xlu0 %2629 }
0x13e5   :  { %v2644_v8 = vmul.f32 %v2630_v51, %v4880_v50 }
0x13e7   :  { %v5595_v25 = vadd.f32 %v2644_v8, %v2624_v31  ;;  %v2654_v31 = vmax.f32 %v5585_v58, 0.0 }
0x13e8   :  { %v2642_v22 = vpop.permute.xlu0 %2641 }
0x13e9   :  { %v5597_v13 = vpop.eup %4368  ;;  %v2656_v40 = vand.u32 2147483647, %v5595_v25  ;;  %v2647_v28 = vmul.f32 %v2642_v22, %v4880_v50  ;;  %v2652_v54 = vmax.f32 %v5595_v25, 0.0 }
0x13ea   :  { %v2160_v63 = vmul.f32 %v5597_v13, %v5256_v47  ;;  %v4371_v56 = vpop.eup %4370 }
0x13eb   :  { %v2660_v52 = vsub.f32 0.0, %v2656_v40  ;;  %v5614_v35 = vadd.f32 %v2647_v28, %v2627_v57  ;;  %v2674_v26 = vadd.f32 1.0, %v4371_v56 }
0x13ec   :  { %v2164_v24 = vadd.f32 %v2160_v63, %v5210_v23 }
0x13ed   :  { %v2664_v19 = vmul.f32 1.442695, %v2660_v52  ;;  %v2659_v41 = vand.u32 2147483647, %v5614_v35 }
0x13ee   :  { %2241 = vrot.lane.b32.xlu0 %v2164_v24, %s4553_s4 }
0x13ef   :  { %4372 = vpow2.f32 %v2664_v19  ;;  %v2663_v20 = vsub.f32 0.0, %v2659_v41 }
0x13f0   :  { %4374 = vlog2.f32 %v2674_v26 }
0x13f1   :  { %v2670_v17 = vmul.f32 1.442695, %v2663_v20  ;;  %v6631_v20 = vld [vmem:[#allocation26_spill] sm:$0xff] }
0x13f2   :  { %3594 = vrot.lane.b32.xlu0 %v3861_v37, %s4551_s30 }
0x13f6   :  { %3598 = vrot.lane.b32.xlu0 %v3863_v1, %s4551_s30  ;;  %v2655_v1 = vmax.f32 %v5614_v35, 0.0 }
0x13f9   :  { %v4373_v55 = vpop.eup %4372 }
0x13fa   :  { %v2672_v59 = vadd.f32 1.0, %v4373_v55  ;;  %v4375_v2 = vpop.eup %4374  ;;  %v6630_v55 = vld [vmem:[#allocation14_spill] sm:$0xff] }
0x13fb   :  { %v2681_v62 = vmul.f32 0.6931472, %v4375_v2 }
0x13fc   :  { %4376 = vlog2.f32 %v2672_v59 }
0x13fd   :  { %4378 = vpow2.f32 %v2670_v17  ;;  %v5627_v40 = vadd.f32 %v2681_v62, %v2654_v31  ;;  %v2138_v17 = vmul.f32 %v5542_v53, %v6631_v20  ;;  %v6632_v62 = vld [vmem:[#allocation12_spill] sm:$0xff] }
0x13ff   :  { %v2711_v52 = vmul.f32 %v6629_v61, %v5627_v40  ;;  %v2148_v2 = vsel %vm1337_vm5, %v2138_v17, 0.0 }
0x1406   :  { %v4377_v5 = vpop.eup %4376 }
0x1407   :  { %v2677_v18 = vmul.f32 0.6931472, %v4377_v5  ;;  %v4379_v63 = vpop.eup %4378  ;;  %v2141_v5 = vpop.xlane.xlu1 %2140 }
0x1408   :  { %v2675_v22 = vadd.f32 1.0, %v4379_v63  ;;  %v6634_v63 = vld [vmem:[#allocation17_spill] sm:$0xff] }
0x1409   :  { %v5622_v51 = vadd.f32 %v2677_v18, %v2652_v54  ;;  %v2151_v54 = vadd.f32 %v2141_v5, %v5229_v12  ;;  %v2434_v18 = vmul.f32 %v5542_v53, %v5430_v38 }
0x140a   :  { %4380 = vlog2.f32 %v2675_v22 }
0x140b   :  { %v2709_v8 = vmul.f32 %v6628_v43, %v5622_v51  ;;  %v2438_v31 = vsel %vm1337_vm5, %v2434_v18, 0.0  ;;  %v6633_v43 = vld [vmem:[#allocation13_spill] sm:$0xff] }
0x140d   :  { %2717 = vrot.lane.b32.xlu1 %v2709_v8, %s4552_s11 }
0x1411   :  { %2721 = vrot.lane.b32.xlu1 %v2711_v52, %s4552_s11  ;;  %v6635_v52 = vld [vmem:[#allocation19_spill] sm:$0xff] }
0x1414   :  { %v4381_v28 = vpop.eup %4380 }
0x1415   :  { %v2147_v24 = vpop.xlane.xlu0 %2146  ;;  %v2683_v37 = vmul.f32 0.6931472, %v4381_v28 }
0x1416   :  { %v2153_v4 = vadd.f32 %v2147_v24, %v5229_v12  ;;  %v3862_v24 = vld [vmem:[%s6564_s1 + $0x3a] sm:$0x3] }
0x1417   :  { %v5642_v41 = vadd.f32 %v2683_v37, %v2655_v1 }
0x1418   :  { %4382 = vtanh.f32 %v2153_v4  ;;  %v3864_v4 = vld [vmem:[%s6564_s1 + $0x3e] sm:$0x3] }
0x1419   :  { %v2720_v19 = vpop.permute.xlu0 %2719  ;;  %v2712_v59 = vmul.f32 %v6630_v55, %v5642_v41  ;;  %4384 = vtanh.f32 %v2151_v54 }
0x141a   :  { %v5635_v30 = vadd.f32 %v2720_v19, %v5521_v45 }
0x141c   :  { %2798 = vst.msk [vmem:[#allocation8 + $0x2] sm:$0x3] %vm1337_vm5, %v5635_v30 }
0x141d   :  { %v5678_v19 = vpop.permute.xlu0 %2207 }
0x1421   :  { %v5680_v28 = vpop.permute.xlu0 %2213 }
0x1422   :  { %v4383_v57 = vpop.eup %4382 }
0x1423   :  { %v2161_v56 = vmul.f32 %v4383_v57, %v5256_v47  ;;  %v4385_v8 = vpop.eup %4384 }
0x1424   :  { %v2159_v61 = vmul.f32 %v4385_v8, %v5256_v47  ;;  %v5674_v47 = vld [vmem:[#allocation8 + $0x2] sm:$0x3] }
0x1425   :  { %v2165_v26 = vadd.f32 %v2161_v56, %v5215_v11  ;;  %v2226_v37 = vpop.permute.xlu0 %2225 }
0x1426   :  { %v2163_v22 = vadd.f32 %v2159_v61, %v5205_v16 }
0x1427   :  { %2243 = vrot.lane.b32.xlu0 %v2165_v26, %s4553_s4 }
0x142b   :  { %2723 = vrot.lane.b32.xlu0 %v2712_v59, %s4552_s11  ;;  %v5690_v59 = vpop.permute.xlu0 %2229 }
0x1435   :  { %2149 = vadd.xlane.f32.xlu1 %v2148_v2 }
0x1446   :  { %2209 = vrot.lane.b32.xlu1 %v6632_v62, %s4551_s30 }
0x144a   :  { %2439 = vadd.xlane.f32.xlu0 %v2438_v31  ;;  %2211 = vrot.lane.b32.xlu1 %v6633_v43, %s4551_s30  ;;  %v2168_v43 = vmul.f32 %v5597_v13, %v5597_v13 }
0x144e   :  { %2223 = vrot.lane.b32.xlu1 %v6634_v63, %s4551_s30  ;;  %v2172_v63 = vsub.f32 1.0, %v2168_v43 }
0x1452   :  { %2227 = vrot.lane.b32.xlu1 %v6635_v52, %s4551_s30  ;;  %v2176_v52 = vmul.f32 %v2172_v63, %v5295_v15 }
0x1456   :  { %2239 = vrot.lane.b32.xlu1 %v2163_v22, %s4553_s4  ;;  %v2169_v22 = vmul.f32 %v4383_v57, %v4383_v57 }
0x145a   :  { %3596 = vrot.lane.b32.xlu1 %v3862_v24, %s4551_s30  ;;  %v2180_v24 = vadd.f32 1.0, %v2176_v52 }
0x145e   :  { %3600 = vrot.lane.b32.xlu1 %v3864_v4, %s4551_s30  ;;  %v2167_v4 = vmul.f32 %v4385_v8, %v4385_v8 }
0x1460   :  { %2882 = vperm.xlu0 %4171, %v5674_v47   ;;  %v2242_v17 = vpop.permute.xlu0 %2241 }
0x1464   :  { %4172 = vset.pattern.permute.xlu0 %v6623_v21  ;;  %v5697_v5 = vpop.permute.xlu0 %3594 }
0x1465   :  { %6636 = vst [vmem:[#allocation20_spill] sm:$0xff] %v5697_v5 }
0x1468   :  { %v5699_v54 = vpop.permute.xlu0 %3598 }
0x1469   :  { %6637 = vst [vmem:[#allocation18_spill] sm:$0xff] %v5699_v54 }
0x147f   :  { %v2718_v56 = vpop.permute.xlu1 %2717 }
0x1480   :  { %v5683_v1 = vadd.f32 %v2718_v56, %v5595_v25  ;;  %v2173_v56 = vsub.f32 1.0, %v2169_v22 }
0x1482   :  { %2797 = vst.msk [vmem:[#allocation8] sm:$0x3] %vm1337_vm5, %v5683_v1  ;;  %v2177_v13 = vmul.f32 %v2173_v56, %v5295_v15 }
0x1483   :  { %v2722_v26 = vpop.permute.xlu1 %2721 }
0x1484   :  { %v5688_v55 = vadd.f32 %v2722_v26, %v5585_v58  ;;  %v2184_v26 = vand.u32 2147483647, %v2180_v24  ;;  %v2181_v5 = vadd.f32 1.0, %v2177_v13 }
0x1486   :  { %2799 = vst.msk [vmem:[#allocation8 + $0x4] sm:$0x3] %vm1337_vm5, %v5688_v55  ;;  %v2188_v43 = vadd.f32 1e-08, %v2184_v26  ;;  %v2185_v44 = vand.u32 2147483647, %v2181_v5 }
0x1488   :  { %4386 = vlog2.f32 %v2188_v43  ;;  %v2189_v46 = vadd.f32 1e-08, %v2185_v44 }
0x1489   :  { %v5694_v2 = vld [vmem:[#allocation8] sm:$0x3] }
0x148a   :  { %2904 = vperm.xlu0 %4172, %v5694_v2  }
0x1492   :  { %v4387_v8 = vpop.eup %4386 }
0x1493   :  { %v2194_v56 = vmul.f32 0.6931472, %v4387_v8 }
0x1499   :  { %v2244_v18 = vpop.permute.xlu0 %2243 }
0x149d   :  { %v2724_v62 = vpop.permute.xlu0 %2723 }
0x149e   :  { %v5702_v31 = vadd.f32 %v2724_v62, %v5614_v35  ;;  %v2171_v62 = vsub.f32 1.0, %v2167_v4  ;;  %v2436_v4 = vmul.f32 %v5542_v53, %v5436_v60 }
0x14a0   :  { %2800 = vst.msk [vmem:[#allocation8 + $0x6] sm:$0x3] %vm1337_vm5, %v5702_v31  ;;  %v2175_v54 = vmul.f32 %v2171_v62, %v5295_v15  ;;  %v5736_v62 = vld [vmem:[%s6577_s14] ss:$0 sm:$0xff] }
0x14a2   :  { %v2179_v63 = vadd.f32 1.0, %v2175_v54 }
0x14a4   :  { %v2183_v6 = vand.u32 2147483647, %v2179_v63 }
0x14a6   :  { %v2187_v52 = vadd.f32 1e-08, %v2183_v6 }
0x14a7   :  { %v5708_v61 = vld [vmem:[#allocation8 + $0x6] sm:$0x3] }
0x14a8   :  { %2916 = vperm.xlu0 %4172, %v5708_v61  }
0x14ac   :  { %4175 = vset.pattern.permute.xlu0 %v6624_v36 }
0x14ad   :  { %2932 = vperm.xlu0 %4175, %v5674_v47  }
0x14b1   :  { %4176 = vset.pattern.permute.xlu0 %v6618_v29 }
0x14c2   :  { %v2150_v27 = vpop.xlane.xlu1 %2149 }
0x14c3   :  { %v2154_v57 = vadd.f32 %v2150_v27, %v5229_v12 }
0x14c5   :  { %4388 = vtanh.f32 %v2154_v57 }
0x14c6   :  { %v2210_v22 = vpop.permute.xlu1 %2209  ;;  %4390 = vlog2.f32 %v2189_v46  ;;  %v2444_v46 = vsel %vm1337_vm5, %v2436_v4, 0.0  ;;  %v2251_v4 = vsel %vm1650_vm7, %v5205_v16, %v5678_v19  ;;  %v2872_v19 = vld [vmem:[#allocation8 + $0x4] sm:$0x3] }
0x14c7   :  { %v2252_v24 = vsel %vm1650_vm7, %v5210_v23, %v2210_v22  ;;  %4392 = vlog2.f32 %v2187_v52  ;;  %v2437_v23 = vmul.f32 %v5542_v53, %v5441_v9 }
0x14c8   :  { %v2256_v54 = vsel %vm1334_vm6, %v2252_v24, %v2226_v37 }
0x14c9   :  { %v2260_v5 = vsel %vm1659_vm8, %v2256_v54, %v2242_v17  ;;  %v2447_v37 = vsel %vm1337_vm5, %v2437_v23, 0.0 }
0x14ca   :  { %v2264_v44 = vsel %vm1664_vm9, %v2260_v5, %v2194_v56  ;;  %v2212_v27 = vpop.permute.xlu1 %2211 }
0x14cb   :  { %3826 = vst.msk [vmem:[%s6579_s16 + $0x12] sm:$0x3] %vm1669_vm10, %v2264_v44  ;;  %v2253_v43 = vsel %vm1650_vm7, %v5215_v11, %v2212_v27 }
0x14cc   :  { %2445 = vadd.xlane.f32.xlu0 %v2444_v46 }
0x14ce   :  { %v2224_v6 = vpop.permute.xlu1 %2223 }
0x14cf   :  { %v4389_v26 = vpop.eup %4388  ;;  %v2255_v54 = vsel %vm1334_vm6, %v2251_v4, %v2224_v6 }
0x14d0   :  { %v4391_v17 = vpop.eup %4390  ;;  %2448 = vadd.xlane.f32.xlu0 %v2447_v37  ;;  %v2162_v13 = vmul.f32 %v5736_v62, %v4389_v26  ;;  %v2170_v6 = vmul.f32 %v4389_v26, %v4389_v26 }
0x14d1   :  { %v4393_v8 = vpop.eup %4392  ;;  %v2196_v52 = vmul.f32 0.6931472, %v4391_v17 }
0x14d2   :  { %v2228_v63 = vpop.permute.xlu1 %2227  ;;  %v2166_v57 = vadd.f32 %v2162_v13, %v6631_v20  ;;  %v2192_v11 = vmul.f32 0.6931472, %v4393_v8  ;;  %v2174_v37 = vsub.f32 1.0, %v2170_v6  ;;  %v2733_v6 = vmul.f32 %v5542_v53, %v5683_v1 }
0x14d3   :  { %v2257_v22 = vsel %vm1334_vm6, %v2253_v43, %v2228_v63 }
0x14d4   :  { %v2261_v24 = vsel %vm1659_vm8, %v2257_v22, %v2244_v18  ;;  %2245 = vrot.lane.b32.xlu1 %v2166_v57, %s4553_s4 }
0x14d5   :  { %v2265_v56 = vsel %vm1664_vm9, %v2261_v24, %v2196_v52 }
0x14d6   :  { %3827 = vst.msk [vmem:[%s6579_s16 + $0x14] sm:$0x3] %vm1669_vm10, %v2265_v56  ;;  %v2240_v5 = vpop.permute.xlu1 %2239 }
0x14d7   :  { %v2259_v44 = vsel %vm1659_vm8, %v2255_v54, %v2240_v5  ;;  %v2440_v27 = vpop.xlane.xlu0 %2439 }
0x14d8   :  { %v2263_v18 = vsel %vm1664_vm9, %v2259_v44, %v2192_v11  ;;  %2877 = vperm.xlu1 %4170, %v5694_v2   ;;  %v2450_v16 = vadd.f32 %v2440_v27, %v5229_v12  ;;  %v2874_v27 = vld [vmem:[#allocation7 + $0xa] sm:$0x3] }
0x14d9   :  { %3825 = vst.msk [vmem:[%s6579_s16 + $0x10] sm:$0x3] %vm1669_vm10, %v2263_v18 }
0x14da   :  { %4394 = vtanh.f32 %v2450_v16  ;;  %v5793_v26 = vpop.permute.xlu1 %3596 }
0x14dc   :  { %2887 = vperm.xlu1 %4170, %v2872_v19  }
0x14de   :  { %v5797_v13 = vpop.permute.xlu1 %3600 }
0x14df   :  { %v2883_v57 = vpop.permute.xlu0 %2882 }
0x14e0   :  { %2892 = vperm.xlu1 %4170, %v5708_v61  }
0x14e4   :  { %4173 = vset.pattern.permute.xlu1 %v6623_v21  ;;  %v5767_v46 = vpop.eup %4394 }
0x14e5   :  { %2908 = vperm.xlu1 %4173, %v5674_v47   ;;  %v2458_v23 = vmul.f32 %v5736_v62, %v5767_v46 }
0x14e6   :  { %2508 = vrot.lane.b32.xlu0 %v5305_v33, %s4551_s30  ;;  %v2435_v33 = vmul.f32 %v5542_v53, %v5425_v0 }
0x14e7   :  { %v2462_v47 = vadd.f32 %v2458_v23, %v5430_v38  ;;  %v2896_v23 = vmul.f32 %v2883_v57, %v4876_v48 }
0x14e9   :  { %2912 = vperm.xlu1 %4173, %v2872_v19  }
0x14ea   :  { %2522 = vrot.lane.b32.xlu0 %v5383_v42, %s4551_s30  ;;  %v2441_v42 = vsel %vm1337_vm5, %v2435_v33, 0.0 }
0x14ed   :  { %4174 = vset.pattern.permute.xlu1 %v6624_v36 }
0x14ee   :  { %2526 = vrot.lane.b32.xlu0 %v5394_v14, %s4551_s30  ;;  %2928 = vperm.xlu1 %4174, %v5694_v2   ;;  %v2178_v14 = vmul.f32 %v2174_v37, %v5295_v15 }
0x14f0   :  { %v2182_v2 = vadd.f32 1.0, %v2178_v14  ;;  %v2900_v14 = vadd.f32 %v2896_v23, %v2874_v27 }
0x14f2   :  { %2538 = vrot.lane.b32.xlu0 %v2462_v47, %s4553_s4  ;;  %2936 = vperm.xlu1 %4174, %v2872_v19  }
0x14f6   :  { %2940 = vperm.xlu1 %4174, %v5708_v61   ;;  %v2186_v61 = vand.u32 2147483647, %v2182_v2  ;;  %v2466_v2 = vmul.f32 %v5767_v46, %v5767_v46 }
0x14f8   :  { %v2190_v17 = vadd.f32 1e-08, %v2186_v61 }
0x14fa   :  { %4177 = vset.pattern.permute.xlu1 %v6618_v29  ;;  %4396 = vlog2.f32 %v2190_v17 }
0x151a   :  { %2442 = vadd.xlane.f32.xlu1 %v2441_v42 }
0x152b   :  { %2506 = vrot.lane.b32.xlu1 %v5315_v32, %s4551_s30  ;;  %v4397_v32 = vpop.eup %4396 }
0x152c   :  { %v2198_v43 = vmul.f32 0.6931472, %v4397_v32 }
0x152f   :  { %2510 = vrot.lane.b32.xlu1 %v5323_v3, %s4551_s30  ;;  %v2254_v3 = vsel %vm1650_vm7, %v6631_v20, %v5680_v28 }
0x1533   :  { %2512 = vrot.lane.b32.xlu1 %v5329_v39, %s4551_s30  ;;  %v2258_v39 = vsel %vm1334_vm6, %v2254_v3, %v5690_v59 }
0x1537   :  { %2524 = vrot.lane.b32.xlu1 %v5369_v10, %s4551_s30 }
0x153b   :  { %2528 = vrot.lane.b32.xlu1 %v5400_v34, %s4551_s30  ;;  %v2905_v34 = vpop.permute.xlu0 %2904 }
0x153c   :  { %v2919_v47 = vmul.f32 %v2905_v34, %v4878_v49 }
0x153f   :  { %v2917_v52 = vpop.permute.xlu0 %2916 }
0x1543   :  { %v2933_v22 = vpop.permute.xlu0 %2932 }
0x1546   :  { %v2246_v63 = vpop.permute.xlu1 %2245 }
0x1547   :  { %v2262_v10 = vsel %vm1659_vm8, %v2258_v39, %v2246_v63  ;;  %v2737_v39 = vsel %vm1337_vm5, %v2733_v6, 0.0  ;;  %v2944_v63 = vmul.f32 %v2933_v22, %v4880_v50 }
0x1548   :  { %v2266_v8 = vsel %vm1664_vm9, %v2262_v10, %v2198_v43  ;;  %v2735_v43 = vmul.f32 %v5542_v53, %v5688_v55 }
0x1549   :  { %3828 = vst.msk [vmem:[%s6579_s16 + $0x16] sm:$0x3] %vm1669_vm10, %v2266_v8  ;;  %v2470_v8 = vsub.f32 1.0, %v2466_v2 }
0x154b   :  { %v2474_v22 = vmul.f32 %v2470_v8, %v5295_v15 }
0x154d   :  { %v2478_v23 = vadd.f32 1.0, %v2474_v22 }
0x1557   :  { %v2878_v28 = vpop.permute.xlu1 %2877 }
0x1558   :  { %v2895_v18 = vmul.f32 %v2878_v28, %v4876_v48  ;;  %v2743_v28 = vsel %vm1337_vm5, %v2735_v43, 0.0 }
0x1559   :  { %v2446_v24 = vpop.xlane.xlu0 %2445 }
0x155a   :  { %v2452_v20 = vadd.f32 %v2446_v24, %v5229_v12  ;;  %v2899_v19 = vadd.f32 %v2895_v18, %v2874_v27 }
0x155b   :  { %v2888_v56 = vpop.permute.xlu1 %2887 }
0x155c   :  { %4398 = vtanh.f32 %v2452_v20  ;;  %v2923_v37 = vadd.f32 %v2919_v47, %v2899_v19  ;;  %v2897_v32 = vmul.f32 %v2888_v56, %v4876_v48 }
0x155e   :  { %v2901_v34 = vadd.f32 %v2897_v32, %v2874_v27 }
0x155f   :  { %v2893_v11 = vpop.permute.xlu1 %2892 }
0x1560   :  { %v2898_v57 = vmul.f32 %v2893_v11, %v4876_v48  ;;  %v2922_v11 = vmul.f32 %v2917_v52, %v4878_v49 }
0x1562   :  { %v2902_v56 = vadd.f32 %v2898_v57, %v2874_v27 }
0x1564   :  { %v2909_v5 = vpop.permute.xlu1 %2908  ;;  %v2926_v19 = vadd.f32 %v2922_v11, %v2902_v56 }
0x1565   :  { %v2920_v42 = vmul.f32 %v2909_v5, %v4878_v49 }
0x1566   :  { %v5811_v59 = vpop.eup %4398 }
0x1567   :  { %v2460_v4 = vmul.f32 %v5736_v62, %v5811_v59  ;;  %v2924_v3 = vadd.f32 %v2920_v42, %v2900_v14 }
0x1568   :  { %v2913_v44 = vpop.permute.xlu1 %2912 }
0x1569   :  { %v2464_v54 = vadd.f32 %v2460_v4, %v5436_v60  ;;  %v2921_v10 = vmul.f32 %v2913_v44, %v4878_v49  ;;  %v5836_v24 = vadd.f32 %v2944_v63, %v2924_v3 }
0x156b   :  { %2542 = vrot.lane.b32.xlu0 %v2464_v54, %s4553_s4  ;;  %v2925_v54 = vadd.f32 %v2921_v10, %v2901_v34  ;;  %v2956_v44 = vand.u32 2147483647, %v5836_v24 }
0x156d   :  { %v2929_v16 = vpop.permute.xlu1 %2928  ;;  %v2960_v42 = vsub.f32 0.0, %v2956_v44 }
0x156e   :  { %v2943_v33 = vmul.f32 %v2929_v16, %v4880_v50 }
0x156f   :  { %v2965_v14 = vmul.f32 1.442695, %v2960_v42 }
0x1570   :  { %v5826_v61 = vadd.f32 %v2943_v33, %v2923_v37  ;;  %v2449_v33 = vpop.xlane.xlu0 %2448  ;;  %v2482_v37 = vand.u32 2147483647, %v2478_v23 }
0x1571   :  { %v2937_v17 = vpop.permute.xlu1 %2936  ;;  %v2453_v10 = vadd.f32 %v2449_v33, %v5229_v12 }
0x1572   :  { %v2955_v46 = vand.u32 2147483647, %v5826_v61  ;;  %v2945_v20 = vmul.f32 %v2937_v17, %v4880_v50  ;;  %v2486_v32 = vadd.f32 1e-08, %v2482_v37 }
0x1574   :  { %v2959_v5 = vsub.f32 0.0, %v2955_v46  ;;  %v5843_v18 = vadd.f32 %v2945_v20, %v2925_v54  ;;  %v5850_v17 = vpop.permute.xlu0 %2508 }
0x1575   :  { %v2941_v4 = vpop.permute.xlu1 %2940 }
0x1576   :  { %v2946_v16 = vmul.f32 %v2941_v4, %v4880_v50  ;;  %v2963_v47 = vmul.f32 1.442695, %v2959_v5  ;;  %v2957_v6 = vand.u32 2147483647, %v5843_v18 }
0x1578   :  { %v5847_v27 = vadd.f32 %v2946_v16, %v2926_v19  ;;  %4400 = vpow2.f32 %v2963_v47  ;;  %v2961_v2 = vsub.f32 0.0, %v2957_v6  ;;  %v2523_v43 = vpop.permute.xlu0 %2522 }
0x1579   :  { %4402 = vpow2.f32 %v2965_v14 }
0x157a   :  { %v2958_v52 = vand.u32 2147483647, %v5847_v27  ;;  %v2967_v3 = vmul.f32 1.442695, %v2961_v2  ;;  %4404 = vlog2.f32 %v2486_v32 }
0x157c   :  { %4406 = vpow2.f32 %v2967_v3  ;;  %v5853_v34 = vpop.permute.xlu0 %2526 }
0x1580   :  { %v2539_v11 = vpop.permute.xlu0 %2538 }
0x1582   :  { %v4401_v57 = vpop.eup %4400 }
0x1583   :  { %v2971_v8 = vadd.f32 1.0, %v4401_v57  ;;  %v4403_v46 = vpop.eup %4402 }
0x1584   :  { %v4405_v4 = vpop.eup %4404  ;;  %v2972_v56 = vadd.f32 1.0, %v4403_v46 }
0x1585   :  { %v2491_v44 = vmul.f32 0.6931472, %v4405_v4 }
0x1586   :  { %v4407_v54 = vpop.eup %4406 }
0x1587   :  { %v2973_v23 = vadd.f32 1.0, %v4407_v54 }
0x158a   :  { %2738 = vadd.xlane.f32.xlu0 %v2737_v39  ;;  %v2962_v39 = vsub.f32 0.0, %v2958_v52 }
0x158c   :  { %v2969_v63 = vmul.f32 1.442695, %v2962_v39  ;;  %v2468_v39 = vmul.f32 %v5811_v59, %v5811_v59 }
0x158e   :  { %2744 = vadd.xlane.f32.xlu0 %v2743_v28  ;;  %4408 = vpow2.f32 %v2969_v63  ;;  %v2472_v46 = vsub.f32 1.0, %v2468_v39 }
0x158f   :  { %4410 = vtanh.f32 %v2453_v10 }
0x1590   :  { %4412 = vlog2.f32 %v2971_v8 }
0x1598   :  { %v4409_v47 = vpop.eup %4408 }
0x1599   :  { %v4411_v42 = vpop.eup %4410  ;;  %v2974_v6 = vadd.f32 1.0, %v4409_v47  ;;  %v2954_v47 = vmax.f32 %v5847_v27, 0.0 }
0x159a   :  { %v2461_v52 = vmul.f32 %v5736_v62, %v4411_v42 }
0x159c   :  { %v2465_v63 = vadd.f32 %v2461_v52, %v5441_v9 }
0x15a7   :  { %v2443_v20 = vpop.xlane.xlu1 %2442 }
0x15a8   :  { %v2451_v28 = vadd.f32 %v2443_v20, %v5229_v12  ;;  %v2952_v20 = vmax.f32 %v5836_v24, 0.0 }
0x15aa   :  { %4414 = vtanh.f32 %v2451_v28  ;;  %v6638_v28 = vld [vmem:[#allocation15_spill] sm:$0xff] }
0x15ab   :  { %v2507_v22 = vpop.permute.xlu1 %2506  ;;  %4416 = vlog2.f32 %v2972_v56 }
0x15ac   :  { %v2550_v5 = vsel %vm1650_vm7, %v5430_v38, %v2507_v22  ;;  %4418 = vlog2.f32 %v2973_v23  ;;  %v4413_v38 = vpop.eup %4412  ;;  %v2476_v22 = vmul.f32 %v2472_v46, %v5295_v15 }
0x15ad   :  { %v2554_v16 = vsel %vm1334_vm6, %v2550_v5, %v2523_v43  ;;  %4420 = vlog2.f32 %v2974_v6  ;;  %v2976_v32 = vmul.f32 0.6931472, %v4413_v38  ;;  %v2951_v43 = vmax.f32 %v5826_v61, 0.0 }
0x15ae   :  { %v2558_v19 = vsel %vm1659_vm8, %v2554_v16, %v2539_v11  ;;  %v2953_v5 = vmax.f32 %v5843_v18, 0.0  ;;  %v6639_v11 = vld [vmem:[#allocation24_spill] sm:$0xff]  ;;  %v2480_v23 = vadd.f32 1.0, %v2476_v22 }
0x15af   :  { %v2562_v33 = vsel %vm1664_vm9, %v2558_v19, %v2491_v44  ;;  %v5873_v57 = vadd.f32 %v2976_v32, %v2951_v43 }
0x15b0   :  { %3833 = vst.msk [vmem:[%s6579_s16 + $0x18] sm:$0x3] %vm1669_vm10, %v2562_v33  ;;  %v6640_v33 = vld [vmem:[#allocation16_spill] sm:$0xff] }
0x15b1   :  { %v3008_v4 = vmul.f32 %v6638_v28, %v5873_v57  ;;  %v2734_v28 = vmul.f32 %v5542_v53, %v5635_v30 }
0x15b4   :  { %v4415_v37 = vpop.eup %4414 }
0x15b5   :  { %v2459_v14 = vmul.f32 %v5736_v62, %v4415_v37  ;;  %v4417_v3 = vpop.eup %4416 }
0x15b6   :  { %v2978_v10 = vmul.f32 0.6931472, %v4417_v3  ;;  %v4419_v8 = vpop.eup %4418  ;;  %v2511_v3 = vpop.permute.xlu1 %2510 }
0x15b7   :  { %v2463_v2 = vadd.f32 %v2459_v14, %v5425_v0  ;;  %v2980_v59 = vmul.f32 0.6931472, %v4419_v8  ;;  %v4421_v54 = vpop.eup %4420  ;;  %v2484_v14 = vand.u32 2147483647, %v2480_v23  ;;  %v2552_v43 = vsel %vm1650_vm7, %v5436_v60, %v2511_v3 }
0x15b8   :  { %v5879_v56 = vadd.f32 %v2978_v10, %v2952_v20  ;;  %v2982_v19 = vmul.f32 0.6931472, %v4421_v54  ;;  %v2556_v8 = vsel %vm1334_vm6, %v2552_v43, %v5853_v34  ;;  %v2467_v60 = vmul.f32 %v4415_v37, %v4415_v37 }
0x15b9   :  { %2540 = vrot.lane.b32.xlu1 %v2463_v2, %s4553_s4  ;;  %v5886_v16 = vadd.f32 %v2980_v59, %v2953_v5  ;;  %v6641_v2 = vld [vmem:[#allocation25_spill] sm:$0xff]  ;;  %v2488_v32 = vadd.f32 1e-08, %v2484_v14  ;;  %v2469_v59 = vmul.f32 %v4411_v42, %v4411_v42  ;;  %v2551_v42 = vsel %vm1650_vm7, %v5425_v0, %v5850_v17 }
0x15ba   :  { %v3009_v44 = vmul.f32 %v6639_v11, %v5879_v56  ;;  %v5892_v38 = vadd.f32 %v2982_v19, %v2954_v47  ;;  %v2471_v54 = vsub.f32 1.0, %v2467_v60 }
0x15bb   :  { %v3010_v6 = vmul.f32 %v6640_v33, %v5886_v16  ;;  %4422 = vlog2.f32 %v2488_v32  ;;  %v2473_v22 = vsub.f32 1.0, %v2469_v59  ;;  %v2513_v33 = vpop.permute.xlu1 %2512 }
0x15bc   :  { %v3011_v52 = vmul.f32 %v6641_v2, %v5892_v38  ;;  %v2475_v34 = vmul.f32 %v2471_v54, %v5295_v15 }
0x15bd   :  { %2544 = vrot.lane.b32.xlu1 %v2465_v63, %s4553_s4  ;;  %v2477_v11 = vmul.f32 %v2473_v22, %v5295_v15 }
0x15be   :  { %v2479_v5 = vadd.f32 1.0, %v2475_v34 }
0x15bf   :  { %v2481_v19 = vadd.f32 1.0, %v2477_v11  ;;  %v2525_v14 = vpop.permute.xlu1 %2524 }
0x15c0   :  { %v2555_v37 = vsel %vm1334_vm6, %v2551_v42, %v2525_v14 }
0x15c1   :  { %3016 = vrot.lane.b32.xlu1 %v3008_v4, %s4552_s11  ;;  %v2740_v4 = vsel %vm1337_vm5, %v2734_v28, 0.0  ;;  %v2485_v47 = vand.u32 2147483647, %v2481_v19 }
0x15c3   :  { %v2529_v2 = vpop.permute.xlu1 %2528 }
0x15c5   :  { %3018 = vrot.lane.b32.xlu1 %v3009_v44, %s4552_s11  ;;  %v4423_v39 = vpop.eup %4422  ;;  %v2483_v44 = vand.u32 2147483647, %v2479_v5 }
0x15c6   :  { %v2495_v63 = vmul.f32 0.6931472, %v4423_v39 }
0x15c7   :  { %v2487_v23 = vadd.f32 1e-08, %v2483_v44 }
0x15c9   :  { %3020 = vrot.lane.b32.xlu1 %v3010_v6, %s4552_s11  ;;  %4424 = vlog2.f32 %v2487_v23  ;;  %v2489_v6 = vadd.f32 1e-08, %v2485_v47  ;;  %v2736_v23 = vmul.f32 %v5542_v53, %v5702_v31 }
0x15cb   :  { %4426 = vlog2.f32 %v2489_v6  ;;  %v2746_v47 = vsel %vm1337_vm5, %v2736_v23, 0.0 }
0x15cd   :  { %3022 = vrot.lane.b32.xlu1 %v3011_v52, %s4552_s11 }
0x15d3   :  { %v4425_v52 = vpop.eup %4424 }
0x15d4   :  { %v2493_v32 = vmul.f32 0.6931472, %v4425_v52 }
0x15d5   :  { %v4427_v39 = vpop.eup %4426 }
0x15d6   :  { %v2497_v0 = vmul.f32 0.6931472, %v4427_v39 }
0x15dd   :  { %v2543_v10 = vpop.permute.xlu0 %2542 }
0x15de   :  { %v2560_v46 = vsel %vm1659_vm8, %v2556_v8, %v2543_v10  ;;  %v2553_v10 = vsel %vm1650_vm7, %v5441_v9, %v2513_v33 }
0x15df   :  { %v2564_v20 = vsel %vm1664_vm9, %v2560_v46, %v2495_v63  ;;  %v2557_v8 = vsel %vm1334_vm6, %v2553_v10, %v2529_v2 }
0x15e0   :  { %3835 = vst.msk [vmem:[%s6579_s16 + $0x1c] sm:$0x3] %vm1669_vm10, %v2564_v20 }
0x15f1   :  { %2741 = vadd.xlane.f32.xlu1 %v2740_v4 }
0x162b   :  { %v2541_v3 = vpop.permute.xlu1 %2540 }
0x162c   :  { %v2559_v43 = vsel %vm1659_vm8, %v2555_v37, %v2541_v3 }
0x162d   :  { %v2563_v63 = vsel %vm1664_vm9, %v2559_v43, %v2493_v32  ;;  %v3173_v43 = vld [vmem:[#allocation7 + $0xc] sm:$0x3] }
0x162e   :  { %3834 = vst.msk [vmem:[%s6579_s16 + $0x1a] sm:$0x3] %vm1669_vm10, %v2563_v63 }
0x162f   :  { %v2545_v17 = vpop.permute.xlu1 %2544 }
0x1630   :  { %v2561_v46 = vsel %vm1659_vm8, %v2557_v8, %v2545_v17 }
0x1631   :  { %v2565_v20 = vsel %vm1664_vm9, %v2561_v46, %v2497_v0 }
0x1632   :  { %3836 = vst.msk [vmem:[%s6579_s16 + $0x1e] sm:$0x3] %vm1669_vm10, %v2565_v20 }
0x1633   :  { %v3017_v28 = vpop.permute.xlu1 %3016 }
0x1634   :  { %v5933_v9 = vadd.f32 %v3017_v28, %v5826_v61 }
0x1636   :  { %3096 = vst.msk [vmem:[#allocation8] sm:$0x3] %vm1337_vm5, %v5933_v9 }
0x1637   :  { %v3019_v4 = vpop.permute.xlu1 %3018 }
0x1638   :  { %v5938_v60 = vadd.f32 %v3019_v4, %v5836_v24 }
0x163a   :  { %3097 = vst.msk [vmem:[#allocation8 + $0x2] sm:$0x3] %vm1337_vm5, %v5938_v60 }
0x163b   :  { %v3021_v59 = vpop.permute.xlu1 %3020 }
0x163c   :  { %v5943_v54 = vadd.f32 %v3021_v59, %v5843_v18 }
0x163d   :  { %v3169_v22 = vld [vmem:[#allocation8] sm:$0x3] }
0x163e   :  { %3098 = vst.msk [vmem:[#allocation8 + $0x4] sm:$0x3] %vm1337_vm5, %v5943_v54  ;;  %3176 = vperm.xlu0 %4176, %v3169_v22  }
0x163f   :  { %v3023_v34 = vpop.permute.xlu1 %3022 }
0x1640   :  { %v5948_v5 = vadd.f32 %v3023_v34, %v5847_v27 }
0x1641   :  { %v3170_v11 = vld [vmem:[#allocation8 + $0x2] sm:$0x3] }
0x1642   :  { %3099 = vst.msk [vmem:[#allocation8 + $0x6] sm:$0x3] %vm1337_vm5, %v5948_v5  ;;  %3181 = vperm.xlu1 %4177, %v3170_v11  }
0x1645   :  { %v3171_v44 = vld [vmem:[#allocation8 + $0x4] sm:$0x3] }
0x1646   :  { %3186 = vperm.xlu1 %4177, %v3171_v44  }
0x1649   :  { %v3172_v19 = vld [vmem:[#allocation8 + $0x6] sm:$0x3] }
0x164a   :  { %4178 = vset.pattern.permute.xlu1 %v6623_v21  ;;  %3191 = vperm.xlu0 %4176, %v3172_v19  }
0x164b   :  { %3203 = vperm.xlu1 %4178, %v3169_v22  }
0x164e   :  { %4179 = vset.pattern.permute.xlu0 %v6623_v21 }
0x164f   :  { %3211 = vperm.xlu1 %4178, %v3171_v44   ;;  %3207 = vperm.xlu0 %4179, %v3170_v11  }
0x1653   :  { %3215 = vperm.xlu1 %4178, %v3172_v19   ;;  %4180 = vset.pattern.permute.xlu0 %v6624_v36 }
0x1654   :  { %3227 = vperm.xlu0 %4180, %v3169_v22  }
0x1657   :  { %4181 = vset.pattern.permute.xlu1 %v6624_v36 }
0x1658   :  { %3231 = vperm.xlu1 %4181, %v3170_v11   ;;  %3239 = vperm.xlu0 %4180, %v3172_v19  }
0x165c   :  { %3235 = vperm.xlu1 %4181, %v3171_v44   ;;  %4183 = vset.pattern.permute.xlu0 %v6618_v29 }
0x1660   :  { %2805 = vrot.lane.b32.xlu1 %v5595_v25, %s4551_s30  ;;  %v2739_v25 = vpop.xlane.xlu0 %2738 }
0x1661   :  { %4182 = vset.pattern.permute.xlu1 %v6618_v29  ;;  %v2749_v29 = vadd.f32 %v2739_v25, %v5229_v12 }
0x1663   :  { %4428 = vtanh.f32 %v2749_v29 }
0x1664   :  { %2809 = vrot.lane.b32.xlu1 %v5585_v58, %s4551_s30  ;;  %v3032_v58 = vmul.f32 %v5542_v53, %v5933_v9  ;;  %v5992_v14 = vpop.xlane.xlu0 %2744 }
0x1668   :  { %2811 = vrot.lane.b32.xlu1 %v5614_v35, %s4551_s30  ;;  %v3036_v35 = vsel %vm1337_vm5, %v3032_v58, 0.0 }
0x166c   :  { %2823 = vrot.lane.b32.xlu1 %v5555_v7, %s4551_s30 }
0x166d   :  { %v5976_v7 = vpop.eup %4428 }
0x1670   :  { %2827 = vrot.lane.b32.xlu1 %v5642_v41, %s4551_s30  ;;  %v2757_v41 = vmul.f32 %v5736_v62, %v5976_v7 }
0x1672   :  { %v2761_v33 = vadd.f32 %v2757_v41, %v5683_v1 }
0x1677   :  { %2747 = vadd.xlane.f32.xlu0 %v2746_v47 }
0x168d   :  { %2807 = vrot.lane.b32.xlu0 %v5521_v45, %s4551_s30  ;;  %v3033_v45 = vmul.f32 %v5542_v53, %v5938_v60 }
0x168f   :  { %v3039_v6 = vsel %vm1337_vm5, %v3033_v45, 0.0 }
0x1691   :  { %2821 = vrot.lane.b32.xlu0 %v5622_v51, %s4551_s30  ;;  %v5990_v51 = vpop.xlane.xlu1 %2741 }
0x1694   :  { %3037 = vadd.xlane.f32.xlu1 %v3036_v35 }
0x1695   :  { %2825 = vrot.lane.b32.xlu0 %v5627_v40, %s4551_s30 }
0x1699   :  { %2837 = vrot.lane.b32.xlu0 %v2761_v33, %s4553_s4 }
0x16b8   :  { %3040 = vadd.xlane.f32.xlu0 %v3039_v6 }
0x16bd   :  { %v3177_v62 = vpop.permute.xlu0 %3176 }
0x16be   :  { %v3194_v40 = vmul.f32 %v3177_v62, %v4876_v48 }
0x16c0   :  { %v3198_v63 = vadd.f32 %v3194_v40, %v3173_v43 }
0x16c1   :  { %v3182_v2 = vpop.permute.xlu1 %3181 }
0x16c2   :  { %v3195_v53 = vmul.f32 %v3182_v2, %v4876_v48 }
0x16c4   :  { %v3199_v4 = vadd.f32 %v3195_v53, %v3173_v43 }
0x16c5   :  { %v3187_v52 = vpop.permute.xlu1 %3186 }
0x16c6   :  { %v3196_v34 = vmul.f32 %v3187_v52, %v4876_v48 }
0x16c8   :  { %v3200_v45 = vadd.f32 %v3196_v34, %v3173_v43 }
0x16c9   :  { %v3192_v42 = vpop.permute.xlu0 %3191 }
0x16ca   :  { %v3204_v37 = vpop.permute.xlu1 %3203  ;;  %v3197_v10 = vmul.f32 %v3192_v42, %v4876_v48 }
0x16cb   :  { %v3218_v39 = vmul.f32 %v3204_v37, %v4878_v49 }
0x16cc   :  { %v3201_v59 = vadd.f32 %v3197_v10, %v3173_v43 }
0x16cd   :  { %v3222_v46 = vadd.f32 %v3218_v39, %v3198_v63 }
0x16ce   :  { %v3208_v32 = vpop.permute.xlu0 %3207  ;;  %v3212_v3 = vpop.permute.xlu1 %3211 }
0x16cf   :  { %v3219_v0 = vmul.f32 %v3208_v32, %v4878_v49  ;;  %v3220_v58 = vmul.f32 %v3212_v3, %v4878_v49 }
0x16d1   :  { %v3223_v11 = vadd.f32 %v3219_v0, %v3199_v4  ;;  %v3224_v52 = vadd.f32 %v3220_v58, %v3200_v45 }
0x16d2   :  { %v3216_v8 = vpop.permute.xlu1 %3215 }
0x16d3   :  { %v3228_v17 = vpop.permute.xlu0 %3227  ;;  %v3221_v20 = vmul.f32 %v3216_v8, %v4878_v49 }
0x16d4   :  { %v3242_v28 = vmul.f32 %v3228_v17, %v4880_v50 }
0x16d5   :  { %v3225_v23 = vadd.f32 %v3221_v20, %v3201_v59 }
0x16d6   :  { %v6001_v22 = vadd.f32 %v3242_v28, %v3222_v46 }
0x16d7   :  { %v3240_v44 = vpop.permute.xlu0 %3239  ;;  %v3232_v19 = vpop.permute.xlu1 %3231 }
0x16d8   :  { %v3254_v47 = vand.u32 2147483647, %v6001_v22  ;;  %v3245_v25 = vmul.f32 %v3240_v44, %v4880_v50  ;;  %v3243_v29 = vmul.f32 %v3232_v19, %v4880_v50  ;;  %v3250_v45 = vmax.f32 %v6001_v22, 0.0 }
0x16da   :  { %v3258_v35 = vsub.f32 0.0, %v3254_v47  ;;  %v6008_v41 = vadd.f32 %v3245_v25, %v3225_v23  ;;  %v6010_v33 = vadd.f32 %v3243_v29, %v3223_v11  ;;  %v2765_v11 = vmul.f32 %v5976_v7, %v5976_v7 }
0x16db   :  { %v3236_v6 = vpop.permute.xlu1 %3235 }
0x16dc   :  { %6642 = vst [vmem:[#allocation21_spill] sm:$0xff] %v6008_v41  ;;  %v3262_v2 = vmul.f32 1.442695, %v3258_v35  ;;  %v3257_v62 = vand.u32 2147483647, %v6008_v41  ;;  %v3244_v37 = vmul.f32 %v3236_v6, %v4880_v50  ;;  %v2769_v29 = vsub.f32 1.0, %v2765_v11 }
0x16dd   :  { %v3255_v42 = vand.u32 2147483647, %v6010_v33 }
0x16de   :  { %4430 = vpow2.f32 %v3262_v2  ;;  %v3261_v40 = vsub.f32 0.0, %v3257_v62  ;;  %v6015_v39 = vadd.f32 %v3244_v37, %v3224_v52  ;;  %v2773_v7 = vmul.f32 %v2769_v29, %v5295_v15 }
0x16df   :  { %v3259_v32 = vsub.f32 0.0, %v3255_v42  ;;  %v6017_v3 = vpop.permute.xlu1 %2805  ;;  %v6643_v42 = vld [vmem:[#allocation27_spill] sm:$0xff] }
0x16e0   :  { %v3268_v53 = vmul.f32 1.442695, %v3261_v40  ;;  %v3256_v43 = vand.u32 2147483647, %v6015_v39  ;;  %v2777_v40 = vadd.f32 1.0, %v2773_v7 }
0x16e1   :  { %v3264_v63 = vmul.f32 1.442695, %v3259_v32  ;;  %v3251_v32 = vmax.f32 %v6010_v33, 0.0 }
0x16e2   :  { %4432 = vpow2.f32 %v3268_v53  ;;  %v3260_v10 = vsub.f32 0.0, %v3256_v43  ;;  %v3253_v43 = vmax.f32 %v6008_v41, 0.0 }
0x16e3   :  { %4434 = vpow2.f32 %v3264_v63  ;;  %v2810_v8 = vpop.permute.xlu1 %2809 }
0x16e4   :  { %v3266_v0 = vmul.f32 1.442695, %v3260_v10 }
0x16e6   :  { %4436 = vpow2.f32 %v3266_v0 }
0x16e7   :  { %v2812_v17 = vpop.permute.xlu1 %2811 }
0x16e8   :  { %v4431_v46 = vpop.eup %4430  ;;  %v2852_v19 = vsel %vm1650_vm7, %v5702_v31, %v2812_v17  ;;  %v2781_v17 = vand.u32 2147483647, %v2777_v40  ;;  %v2849_v40 = vsel %vm1650_vm7, %v5683_v1, %v6017_v3 }
0x16e9   :  { %v3270_v20 = vadd.f32 1.0, %v4431_v46  ;;  %v3252_v46 = vmax.f32 %v6015_v39, 0.0 }
0x16ea   :  { %v2785_v29 = vadd.f32 1e-08, %v2781_v17 }
0x16eb   :  { %v2824_v28 = vpop.permute.xlu1 %2823  ;;  %4438 = vlog2.f32 %v3270_v20  ;;  %v6645_v20 = vld [vmem:[#allocation29_spill] sm:$0xff] }
0x16ec   :  { %v4433_v4 = vpop.eup %4432 }
0x16ed   :  { %v4435_v59 = vpop.eup %4434  ;;  %v3273_v34 = vadd.f32 1.0, %v4433_v4 }
0x16ee   :  { %v3271_v44 = vadd.f32 1.0, %v4435_v59 }
0x16ef   :  { %v2828_v23 = vpop.permute.xlu1 %2827  ;;  %4440 = vlog2.f32 %v3273_v34 }
0x16f0   :  { %v6025_v47 = vsel %vm1334_vm6, %v2852_v19, %v2828_v23  ;;  %4442 = vlog2.f32 %v3271_v44  ;;  %v4437_v25 = vpop.eup %4436  ;;  %v6647_v44 = vld [vmem:[#allocation30_spill] sm:$0xff]  ;;  %v6648_v23 = vld [vmem:[#allocation28_spill] sm:$0xff] }
0x16f1   :  { %v3272_v58 = vadd.f32 1.0, %v4437_v25 }
0x16f3   :  { %4444 = vlog2.f32 %v3272_v58 }
0x16f4   :  { %4446 = vlog2.f32 %v2785_v29 }
0x16f5   :  { %v4439_v35 = vpop.eup %4438 }
0x16f6   :  { %v3275_v6 = vmul.f32 0.6931472, %v4439_v35 }
0x16f8   :  { %v6029_v2 = vadd.f32 %v3275_v6, %v3250_v45 }
0x16f9   :  { %v4441_v62 = vpop.eup %4440 }
0x16fa   :  { %v4443_v52 = vpop.eup %4442  ;;  %v3307_v37 = vmul.f32 %v6643_v42, %v6029_v2  ;;  %v3281_v63 = vmul.f32 0.6931472, %v4441_v62  ;;  %v2851_v62 = vsel %vm1650_vm7, %v5688_v55, %v2810_v8  ;;  %v6077_v8 = vld [vmem:[%s6576_s13] ss:$0 sm:$0xff] }
0x16fb   :  { %v3277_v53 = vmul.f32 0.6931472, %v4443_v52  ;;  %v3034_v1 = vmul.f32 %v6077_v8, %v5943_v54 }
0x16fc   :  { %3315 = vrot.lane.b32.xlu0 %v3307_v37, %s4552_s11  ;;  %v6041_v59 = vadd.f32 %v3281_v63, %v3253_v43 }
0x16fd   :  { %v6036_v10 = vadd.f32 %v3277_v53, %v3251_v32  ;;  %v4445_v0 = vpop.eup %4444  ;;  %v3042_v3 = vsel %vm1337_vm5, %v3034_v1, 0.0 }
0x16fe   :  { %6646 = vst [vmem:[#allocation23_spill] sm:$0xff] %v6041_v59  ;;  %v3279_v34 = vmul.f32 0.6931472, %v4445_v0  ;;  %v3310_v19 = vmul.f32 %v6647_v44, %v6041_v59  ;;  %v4447_v42 = vpop.eup %4446  ;;  %v3035_v0 = vmul.f32 %v6077_v8, %v5948_v5 }
0x16ff   :  { %6644 = vst [vmem:[#allocation22_spill] sm:$0xff] %v6036_v10  ;;  %v3308_v4 = vmul.f32 %v6645_v20, %v6036_v10  ;;  %v2790_v53 = vmul.f32 0.6931472, %v4447_v42 }
0x1700   :  { %v6044_v11 = vadd.f32 %v3279_v34, %v3252_v46  ;;  %v3045_v17 = vsel %vm1337_vm5, %v3035_v0, 0.0 }
0x1701   :  { %3317 = vrot.lane.b32.xlu1 %v3308_v4, %s4552_s11 }
0x1702   :  { %v3309_v25 = vmul.f32 %v6648_v23, %v6044_v11 }
0x1704   :  { %v6050_v58 = vpop.xlane.xlu0 %2747  ;;  %3319 = vrot.lane.b32.xlu0 %v3309_v25, %s4552_s11 }
0x1705   :  { %3321 = vrot.lane.b32.xlu1 %v3310_v19, %s4552_s11 }
0x1708   :  { %v2808_v35 = vpop.permute.xlu0 %2807 }
0x1709   :  { %v2850_v45 = vsel %vm1650_vm7, %v5635_v30, %v2808_v35 }
0x170a   :  { %v6057_v6 = vsel %vm1334_vm6, %v2850_v45, %v2824_v28 }
0x170c   :  { %v2822_v7 = vpop.permute.xlu0 %2821 }
0x170d   :  { %v2853_v32 = vsel %vm1334_vm6, %v2849_v40, %v2822_v7 }
0x1710   :  { %v2826_v52 = vpop.permute.xlu0 %2825 }
0x1711   :  { %v6062_v37 = vsel %vm1334_vm6, %v2851_v62, %v2826_v52 }
0x1714   :  { %v2838_v63 = vpop.permute.xlu0 %2837 }
0x1715   :  { %v2857_v28 = vsel %vm1659_vm8, %v2853_v32, %v2838_v63 }
0x1716   :  { %v2861_v43 = vsel %vm1664_vm9, %v2857_v28, %v2790_v53 }
0x1717   :  { %3841 = vst.msk [vmem:[%s6579_s16 + $0x20] sm:$0x3] %vm1669_vm10, %v2861_v43 }
0x1721   :  { %v6087_v4 = vpop.xlane.xlu1 %3037 }
0x1723   :  { %3043 = vadd.xlane.f32.xlu0 %v3042_v3 }
0x1729   :  { %3046 = vadd.xlane.f32.xlu1 %v3045_v17 }
0x1745   :  { %v6085_v46 = vpop.xlane.xlu0 %3040 }
0x176e   :  { %v3316_v20 = vpop.permute.xlu0 %3315 }
0x176f   :  { %v6090_v34 = vadd.f32 %v3316_v20, %v6001_v22  ;;  %v3472_v20 = vld [vmem:[#allocation7 + $0xe] sm:$0x3] }
0x1771   :  { %3395 = vst.msk [vmem:[#allocation8] sm:$0x3] %vm1337_vm5, %v6090_v34  ;;  %v3331_v42 = vmul.f32 %v6077_v8, %v6090_v34 }
0x1773   :  { %v3318_v44 = vpop.permute.xlu1 %3317  ;;  %v3335_v40 = vsel %vm1337_vm5, %v3331_v42, 0.0 }
0x1774   :  { %v6095_v19 = vadd.f32 %v3318_v44, %v6010_v33 }
0x1776   :  { %6649 = vst [vmem:[#allocation14_spill] sm:$0xff] %v6095_v19  ;;  %3396 = vst.msk [vmem:[#allocation8 + $0x2] sm:$0x3] %vm1337_vm5, %v6095_v19  ;;  %v3320_v23 = vpop.permute.xlu0 %3319  ;;  %v3332_v32 = vmul.f32 %v6077_v8, %v6095_v19 }
0x1777   :  { %v3322_v25 = vpop.permute.xlu1 %3321  ;;  %v6100_v29 = vadd.f32 %v3320_v23, %v6015_v39 }
0x1778   :  { %v6103_v35 = vadd.f32 %v3322_v25, %v6008_v41  ;;  %v3468_v45 = vld [vmem:[#allocation8] sm:$0x3] }
0x1779   :  { %3475 = vperm.xlu1 %4182, %v3468_v45   ;;  %3397 = vst.msk [vmem:[#allocation8 + $0x4] sm:$0x3] %vm1337_vm5, %v6100_v29 }
0x177a   :  { %3398 = vst.msk [vmem:[#allocation8 + $0x6] sm:$0x3] %vm1337_vm5, %v6103_v35 }
0x177d   :  { %v3469_v7 = vld [vmem:[#allocation8 + $0x2] sm:$0x3] }
0x177e   :  { %3480 = vperm.xlu0 %4183, %v3469_v7  }
0x1780   :  { %v3470_v62 = vld [vmem:[#allocation8 + $0x4] sm:$0x3] }
0x1781   :  { %3485 = vperm.xlu1 %4182, %v3470_v62   ;;  %v3471_v52 = vld [vmem:[#allocation8 + $0x6] sm:$0x3] }
0x1782   :  { %4184 = vset.pattern.permute.xlu0 %v6623_v21 }
0x1783   :  { %3502 = vperm.xlu0 %4184, %v3468_v45  }
0x1785   :  { %3490 = vperm.xlu1 %4182, %v3471_v52  }
0x1787   :  { %3514 = vperm.xlu0 %4184, %v3471_v52  }
0x1789   :  { %4185 = vset.pattern.permute.xlu1 %v6623_v21  ;;  %v3338_v21 = vsel %vm1337_vm5, %v3332_v32, 0.0 }
0x178a   :  { %3506 = vperm.xlu1 %4185, %v3469_v7  }
0x178b   :  { %4187 = vset.pattern.permute.xlu0 %v6624_v36 }
0x178c   :  { %3530 = vperm.xlu0 %4187, %v3469_v7  }
0x178e   :  { %3510 = vperm.xlu1 %4185, %v3470_v62  }
0x1792   :  { %4186 = vset.pattern.permute.xlu1 %v6624_v36 }
0x1793   :  { %3526 = vperm.xlu1 %4186, %v3468_v45  }
0x1797   :  { %3534 = vperm.xlu1 %4186, %v3470_v62  }
0x179b   :  { %3538 = vperm.xlu1 %4186, %v3471_v52  }
0x17ab   :  { %3336 = vadd.xlane.f32.xlu0 %v3335_v40 }
0x17b0   :  { %v6119_v53 = vpop.xlane.xlu0 %3043 }
0x17b6   :  { %v6121_v63 = vpop.xlane.xlu1 %3046 }
0x17bf   :  { %3339 = vadd.xlane.f32.xlu1 %v3338_v21 }
0x17f8   :  { %v3476_v36 = vpop.permute.xlu1 %3475 }
0x17f9   :  { %v3493_v52 = vmul.f32 %v3476_v36, %v4876_v48 }
0x17fb   :  { %v3497_v19 = vadd.f32 %v3493_v52, %v3472_v20 }
0x17fd   :  { %v3481_v28 = vpop.permute.xlu0 %3480 }
0x17fe   :  { %v3494_v17 = vmul.f32 %v3481_v28, %v4876_v48 }
0x1800   :  { %v3486_v43 = vpop.permute.xlu1 %3485  ;;  %v3498_v23 = vadd.f32 %v3494_v17, %v3472_v20 }
0x1801   :  { %v3495_v28 = vmul.f32 %v3486_v43, %v4876_v48 }
0x1802   :  { %v3503_v1 = vpop.permute.xlu0 %3502 }
0x1803   :  { %v3517_v32 = vmul.f32 %v3503_v1, %v4878_v49 }
0x1804   :  { %v3491_v3 = vpop.permute.xlu1 %3490 }
0x1805   :  { %v3521_v10 = vadd.f32 %v3517_v32, %v3497_v19 }
0x1806   :  { %v3515_v0 = vpop.permute.xlu0 %3514 }
0x1807   :  { %v3520_v1 = vmul.f32 %v3515_v0, %v4878_v49 }
0x1809   :  { %v3507_v44 = vpop.permute.xlu1 %3506 }
0x180a   :  { %v3518_v25 = vmul.f32 %v3507_v44, %v4878_v49  ;;  %v3496_v44 = vmul.f32 %v3491_v3, %v4876_v48 }
0x180b   :  { %v3531_v45 = vpop.permute.xlu0 %3530 }
0x180c   :  { %v3542_v7 = vmul.f32 %v3531_v45, %v4880_v50  ;;  %v3522_v62 = vadd.f32 %v3518_v25, %v3498_v23  ;;  %v3499_v25 = vadd.f32 %v3495_v28, %v3472_v20  ;;  %v3500_v52 = vadd.f32 %v3496_v44, %v3472_v20 }
0x180d   :  { %v3511_v42 = vpop.permute.xlu1 %3510 }
0x180e   :  { %v6127_v40 = vadd.f32 %v3542_v7, %v3522_v62  ;;  %v3519_v45 = vmul.f32 %v3511_v42, %v4878_v49  ;;  %v3524_v42 = vadd.f32 %v3520_v1, %v3500_v52 }
0x1810   :  { %v3554_v21 = vand.u32 2147483647, %v6127_v40  ;;  %v3523_v41 = vadd.f32 %v3519_v45, %v3499_v25 }
0x1812   :  { %v3558_v59 = vsub.f32 0.0, %v3554_v21  ;;  %v3527_v17 = vpop.permute.xlu1 %3526 }
0x1813   :  { %v3541_v23 = vmul.f32 %v3527_v17, %v4880_v50 }
0x1814   :  { %v3563_v36 = vmul.f32 1.442695, %v3558_v59 }
0x1815   :  { %v6135_v7 = vadd.f32 %v3541_v23, %v3521_v10 }
0x1816   :  { %4448 = vpow2.f32 %v3563_v36  ;;  %v3535_v62 = vpop.permute.xlu1 %3534 }
0x1817   :  { %v3553_v43 = vand.u32 2147483647, %v6135_v7  ;;  %v3543_v19 = vmul.f32 %v3535_v62, %v4880_v50  ;;  %v3550_v62 = vmax.f32 %v6127_v40, 0.0 }
0x1819   :  { %v3557_v32 = vsub.f32 0.0, %v3553_v43  ;;  %v6140_v48 = vadd.f32 %v3543_v19, %v3523_v41 }
0x181a   :  { %v3539_v3 = vpop.permute.xlu1 %3538 }
0x181b   :  { %v3561_v21 = vmul.f32 1.442695, %v3557_v32  ;;  %v3555_v59 = vand.u32 2147483647, %v6140_v48  ;;  %v3544_v10 = vmul.f32 %v3539_v3, %v4880_v50 }
0x181d   :  { %4450 = vpow2.f32 %v3561_v21  ;;  %v3559_v49 = vsub.f32 0.0, %v3555_v59  ;;  %v6144_v0 = vadd.f32 %v3544_v10, %v3524_v42  ;;  %v3549_v21 = vmax.f32 %v6135_v7, 0.0 }
0x181f   :  { %v3565_v20 = vmul.f32 1.442695, %v3559_v49  ;;  %v3556_v28 = vand.u32 2147483647, %v6144_v0 }
0x1820   :  { %v4449_v17 = vpop.eup %4448 }
0x1821   :  { %4452 = vpow2.f32 %v3565_v20  ;;  %v3560_v44 = vsub.f32 0.0, %v3556_v28  ;;  %v3570_v45 = vadd.f32 1.0, %v4449_v17  ;;  %v3551_v20 = vmax.f32 %v6140_v48, 0.0  ;;  %v6650_v28 = vld [vmem:[#allocation20_spill] sm:$0xff] }
0x1823   :  { %v3567_v41 = vmul.f32 1.442695, %v3560_v44  ;;  %4454 = vlog2.f32 %v3570_v45 }
0x1825   :  { %4456 = vpow2.f32 %v3567_v41  ;;  %v3552_v41 = vmax.f32 %v6144_v0, 0.0 }
0x1827   :  { %v4451_v23 = vpop.eup %4450 }
0x1828   :  { %v3569_v36 = vadd.f32 1.0, %v4451_v23  ;;  %v6651_v23 = vld [vmem:[#allocation18_spill] sm:$0xff] }
0x182a   :  { %4458 = vlog2.f32 %v3569_v36 }
0x182b   :  { %v4453_v25 = vpop.eup %4452 }
0x182c   :  { %v3571_v1 = vadd.f32 1.0, %v4453_v25 }
0x182d   :  { %v4455_v50 = vpop.eup %4454 }
0x182e   :  { %v3576_v52 = vmul.f32 0.6931472, %v4455_v50  ;;  %4460 = vlog2.f32 %v3571_v1 }
0x182f   :  { %v4457_v43 = vpop.eup %4456 }
0x1830   :  { %v6148_v19 = vadd.f32 %v3576_v52, %v3550_v62  ;;  %v3572_v32 = vadd.f32 1.0, %v4457_v43  ;;  %v2751_v62 = vadd.f32 %v5992_v14, %v5229_v12  ;;  %v3333_v52 = vmul.f32 %v6077_v8, %v6100_v29 }
0x1831   :  { %v3334_v43 = vmul.f32 %v6077_v8, %v6103_v35 }
0x1832   :  { %v3607_v3 = vmul.f32 %v5793_v26, %v6148_v19  ;;  %4462 = vlog2.f32 %v3572_v32  ;;  %v2750_v32 = vadd.f32 %v5990_v51, %v5229_v12 }
0x1833   :  { %4464 = vtanh.f32 %v2751_v62 }
0x1834   :  { %v4459_v42 = vpop.eup %4458  ;;  %3616 = vrot.lane.b32.xlu0 %v3607_v3, %s4552_s11  ;;  %v2752_v3 = vadd.f32 %v6050_v58, %v5229_v12  ;;  %4466 = vtanh.f32 %v2750_v32  ;;  %v3048_v32 = vadd.f32 %v6087_v4, %v5229_v12 }
0x1835   :  { %v3574_v59 = vmul.f32 0.6931472, %v4459_v42  ;;  %v3344_v42 = vsel %vm1337_vm5, %v3334_v43, 0.0 }
0x1836   :  { %4468 = vtanh.f32 %v2752_v3  ;;  %v3050_v3 = vadd.f32 %v6119_v53, %v5229_v12 }
0x1837   :  { %v6154_v10 = vadd.f32 %v3574_v59, %v3549_v21  ;;  %v6186_v59 = vld [vmem:[%s6577_s14] ss:$0 sm:$0xff]  ;;  %4470 = vtanh.f32 %v3048_v32 }
0x1838   :  { %v4461_v49 = vpop.eup %4460  ;;  %4472 = vtanh.f32 %v3050_v3 }
0x1839   :  { %v3606_v17 = vmul.f32 %v6650_v28, %v6154_v10  ;;  %v3578_v44 = vmul.f32 0.6931472, %v4461_v49 }
0x183b   :  { %3614 = vrot.lane.b32.xlu1 %v3606_v17, %s4552_s11  ;;  %v6160_v45 = vadd.f32 %v3578_v44, %v3551_v20 }
0x183c   :  { %v4463_v26 = vpop.eup %4462 }
0x183d   :  { %v3608_v36 = vmul.f32 %v6651_v23, %v6160_v45  ;;  %v3580_v25 = vmul.f32 0.6931472, %v4463_v26  ;;  %v4465_v14 = vpop.eup %4464 }
0x183e   :  { %v4467_v21 = vpop.eup %4466  ;;  %v2759_v51 = vmul.f32 %v6186_v59, %v4465_v14 }
0x183f   :  { %3618 = vrot.lane.b32.xlu1 %v3608_v36, %s4552_s11  ;;  %v6166_v1 = vadd.f32 %v3580_v25, %v3552_v41  ;;  %v2758_v28 = vmul.f32 %v6186_v59, %v4467_v21 }
0x1840   :  { %v4469_v49 = vpop.eup %4468  ;;  %v2763_v58 = vadd.f32 %v2759_v51, %v5688_v55  ;;  %v6205_v55 = vpop.xlane.xlu0 %3336  ;;  %v2766_v51 = vmul.f32 %v4467_v21, %v4467_v21 }
0x1841   :  { %v3609_v50 = vmul.f32 %v5797_v13, %v6166_v1  ;;  %v3341_v13 = vsel %vm1337_vm5, %v3333_v52, 0.0  ;;  %v2760_v20 = vmul.f32 %v6186_v59, %v4469_v49  ;;  %v2762_v44 = vadd.f32 %v2758_v28, %v5635_v30 }
0x1842   :  { %v2770_v4 = vsub.f32 1.0, %v2766_v51  ;;  %v2768_v28 = vmul.f32 %v4469_v49, %v4469_v49 }
0x1843   :  { %3620 = vrot.lane.b32.xlu0 %v3609_v50, %s4552_s11  ;;  %v2764_v17 = vadd.f32 %v2760_v20, %v5702_v31 }
0x1844   :  { %v2774_v21 = vmul.f32 %v2770_v4, %v5295_v15 }
0x184c   :  { %v6210_v26 = vpop.xlane.xlu1 %3339 }
0x1862   :  { %3342 = vadd.xlane.f32.xlu0 %v3341_v13  ;;  %v6244_v13 = vpop.eup %4470 }
0x1863   :  { %3345 = vadd.xlane.f32.xlu1 %v3344_v42  ;;  %v2767_v42 = vmul.f32 %v4465_v14, %v4465_v14  ;;  %v6250_v20 = vpop.eup %4472 }
0x1864   :  { %v3058_v14 = vmul.f32 %v6186_v59, %v6250_v20 }
0x1874   :  { %2841 = vrot.lane.b32.xlu1 %v2763_v58, %s4553_s4  ;;  %v3056_v58 = vmul.f32 %v6186_v59, %v6244_v13 }
0x1876   :  { %v3060_v53 = vadd.f32 %v3056_v58, %v5933_v9 }
0x1878   :  { %2843 = vrot.lane.b32.xlu1 %v2764_v17, %s4553_s4  ;;  %2839 = vrot.lane.b32.xlu0 %v2762_v44, %s4553_s4  ;;  %v2772_v17 = vsub.f32 1.0, %v2768_v28  ;;  %v3062_v44 = vadd.f32 %v3058_v14, %v5943_v54 }
0x187a   :  { %v2776_v49 = vmul.f32 %v2772_v17, %v5295_v15 }
0x187c   :  { %3106 = vrot.lane.b32.xlu1 %v5836_v24, %s4551_s30  ;;  %3104 = vrot.lane.b32.xlu0 %v5826_v61, %s4551_s30 }
0x1880   :  { %3110 = vrot.lane.b32.xlu1 %v5847_v27, %s4551_s30  ;;  %3108 = vrot.lane.b32.xlu0 %v5843_v18, %s4551_s30 }
0x18a6   :  { %v3617_v31 = vpop.permute.xlu0 %3616 }
0x18a7   :  { %v6208_v30 = vadd.f32 %v3617_v31, %v6127_v40 }
0x18a9   :  { %3695 = vst.msk [vmem:[#allocation8 + $0x2] sm:$0x3] %vm1337_vm5, %v6208_v30  ;;  %v3631_v61 = vmul.f32 %v6077_v8, %v6208_v30 }
0x18ab   :  { %v3637_v24 = vsel %vm1337_vm5, %v3631_v61, 0.0 }
0x18ac   :  { %3638 = vadd.xlane.f32.xlu1 %v3637_v24 }
0x18ad   :  { %v3615_v27 = vpop.permute.xlu1 %3614 }
0x18ae   :  { %v6218_v18 = vadd.f32 %v3615_v27, %v6135_v7 }
0x18b0   :  { %3694 = vst.msk [vmem:[#allocation8] sm:$0x3] %vm1337_vm5, %v6218_v18  ;;  %v3630_v41 = vmul.f32 %v6077_v8, %v6218_v18 }
0x18b1   :  { %v3619_v23 = vpop.permute.xlu1 %3618 }
0x18b2   :  { %v6225_v36 = vadd.f32 %v3619_v23, %v6140_v48  ;;  %v3634_v25 = vsel %vm1337_vm5, %v3630_v41, 0.0  ;;  %v3049_v41 = vadd.f32 %v6085_v46, %v5229_v12  ;;  %v2780_v23 = vadd.f32 1.0, %v2776_v49 }
0x18b3   :  { %3635 = vadd.xlane.f32.xlu0 %v3634_v25 }
0x18b4   :  { %3696 = vst.msk [vmem:[#allocation8 + $0x4] sm:$0x3] %vm1337_vm5, %v6225_v36  ;;  %v3632_v50 = vmul.f32 %v6077_v8, %v6225_v36  ;;  %4474 = vtanh.f32 %v3049_v41  ;;  %v6654_v41 = vld [vmem:[#allocation23_spill] sm:$0xff] }
0x18b5   :  { %v3621_v62 = vpop.permute.xlu0 %3620 }
0x18b6   :  { %v6233_v52 = vadd.f32 %v3621_v62, %v6144_v0  ;;  %v3640_v43 = vsel %vm1337_vm5, %v3632_v50, 0.0 }
0x18b7   :  { %3641 = vadd.xlane.f32.xlu0 %v3640_v43  ;;  %v2784_v43 = vand.u32 2147483647, %v2780_v23 }
0x18b8   :  { %3697 = vst.msk [vmem:[#allocation8 + $0x6] sm:$0x3] %vm1337_vm5, %v6233_v52  ;;  %v3633_v61 = vmul.f32 %v6077_v8, %v6233_v52  ;;  %v3051_v8 = vadd.f32 %v6121_v63, %v5229_v12 }
0x18b9   :  { %v2788_v46 = vadd.f32 1e-08, %v2784_v43  ;;  %v3066_v43 = vmul.f32 %v6250_v20, %v6250_v20 }
0x18ba   :  { %v3643_v25 = vsel %vm1337_vm5, %v3633_v61, 0.0  ;;  %v6652_v61 = vld [vmem:[#allocation21_spill] sm:$0xff] }
0x18bd   :  { %3122 = vrot.lane.b32.xlu1 %v5879_v56, %s4551_s30  ;;  %v2771_v56 = vsub.f32 1.0, %v2767_v42 }
0x18cd   :  { %3120 = vrot.lane.b32.xlu0 %v5873_v57, %s4551_s30  ;;  %v2775_v57 = vmul.f32 %v2771_v56, %v5295_v15 }
0x18cf   :  { %v2779_v31 = vadd.f32 1.0, %v2775_v57 }
0x18d1   :  { %3124 = vrot.lane.b32.xlu0 %v5886_v16, %s4551_s30  ;;  %v2778_v16 = vadd.f32 1.0, %v2774_v21  ;;  %v2783_v24 = vand.u32 2147483647, %v2779_v31 }
0x18d3   :  { %v2782_v27 = vand.u32 2147483647, %v2778_v16  ;;  %v2787_v50 = vadd.f32 1e-08, %v2783_v24  ;;  %v3348_v24 = vadd.f32 %v6210_v26, %v5229_v12 }
0x18d5   :  { %3136 = vrot.lane.b32.xlu0 %v3060_v53, %s4553_s4  ;;  %v2786_v62 = vadd.f32 1e-08, %v2782_v27  ;;  %4476 = vlog2.f32 %v2787_v50 }
0x18d7   :  { %4478 = vlog2.f32 %v2786_v62 }
0x18d8   :  { %4480 = vtanh.f32 %v3051_v8 }
0x18d9   :  { %3140 = vrot.lane.b32.xlu0 %v3062_v44, %s4553_s4 }
0x18dd   :  { %3403 = vrot.lane.b32.xlu0 %v6001_v22, %s4551_s30  ;;  %v3347_v22 = vadd.f32 %v6205_v55, %v5229_v12 }
0x18df   :  { %4482 = vtanh.f32 %v3347_v22 }
0x18e0   :  { %4484 = vlog2.f32 %v2788_v46 }
0x18e1   :  { %3644 = vadd.xlane.f32.xlu1 %v3643_v25  ;;  %3407 = vrot.lane.b32.xlu0 %v6015_v39, %s4551_s30  ;;  %v6280_v39 = vpop.eup %4474 }
0x18e2   :  { %v4477_v63 = vpop.eup %4476  ;;  %v3057_v55 = vmul.f32 %v6186_v59, %v6280_v39 }
0x18e3   :  { %v2794_v4 = vmul.f32 0.6931472, %v4477_v63 }
0x18e4   :  { %v3061_v53 = vadd.f32 %v3057_v55, %v5938_v60 }
0x18e5   :  { %3419 = vrot.lane.b32.xlu0 %v6029_v2, %s4551_s30  ;;  %v4479_v2 = vpop.eup %4478 }
0x18e6   :  { %v6287_v51 = vpop.eup %4480 }
0x18e7   :  { %v3059_v14 = vmul.f32 %v6186_v59, %v6287_v51 }
0x18e9   :  { %3704 = vrot.lane.b32.xlu0 %v6127_v40, %s4551_s30  ;;  %v2792_v40 = vmul.f32 0.6931472, %v4479_v2  ;;  %v6293_v58 = vpop.eup %4482 }
0x18ea   :  { %v4485_v57 = vpop.eup %4484 }
0x18eb   :  { %v2796_v21 = vmul.f32 0.6931472, %v4485_v57 }
0x18ed   :  { %3708 = vrot.lane.b32.xlu0 %v6144_v0, %s4551_s30 }
0x18ef   :  { %v3343_v32 = vpop.xlane.xlu0 %3342 }
0x18f0   :  { %v3349_v3 = vadd.f32 %v3343_v32, %v5229_v12  ;;  %v3346_v42 = vpop.xlane.xlu1 %3345 }
0x18f1   :  { %3423 = vrot.lane.b32.xlu0 %v6044_v11, %s4551_s30  ;;  %v3350_v27 = vadd.f32 %v3346_v42, %v5229_v12 }
0x18f2   :  { %4486 = vtanh.f32 %v3349_v3  ;;  %3126 = vrot.lane.b32.xlu1 %v5892_v38, %s4551_s30 }
0x18f3   :  { %v2840_v0 = vpop.permute.xlu0 %2839  ;;  %4488 = vtanh.f32 %v3348_v24 }
0x18f4   :  { %v2858_v56 = vsel %vm1659_vm8, %v6057_v6, %v2840_v0  ;;  %v2842_v28 = vpop.permute.xlu1 %2841  ;;  %4490 = vtanh.f32 %v3350_v27 }
0x18f5   :  { %v2862_v11 = vsel %vm1664_vm9, %v2858_v56, %v2792_v40  ;;  %v2859_v38 = vsel %vm1659_vm8, %v6062_v37, %v2842_v28  ;;  %3718 = vrot.lane.b32.xlu0 %v6154_v10, %s4551_s30  ;;  %v3355_v37 = vmul.f32 %v6186_v59, %v6293_v58  ;;  %v3063_v10 = vadd.f32 %v3059_v14, %v5948_v5 }
0x18f6   :  { %3842 = vst.msk [vmem:[%s6579_s16 + $0x22] sm:$0x3] %vm1669_vm10, %v2862_v11  ;;  %v2863_v6 = vsel %vm1664_vm9, %v2859_v38, %v2794_v4  ;;  %3138 = vrot.lane.b32.xlu1 %v3061_v53, %s4553_s4 }
0x18f7   :  { %3843 = vst.msk [vmem:[%s6579_s16 + $0x24] sm:$0x3] %vm1669_vm10, %v2863_v6  ;;  %v3359_v16 = vadd.f32 %v3355_v37, %v6090_v34  ;;  %v3105_v32 = vpop.permute.xlu0 %3104 }
0x18f8   :  { %v2844_v17 = vpop.permute.xlu1 %2843 }
0x18f9   :  { %v2860_v44 = vsel %vm1659_vm8, %v6025_v47, %v2844_v17  ;;  %3722 = vrot.lane.b32.xlu0 %v6160_v45, %s4551_s30 }
0x18fa   :  { %v2864_v31 = vsel %vm1664_vm9, %v2860_v44, %v2796_v21  ;;  %3142 = vrot.lane.b32.xlu1 %v3063_v10, %s4553_s4 }
0x18fb   :  { %3844 = vst.msk [vmem:[%s6579_s16 + $0x26] sm:$0x3] %vm1669_vm10, %v2864_v31  ;;  %v3109_v0 = vpop.permute.xlu0 %3108  ;;  %v3148_v31 = vsel %vm1650_vm7, %v5933_v9, %v3105_v32 }
0x18fc   :  { %v6329_v49 = vpop.eup %4486  ;;  %v6371_v22 = vpop.permute.xlu1 %3106 }
0x18fd   :  { %3435 = vrot.lane.b32.xlu0 %v3359_v16, %s4553_s4  ;;  %v3357_v47 = vmul.f32 %v6186_v59, %v6329_v49  ;;  %v6351_v23 = vpop.eup %4488  ;;  %v3365_v32 = vmul.f32 %v6329_v49, %v6329_v49 }
0x18fe   :  { %3405 = vrot.lane.b32.xlu1 %v6010_v33, %s4551_s30  ;;  %v6653_v33 = vld [vmem:[#allocation22_spill] sm:$0xff]  ;;  %v6357_v26 = vpop.eup %4490 }
0x18ff   :  { %v3361_v45 = vadd.f32 %v3357_v47, %v6100_v29  ;;  %v3358_v50 = vmul.f32 %v6186_v59, %v6357_v26 }
0x1900   :  { %v6374_v63 = vpop.permute.xlu1 %3110 }
0x1901   :  { %3439 = vrot.lane.b32.xlu0 %v3361_v45, %s4553_s4  ;;  %v3362_v62 = vadd.f32 %v3358_v50, %v6103_v35  ;;  %v3150_v50 = vsel %vm1650_vm7, %v5943_v54, %v3109_v0 }
0x1902   :  { %3409 = vrot.lane.b32.xlu1 %v6652_v61, %s4551_s30 }
0x1906   :  { %3702 = vrot.lane.b32.xlu1 %v6135_v7, %s4551_s30  ;;  %v3356_v7 = vmul.f32 %v6186_v59, %v6351_v23 }
0x190a   :  { %3706 = vrot.lane.b32.xlu1 %v6140_v48, %s4551_s30  ;;  %v6655_v48 = vld [vmem:[#allocation14_spill] sm:$0xff] }
0x190b   :  { %v3360_v25 = vadd.f32 %v3356_v7, %v6655_v48 }
0x190e   :  { %3421 = vrot.lane.b32.xlu1 %v6653_v33, %s4551_s30  ;;  %v3065_v33 = vmul.f32 %v6280_v39, %v6280_v39 }
0x1912   :  { %3425 = vrot.lane.b32.xlu1 %v6654_v41, %s4551_s30 }
0x1916   :  { %3720 = vrot.lane.b32.xlu1 %v6148_v19, %s4551_s30  ;;  %v3064_v19 = vmul.f32 %v6244_v13, %v6244_v13 }
0x1918   :  { %v3068_v8 = vsub.f32 1.0, %v3064_v19 }
0x191a   :  { %3724 = vrot.lane.b32.xlu1 %v6166_v1, %s4551_s30  ;;  %v3070_v1 = vsub.f32 1.0, %v3066_v43  ;;  %v3072_v46 = vmul.f32 %v3068_v8, %v5295_v15  ;;  %v3069_v43 = vsub.f32 1.0, %v3065_v33 }
0x191c   :  { %v3076_v2 = vadd.f32 1.0, %v3072_v46  ;;  %v3074_v3 = vmul.f32 %v3070_v1, %v5295_v15  ;;  %v3067_v1 = vmul.f32 %v6287_v51, %v6287_v51  ;;  %v3369_v51 = vsub.f32 1.0, %v3365_v32 }
0x191e   :  { %3437 = vrot.lane.b32.xlu1 %v3360_v25, %s4553_s4  ;;  %v3080_v40 = vand.u32 2147483647, %v3076_v2  ;;  %v3078_v13 = vadd.f32 1.0, %v3074_v3  ;;  %v3363_v25 = vmul.f32 %v6293_v58, %v6293_v58  ;;  %v3071_v3 = vsub.f32 1.0, %v3067_v1 }
0x1920   :  { %v3084_v56 = vadd.f32 1e-08, %v3080_v40  ;;  %v3082_v20 = vand.u32 2147483647, %v3078_v13  ;;  %v3367_v54 = vsub.f32 1.0, %v3363_v25  ;;  %v3075_v0 = vmul.f32 %v3071_v3, %v5295_v15 }
0x1921   :  { %v3149_v25 = vsel %vm1650_vm7, %v5938_v60, %v6371_v22  ;;  %v3364_v60 = vmul.f32 %v6351_v23, %v6351_v23  ;;  %v3151_v22 = vsel %vm1650_vm7, %v5948_v5, %v6374_v63 }
0x1922   :  { %3441 = vrot.lane.b32.xlu1 %v3362_v62, %s4553_s4  ;;  %v3086_v53 = vadd.f32 1e-08, %v3082_v20  ;;  %v3373_v20 = vmul.f32 %v3369_v51, %v5295_v15 }
0x1939   :  { %v3639_v42 = vpop.xlane.xlu1 %3638 }
0x193a   :  { %v3647_v55 = vadd.f32 %v3639_v42, %v5229_v12  ;;  %v3073_v42 = vmul.f32 %v3069_v43, %v5295_v15 }
0x193c   :  { %4492 = vtanh.f32 %v3647_v55  ;;  %v3371_v55 = vmul.f32 %v3367_v54, %v5295_v15  ;;  %v3077_v13 = vadd.f32 1.0, %v3073_v42 }
0x193d   :  { %4494 = vlog2.f32 %v3084_v56 }
0x193e   :  { %v3375_v56 = vadd.f32 1.0, %v3371_v55 }
0x1940   :  { %v3636_v4 = vpop.xlane.xlu0 %3635 }
0x1941   :  { %v3646_v28 = vadd.f32 %v3636_v4, %v5229_v12  ;;  %v3081_v4 = vand.u32 2147483647, %v3077_v13 }
0x1943   :  { %4496 = vtanh.f32 %v3646_v28  ;;  %v3079_v28 = vadd.f32 1.0, %v3075_v0 }
0x1944   :  { %v3642_v14 = vpop.xlane.xlu0 %3641  ;;  %4498 = vlog2.f32 %v3086_v53  ;;  %v3379_v53 = vand.u32 2147483647, %v3375_v56 }
0x1945   :  { %v3648_v57 = vadd.f32 %v3642_v14, %v5229_v12  ;;  %v3377_v14 = vadd.f32 1.0, %v3373_v20  ;;  %v3368_v20 = vsub.f32 1.0, %v3364_v60 }
0x1946   :  { %v6380_v11 = vpop.eup %4492 }
0x1947   :  { %4500 = vtanh.f32 %v3648_v57  ;;  %v3655_v38 = vmul.f32 %v6186_v59, %v6380_v11  ;;  %v4495_v21 = vpop.eup %4494 }
0x1948   :  { %v3121_v6 = vpop.permute.xlu0 %3120  ;;  %v3089_v45 = vmul.f32 0.6931472, %v4495_v21  ;;  %v3381_v21 = vand.u32 2147483647, %v3377_v14 }
0x1949   :  { %v3659_v37 = vadd.f32 %v3655_v38, %v6208_v30  ;;  %v3152_v47 = vsel %vm1334_vm6, %v3148_v31, %v3121_v6  ;;  %v3085_v38 = vadd.f32 1e-08, %v3081_v4  ;;  %v3083_v6 = vand.u32 2147483647, %v3079_v28  ;;  %v3123_v31 = vpop.permute.xlu1 %3122 }
0x194b   :  { %3736 = vrot.lane.b32.xlu1 %v3659_v37, %s4553_s4  ;;  %v3383_v37 = vadd.f32 1e-08, %v3379_v53  ;;  %4502 = vlog2.f32 %v3085_v38 }
0x194c   :  { %v3125_v17 = vpop.permute.xlu0 %3124 }
0x194d   :  { %v6386_v10 = vpop.eup %4496  ;;  %v3154_v39 = vsel %vm1334_vm6, %v3150_v50, %v3125_v17  ;;  %4504 = vlog2.f32 %v3383_v37  ;;  %v3153_v50 = vsel %vm1334_vm6, %v3149_v25, %v3123_v31 }
0x194e   :  { %v3654_v44 = vmul.f32 %v6186_v59, %v6386_v10  ;;  %v4499_v16 = vpop.eup %4498 }
0x194f   :  { %v3093_v62 = vmul.f32 0.6931472, %v4499_v16  ;;  %v3385_v16 = vadd.f32 1e-08, %v3381_v21 }
0x1950   :  { %v3137_v61 = vpop.permute.xlu0 %3136  ;;  %v3658_v24 = vadd.f32 %v3654_v44, %v6218_v18  ;;  %v3087_v44 = vadd.f32 1e-08, %v3083_v6 }
0x1951   :  { %v6394_v27 = vpop.eup %4500  ;;  %v3156_v41 = vsel %vm1659_vm8, %v3152_v47, %v3137_v61 }
0x1952   :  { %v3160_v7 = vsel %vm1664_vm9, %v3156_v41, %v3089_v45  ;;  %3734 = vrot.lane.b32.xlu0 %v3658_v24, %s4553_s4  ;;  %v3656_v9 = vmul.f32 %v6186_v59, %v6394_v27  ;;  %4506 = vlog2.f32 %v3087_v44 }
0x1953   :  { %3849 = vst.msk [vmem:[%s6579_s16 + $0x28] sm:$0x3] %vm1669_vm10, %v3160_v7  ;;  %4508 = vlog2.f32 %v3385_v16 }
0x1954   :  { %v3141_v19 = vpop.permute.xlu0 %3140  ;;  %v3660_v8 = vadd.f32 %v3656_v9, %v6225_v36 }
0x1955   :  { %v3158_v58 = vsel %vm1659_vm8, %v3154_v39, %v3141_v19  ;;  %v4503_v41 = vpop.eup %4502 }
0x1956   :  { %v3162_v46 = vsel %vm1664_vm9, %v3158_v58, %v3093_v62  ;;  %3738 = vrot.lane.b32.xlu0 %v3660_v8, %s4553_s4  ;;  %v3091_v39 = vmul.f32 0.6931472, %v4503_v41  ;;  %v3663_v41 = vmul.f32 %v6380_v11, %v6380_v11  ;;  %v3662_v11 = vmul.f32 %v6386_v10, %v6386_v10 }
0x1957   :  { %3851 = vst.msk [vmem:[%s6579_s16 + $0x2c] sm:$0x3] %vm1669_vm10, %v3162_v46  ;;  %v4505_v9 = vpop.eup %4504  ;;  %v3664_v10 = vmul.f32 %v6394_v27, %v6394_v27 }
0x1958   :  { %v3404_v2 = vpop.permute.xlu0 %3403  ;;  %v3388_v58 = vmul.f32 0.6931472, %v4505_v9 }
0x195c   :  { %v3408_v40 = vpop.permute.xlu0 %3407  ;;  %v4507_v19 = vpop.eup %4506 }
0x195d   :  { %v4509_v54 = vpop.eup %4508  ;;  %v3095_v3 = vmul.f32 0.6931472, %v4507_v19  ;;  %v3449_v23 = vsel %vm1650_vm7, %v6100_v29, %v3408_v40  ;;  %v3366_v29 = vmul.f32 %v6357_v26, %v6357_v26  ;;  %v3372_v26 = vmul.f32 %v3368_v20, %v5295_v15 }
0x195e   :  { %v3392_v13 = vmul.f32 0.6931472, %v4509_v54 }
0x195f   :  { %v3376_v14 = vadd.f32 1.0, %v3372_v26 }
0x1960   :  { %v3420_v49 = vpop.permute.xlu0 %3419 }
0x1961   :  { %v3380_v37 = vand.u32 2147483647, %v3376_v14 }
0x1963   :  { %v3384_v31 = vadd.f32 1e-08, %v3380_v37 }
0x1964   :  { %v6428_v57 = vpop.permute.xlu0 %3704 }
0x1968   :  { %v6430_v17 = vpop.permute.xlu0 %3708 }
0x1969   :  { %v3749_v9 = vsel %vm1650_vm7, %v6233_v52, %v6430_v17 }
0x196c   :  { %v3424_v47 = vpop.permute.xlu0 %3423 }
0x196d   :  { %v3453_v63 = vsel %vm1334_vm6, %v3449_v23, %v3424_v47 }
0x196e   :  { %v3645_v45 = vpop.xlane.xlu1 %3644 }
0x196f   :  { %v3649_v61 = vadd.f32 %v3645_v45, %v5229_v12  ;;  %v3447_v12 = vsel %vm1650_vm7, %v6090_v34, %v3404_v2 }
0x1970   :  { %v6433_v24 = vpop.permute.xlu0 %3718  ;;  %v3451_v43 = vsel %vm1334_vm6, %v3447_v12, %v3420_v49 }
0x1971   :  { %4510 = vtanh.f32 %v3649_v61 }
0x1972   :  { %v3127_v33 = vpop.permute.xlu1 %3126  ;;  %4512 = vlog2.f32 %v3384_v31 }
0x1973   :  { %v3155_v32 = vsel %vm1334_vm6, %v3151_v22, %v3127_v33  ;;  %v3666_v22 = vsub.f32 1.0, %v3662_v11 }
0x1974   :  { %v6435_v7 = vpop.permute.xlu0 %3722 }
0x1976   :  { %v3139_v62 = vpop.permute.xlu1 %3138 }
0x1977   :  { %v3157_v8 = vsel %vm1659_vm8, %v3153_v50, %v3139_v62  ;;  %v3667_v62 = vsub.f32 1.0, %v3663_v41 }
0x1978   :  { %v3161_v1 = vsel %vm1664_vm9, %v3157_v8, %v3091_v39  ;;  %v3436_v46 = vpop.permute.xlu0 %3435 }
0x1979   :  { %3850 = vst.msk [vmem:[%s6579_s16 + $0x2a] sm:$0x3] %vm1669_vm10, %v3161_v1  ;;  %v3455_v34 = vsel %vm1659_vm8, %v3451_v43, %v3436_v46  ;;  %v3671_v17 = vmul.f32 %v3667_v62, %v5295_v15 }
0x197a   :  { %v3459_v2 = vsel %vm1664_vm9, %v3455_v34, %v3388_v58  ;;  %v3143_v42 = vpop.permute.xlu1 %3142 }
0x197b   :  { %v6458_v51 = vpop.eup %4510  ;;  %3857 = vst.msk [vmem:[%s6579_s16 + $0x30] sm:$0x3] %vm1669_vm10, %v3459_v2  ;;  %v3159_v5 = vsel %vm1659_vm8, %v3155_v32, %v3143_v42  ;;  %v3675_v2 = vadd.f32 1.0, %v3671_v17 }
0x197c   :  { %v3163_v55 = vsel %vm1664_vm9, %v3159_v5, %v3095_v3  ;;  %v3440_v0 = vpop.permute.xlu0 %3439  ;;  %v3657_v56 = vmul.f32 %v6186_v59, %v6458_v51  ;;  %v3370_v59 = vsub.f32 1.0, %v3366_v29  ;;  %v4513_v50 = vpop.eup %4512  ;;  %v3670_v3 = vmul.f32 %v3666_v22, %v5295_v15 }
0x197d   :  { %3852 = vst.msk [vmem:[%s6579_s16 + $0x2e] sm:$0x3] %vm1669_vm10, %v3163_v55  ;;  %v3457_v40 = vsel %vm1659_vm8, %v3453_v63, %v3440_v0  ;;  %v3390_v8 = vmul.f32 0.6931472, %v4513_v50  ;;  %v3679_v42 = vand.u32 2147483647, %v3675_v2  ;;  %v3747_v29 = vsel %vm1650_vm7, %v6208_v30, %v6428_v57 }
0x197e   :  { %v3461_v49 = vsel %vm1664_vm9, %v3457_v40, %v3392_v13  ;;  %v3406_v4 = vpop.permute.xlu1 %3405  ;;  %v3661_v28 = vadd.f32 %v3657_v56, %v6233_v52  ;;  %v3374_v38 = vmul.f32 %v3370_v59, %v5295_v15  ;;  %v3674_v23 = vadd.f32 1.0, %v3670_v3 }
0x197f   :  { %3859 = vst.msk [vmem:[%s6579_s16 + $0x34] sm:$0x3] %vm1669_vm10, %v3461_v49  ;;  %v3448_v19 = vsel %vm1650_vm7, %v6655_v48, %v3406_v4  ;;  %v3683_v63 = vadd.f32 1e-08, %v3679_v42 }
0x1980   :  { %3740 = vrot.lane.b32.xlu1 %v3661_v28, %s4553_s4  ;;  %v3378_v21 = vadd.f32 1.0, %v3374_v38  ;;  %v3678_v55 = vand.u32 2147483647, %v3674_v23 }
0x1982   :  { %v3410_v53 = vpop.permute.xlu1 %3409  ;;  %v3382_v16 = vand.u32 2147483647, %v3378_v21  ;;  %v3682_v13 = vadd.f32 1e-08, %v3678_v55 }
0x1983   :  { %v3450_v46 = vsel %vm1650_vm7, %v6103_v35, %v3410_v53  ;;  %v3668_v35 = vsub.f32 1.0, %v3664_v10 }
0x1984   :  { %v3386_v45 = vadd.f32 1e-08, %v3382_v16 }
0x1985   :  { %v3672_v5 = vmul.f32 %v3668_v35, %v5295_v15 }
0x1986   :  { %v3703_v6 = vpop.permute.xlu1 %3702  ;;  %4514 = vlog2.f32 %v3386_v45 }
0x1987   :  { %v3676_v27 = vadd.f32 1.0, %v3672_v5  ;;  %4516 = vlog2.f32 %v3683_v63  ;;  %v3746_v53 = vsel %vm1650_vm7, %v6218_v18, %v3703_v6 }
0x1988   :  { %4518 = vlog2.f32 %v3682_v13  ;;  %v3750_v30 = vsel %vm1334_vm6, %v3746_v53, %v6433_v24 }
0x1989   :  { %v3680_v0 = vand.u32 2147483647, %v3676_v27 }
0x198a   :  { %v6487_v44 = vpop.permute.xlu1 %3706 }
0x198b   :  { %v3684_v56 = vadd.f32 1e-08, %v3680_v0  ;;  %v3748_v37 = vsel %vm1650_vm7, %v6225_v36, %v6487_v44  ;;  %v3665_v36 = vmul.f32 %v6458_v51, %v6458_v51 }
0x198c   :  { %v3752_v16 = vsel %vm1334_vm6, %v3748_v37, %v6435_v7 }
0x198d   :  { %4520 = vlog2.f32 %v3684_v56  ;;  %v3669_v44 = vsub.f32 1.0, %v3665_v36 }
0x198e   :  { %v3422_v47 = vpop.permute.xlu1 %3421 }
0x198f   :  { %v3452_v12 = vsel %vm1334_vm6, %v3448_v19, %v3422_v47  ;;  %v3673_v45 = vmul.f32 %v3669_v44, %v5295_v15 }
0x1990   :  { %v4515_v1 = vpop.eup %4514 }
0x1991   :  { %v3394_v54 = vmul.f32 0.6931472, %v4515_v1  ;;  %v4517_v20 = vpop.eup %4516 }
0x1992   :  { %v3426_v61 = vpop.permute.xlu1 %3425  ;;  %v3689_v49 = vmul.f32 0.6931472, %v4517_v20  ;;  %v4519_v26 = vpop.eup %4518 }
0x1993   :  { %v3454_v48 = vsel %vm1334_vm6, %v3450_v46, %v3426_v61  ;;  %v3687_v14 = vmul.f32 0.6931472, %v4519_v26  ;;  %v3677_v61 = vadd.f32 1.0, %v3673_v45 }
0x1996   :  { %v3721_v33 = vpop.permute.xlu1 %3720 }
0x1997   :  { %v3751_v40 = vsel %vm1334_vm6, %v3747_v29, %v3721_v33  ;;  %v4521_v57 = vpop.eup %4520  ;;  %v3681_v33 = vand.u32 2147483647, %v3677_v61 }
0x1998   :  { %v3691_v18 = vmul.f32 0.6931472, %v4521_v57 }
0x1999   :  { %v3685_v41 = vadd.f32 1e-08, %v3681_v33 }
0x199a   :  { %v3725_v25 = vpop.permute.xlu1 %3724 }
0x199b   :  { %v6495_v39 = vsel %vm1334_vm6, %v3749_v9, %v3725_v25  ;;  %4522 = vlog2.f32 %v3685_v41 }
0x199e   :  { %v3438_v43 = vpop.permute.xlu1 %3437 }
0x199f   :  { %v3456_v58 = vsel %vm1659_vm8, %v3452_v12, %v3438_v43 }
0x19a0   :  { %v3460_v52 = vsel %vm1664_vm9, %v3456_v58, %v3390_v8 }
0x19a1   :  { %3858 = vst.msk [vmem:[%s6579_s16 + $0x32] sm:$0x3] %vm1669_vm10, %v3460_v52 }
0x19a2   :  { %v3442_v60 = vpop.permute.xlu1 %3441 }
0x19a3   :  { %v3458_v34 = vsel %vm1659_vm8, %v3454_v48, %v3442_v60 }
0x19a4   :  { %v3462_v32 = vsel %vm1664_vm9, %v3458_v34, %v3394_v54 }
0x19a5   :  { %3860 = vst.msk [vmem:[%s6579_s16 + $0x36] sm:$0x3] %vm1669_vm10, %v3462_v32  ;;  %v4523_v7 = vpop.eup %4522 }
0x19a6   :  { %v3693_v9 = vmul.f32 0.6931472, %v4523_v7 }
0x19bd   :  { %v3737_v4 = vpop.permute.xlu1 %3736 }
0x19be   :  { %v3755_v28 = vsel %vm1659_vm8, %v3751_v40, %v3737_v4 }
0x19bf   :  { %v3759_v59 = vsel %vm1664_vm9, %v3755_v28, %v3689_v49 }
0x19c0   :  { %3866 = vst.msk [vmem:[%s6579_s16 + $0x3a] sm:$0x3] %vm1669_vm10, %v3759_v59 }
0x19c4   :  { %v3735_v38 = vpop.permute.xlu0 %3734 }
0x19c5   :  { %v3754_v21 = vsel %vm1659_vm8, %v3750_v30, %v3735_v38 }
0x19c6   :  { %v3758_v31 = vsel %vm1664_vm9, %v3754_v21, %v3687_v14 }
0x19c7   :  { %3865 = vst.msk [vmem:[%s6579_s16 + $0x38] sm:$0x3] %vm1669_vm10, %v3758_v31 }
0x19c8   :  { %v3739_v6 = vpop.permute.xlu0 %3738 }
0x19c9   :  { %v3756_v24 = vsel %vm1659_vm8, %v3752_v16, %v3739_v6 }
0x19ca   :  { %v3760_v47 = vsel %vm1664_vm9, %v3756_v24, %v3691_v18 }
0x19cb   :  { %3867 = vst.msk [vmem:[%s6579_s16 + $0x3c] sm:$0x3] %vm1669_vm10, %v3760_v47 }
0x19f2   :  { %v3741_v25 = vpop.permute.xlu1 %3740 }
0x19f3   :  { %v3757_v50 = vsel %vm1659_vm8, %v6495_v39, %v3741_v25 }
0x19f4   :  { %v3761_v62 = vsel %vm1664_vm9, %v3757_v50, %v3693_v9 }
0x19f5   :  { %3868 = vst.msk [vmem:[%s6579_s16 + $0x3e] sm:$0x3] %vm1669_vm10, %v3761_v62 }
0x19f6   :  { %3771 = vsyncpa [#allocation10], 1 }

</bundles_post_ra>
